<compile_context>
chip_gen: v7x
topology: tpu7x:2x2x1
jax: 0.10.0
libtpu: 0.0.40
codegen_flags: <defaults>
</compile_context>

<pallas_src>
import functools

import jax
import jax.numpy as jnp
from jax import lax
from jax.experimental import pallas as pl
from jax.experimental.pallas import tpu as pltpu

# ----------------------------- configuration --------------------------------
IN_CHANNELS = 3
IMG_SIZE = 8
PATCH_SIZE = 2
EMBED = 32          # embedding_size (small test config)
NUM_HEADS = 4
NUM_LAYERS = 2
N_CLASSES = 3
DIM_FF = 2048       # nn.TransformerEncoderLayer default dim_feedforward
BATCH = 2
LN_EPS = 1e-5

NUM_PATCHES = (IMG_SIZE // PATCH_SIZE) ** 2            # 16
SEQ_LEN = NUM_PATCHES + 1                              # 17 (cls + patches)
S_PAD = 24                                             # 17 padded to sublane mult
PATCH_K = IN_CHANNELS * PATCH_SIZE * PATCH_SIZE        # 12
OUT_PAD = 128                                          # lane-dense classifier out


# ------------------------------- kernel --------------------------------------
def _layernorm(x, g, b):
    mu = jnp.mean(x, axis=-1, keepdims=True)
    var = jnp.mean(jnp.square(x - mu), axis=-1, keepdims=True)
    return (x - mu) * lax.rsqrt(var + LN_EPS) * g + b


def vit_kernel(xpt_ref, wev_ref, wod_ref, sel_tok_ref, base_ref,
               ih_ref, iht_ref, sel_cls_ref,
               wq_ref, wk_ref, wv_ref, wo_ref,
               bq_ref, bk_ref, bv_ref, bo_ref,
               g1_ref, be1_ref, g2_ref, be2_ref,
               w1_ref, b1_ref, w2_ref, b2_ref,
               wc_ref, bc_ref, out_ref, *, num_layers, s_pad):
    dot = lambda a, b: jnp.dot(a, b, preferred_element_type=jnp.float32)

    # ---- patch embedding: conv-as-matmul + faithful torch .view() scramble ---
    # T_b[q, 16j+i] = Y[b, 2q+j, patch i]  -> rows of T_b are (even|odd)
    # conv-channel rows of Y_b, obtained directly as matmuls (no reshape).
    wev = wev_ref[...]                         # (E/2, K)  even-channel weights^T
    wod = wod_ref[...]                         # (E/2, K)  odd-channel weights^T
    n_batch = xpt_ref.shape[0]
    t_blocks = []
    for b in range(n_batch):
        xpt_b = xpt_ref[b]                     # (K, P)
        t_blocks.append(jnp.concatenate([dot(wev, xpt_b), dot(wod, xpt_b)],
                                        axis=1))          # (P, E)
    stacked_t = jnp.concatenate(t_blocks, axis=0)          # (B*P, E)
    # scatter patch tokens into padded rows; base folds cls, pos-enc, conv bias
    h = dot(sel_tok_ref[...], stacked_t) + base_ref[...]   # (B*S_PAD, E)

    ih = ih_ref[...]                           # (E, H) head-sum indicator * scale
    iht = iht_ref[...]                         # (H, E) head-broadcast indicator

    for l in range(num_layers):
        # ---- multi-head self-attention (attention seq == torch batch) ----
        q = dot(h, wq_ref[l]) + bq_ref[l]
        k = dot(h, wk_ref[l]) + bk_ref[l]
        v = dot(h, wv_ref[l]) + bv_ref[l]
        # logits/values for target seq-pos (i+j) % B, vectorized over all rows:
        # rotate K/V by j*S_PAD along the sublane (row) axis.
        scores, vals = [], []
        for j in range(n_batch):
            if j == 0:
                kj, vj = k, v
            else:
                off = j * s_pad
                kj = jnp.concatenate([k[off:], k[:off]], axis=0)
                vj = jnp.concatenate([v[off:], v[:off]], axis=0)
            scores.append(dot(q * kj, ih))                  # (B*S_PAD, H)
            vals.append(vj)
        m = functools.reduce(jnp.maximum, scores)
        exps = [jnp.exp(s - m) for s in scores]
        rden = pl.reciprocal(functools.reduce(jnp.add, exps), approx=True)
        attn = functools.reduce(
            jnp.add,
            [dot(e * rden, iht) * vj for e, vj in zip(exps, vals)])
        attn = dot(attn, wo_ref[l]) + bo_ref[l]
        x1 = _layernorm(h + attn, g1_ref[l], be1_ref[l])    # post-norm layer
        # ---- feed-forward (ReLU); dropout is eval-mode identity ----
        hid = jnp.maximum(dot(x1, w1_ref[l]) + b1_ref[l], 0.0)
        ffn = dot(hid, w2_ref[l]) + b2_ref[l]
        h = _layernorm(x1 + ffn, g2_ref[l], be2_ref[l])

    # ---- classifier head on the cls-token rows (lane-dense padded output) ---
    cls_h = dot(sel_cls_ref[...], h)                        # (B, E)
    out_ref[...] = dot(cls_h, wc_ref[...]) + bc_ref[...]    # (B, OUT_PAD)


# ------------------------------ host glue ------------------------------------
def make_positional_encodings(embedding_size, max_seq_len):
    pos = jnp.arange(max_seq_len, dtype=jnp.float32)[:, None]
    dim = jnp.arange(embedding_size // 2, dtype=jnp.float32)[None, :]
    exponents = (2.0 * dim) / embedding_size
    trig_args = pos / (10000.0 ** exponents)
    pe = jnp.zeros((max_seq_len, embedding_size), jnp.float32)
    pe = pe.at[:, 0::2].set(jnp.sin(trig_args))
    pe = pe.at[:, 1::2].set(jnp.cos(trig_args))
    return pe


def init_params(key):
    """Parameters in torch-equivalent shapes."""
    e, ff = EMBED, DIM_FF
    keys = iter(jax.random.split(key, 6 + 8 * NUM_LAYERS))

    def nrm(shape, scale=0.02):
        return (scale * jax.random.normal(next(keys), shape)).astype(jnp.float32)

    params = {
        'conv_w': nrm((e, IN_CHANNELS, PATCH_SIZE, PATCH_SIZE)),
        'conv_b': nrm((e,)),
        'cls_token': nrm((1, 1, e)),
        'pos_enc': make_positional_encodings(e, SEQ_LEN),
        'cls_w': nrm((N_CLASSES, e)),
        'cls_b': nrm((N_CLASSES,)),
        'layers': [],
    }
    for _ in range(NUM_LAYERS):
        params['layers'].append({
            'wqkv': nrm((3 * e, e)), 'bqkv': nrm((3 * e,)),
            'wo': nrm((e, e)), 'bo': nrm((e,)),
            'ln1_g': jnp.ones((e,), jnp.float32),
            'ln1_b': jnp.zeros((e,), jnp.float32),
            'ln2_g': jnp.ones((e,), jnp.float32),
            'ln2_b': jnp.zeros((e,), jnp.float32),
            'w1': nrm((ff, e)), 'b1': nrm((ff,)),
            'w2': nrm((e, ff)), 'b2': nrm((e,)),
        })
    return params


def pack_params(params):
    """One-time host-side repack: transpose weights, build selection/indicator
    matrices and the (cls + pos-enc + conv-bias) base block."""
    e, p = EMBED, NUM_PATCHES
    # The torch .view() scramble packs exactly 2 conv channels per token row
    # for this config (E == 2 * NUM_PATCHES).
    assert e == 2 * p, "scramble packing assumes embedding == 2 * num_patches"

    # conv as matmul; split into even/odd output channels, pre-transposed.
    w_mat = params['conv_w'].reshape(e, PATCH_K).T               # (K, E)
    w_even_t = w_mat[:, 0::2].T                                  # (E/2, K)
    w_odd_t = w_mat[:, 1::2].T                                   # (E/2, K)

    pos = params['pos_enc'][:SEQ_LEN]                            # (17, E)
    conv_b = params['conv_b']
    bias_t = jnp.concatenate(
        [jnp.repeat(conv_b[0::2][:, None], p, axis=1),
         jnp.repeat(conv_b[1::2][:, None], p, axis=1)], axis=1)  # (P, E)

    cls_row = params['cls_token'][0, 0] + pos[0]                 # (E,)
    patch_base = pos[1:SEQ_LEN] + bias_t                         # (P, E)

    base = jnp.zeros((BATCH * S_PAD, e), jnp.float32)
    sel_tok = jnp.zeros((BATCH * S_PAD, BATCH * p), jnp.float32)
    for b in range(BATCH):
        base = base.at[b * S_PAD].set(cls_row)
        base = base.at[b * S_PAD + 1:b * S_PAD + SEQ_LEN].set(patch_base)
        sel_tok = sel_tok.at[b * S_PAD + 1 + jnp.arange(p),
                             b * p + jnp.arange(p)].set(1.0)

    head = jnp.arange(e) // (e // NUM_HEADS)
    ind = (head[:, None] == jnp.arange(NUM_HEADS)[None, :]).astype(jnp.float32)
    scale = 1.0 / float(e // NUM_HEADS) ** 0.5
    ih = ind * scale                                             # scale folded in
    iht = ind.T                                                  # pure 0/1 broadcast

    sel_cls = jnp.zeros((BATCH, BATCH * S_PAD), jnp.float32)
    for b in range(BATCH):
        sel_cls = sel_cls.at[b, b * S_PAD].set(1.0)

    def stack(fn):
        return jnp.stack([fn(lp) for lp in params['layers']])

    packed = dict(
        w_even_t=w_even_t, w_odd_t=w_odd_t, sel_tok=sel_tok, base=base,
        ih=ih, iht=iht, sel_cls=sel_cls,
        wq_t=stack(lambda lp: lp['wqkv'][:e].T),
        wk_t=stack(lambda lp: lp['wqkv'][e:2 * e].T),
        wv_t=stack(lambda lp: lp['wqkv'][2 * e:].T),
        wo_t=stack(lambda lp: lp['wo'].T),
        bq=stack(lambda lp: lp['bqkv'][:e][None]),
        bk=stack(lambda lp: lp['bqkv'][e:2 * e][None]),
        bv=stack(lambda lp: lp['bqkv'][2 * e:][None]),
        bo=stack(lambda lp: lp['bo'][None]),
        g1=stack(lambda lp: lp['ln1_g'][None]),
        be1=stack(lambda lp: lp['ln1_b'][None]),
        g2=stack(lambda lp: lp['ln2_g'][None]),
        be2=stack(lambda lp: lp['ln2_b'][None]),
        w1_t=stack(lambda lp: lp['w1'].T),
        b1=stack(lambda lp: lp['b1'][None]),
        w2_t=stack(lambda lp: lp['w2'].T),
        b2=stack(lambda lp: lp['b2'][None]),
        wc_t=jnp.zeros((e, OUT_PAD), jnp.float32)
            .at[:, :N_CLASSES].set(params['cls_w'].T),
        bc=jnp.zeros((1, OUT_PAD), jnp.float32)
            .at[:, :N_CLASSES].set(params['cls_b']),
    )
    return packed


@jax.jit
def vit_forward(x, pk):
    bsz, c, hh, ww = x.shape
    hp, wp = hh // PATCH_SIZE, ww // PATCH_SIZE
    # (B, C, H, W) -> per-patch flattened pixels, transposed to (B, K, P)
    patches = x.reshape(bsz, c, hp, PATCH_SIZE, wp, PATCH_SIZE)
    patches = patches.transpose(0, 2, 4, 1, 3, 5).reshape(bsz, hp * wp, PATCH_K)
    xpt = patches.transpose(0, 2, 1).astype(jnp.float32)          # (B, K, P)

    kernel = functools.partial(vit_kernel, num_layers=NUM_LAYERS, s_pad=S_PAD)
    out = pl.pallas_call(
        kernel,
        out_shape=jax.ShapeDtypeStruct((bsz, OUT_PAD), jnp.float32),
        compiler_params=pltpu.CompilerParams(vmem_limit_bytes=32 * 1024 * 1024),
    )(xpt, pk['w_even_t'], pk['w_odd_t'], pk['sel_tok'], pk['base'],
      pk['ih'], pk['iht'], pk['sel_cls'],
      pk['wq_t'], pk['wk_t'], pk['wv_t'], pk['wo_t'],
      pk['bq'], pk['bk'], pk['bv'], pk['bo'],
      pk['g1'], pk['be1'], pk['g2'], pk['be2'],
      pk['w1_t'], pk['b1'], pk['w2_t'], pk['b2'],
      pk['wc_t'], pk['bc'])
    return out[:, :N_CLASSES]                                     # (B, 3)


# --------------------------------- main ---------------------------------------
if __name__ == "__main__":
    key = jax.random.PRNGKey(0)
    pkey, xkey = jax.random.split(key)
    params = init_params(pkey)
    packed = pack_params(params)
    x = jax.random.normal(xkey, (BATCH, IN_CHANNELS, IMG_SIZE, IMG_SIZE),
                          dtype=jnp.float32)

    logits = vit_forward(x, packed)
    jax.block_until_ready(logits)
    assert logits.shape == (BATCH, N_CLASSES)
    print("KERNEL_OK")
</pallas_src>

<mosaic_0001>
module attributes {stable_mosaic.version = 11 : i64} {
  func.func @vit_kernel(%arg0: memref<2x12x16xf32, #tpu.memory_space<vmem>>, %arg1: memref<16x12xf32, #tpu.memory_space<vmem>>, %arg2: memref<16x12xf32, #tpu.memory_space<vmem>>, %arg3: memref<48x32xf32, #tpu.memory_space<vmem>>, %arg4: memref<48x32xf32, #tpu.memory_space<vmem>>, %arg5: memref<32x4xf32, #tpu.memory_space<vmem>>, %arg6: memref<4x32xf32, #tpu.memory_space<vmem>>, %arg7: memref<2x48xf32, #tpu.memory_space<vmem>>, %arg8: memref<2x32x32xf32, #tpu.memory_space<vmem>>, %arg9: memref<2x32x32xf32, #tpu.memory_space<vmem>>, %arg10: memref<2x32x32xf32, #tpu.memory_space<vmem>>, %arg11: memref<2x32x32xf32, #tpu.memory_space<vmem>>, %arg12: memref<2x1x32xf32, #tpu.memory_space<vmem>>, %arg13: memref<2x1x32xf32, #tpu.memory_space<vmem>>, %arg14: memref<2x1x32xf32, #tpu.memory_space<vmem>>, %arg15: memref<2x1x32xf32, #tpu.memory_space<vmem>>, %arg16: memref<2x1x32xf32, #tpu.memory_space<vmem>>, %arg17: memref<2x1x32xf32, #tpu.memory_space<vmem>>, %arg18: memref<2x1x32xf32, #tpu.memory_space<vmem>>, %arg19: memref<2x1x32xf32, #tpu.memory_space<vmem>>, %arg20: memref<2x32x2048xf32, #tpu.memory_space<vmem>>, %arg21: memref<2x1x2048xf32, #tpu.memory_space<vmem>>, %arg22: memref<2x2048x32xf32, #tpu.memory_space<vmem>>, %arg23: memref<2x1x32xf32, #tpu.memory_space<vmem>>, %arg24: memref<32x128xf32, #tpu.memory_space<vmem>>, %arg25: memref<1x128xf32, #tpu.memory_space<vmem>>, %arg26: memref<2x128xf32, #tpu.memory_space<vmem>>) attributes {dimension_semantics = [], scalar_prefetch = 0 : i64, scratch_operands = 0 : i64, tpu.core_type = #tpu.core_type<tc>} {
    %c0 = arith.constant 0 : index
    %c0_0 = arith.constant 0 : index
    %0 = vector.load %arg1[%c0, %c0_0] : memref<16x12xf32, #tpu.memory_space<vmem>>, vector<16x12xf32>
    %c0_1 = arith.constant 0 : index
    %c0_2 = arith.constant 0 : index
    %1 = vector.load %arg2[%c0_1, %c0_2] : memref<16x12xf32, #tpu.memory_space<vmem>>, vector<16x12xf32>
    %c0_3 = arith.constant 0 : index
    %c0_4 = arith.constant 0 : index
    %c0_5 = arith.constant 0 : index
    %2 = vector.load %arg0[%c0_3, %c0_4, %c0_5] : memref<2x12x16xf32, #tpu.memory_space<vmem>>, vector<1x12x16xf32>
    %3 = vector.shape_cast %2 : vector<1x12x16xf32> to vector<12x16xf32>
    %cst = arith.constant dense<0.000000e+00> : vector<16x16xf32>
    %4 = tpu.matmul %0, %3, %cst {dimension_numbers = #tpu.dot_dimension_numbers<[1], [0], [0], [1], [0, 0, 1, 1], [], []>} : vector<16x12xf32>, vector<12x16xf32>, vector<16x16xf32> -> vector<16x16xf32>
    %cst_6 = arith.constant dense<0.000000e+00> : vector<16x16xf32>
    %5 = tpu.matmul %1, %3, %cst_6 {dimension_numbers = #tpu.dot_dimension_numbers<[1], [0], [0], [1], [0, 0, 1, 1], [], []>} : vector<16x12xf32>, vector<12x16xf32>, vector<16x16xf32> -> vector<16x16xf32>
    %6 = tpu.concatenate %4, %5 in 1 : vector<16x16xf32>, vector<16x16xf32> -> vector<16x32xf32>
    %c1 = arith.constant 1 : index
    %c0_7 = arith.constant 0 : index
    %c0_8 = arith.constant 0 : index
    %7 = vector.load %arg0[%c1, %c0_7, %c0_8] : memref<2x12x16xf32, #tpu.memory_space<vmem>>, vector<1x12x16xf32>
    %8 = vector.shape_cast %7 : vector<1x12x16xf32> to vector<12x16xf32>
    %cst_9 = arith.constant dense<0.000000e+00> : vector<16x16xf32>
    %9 = tpu.matmul %0, %8, %cst_9 {dimension_numbers = #tpu.dot_dimension_numbers<[1], [0], [0], [1], [0, 0, 1, 1], [], []>} : vector<16x12xf32>, vector<12x16xf32>, vector<16x16xf32> -> vector<16x16xf32>
    %cst_10 = arith.constant dense<0.000000e+00> : vector<16x16xf32>
    %10 = tpu.matmul %1, %8, %cst_10 {dimension_numbers = #tpu.dot_dimension_numbers<[1], [0], [0], [1], [0, 0, 1, 1], [], []>} : vector<16x12xf32>, vector<12x16xf32>, vector<16x16xf32> -> vector<16x16xf32>
    %11 = tpu.concatenate %9, %10 in 1 : vector<16x16xf32>, vector<16x16xf32> -> vector<16x32xf32>
    %12 = tpu.concatenate %6, %11 in 0 : vector<16x32xf32>, vector<16x32xf32> -> vector<32x32xf32>
    %c0_11 = arith.constant 0 : index
    %c0_12 = arith.constant 0 : index
    %13 = vector.load %arg3[%c0_11, %c0_12] : memref<48x32xf32, #tpu.memory_space<vmem>>, vector<48x32xf32>
    %cst_13 = arith.constant dense<0.000000e+00> : vector<48x32xf32>
    %14 = tpu.matmul %13, %12, %cst_13 {dimension_numbers = #tpu.dot_dimension_numbers<[1], [0], [0], [1], [0, 0, 1, 1], [], []>} : vector<48x32xf32>, vector<32x32xf32>, vector<48x32xf32> -> vector<48x32xf32>
    %c0_14 = arith.constant 0 : index
    %c0_15 = arith.constant 0 : index
    %15 = vector.load %arg4[%c0_14, %c0_15] : memref<48x32xf32, #tpu.memory_space<vmem>>, vector<48x32xf32>
    %16 = arith.addf %14, %15 : vector<48x32xf32>
    %c0_16 = arith.constant 0 : index
    %c0_17 = arith.constant 0 : index
    %17 = vector.load %arg5[%c0_16, %c0_17] : memref<32x4xf32, #tpu.memory_space<vmem>>, vector<32x4xf32>
    %c0_18 = arith.constant 0 : index
    %c0_19 = arith.constant 0 : index
    %18 = vector.load %arg6[%c0_18, %c0_19] : memref<4x32xf32, #tpu.memory_space<vmem>>, vector<4x32xf32>
    %c0_20 = arith.constant 0 : index
    %c0_21 = arith.constant 0 : index
    %c0_22 = arith.constant 0 : index
    %19 = vector.load %arg8[%c0_20, %c0_21, %c0_22] : memref<2x32x32xf32, #tpu.memory_space<vmem>>, vector<1x32x32xf32>
    %20 = vector.shape_cast %19 : vector<1x32x32xf32> to vector<32x32xf32>
    %cst_23 = arith.constant dense<0.000000e+00> : vector<48x32xf32>
    %21 = tpu.matmul %16, %20, %cst_23 {dimension_numbers = #tpu.dot_dimension_numbers<[1], [0], [0], [1], [0, 0, 1, 1], [], []>} : vector<48x32xf32>, vector<32x32xf32>, vector<48x32xf32> -> vector<48x32xf32>
    %c0_24 = arith.constant 0 : index
    %c0_25 = arith.constant 0 : index
    %c0_26 = arith.constant 0 : index
    %22 = vector.load %arg12[%c0_24, %c0_25, %c0_26] : memref<2x1x32xf32, #tpu.memory_space<vmem>>, vector<1x1x32xf32>
    %23 = vector.shape_cast %22 : vector<1x1x32xf32> to vector<1x32xf32>
    %24 = vector.broadcast %23 : vector<1x32xf32> to vector<48x32xf32>
    %25 = arith.addf %21, %24 : vector<48x32xf32>
    %c0_27 = arith.constant 0 : index
    %c0_28 = arith.constant 0 : index
    %c0_29 = arith.constant 0 : index
    %26 = vector.load %arg9[%c0_27, %c0_28, %c0_29] : memref<2x32x32xf32, #tpu.memory_space<vmem>>, vector<1x32x32xf32>
    %27 = vector.shape_cast %26 : vector<1x32x32xf32> to vector<32x32xf32>
    %cst_30 = arith.constant dense<0.000000e+00> : vector<48x32xf32>
    %28 = tpu.matmul %16, %27, %cst_30 {dimension_numbers = #tpu.dot_dimension_numbers<[1], [0], [0], [1], [0, 0, 1, 1], [], []>} : vector<48x32xf32>, vector<32x32xf32>, vector<48x32xf32> -> vector<48x32xf32>
    %c0_31 = arith.constant 0 : index
    %c0_32 = arith.constant 0 : index
    %c0_33 = arith.constant 0 : index
    %29 = vector.load %arg13[%c0_31, %c0_32, %c0_33] : memref<2x1x32xf32, #tpu.memory_space<vmem>>, vector<1x1x32xf32>
    %30 = vector.shape_cast %29 : vector<1x1x32xf32> to vector<1x32xf32>
    %31 = vector.broadcast %30 : vector<1x32xf32> to vector<48x32xf32>
    %32 = arith.addf %28, %31 : vector<48x32xf32>
    %c0_34 = arith.constant 0 : index
    %c0_35 = arith.constant 0 : index
    %c0_36 = arith.constant 0 : index
    %33 = vector.load %arg10[%c0_34, %c0_35, %c0_36] : memref<2x32x32xf32, #tpu.memory_space<vmem>>, vector<1x32x32xf32>
    %34 = vector.shape_cast %33 : vector<1x32x32xf32> to vector<32x32xf32>
    %cst_37 = arith.constant dense<0.000000e+00> : vector<48x32xf32>
    %35 = tpu.matmul %16, %34, %cst_37 {dimension_numbers = #tpu.dot_dimension_numbers<[1], [0], [0], [1], [0, 0, 1, 1], [], []>} : vector<48x32xf32>, vector<32x32xf32>, vector<48x32xf32> -> vector<48x32xf32>
    %c0_38 = arith.constant 0 : index
    %c0_39 = arith.constant 0 : index
    %c0_40 = arith.constant 0 : index
    %36 = vector.load %arg14[%c0_38, %c0_39, %c0_40] : memref<2x1x32xf32, #tpu.memory_space<vmem>>, vector<1x1x32xf32>
    %37 = vector.shape_cast %36 : vector<1x1x32xf32> to vector<1x32xf32>
    %38 = vector.broadcast %37 : vector<1x32xf32> to vector<48x32xf32>
    %39 = arith.addf %35, %38 : vector<48x32xf32>
    %40 = arith.mulf %25, %32 : vector<48x32xf32>
    %cst_41 = arith.constant dense<0.000000e+00> : vector<48x4xf32>
    %41 = tpu.matmul %40, %17, %cst_41 {dimension_numbers = #tpu.dot_dimension_numbers<[1], [0], [0], [1], [0, 0, 1, 1], [], []>} : vector<48x32xf32>, vector<32x4xf32>, vector<48x4xf32> -> vector<48x4xf32>
    %42 = vector.extract_strided_slice %32 {offsets = [24, 0], sizes = [24, 32], strides = [1, 1]} : vector<48x32xf32> to vector<24x32xf32>
    %43 = vector.extract_strided_slice %32 {offsets = [0, 0], sizes = [24, 32], strides = [1, 1]} : vector<48x32xf32> to vector<24x32xf32>
    %44 = tpu.concatenate %42, %43 in 0 : vector<24x32xf32>, vector<24x32xf32> -> vector<48x32xf32>
    %45 = vector.extract_strided_slice %39 {offsets = [24, 0], sizes = [24, 32], strides = [1, 1]} : vector<48x32xf32> to vector<24x32xf32>
    %46 = vector.extract_strided_slice %39 {offsets = [0, 0], sizes = [24, 32], strides = [1, 1]} : vector<48x32xf32> to vector<24x32xf32>
    %47 = tpu.concatenate %45, %46 in 0 : vector<24x32xf32>, vector<24x32xf32> -> vector<48x32xf32>
    %48 = arith.mulf %25, %44 : vector<48x32xf32>
    %cst_42 = arith.constant dense<0.000000e+00> : vector<48x4xf32>
    %49 = tpu.matmul %48, %17, %cst_42 {dimension_numbers = #tpu.dot_dimension_numbers<[1], [0], [0], [1], [0, 0, 1, 1], [], []>} : vector<48x32xf32>, vector<32x4xf32>, vector<48x4xf32> -> vector<48x4xf32>
    %50 = arith.maximumf %41, %49 : vector<48x4xf32>
    %51 = arith.subf %41, %50 : vector<48x4xf32>
    %52 = math.exp %51 : vector<48x4xf32>
    %53 = arith.subf %49, %50 : vector<48x4xf32>
    %54 = math.exp %53 : vector<48x4xf32>
    %55 = arith.addf %52, %54 : vector<48x4xf32>
    %56 = tpu.reciprocal %55 {approx = true} : vector<48x4xf32> -> vector<48x4xf32>
    %57 = arith.mulf %52, %56 : vector<48x4xf32>
    %cst_43 = arith.constant dense<0.000000e+00> : vector<48x32xf32>
    %58 = tpu.matmul %57, %18, %cst_43 {dimension_numbers = #tpu.dot_dimension_numbers<[1], [0], [0], [1], [0, 0, 1, 1], [], []>} : vector<48x4xf32>, vector<4x32xf32>, vector<48x32xf32> -> vector<48x32xf32>
    %59 = arith.mulf %58, %39 : vector<48x32xf32>
    %60 = arith.mulf %54, %56 : vector<48x4xf32>
    %cst_44 = arith.constant dense<0.000000e+00> : vector<48x32xf32>
    %61 = tpu.matmul %60, %18, %cst_44 {dimension_numbers = #tpu.dot_dimension_numbers<[1], [0], [0], [1], [0, 0, 1, 1], [], []>} : vector<48x4xf32>, vector<4x32xf32>, vector<48x32xf32> -> vector<48x32xf32>
    %62 = arith.mulf %61, %47 : vector<48x32xf32>
    %63 = arith.addf %59, %62 : vector<48x32xf32>
    %c0_45 = arith.constant 0 : index
    %c0_46 = arith.constant 0 : index
    %c0_47 = arith.constant 0 : index
    %64 = vector.load %arg11[%c0_45, %c0_46, %c0_47] : memref<2x32x32xf32, #tpu.memory_space<vmem>>, vector<1x32x32xf32>
    %65 = vector.shape_cast %64 : vector<1x32x32xf32> to vector<32x32xf32>
    %cst_48 = arith.constant dense<0.000000e+00> : vector<48x32xf32>
    %66 = tpu.matmul %63, %65, %cst_48 {dimension_numbers = #tpu.dot_dimension_numbers<[1], [0], [0], [1], [0, 0, 1, 1], [], []>} : vector<48x32xf32>, vector<32x32xf32>, vector<48x32xf32> -> vector<48x32xf32>
    %c0_49 = arith.constant 0 : index
    %c0_50 = arith.constant 0 : index
    %c0_51 = arith.constant 0 : index
    %67 = vector.load %arg15[%c0_49, %c0_50, %c0_51] : memref<2x1x32xf32, #tpu.memory_space<vmem>>, vector<1x1x32xf32>
    %68 = vector.shape_cast %67 : vector<1x1x32xf32> to vector<1x32xf32>
    %69 = vector.broadcast %68 : vector<1x32xf32> to vector<48x32xf32>
    %70 = arith.addf %66, %69 : vector<48x32xf32>
    %71 = arith.addf %16, %70 : vector<48x32xf32>
    %c0_52 = arith.constant 0 : index
    %c0_53 = arith.constant 0 : index
    %c0_54 = arith.constant 0 : index
    %72 = vector.load %arg16[%c0_52, %c0_53, %c0_54] : memref<2x1x32xf32, #tpu.memory_space<vmem>>, vector<1x1x32xf32>
    %73 = vector.shape_cast %72 : vector<1x1x32xf32> to vector<1x32xf32>
    %c0_55 = arith.constant 0 : index
    %c0_56 = arith.constant 0 : index
    %c0_57 = arith.constant 0 : index
    %74 = vector.load %arg17[%c0_55, %c0_56, %c0_57] : memref<2x1x32xf32, #tpu.memory_space<vmem>>, vector<1x1x32xf32>
    %75 = vector.shape_cast %74 : vector<1x1x32xf32> to vector<1x32xf32>
    %cst_58 = arith.constant dense<0.000000e+00> : vector<48xf32>
    %76 = vector.multi_reduction <add>, %71, %cst_58 [1] : vector<48x32xf32> to vector<48xf32>
    %77 = vector.shape_cast %76 : vector<48xf32> to vector<48x1xf32>
    %cst_59 = arith.constant 3.200000e+01 : f32
    %78 = vector.broadcast %cst_59 : f32 to vector<48x1xf32>
    %79 = arith.divf %77, %78 : vector<48x1xf32>
    %80 = vector.broadcast %79 : vector<48x1xf32> to vector<48x32xf32>
    %81 = arith.subf %71, %80 : vector<48x32xf32>
    %82 = arith.mulf %81, %81 : vector<48x32xf32>
    %cst_60 = arith.constant dense<0.000000e+00> : vector<48xf32>
    %83 = vector.multi_reduction <add>, %82, %cst_60 [1] : vector<48x32xf32> to vector<48xf32>
    %84 = vector.shape_cast %83 : vector<48xf32> to vector<48x1xf32>
    %cst_61 = arith.constant 3.200000e+01 : f32
    %85 = vector.broadcast %cst_61 : f32 to vector<48x1xf32>
    %86 = arith.divf %84, %85 : vector<48x1xf32>
    %87 = vector.broadcast %79 : vector<48x1xf32> to vector<48x32xf32>
    %88 = arith.subf %71, %87 : vector<48x32xf32>
    %cst_62 = arith.constant 9.99999974E-6 : f32
    %89 = vector.broadcast %cst_62 : f32 to vector<48x1xf32>
    %90 = arith.addf %86, %89 : vector<48x1xf32>
    %91 = math.rsqrt %90 : vector<48x1xf32>
    %92 = vector.broadcast %91 : vector<48x1xf32> to vector<48x32xf32>
    %93 = arith.mulf %88, %92 : vector<48x32xf32>
    %94 = vector.broadcast %73 : vector<1x32xf32> to vector<48x32xf32>
    %95 = arith.mulf %93, %94 : vector<48x32xf32>
    %96 = vector.broadcast %75 : vector<1x32xf32> to vector<48x32xf32>
    %97 = arith.addf %95, %96 : vector<48x32xf32>
    %c0_63 = arith.constant 0 : index
    %c0_64 = arith.constant 0 : index
    %c0_65 = arith.constant 0 : index
    %98 = vector.load %arg20[%c0_63, %c0_64, %c0_65] : memref<2x32x2048xf32, #tpu.memory_space<vmem>>, vector<1x32x2048xf32>
    %99 = vector.shape_cast %98 : vector<1x32x2048xf32> to vector<32x2048xf32>
    %cst_66 = arith.constant dense<0.000000e+00> : vector<48x2048xf32>
    %100 = tpu.matmul %97, %99, %cst_66 {dimension_numbers = #tpu.dot_dimension_numbers<[1], [0], [0], [1], [0, 0, 1, 1], [], []>} : vector<48x32xf32>, vector<32x2048xf32>, vector<48x2048xf32> -> vector<48x2048xf32>
    %c0_67 = arith.constant 0 : index
    %c0_68 = arith.constant 0 : index
    %c0_69 = arith.constant 0 : index
    %101 = vector.load %arg21[%c0_67, %c0_68, %c0_69] : memref<2x1x2048xf32, #tpu.memory_space<vmem>>, vector<1x1x2048xf32>
    %102 = vector.shape_cast %101 : vector<1x1x2048xf32> to vector<1x2048xf32>
    %103 = vector.broadcast %102 : vector<1x2048xf32> to vector<48x2048xf32>
    %104 = arith.addf %100, %103 : vector<48x2048xf32>
    %cst_70 = arith.constant 0.000000e+00 : f32
    %105 = vector.broadcast %cst_70 : f32 to vector<48x2048xf32>
    %106 = arith.maximumf %104, %105 : vector<48x2048xf32>
    %c0_71 = arith.constant 0 : index
    %c0_72 = arith.constant 0 : index
    %c0_73 = arith.constant 0 : index
    %107 = vector.load %arg22[%c0_71, %c0_72, %c0_73] : memref<2x2048x32xf32, #tpu.memory_space<vmem>>, vector<1x2048x32xf32>
    %108 = vector.shape_cast %107 : vector<1x2048x32xf32> to vector<2048x32xf32>
    %cst_74 = arith.constant dense<0.000000e+00> : vector<48x32xf32>
    %109 = tpu.matmul %106, %108, %cst_74 {dimension_numbers = #tpu.dot_dimension_numbers<[1], [0], [0], [1], [0, 0, 1, 1], [], []>} : vector<48x2048xf32>, vector<2048x32xf32>, vector<48x32xf32> -> vector<48x32xf32>
    %c0_75 = arith.constant 0 : index
    %c0_76 = arith.constant 0 : index
    %c0_77 = arith.constant 0 : index
    %110 = vector.load %arg23[%c0_75, %c0_76, %c0_77] : memref<2x1x32xf32, #tpu.memory_space<vmem>>, vector<1x1x32xf32>
    %111 = vector.shape_cast %110 : vector<1x1x32xf32> to vector<1x32xf32>
    %112 = vector.broadcast %111 : vector<1x32xf32> to vector<48x32xf32>
    %113 = arith.addf %109, %112 : vector<48x32xf32>
    %114 = arith.addf %97, %113 : vector<48x32xf32>
    %c0_78 = arith.constant 0 : index
    %c0_79 = arith.constant 0 : index
    %c0_80 = arith.constant 0 : index
    %115 = vector.load %arg18[%c0_78, %c0_79, %c0_80] : memref<2x1x32xf32, #tpu.memory_space<vmem>>, vector<1x1x32xf32>
    %116 = vector.shape_cast %115 : vector<1x1x32xf32> to vector<1x32xf32>
    %c0_81 = arith.constant 0 : index
    %c0_82 = arith.constant 0 : index
    %c0_83 = arith.constant 0 : index
    %117 = vector.load %arg19[%c0_81, %c0_82, %c0_83] : memref<2x1x32xf32, #tpu.memory_space<vmem>>, vector<1x1x32xf32>
    %118 = vector.shape_cast %117 : vector<1x1x32xf32> to vector<1x32xf32>
    %cst_84 = arith.constant dense<0.000000e+00> : vector<48xf32>
    %119 = vector.multi_reduction <add>, %114, %cst_84 [1] : vector<48x32xf32> to vector<48xf32>
    %120 = vector.shape_cast %119 : vector<48xf32> to vector<48x1xf32>
    %cst_85 = arith.constant 3.200000e+01 : f32
    %121 = vector.broadcast %cst_85 : f32 to vector<48x1xf32>
    %122 = arith.divf %120, %121 : vector<48x1xf32>
    %123 = vector.broadcast %122 : vector<48x1xf32> to vector<48x32xf32>
    %124 = arith.subf %114, %123 : vector<48x32xf32>
    %125 = arith.mulf %124, %124 : vector<48x32xf32>
    %cst_86 = arith.constant dense<0.000000e+00> : vector<48xf32>
    %126 = vector.multi_reduction <add>, %125, %cst_86 [1] : vector<48x32xf32> to vector<48xf32>
    %127 = vector.shape_cast %126 : vector<48xf32> to vector<48x1xf32>
    %cst_87 = arith.constant 3.200000e+01 : f32
    %128 = vector.broadcast %cst_87 : f32 to vector<48x1xf32>
    %129 = arith.divf %127, %128 : vector<48x1xf32>
    %130 = vector.broadcast %122 : vector<48x1xf32> to vector<48x32xf32>
    %131 = arith.subf %114, %130 : vector<48x32xf32>
    %cst_88 = arith.constant 9.99999974E-6 : f32
    %132 = vector.broadcast %cst_88 : f32 to vector<48x1xf32>
    %133 = arith.addf %129, %132 : vector<48x1xf32>
    %134 = math.rsqrt %133 : vector<48x1xf32>
    %135 = vector.broadcast %134 : vector<48x1xf32> to vector<48x32xf32>
    %136 = arith.mulf %131, %135 : vector<48x32xf32>
    %137 = vector.broadcast %116 : vector<1x32xf32> to vector<48x32xf32>
    %138 = arith.mulf %136, %137 : vector<48x32xf32>
    %139 = vector.broadcast %118 : vector<1x32xf32> to vector<48x32xf32>
    %140 = arith.addf %138, %139 : vector<48x32xf32>
    %c1_89 = arith.constant 1 : index
    %c0_90 = arith.constant 0 : index
    %c0_91 = arith.constant 0 : index
    %141 = vector.load %arg8[%c1_89, %c0_90, %c0_91] : memref<2x32x32xf32, #tpu.memory_space<vmem>>, vector<1x32x32xf32>
    %142 = vector.shape_cast %141 : vector<1x32x32xf32> to vector<32x32xf32>
    %cst_92 = arith.constant dense<0.000000e+00> : vector<48x32xf32>
    %143 = tpu.matmul %140, %142, %cst_92 {dimension_numbers = #tpu.dot_dimension_numbers<[1], [0], [0], [1], [0, 0, 1, 1], [], []>} : vector<48x32xf32>, vector<32x32xf32>, vector<48x32xf32> -> vector<48x32xf32>
    %c1_93 = arith.constant 1 : index
    %c0_94 = arith.constant 0 : index
    %c0_95 = arith.constant 0 : index
    %144 = vector.load %arg12[%c1_93, %c0_94, %c0_95] : memref<2x1x32xf32, #tpu.memory_space<vmem>>, vector<1x1x32xf32>
    %145 = vector.shape_cast %144 : vector<1x1x32xf32> to vector<1x32xf32>
    %146 = vector.broadcast %145 : vector<1x32xf32> to vector<48x32xf32>
    %147 = arith.addf %143, %146 : vector<48x32xf32>
    %c1_96 = arith.constant 1 : index
    %c0_97 = arith.constant 0 : index
    %c0_98 = arith.constant 0 : index
    %148 = vector.load %arg9[%c1_96, %c0_97, %c0_98] : memref<2x32x32xf32, #tpu.memory_space<vmem>>, vector<1x32x32xf32>
    %149 = vector.shape_cast %148 : vector<1x32x32xf32> to vector<32x32xf32>
    %cst_99 = arith.constant dense<0.000000e+00> : vector<48x32xf32>
    %150 = tpu.matmul %140, %149, %cst_99 {dimension_numbers = #tpu.dot_dimension_numbers<[1], [0], [0], [1], [0, 0, 1, 1], [], []>} : vector<48x32xf32>, vector<32x32xf32>, vector<48x32xf32> -> vector<48x32xf32>
    %c1_100 = arith.constant 1 : index
    %c0_101 = arith.constant 0 : index
    %c0_102 = arith.constant 0 : index
    %151 = vector.load %arg13[%c1_100, %c0_101, %c0_102] : memref<2x1x32xf32, #tpu.memory_space<vmem>>, vector<1x1x32xf32>
    %152 = vector.shape_cast %151 : vector<1x1x32xf32> to vector<1x32xf32>
    %153 = vector.broadcast %152 : vector<1x32xf32> to vector<48x32xf32>
    %154 = arith.addf %150, %153 : vector<48x32xf32>
    %c1_103 = arith.constant 1 : index
    %c0_104 = arith.constant 0 : index
    %c0_105 = arith.constant 0 : index
    %155 = vector.load %arg10[%c1_103, %c0_104, %c0_105] : memref<2x32x32xf32, #tpu.memory_space<vmem>>, vector<1x32x32xf32>
    %156 = vector.shape_cast %155 : vector<1x32x32xf32> to vector<32x32xf32>
    %cst_106 = arith.constant dense<0.000000e+00> : vector<48x32xf32>
    %157 = tpu.matmul %140, %156, %cst_106 {dimension_numbers = #tpu.dot_dimension_numbers<[1], [0], [0], [1], [0, 0, 1, 1], [], []>} : vector<48x32xf32>, vector<32x32xf32>, vector<48x32xf32> -> vector<48x32xf32>
    %c1_107 = arith.constant 1 : index
    %c0_108 = arith.constant 0 : index
    %c0_109 = arith.constant 0 : index
    %158 = vector.load %arg14[%c1_107, %c0_108, %c0_109] : memref<2x1x32xf32, #tpu.memory_space<vmem>>, vector<1x1x32xf32>
    %159 = vector.shape_cast %158 : vector<1x1x32xf32> to vector<1x32xf32>
    %160 = vector.broadcast %159 : vector<1x32xf32> to vector<48x32xf32>
    %161 = arith.addf %157, %160 : vector<48x32xf32>
    %162 = arith.mulf %147, %154 : vector<48x32xf32>
    %cst_110 = arith.constant dense<0.000000e+00> : vector<48x4xf32>
    %163 = tpu.matmul %162, %17, %cst_110 {dimension_numbers = #tpu.dot_dimension_numbers<[1], [0], [0], [1], [0, 0, 1, 1], [], []>} : vector<48x32xf32>, vector<32x4xf32>, vector<48x4xf32> -> vector<48x4xf32>
    %164 = vector.extract_strided_slice %154 {offsets = [24, 0], sizes = [24, 32], strides = [1, 1]} : vector<48x32xf32> to vector<24x32xf32>
    %165 = vector.extract_strided_slice %154 {offsets = [0, 0], sizes = [24, 32], strides = [1, 1]} : vector<48x32xf32> to vector<24x32xf32>
    %166 = tpu.concatenate %164, %165 in 0 : vector<24x32xf32>, vector<24x32xf32> -> vector<48x32xf32>
    %167 = vector.extract_strided_slice %161 {offsets = [24, 0], sizes = [24, 32], strides = [1, 1]} : vector<48x32xf32> to vector<24x32xf32>
    %168 = vector.extract_strided_slice %161 {offsets = [0, 0], sizes = [24, 32], strides = [1, 1]} : vector<48x32xf32> to vector<24x32xf32>
    %169 = tpu.concatenate %167, %168 in 0 : vector<24x32xf32>, vector<24x32xf32> -> vector<48x32xf32>
    %170 = arith.mulf %147, %166 : vector<48x32xf32>
    %cst_111 = arith.constant dense<0.000000e+00> : vector<48x4xf32>
    %171 = tpu.matmul %170, %17, %cst_111 {dimension_numbers = #tpu.dot_dimension_numbers<[1], [0], [0], [1], [0, 0, 1, 1], [], []>} : vector<48x32xf32>, vector<32x4xf32>, vector<48x4xf32> -> vector<48x4xf32>
    %172 = arith.maximumf %163, %171 : vector<48x4xf32>
    %173 = arith.subf %163, %172 : vector<48x4xf32>
    %174 = math.exp %173 : vector<48x4xf32>
    %175 = arith.subf %171, %172 : vector<48x4xf32>
    %176 = math.exp %175 : vector<48x4xf32>
    %177 = arith.addf %174, %176 : vector<48x4xf32>
    %178 = tpu.reciprocal %177 {approx = true} : vector<48x4xf32> -> vector<48x4xf32>
    %179 = arith.mulf %174, %178 : vector<48x4xf32>
    %cst_112 = arith.constant dense<0.000000e+00> : vector<48x32xf32>
    %180 = tpu.matmul %179, %18, %cst_112 {dimension_numbers = #tpu.dot_dimension_numbers<[1], [0], [0], [1], [0, 0, 1, 1], [], []>} : vector<48x4xf32>, vector<4x32xf32>, vector<48x32xf32> -> vector<48x32xf32>
    %181 = arith.mulf %180, %161 : vector<48x32xf32>
    %182 = arith.mulf %176, %178 : vector<48x4xf32>
    %cst_113 = arith.constant dense<0.000000e+00> : vector<48x32xf32>
    %183 = tpu.matmul %182, %18, %cst_113 {dimension_numbers = #tpu.dot_dimension_numbers<[1], [0], [0], [1], [0, 0, 1, 1], [], []>} : vector<48x4xf32>, vector<4x32xf32>, vector<48x32xf32> -> vector<48x32xf32>
    %184 = arith.mulf %183, %169 : vector<48x32xf32>
    %185 = arith.addf %181, %184 : vector<48x32xf32>
    %c1_114 = arith.constant 1 : index
    %c0_115 = arith.constant 0 : index
    %c0_116 = arith.constant 0 : index
    %186 = vector.load %arg11[%c1_114, %c0_115, %c0_116] : memref<2x32x32xf32, #tpu.memory_space<vmem>>, vector<1x32x32xf32>
    %187 = vector.shape_cast %186 : vector<1x32x32xf32> to vector<32x32xf32>
    %cst_117 = arith.constant dense<0.000000e+00> : vector<48x32xf32>
    %188 = tpu.matmul %185, %187, %cst_117 {dimension_numbers = #tpu.dot_dimension_numbers<[1], [0], [0], [1], [0, 0, 1, 1], [], []>} : vector<48x32xf32>, vector<32x32xf32>, vector<48x32xf32> -> vector<48x32xf32>
    %c1_118 = arith.constant 1 : index
    %c0_119 = arith.constant 0 : index
    %c0_120 = arith.constant 0 : index
    %189 = vector.load %arg15[%c1_118, %c0_119, %c0_120] : memref<2x1x32xf32, #tpu.memory_space<vmem>>, vector<1x1x32xf32>
    %190 = vector.shape_cast %189 : vector<1x1x32xf32> to vector<1x32xf32>
    %191 = vector.broadcast %190 : vector<1x32xf32> to vector<48x32xf32>
    %192 = arith.addf %188, %191 : vector<48x32xf32>
    %193 = arith.addf %140, %192 : vector<48x32xf32>
    %c1_121 = arith.constant 1 : index
    %c0_122 = arith.constant 0 : index
    %c0_123 = arith.constant 0 : index
    %194 = vector.load %arg16[%c1_121, %c0_122, %c0_123] : memref<2x1x32xf32, #tpu.memory_space<vmem>>, vector<1x1x32xf32>
    %195 = vector.shape_cast %194 : vector<1x1x32xf32> to vector<1x32xf32>
    %c1_124 = arith.constant 1 : index
    %c0_125 = arith.constant 0 : index
    %c0_126 = arith.constant 0 : index
    %196 = vector.load %arg17[%c1_124, %c0_125, %c0_126] : memref<2x1x32xf32, #tpu.memory_space<vmem>>, vector<1x1x32xf32>
    %197 = vector.shape_cast %196 : vector<1x1x32xf32> to vector<1x32xf32>
    %cst_127 = arith.constant dense<0.000000e+00> : vector<48xf32>
    %198 = vector.multi_reduction <add>, %193, %cst_127 [1] : vector<48x32xf32> to vector<48xf32>
    %199 = vector.shape_cast %198 : vector<48xf32> to vector<48x1xf32>
    %cst_128 = arith.constant 3.200000e+01 : f32
    %200 = vector.broadcast %cst_128 : f32 to vector<48x1xf32>
    %201 = arith.divf %199, %200 : vector<48x1xf32>
    %202 = vector.broadcast %201 : vector<48x1xf32> to vector<48x32xf32>
    %203 = arith.subf %193, %202 : vector<48x32xf32>
    %204 = arith.mulf %203, %203 : vector<48x32xf32>
    %cst_129 = arith.constant dense<0.000000e+00> : vector<48xf32>
    %205 = vector.multi_reduction <add>, %204, %cst_129 [1] : vector<48x32xf32> to vector<48xf32>
    %206 = vector.shape_cast %205 : vector<48xf32> to vector<48x1xf32>
    %cst_130 = arith.constant 3.200000e+01 : f32
    %207 = vector.broadcast %cst_130 : f32 to vector<48x1xf32>
    %208 = arith.divf %206, %207 : vector<48x1xf32>
    %209 = vector.broadcast %201 : vector<48x1xf32> to vector<48x32xf32>
    %210 = arith.subf %193, %209 : vector<48x32xf32>
    %cst_131 = arith.constant 9.99999974E-6 : f32
    %211 = vector.broadcast %cst_131 : f32 to vector<48x1xf32>
    %212 = arith.addf %208, %211 : vector<48x1xf32>
    %213 = math.rsqrt %212 : vector<48x1xf32>
    %214 = vector.broadcast %213 : vector<48x1xf32> to vector<48x32xf32>
    %215 = arith.mulf %210, %214 : vector<48x32xf32>
    %216 = vector.broadcast %195 : vector<1x32xf32> to vector<48x32xf32>
    %217 = arith.mulf %215, %216 : vector<48x32xf32>
    %218 = vector.broadcast %197 : vector<1x32xf32> to vector<48x32xf32>
    %219 = arith.addf %217, %218 : vector<48x32xf32>
    %c1_132 = arith.constant 1 : index
    %c0_133 = arith.constant 0 : index
    %c0_134 = arith.constant 0 : index
    %220 = vector.load %arg20[%c1_132, %c0_133, %c0_134] : memref<2x32x2048xf32, #tpu.memory_space<vmem>>, vector<1x32x2048xf32>
    %221 = vector.shape_cast %220 : vector<1x32x2048xf32> to vector<32x2048xf32>
    %cst_135 = arith.constant dense<0.000000e+00> : vector<48x2048xf32>
    %222 = tpu.matmul %219, %221, %cst_135 {dimension_numbers = #tpu.dot_dimension_numbers<[1], [0], [0], [1], [0, 0, 1, 1], [], []>} : vector<48x32xf32>, vector<32x2048xf32>, vector<48x2048xf32> -> vector<48x2048xf32>
    %c1_136 = arith.constant 1 : index
    %c0_137 = arith.constant 0 : index
    %c0_138 = arith.constant 0 : index
    %223 = vector.load %arg21[%c1_136, %c0_137, %c0_138] : memref<2x1x2048xf32, #tpu.memory_space<vmem>>, vector<1x1x2048xf32>
    %224 = vector.shape_cast %223 : vector<1x1x2048xf32> to vector<1x2048xf32>
    %225 = vector.broadcast %224 : vector<1x2048xf32> to vector<48x2048xf32>
    %226 = arith.addf %222, %225 : vector<48x2048xf32>
    %cst_139 = arith.constant 0.000000e+00 : f32
    %227 = vector.broadcast %cst_139 : f32 to vector<48x2048xf32>
    %228 = arith.maximumf %226, %227 : vector<48x2048xf32>
    %c1_140 = arith.constant 1 : index
    %c0_141 = arith.constant 0 : index
    %c0_142 = arith.constant 0 : index
    %229 = vector.load %arg22[%c1_140, %c0_141, %c0_142] : memref<2x2048x32xf32, #tpu.memory_space<vmem>>, vector<1x2048x32xf32>
    %230 = vector.shape_cast %229 : vector<1x2048x32xf32> to vector<2048x32xf32>
    %cst_143 = arith.constant dense<0.000000e+00> : vector<48x32xf32>
    %231 = tpu.matmul %228, %230, %cst_143 {dimension_numbers = #tpu.dot_dimension_numbers<[1], [0], [0], [1], [0, 0, 1, 1], [], []>} : vector<48x2048xf32>, vector<2048x32xf32>, vector<48x32xf32> -> vector<48x32xf32>
    %c1_144 = arith.constant 1 : index
    %c0_145 = arith.constant 0 : index
    %c0_146 = arith.constant 0 : index
    %232 = vector.load %arg23[%c1_144, %c0_145, %c0_146] : memref<2x1x32xf32, #tpu.memory_space<vmem>>, vector<1x1x32xf32>
    %233 = vector.shape_cast %232 : vector<1x1x32xf32> to vector<1x32xf32>
    %234 = vector.broadcast %233 : vector<1x32xf32> to vector<48x32xf32>
    %235 = arith.addf %231, %234 : vector<48x32xf32>
    %236 = arith.addf %219, %235 : vector<48x32xf32>
    %c1_147 = arith.constant 1 : index
    %c0_148 = arith.constant 0 : index
    %c0_149 = arith.constant 0 : index
    %237 = vector.load %arg18[%c1_147, %c0_148, %c0_149] : memref<2x1x32xf32, #tpu.memory_space<vmem>>, vector<1x1x32xf32>
    %238 = vector.shape_cast %237 : vector<1x1x32xf32> to vector<1x32xf32>
    %c1_150 = arith.constant 1 : index
    %c0_151 = arith.constant 0 : index
    %c0_152 = arith.constant 0 : index
    %239 = vector.load %arg19[%c1_150, %c0_151, %c0_152] : memref<2x1x32xf32, #tpu.memory_space<vmem>>, vector<1x1x32xf32>
    %240 = vector.shape_cast %239 : vector<1x1x32xf32> to vector<1x32xf32>
    %cst_153 = arith.constant dense<0.000000e+00> : vector<48xf32>
    %241 = vector.multi_reduction <add>, %236, %cst_153 [1] : vector<48x32xf32> to vector<48xf32>
    %242 = vector.shape_cast %241 : vector<48xf32> to vector<48x1xf32>
    %cst_154 = arith.constant 3.200000e+01 : f32
    %243 = vector.broadcast %cst_154 : f32 to vector<48x1xf32>
    %244 = arith.divf %242, %243 : vector<48x1xf32>
    %245 = vector.broadcast %244 : vector<48x1xf32> to vector<48x32xf32>
    %246 = arith.subf %236, %245 : vector<48x32xf32>
    %247 = arith.mulf %246, %246 : vector<48x32xf32>
    %cst_155 = arith.constant dense<0.000000e+00> : vector<48xf32>
    %248 = vector.multi_reduction <add>, %247, %cst_155 [1] : vector<48x32xf32> to vector<48xf32>
    %249 = vector.shape_cast %248 : vector<48xf32> to vector<48x1xf32>
    %cst_156 = arith.constant 3.200000e+01 : f32
    %250 = vector.broadcast %cst_156 : f32 to vector<48x1xf32>
    %251 = arith.divf %249, %250 : vector<48x1xf32>
    %252 = vector.broadcast %244 : vector<48x1xf32> to vector<48x32xf32>
    %253 = arith.subf %236, %252 : vector<48x32xf32>
    %cst_157 = arith.constant 9.99999974E-6 : f32
    %254 = vector.broadcast %cst_157 : f32 to vector<48x1xf32>
    %255 = arith.addf %251, %254 : vector<48x1xf32>
    %256 = math.rsqrt %255 : vector<48x1xf32>
    %257 = vector.broadcast %256 : vector<48x1xf32> to vector<48x32xf32>
    %258 = arith.mulf %253, %257 : vector<48x32xf32>
    %259 = vector.broadcast %238 : vector<1x32xf32> to vector<48x32xf32>
    %260 = arith.mulf %258, %259 : vector<48x32xf32>
    %261 = vector.broadcast %240 : vector<1x32xf32> to vector<48x32xf32>
    %262 = arith.addf %260, %261 : vector<48x32xf32>
    %c0_158 = arith.constant 0 : index
    %c0_159 = arith.constant 0 : index
    %263 = vector.load %arg7[%c0_158, %c0_159] : memref<2x48xf32, #tpu.memory_space<vmem>>, vector<2x48xf32>
    %cst_160 = arith.constant dense<0.000000e+00> : vector<2x32xf32>
    %264 = tpu.matmul %263, %262, %cst_160 {dimension_numbers = #tpu.dot_dimension_numbers<[1], [0], [0], [1], [0, 0, 1, 1], [], []>} : vector<2x48xf32>, vector<48x32xf32>, vector<2x32xf32> -> vector<2x32xf32>
    %c0_161 = arith.constant 0 : index
    %c0_162 = arith.constant 0 : index
    %265 = vector.load %arg24[%c0_161, %c0_162] : memref<32x128xf32, #tpu.memory_space<vmem>>, vector<32x128xf32>
    %cst_163 = arith.constant dense<0.000000e+00> : vector<2x128xf32>
    %266 = tpu.matmul %264, %265, %cst_163 {dimension_numbers = #tpu.dot_dimension_numbers<[1], [0], [0], [1], [0, 0, 1, 1], [], []>} : vector<2x32xf32>, vector<32x128xf32>, vector<2x128xf32> -> vector<2x128xf32>
    %c0_164 = arith.constant 0 : index
    %c0_165 = arith.constant 0 : index
    %267 = vector.load %arg25[%c0_164, %c0_165] : memref<1x128xf32, #tpu.memory_space<vmem>>, vector<1x128xf32>
    %268 = vector.broadcast %267 : vector<1x128xf32> to vector<2x128xf32>
    %269 = arith.addf %266, %268 : vector<2x128xf32>
    %c0_166 = arith.constant 0 : index
    %c0_167 = arith.constant 0 : index
    %270 = vector.load %arg26[%c0_166, %c0_167] : memref<2x128xf32, #tpu.memory_space<vmem>>, vector<2x128xf32>
    tpu.vector_store %arg26[%c0_166, %c0_167], %269 {strides = array<i32>} : memref<2x128xf32, #tpu.memory_space<vmem>>, vector<2x128xf32>,
    return
  }
}

</mosaic_0001>

<bundles_post_ra>
// kernel: vit_forward.1
= control target key start
LH: loop header
LB: loop body
LE: loop exit
PB: predicated region body
PF: predicated region fallthrough
CT: control target
= control target key end

     0   :  { %s14581_s0 = inlined_call_operand.vmem [shape: f32[2,12,16], index: 0, kind: input, shape index: {}]   ;;  %s14582_s1 = inlined_call_operand.vmem [shape: f32[16,12], index: 1, kind: input, shape index: {}]   ;;  %s14583_s2 = inlined_call_operand.vmem [shape: f32[16,12], index: 2, kind: input, shape index: {}]   ;;  %s14584_s3 = inlined_call_operand.vmem [shape: f32[48,32], index: 3, kind: input, shape index: {}]   ;;  %s14585_s4 = inlined_call_operand.vmem [shape: f32[48,32], index: 4, kind: input, shape index: {}]   ;;  %s14586_s5 = inlined_call_operand.vmem [shape: f32[32,4], index: 5, kind: input, shape index: {}]   ;;  %s14587_s6 = inlined_call_operand.vmem [shape: f32[4,32], index: 6, kind: input, shape index: {}]   ;;  %s14588_s7 = inlined_call_operand.vmem [shape: f32[2,48], index: 7, kind: input, shape index: {}]   ;;  %s14589_s8 = inlined_call_operand.vmem [shape: f32[2,32,32], index: 8, kind: input, shape index: {}]   ;;  %s14590_s9 = inlined_call_operand.vmem [shape: f32[2,32,32], index: 9, kind: input, shape index: {}]   ;;  %s14591_s10 = inlined_call_operand.vmem [shape: f32[2,32,32], index: 10, kind: input, shape index: {}]   ;;  %s14592_s11 = inlined_call_operand.vmem [shape: f32[2,32,32], index: 11, kind: input, shape index: {}]   ;;  %s14593_s12 = inlined_call_operand.vmem [shape: f32[2,1,32], index: 12, kind: input, shape index: {}]   ;;  %s14594_s13 = inlined_call_operand.vmem [shape: f32[2,1,32], index: 13, kind: input, shape index: {}]   ;;  %s14595_s14 = inlined_call_operand.vmem [shape: f32[2,1,32], index: 14, kind: input, shape index: {}]   ;;  %s14596_s15 = inlined_call_operand.vmem [shape: f32[2,1,32], index: 15, kind: input, shape index: {}]   ;;  %s14597_s16 = inlined_call_operand.vmem [shape: f32[2,1,32], index: 16, kind: input, shape index: {}]   ;;  %s14598_s17 = inlined_call_operand.vmem [shape: f32[2,1,32], index: 17, kind: input, shape index: {}]   ;;  %s14599_s18 = inlined_call_operand.vmem [shape: f32[2,1,32], index: 18, kind: input, shape index: {}]   ;;  %s14600_s19 = inlined_call_operand.vmem [shape: f32[2,1,32], index: 19, kind: input, shape index: {}]   ;;  %s14601_s20 = inlined_call_operand.vmem [shape: f32[2,32,2048], index: 20, kind: input, shape index: {}]   ;;  %s14602_s21 = inlined_call_operand.vmem [shape: f32[2,1,2048], index: 21, kind: input, shape index: {}]   ;;  %s14603_s22 = inlined_call_operand.vmem [shape: f32[2,2048,32], index: 22, kind: input, shape index: {}]   ;;  %s14604_s23 = inlined_call_operand.vmem [shape: f32[2,1,32], index: 23, kind: input, shape index: {}]   ;;  %s14605_s24 = inlined_call_operand.vmem [shape: f32[32,128], index: 24, kind: input, shape index: {}]   ;;  %s14606_s25 = inlined_call_operand.vmem [shape: f32[1,128], index: 25, kind: input, shape index: {}]   ;;  %s14607_s26 = inlined_call_operand.hbm [shape: f32[2,128], index: 26, kind: output, shape index: {}]  }
   0x1   :  { %14625 = sst [smem:[#allocation7_spill]] %s14581_s0 }
   0x2   :  { %14626 = sst [smem:[#allocation8_spill]] %s14582_s1 }
   0x3   :  { %14627 = sst [smem:[#allocation9_spill]] %s14583_s2 }
   0x4   :  { %14628 = sst [smem:[#allocation10_spill]] %s14584_s3 }
   0x5   :  { %14629 = sst [smem:[#allocation11_spill]] %s14585_s4 }
   0x6   :  { %14630 = sst [smem:[#allocation12_spill]] %s14586_s5 }
   0x7   :  { %14631 = sst [smem:[#allocation13_spill]] %s14587_s6 }
   0x8   :  { %14632 = sst [smem:[#allocation14_spill]] %s14588_s7 }
   0x9   :  { %14633 = sst [smem:[#allocation15_spill]] %s14589_s8 }
   0xa   :  { %14634 = sst [smem:[#allocation16_spill]] %s14590_s9 }
   0xb   :  { %14635 = sst [smem:[#allocation17_spill]] %s14591_s10 }
   0xc   :  { %14636 = sst [smem:[#allocation18_spill]] %s14607_s26 }
   0xd   :  { %s14637_s7 = sld [smem:[#allocation7_spill]]  ;;  %vm97_vm0 = vcmask 1043456   ;;  %s14638_s0 = sld [smem:[#allocation9_spill]]  ;;  %vm10235_vm1 = vmmov 1   ;;  %vm90_vm3 = vcmask 97280  }
   0xe   :  { %vm10386_vm2 = vmpackc.low %vm97_vm0, %vm10235_vm1  ;;  %s14641_s1 = sld [smem:[#allocation8_spill]] }
  0x13   :  { %v88_v0 = vld [vmem:[%s14637_s7] sm:$0xff]  ;;  %v89_v1 = vld [vmem:[%s14637_s7 + $0x8] sm:$0xf]  ;;  %v7408_v5 = vld [vmem:[%s14637_s7 + $0x10] sm:$0xff] }
  0x14   :  { %v86_v2 = vld [vmem:[%s14638_s0] sm:$0xff]  ;;  %v9291_v3 = vpack.c.bf16 %v89_v1, %v88_v0  ;;  %v7409_v6 = vld [vmem:[%s14637_s7 + $0x18] sm:$0xf] }
  0x15   :  { %8983 = vmatprep.mubr.msk.f32.mxu1 %vm90_vm3, %v86_v2  ;;  %v84_v7 = vld [vmem:[%s14641_s1] sm:$0xff]  ;;  %v9303_v8 = vpack.c.bf16 %v7409_v6, %v7408_v5 }
  0x16   :  { %9299 = vmatprep.subr.msk.bf16.mxu1 %vm10386_vm2, %v9291_v3  ;;  %9293 = vmatprep.subr.msk.bf16.mxu0 %vm10386_vm2, %v9291_v3 }
  0x17   :  { %31 = vsyncpa [#allocation3], 0  ;;  %9302 = vmatpush3.bf16.msk.msra.mxu1 %vm10386_vm2, %v9291_v3  ;;  %v87_v9 = vld [vmem:[%s14638_s0 + $0x8] sm:$0xff]  ;;  %9296 = vmatpush3.bf16.msk.msra.mxu0 %vm10386_vm2, %v9291_v3  ;;  %s14642_s29 = sld [smem:[#allocation10_spill]]  ;;  %vm446_vm4 = vcmask 261120   ;;  %s10236_s0 = smov 16  }
  0x18   :  { %v85_v10 = vld [vmem:[%s14641_s1 + $0x8] sm:$0xff]  ;;  %9311 = vmatprep.subr.msk.bf16.mxu1 %vm10386_vm2, %v9303_v8  ;;  %8976 = vmatprep.mubr.msk.f32.mxu0 %vm90_vm3, %v84_v7  ;;  %s14643_s2 = sld [smem:[#allocation15_spill]]  ;;  %vm265_vm5 = vcmask 130048   ;;  %s14644_s27 = sld [smem:[#allocation16_spill]]  ;;  %vm1199_vm6 = vcmask 31744   ;;  %vm10239_vm7 = vmmov 0  }
  0x19   :  { %9305 = vmatprep.subr.msk.bf16.mxu0 %vm10386_vm2, %v9303_v8  ;;  %s14645_s10 = sld [smem:[#allocation17_spill]]  ;;  %s14646_s28 = sld [smem:[#allocation12_spill]]  ;;  %vm7229_vm8 = vcmask 392192  }
  0x1a   :  { %8984 = vmatmul.mubr.msk.f32.vlgmr.msra.gmra.mrb[0].mxu1 %vm90_vm3, %v87_v9  ;;  %8977 = vmatmul.mubr.msk.f32.vlgmr.msra.gmra.mrb[0].mxu0 %vm90_vm3, %v85_v10  ;;  %s14647_s30 = sld [smem:[#allocation11_spill]]  ;;  %s14648_s6 = sld [smem:[#allocation13_spill]] }
  0x1b   :  { %9314 = vmatpush3.bf16.msk.msra.mxu1 %vm10386_vm2, %v9303_v8  ;;  %8997 = vmatprep.mubr.msk.f32.mxu1 %vm90_vm3, %v86_v2  ;;  %s14654_s4 = sld [smem:[#allocation14_spill]] }
  0x1c   :  { %9308 = vmatpush3.bf16.msk.msra.mxu0 %vm10386_vm2, %v9303_v8  ;;  %8990 = vmatprep.mubr.msk.f32.mxu0 %vm90_vm3, %v84_v7 }
  0x1d   :  { %v434_v15 = vld [vmem:[%s14642_s29] sm:$0xff]  ;;  %v435_v40 = vld [vmem:[%s14642_s29 + $0x8] sm:$0xff]  ;;  %v436_v41 = vld [vmem:[%s14642_s29 + $0x10] sm:$0xff] }
  0x1e   :  { %8998 = vmatmul.mubr.msk.f32.vlgmr.msra.gmra.mrb[2].mxu1 %vm90_vm3, %v87_v9  ;;  %v565_v22 = vld [vmem:[%s14643_s2] sm:$0xff]  ;;  %v566_v23 = vld [vmem:[%s14643_s2 + $0x8] sm:$0xff]  ;;  %v437_v42 = vld [vmem:[%s14642_s29 + $0x18] sm:$0xff] }
  0x1f   :  { %8991 = vmatmul.mubr.msk.f32.vlgmr.msra.gmra.mrb[2].mxu0 %vm90_vm3, %v85_v10  ;;  %v9323_v24 = vpack.c.bf16 %v566_v23, %v565_v22  ;;  %v689_v34 = vld [vmem:[%s14644_s27] sm:$0xff]  ;;  %v690_v35 = vld [vmem:[%s14644_s27 + $0x8] sm:$0xff]  ;;  %v567_v45 = vld [vmem:[%s14643_s2 + $0x10] sm:$0xff] }
  0x20   :  { %9008 = vmatprep.mubr.msk.f32.mxu0 %vm446_vm4, %v434_v15  ;;  %v9331_v39 = vpack.c.bf16 %v690_v35, %v689_v34  ;;  %v438_v43 = vld [vmem:[%s14642_s29 + $0x20] sm:$0xff]  ;;  %v439_v44 = vld [vmem:[%s14642_s29 + $0x28] sm:$0xff]  ;;  %v568_v46 = vld [vmem:[%s14643_s2 + $0x18] sm:$0xff] }
  0x21   :  { %9324 = vmatprep.subr.bf16.mxu1 %v9323_v24  ;;  %v691_v47 = vld [vmem:[%s14644_s27 + $0x10] sm:$0xff]  ;;  %v9327_v48 = vpack.c.bf16 %v568_v46, %v567_v45  ;;  %v692_v49 = vld [vmem:[%s14644_s27 + $0x18] sm:$0xff]  ;;  %v795_v51 = vld [vmem:[%s14645_s10] sm:$0xff] }
  0x22   :  { %9326 = vmatpush3.bf16.msra.mxu1 %v9323_v24  ;;  %v9335_v50 = vpack.c.bf16 %v692_v49, %v691_v47  ;;  %v796_v52 = vld [vmem:[%s14645_s10 + $0x8] sm:$0xff]  ;;  %v560_v54 = vld [vmem:[%s14646_s28] sm:$0xff]  ;;  %v797_v60 = vld [vmem:[%s14645_s10 + $0x10] sm:$0xff] }
  0x23   :  { %9328 = vmatprep.subr.bf16.mxu1 %v9327_v48  ;;  %v9339_v53 = vpack.c.bf16 %v796_v52, %v795_v51  ;;  %v561_v55 = vld [vmem:[%s14646_s28 + $0x8] sm:$0xff]  ;;  %v440_v57 = vld [vmem:[%s14647_s30] sm:$0xff]  ;;  %v798_v61 = vld [vmem:[%s14645_s10 + $0x18] sm:$0xff] }
  0x24   :  { %v10489_v56 = vpack.c.bf16 %v561_v55, %v560_v54  ;;  %v441_v58 = vld [vmem:[%s14647_s30 + $0x8] sm:$0xff]  ;;  %v442_v1 = vld [vmem:[%s14647_s30 + $0x10] sm:$0xff]  ;;  %v9343_v2 = vpack.c.bf16 %v798_v61, %v797_v60  ;;  %v443_v3 = vld [vmem:[%s14647_s30 + $0x18] sm:$0xff] }
  0x25   :  { %v444_v8 = vld [vmem:[%s14647_s30 + $0x20] sm:$0xff]  ;;  %v445_v9 = vld [vmem:[%s14647_s30 + $0x28] sm:$0xff]  ;;  %v563_v15 = vld [vmem:[%s14646_s28 + $0x18] sm:$0xff] }
  0x26   :  { %9330 = vmatpush3.bf16.msra.mxu1 %v9327_v48 }
  0x27   :  { %9340 = vmatprep.subr.bf16.mxu1 %v9339_v53 }
  0xed   :  { %v8985_v11 = vpop.f32.mrb[0].mxu1  ;;  %v8978_v12 = vpop.f32.mrb[0].mxu0 }
  0xee   :  { %v248_v13 = vpop.f32.mrb[1].mxu1  ;;  %v167_v14 = vpop.f32.mrb[1].mxu0 }
  0xef   :  { %v10080_v16 = vpack.i.bf16 %v8985_v11, %v248_v13 }
  0xf1   :  { %10081 = vrot.lane.b32.xlu0 %v10080_v16, %s10236_s0  ;;  %v8999_v17 = vpop.f32.mrb[2].mxu1 }
  0xf2   :  { %v415_v18 = vpop.f32.mrb[3].mxu1  ;;  %v8992_v19 = vpop.f32.mrb[2].mxu0 }
  0xf3   :  { %v10085_v20 = vpack.i.bf16 %v8999_v17, %v415_v18  ;;  %v340_v21 = vpop.f32.mrb[3].mxu0  ;;  %v7422_v17 = vld [vmem:[%s14593_s12] ss:$0 sm:$0xff] }
  0xf4   :  { %v7429_v18 = vld [vmem:[%s14594_s13] ss:$0 sm:$0xff] }
  0xf5   :  { %10086 = vrot.lane.b32.xlu0 %v10085_v20, %s10236_s0 }
 0x163   :  { %v10082_v25 = vpop.permute.xlu0 %10081 }
 0x164   :  { %v10084_v26 = vunpack.i.h.bf16 %v10082_v25  ;;  %v10083_v27 = vunpack.i.l.bf16 %v10082_v25 }
 0x166   :  { %v267_v28 = vsel %vm265_vm5, %v8978_v12, %v10084_v26  ;;  %v266_v29 = vsel %vm265_vm5, %v167_v14, %v10083_v27  ;;  %v562_v14 = vld [vmem:[%s14646_s28 + $0x10] sm:$0xff] }
 0x167   :  { %v9315_v30 = vpack.c.bf16 %v267_v28, %v266_v29  ;;  %v10087_v31 = vpop.permute.xlu0 %10086  ;;  %v10573_v16 = vpack.c.bf16 %v563_v15, %v562_v14 }
 0x168   :  { %v10089_v32 = vunpack.i.h.bf16 %v10087_v31  ;;  %v10088_v33 = vunpack.i.l.bf16 %v10087_v31 }
 0x169   :  { %9316 = vmatprep.subr.bf16.mxu0 %v9315_v30 }
 0x16a   :  { %v433_v36 = vsel %vm265_vm5, %v8992_v19, %v10089_v32  ;;  %v432_v37 = vsel %vm265_vm5, %v340_v21, %v10088_v33  ;;  %9318 = vmatpush3.bf16.msra.mxu0 %v9315_v30 }
 0x16b   :  { %v9319_v38 = vpack.c.bf16 %v433_v36, %v432_v37 }
 0x16d   :  { %9320 = vmatprep.subr.bf16.mxu0 %v9319_v38 }
 0x16e   :  { %9322 = vmatpush3.bf16.msra.mxu0 %v9319_v38 }
 0x16f   :  { %9332 = vmatprep.subr.bf16.mxu0 %v9331_v39 }
 0x171   :  { %9009 = vmatmul.mubr.msk.f32.vlgmr.msra.gmra.mrb[4].mxu0 %vm446_vm4, %v435_v40 }
 0x172   :  { %9011 = vmatprep.mubr.msk.f32.mxu0 %vm446_vm4, %v436_v41  ;;  %9334 = vmatpush3.bf16.msra.mxu0 %v9331_v39 }
 0x173   :  { %9336 = vmatprep.subr.bf16.mxu0 %v9335_v50 }
 0x175   :  { %9012 = vmatmul.mubr.msk.f32.gmra.mrb[6].mxu0 %vm446_vm4, %v437_v42 }
 0x176   :  { %9014 = vmatprep.mubr.msk.f32.mxu0 %vm446_vm4, %v438_v43  ;;  %9338 = vmatpush3.bf16.msra.mxu0 %v9335_v50 }
 0x177   :  { %9348 = vmatprep.subr.bf16.mxu0 %v10489_v56 }
 0x179   :  { %9015 = vmatmul.mubr.msk.f32.gmra.mrb[8].mxu0 %vm446_vm4, %v439_v44 }
 0x244   :  { %v9010_v59 = vpop.f32.mrb[4].mxu0 }
 0x245   :  { %v531_v62 = vpop.f32.mrb[5].mxu0  ;;  %v10506_v0 = vadd.f32 %v9010_v59, %v441_v58 }
 0x246   :  { %v10504_v63 = vadd.f32 %v531_v62, %v440_v57  ;;  %v564_v62 = vld [vmem:[%s14648_s6] sm:$0xf] }
 0x248   :  { %v9013_v4 = vpop.f32.mrb[6].mxu0  ;;  %9025 = vmatprep.mubr.msk.f32.mxu1 %vm446_vm4, %v10504_v63  ;;  %9042 = vmatprep.mubr.msk.f32.mxu0 %vm446_vm4, %v10504_v63 }
 0x249   :  { %v541_v5 = vpop.f32.mrb[7].mxu0  ;;  %9026 = vmatmul.mubr.msk.f32.vlgmr.msra.gmra.mrb[4].mxu1 %vm446_vm4, %v10506_v0  ;;  %9043 = vmatmul.mubr.msk.f32.vlgmr.msra.gmra.mrb[10].mxu0 %vm446_vm4, %v10506_v0  ;;  %v10525_v7 = vadd.f32 %v9013_v4, %v443_v3 }
 0x24a   :  { %v10522_v6 = vadd.f32 %v541_v5, %v442_v1  ;;  %9342 = vmatpush3.bf16.msra.mxu1 %v9339_v53  ;;  %9350 = vmatpush3.bf16.msra.mxu0 %v10489_v56  ;;  %v1453_v1 = vld [vmem:[%s14592_s11] sm:$0xff] }
 0x24b   :  { %9344 = vmatprep.subr.bf16.mxu1 %v9343_v2  ;;  %9352 = vmatprep.subr.bf16.mxu0 %v10573_v16 }
 0x24c   :  { %v9016_v10 = vpop.f32.mrb[8].mxu0  ;;  %9028 = vmatprep.mubr.msk.f32.mxu1 %vm446_vm4, %v10522_v6  ;;  %9045 = vmatprep.mubr.msk.f32.mxu0 %vm446_vm4, %v10522_v6 }
 0x24d   :  { %v551_v11 = vpop.f32.mrb[9].mxu0  ;;  %9029 = vmatmul.mubr.msk.f32.gmra.mrb[6].mxu1 %vm446_vm4, %v10525_v7  ;;  %9046 = vmatmul.mubr.msk.f32.gmra.mrb[12].mxu0 %vm446_vm4, %v10525_v7  ;;  %v10543_v13 = vadd.f32 %v9016_v10, %v445_v9 }
 0x24e   :  { %v10541_v12 = vadd.f32 %v551_v11, %v444_v8  ;;  %9346 = vmatpush3.bf16.msra.mxu1 %v9343_v2  ;;  %9354 = vmatpush3.bf16.msra.mxu0 %v10573_v16  ;;  %v1454_v2 = vld [vmem:[%s14592_s11 + $0x8] sm:$0xff] }
 0x24f   :  { %9356 = vmatprep.subr.bf16.mxu1 %v10489_v56  ;;  %9102 = vmatprep.subr.msk.mxu0 %vm97_vm0, %v564_v62  ;;  %v10622_v3 = vpack.c.bf16 %v1454_v2, %v1453_v1 }
 0x250   :  { %9031 = vmatprep.mubr.msk.f32.mxu1 %vm446_vm4, %v10541_v12  ;;  %9048 = vmatprep.mubr.msk.f32.mxu0 %vm446_vm4, %v10541_v12 }
 0x251   :  { %9032 = vmatmul.mubr.msk.f32.gmra.mrb[8].mxu1 %vm446_vm4, %v10543_v13  ;;  %9049 = vmatmul.mubr.msk.f32.gmra.mrb[14].mxu0 %vm446_vm4, %v10543_v13 }
 0x252   :  { %9059 = vmatprep.mubr.msk.f32.mxu1 %vm446_vm4, %v10504_v63 }
 0x255   :  { %9060 = vmatmul.mubr.msk.f32.vlgmr.msra.gmra.mrb[10].mxu1 %vm446_vm4, %v10506_v0 }
 0x256   :  { %9062 = vmatprep.mubr.msk.f32.mxu1 %vm446_vm4, %v10522_v6  ;;  %9358 = vmatpush3.bf16.msra.mxu1 %v10489_v56 }
 0x257   :  { %9360 = vmatprep.subr.bf16.mxu1 %v10573_v16 }
 0x259   :  { %9063 = vmatmul.mubr.msk.f32.gmra.mrb[12].mxu1 %vm446_vm4, %v10525_v7 }
 0x25a   :  { %9065 = vmatprep.mubr.msk.f32.mxu1 %vm446_vm4, %v10541_v12  ;;  %9362 = vmatpush3.bf16.msra.mxu1 %v10573_v16 }
 0x25b   :  { %9113 = vmatprep.subr.msk.mxu1 %vm97_vm0, %v564_v62 }
 0x25d   :  { %9066 = vmatmul.mubr.msk.f32.gmra.mrb[14].mxu1 %vm446_vm4, %v10543_v13 }
 0x31c   :  { %v9027_v19 = vpop.f32.mrb[4].mxu1  ;;  %v9044_v20 = vpop.f32.mrb[10].mxu0 }
 0x31d   :  { %v666_v21 = vadd.f32 %v9027_v19, %v7422_v17  ;;  %v772_v22 = vadd.f32 %v9044_v20, %v7429_v18  ;;  %v660_v23 = vpop.f32.mrb[5].mxu1  ;;  %v766_v24 = vpop.f32.mrb[11].mxu0 }
 0x31e   :  { %v661_v25 = vadd.f32 %v7422_v17, %v660_v23  ;;  %v767_v26 = vadd.f32 %v7429_v18, %v766_v24 }
 0x31f   :  { %v902_v27 = vmul.f32 %v772_v22, %v666_v21 }
 0x320   :  { %v901_v28 = vmul.f32 %v767_v26, %v661_v25  ;;  %v9030_v29 = vpop.f32.mrb[6].mxu1  ;;  %v9047_v30 = vpop.f32.mrb[12].mxu0 }
 0x321   :  { %v676_v31 = vadd.f32 %v9030_v29, %v7422_v17  ;;  %v782_v32 = vadd.f32 %v9047_v30, %v7429_v18  ;;  %v670_v33 = vpop.f32.mrb[7].mxu1  ;;  %v776_v34 = vpop.f32.mrb[13].mxu0 }
 0x322   :  { %v671_v35 = vadd.f32 %v7422_v17, %v670_v33  ;;  %v777_v36 = vadd.f32 %v7429_v18, %v776_v34  ;;  %9076 = vmatprep.mubr.msk.f32.mxu0 %vm446_vm4, %v901_v28 }
 0x323   :  { %v1023_v37 = vmul.f32 %v767_v26, %v676_v31  ;;  %v904_v38 = vmul.f32 %v782_v32, %v676_v31  ;;  %v1020_v39 = vmul.f32 %v782_v32, %v661_v25  ;;  %9077 = vmatmul.mubr.msk.f32.vlgmr.msra.gmra.mrb[16].mxu0 %vm446_vm4, %v902_v27 }
 0x324   :  { %v903_v40 = vmul.f32 %v777_v36, %v671_v35  ;;  %v9033_v41 = vpop.f32.mrb[8].mxu1  ;;  %v9050_v42 = vpop.f32.mrb[14].mxu0  ;;  %9103 = vmatpush3.msk.msra.mxu0 %vm97_vm0, %v564_v62 }
 0x325   :  { %v686_v43 = vadd.f32 %v9033_v41, %v7422_v17  ;;  %v792_v44 = vadd.f32 %v9050_v42, %v7429_v18  ;;  %v680_v45 = vpop.f32.mrb[9].mxu1  ;;  %v786_v46 = vpop.f32.mrb[15].mxu0  ;;  %9093 = vmatprep.mubr.msk.f32.mxu1 %vm446_vm4, %v1020_v39  ;;  %9364 = vmatprep.subr.bf16.mxu0 %v10622_v3 }
 0x326   :  { %v681_v47 = vadd.f32 %v7422_v17, %v680_v45  ;;  %v787_v48 = vadd.f32 %v7429_v18, %v786_v46  ;;  %9079 = vmatprep.mubr.msk.f32.mxu0 %vm446_vm4, %v903_v40 }
 0x327   :  { %v1025_v49 = vmul.f32 %v777_v36, %v686_v43  ;;  %v906_v50 = vmul.f32 %v792_v44, %v686_v43  ;;  %v1022_v51 = vmul.f32 %v792_v44, %v671_v35  ;;  %9080 = vmatmul.mubr.msk.f32.gmra.mrb[18].mxu0 %vm446_vm4, %v904_v38 }
 0x328   :  { %v1024_v52 = vmul.f32 %v772_v22, %v681_v47  ;;  %v905_v53 = vmul.f32 %v787_v48, %v681_v47  ;;  %v1021_v54 = vmul.f32 %v787_v48, %v666_v21  ;;  %v10590_v55 = vpop.f32.mrb[10].mxu1 }
 0x329   :  { %v10592_v57 = vpop.f32.mrb[11].mxu1 }
 0x32a   :  { %9082 = vmatprep.mubr.msk.f32.mxu0 %vm446_vm4, %v905_v53  ;;  %9094 = vmatmul.mubr.msk.f32.vlgmr.msra.gmra.mrb[16].mxu1 %vm446_vm4, %v1021_v54 }
 0x32b   :  { %9083 = vmatmul.mubr.msk.f32.gmra.mrb[20].mxu0 %vm446_vm4, %v906_v50  ;;  %9096 = vmatprep.mubr.msk.f32.mxu1 %vm446_vm4, %v1022_v51 }
 0x32c   :  { %v10598_v58 = vpop.f32.mrb[12].mxu1  ;;  %9114 = vmatpush3.msk.msra.mxu1 %vm97_vm0, %v564_v62 }
 0x32d   :  { %v10600_v59 = vpop.f32.mrb[13].mxu1 }
 0x32e   :  { %9097 = vmatmul.mubr.msk.f32.gmra.mrb[18].mxu1 %vm446_vm4, %v1023_v37 }
 0x32f   :  { %9099 = vmatprep.mubr.msk.f32.mxu1 %vm446_vm4, %v1024_v52 }
 0x330   :  { %v10604_v60 = vpop.f32.mrb[14].mxu1 }
 0x331   :  { %v10606_v61 = vpop.f32.mrb[15].mxu1 }
 0x332   :  { %9100 = vmatmul.mubr.msk.f32.gmra.mrb[20].mxu1 %vm446_vm4, %v1025_v49 }
 0x3f6   :  { %v9078_v4 = vpop.f32.mrb[16].mxu0 }
 0x3f7   :  { %v991_v5 = vpop.f32.mrb[17].mxu0 }
 0x3fa   :  { %v9081_v8 = vpop.f32.mrb[18].mxu0 }
 0x3fb   :  { %v1001_v9 = vpop.f32.mrb[19].mxu0 }
 0x3fd   :  { %v9095_v10 = vpop.f32.mrb[16].mxu1 }
 0x3fe   :  { %v1140_v11 = vmax.f32 %v9078_v4, %v9095_v10  ;;  %v9084_v14 = vpop.f32.mrb[20].mxu0  ;;  %v1110_v15 = vpop.f32.mrb[17].mxu1 }
 0x3ff   :  { %v1139_v17 = vmax.f32 %v991_v5, %v1110_v15  ;;  %v1011_v18 = vpop.f32.mrb[21].mxu0 }
 0x400   :  { %v1146_v19 = vsub.f32 %v9078_v4, %v1140_v11  ;;  %v1164_v20 = vsub.f32 %v9095_v10, %v1140_v11 }
 0x401   :  { %v1145_v21 = vsub.f32 %v991_v5, %v1139_v17  ;;  %v1163_v22 = vsub.f32 %v1110_v15, %v1139_v17  ;;  %v9098_v23 = vpop.f32.mrb[18].mxu1 }
 0x402   :  { %v1153_v24 = vmul.f32 1.442695, %v1146_v19  ;;  %v1171_v25 = vmul.f32 1.442695, %v1164_v20  ;;  %v1142_v26 = vmax.f32 %v9081_v8, %v9098_v23  ;;  %v1120_v27 = vpop.f32.mrb[19].mxu1 }
 0x403   :  { %v1151_v28 = vmul.f32 1.442695, %v1145_v21  ;;  %v1169_v29 = vmul.f32 1.442695, %v1163_v22  ;;  %v1141_v30 = vmax.f32 %v1001_v9, %v1120_v27 }
 0x404   :  { %10090 = vpow2.f32 %v1153_v24  ;;  %v1148_v31 = vsub.f32 %v9081_v8, %v1142_v26  ;;  %v1166_v32 = vsub.f32 %v9098_v23, %v1142_v26 }
 0x405   :  { %10092 = vpow2.f32 %v1171_v25  ;;  %v1147_v33 = vsub.f32 %v1001_v9, %v1141_v30  ;;  %v1165_v34 = vsub.f32 %v1120_v27, %v1141_v30  ;;  %v9101_v35 = vpop.f32.mrb[20].mxu1 }
 0x406   :  { %10094 = vpow2.f32 %v1151_v28  ;;  %v1157_v36 = vmul.f32 1.442695, %v1148_v31  ;;  %v1175_v37 = vmul.f32 1.442695, %v1166_v32  ;;  %v1144_v38 = vmax.f32 %v9084_v14, %v9101_v35  ;;  %v1130_v39 = vpop.f32.mrb[21].mxu1 }
 0x407   :  { %10096 = vpow2.f32 %v1169_v29  ;;  %v1155_v40 = vmul.f32 1.442695, %v1147_v33  ;;  %v1173_v41 = vmul.f32 1.442695, %v1165_v34  ;;  %v1143_v42 = vmax.f32 %v1011_v18, %v1130_v39 }
 0x408   :  { %10098 = vpow2.f32 %v1157_v36  ;;  %v1150_v43 = vsub.f32 %v9084_v14, %v1144_v38  ;;  %v1168_v44 = vsub.f32 %v9101_v35, %v1144_v38  ;;  %v1456_v38 = vld [vmem:[%s14592_s11 + $0x18] sm:$0xff] }
 0x409   :  { %10100 = vpow2.f32 %v1175_v37  ;;  %v1149_v45 = vsub.f32 %v1011_v18, %v1143_v42  ;;  %v1167_v46 = vsub.f32 %v1130_v39, %v1143_v42 }
 0x40a   :  { %10102 = vpow2.f32 %v1155_v40  ;;  %v1161_v47 = vmul.f32 1.442695, %v1150_v43  ;;  %v1179_v48 = vmul.f32 1.442695, %v1168_v44  ;;  %v7436_v40 = vld [vmem:[%s14595_s14] ss:$0 sm:$0xff] }
 0x40b   :  { %10104 = vpow2.f32 %v1173_v41  ;;  %v1159_v49 = vmul.f32 1.442695, %v1149_v45  ;;  %v1177_v50 = vmul.f32 1.442695, %v1167_v46  ;;  %v878_v41 = vadd.f32 %v10590_v55, %v7436_v40 }
 0x40c   :  { %10106 = vpow2.f32 %v1161_v47  ;;  %v893_v42 = vadd.f32 %v7436_v40, %v10606_v61  ;;  %v873_v43 = vadd.f32 %v7436_v40, %v10592_v57  ;;  %v888_v44 = vadd.f32 %v10598_v58, %v7436_v40 }
 0x40d   :  { %10108 = vpow2.f32 %v1179_v48 }
 0x40e   :  { %v10091_v51 = vpop.eup %10090  ;;  %10110 = vpow2.f32 %v1159_v49 }
 0x40f   :  { %v10093_v52 = vpop.eup %10092  ;;  %10112 = vpow2.f32 %v1177_v50 }
 0x410   :  { %v10095_v53 = vpop.eup %10094  ;;  %v1182_v54 = vadd.f32 %v10093_v52, %v10091_v51 }
 0x411   :  { %v10097_v62 = vpop.eup %10096 }
 0x412   :  { %v10099_v1 = vpop.eup %10098  ;;  %10114 = vrcp.f32 %v1182_v54  ;;  %v1181_v2 = vadd.f32 %v10097_v62, %v10095_v53  ;;  %v883_v54 = vadd.f32 %v7436_v40, %v10600_v59 }
 0x413   :  { %v10101_v4 = vpop.eup %10100 }
 0x414   :  { %v10103_v5 = vpop.eup %10102  ;;  %10116 = vrcp.f32 %v1181_v2  ;;  %v1184_v8 = vadd.f32 %v10101_v4, %v10099_v1 }
 0x415   :  { %v10105_v9 = vpop.eup %10104 }
 0x416   :  { %v10107_v10 = vpop.eup %10106  ;;  %10118 = vrcp.f32 %v1184_v8  ;;  %v1183_v11 = vadd.f32 %v10105_v9, %v10103_v5 }
 0x417   :  { %v10109_v14 = vpop.eup %10108 }
 0x418   :  { %v10111_v15 = vpop.eup %10110  ;;  %10120 = vrcp.f32 %v1183_v11  ;;  %v1186_v17 = vadd.f32 %v10109_v14, %v10107_v10 }
 0x419   :  { %v10113_v18 = vpop.eup %10112 }
 0x41a   :  { %10122 = vrcp.f32 %v1186_v17  ;;  %v1185_v19 = vadd.f32 %v10113_v18, %v10111_v15 }
 0x41c   :  { %v10115_v20 = vpop.eup %10114  ;;  %10124 = vrcp.f32 %v1185_v19 }
 0x41d   :  { %v1194_v21 = vmul.f32 %v10115_v20, %v10091_v51  ;;  %v1323_v22 = vmul.f32 %v10115_v20, %v10093_v52 }
 0x41e   :  { %v10117_v23 = vpop.eup %10116 }
 0x41f   :  { %v1193_v24 = vmul.f32 %v10117_v23, %v10095_v53  ;;  %v1322_v25 = vmul.f32 %v10117_v23, %v10097_v62  ;;  %v898_v62 = vadd.f32 %v10604_v60, %v7436_v40 }
 0x420   :  { %v10119_v26 = vpop.eup %10118 }
 0x421   :  { %9104 = vmatprep.mubr.msk.f32.mxu0 %vm1199_vm6, %v1193_v24  ;;  %9115 = vmatprep.mubr.msk.f32.mxu1 %vm1199_vm6, %v1322_v25  ;;  %v1196_v27 = vmul.f32 %v10119_v26, %v10099_v1  ;;  %v1325_v28 = vmul.f32 %v10119_v26, %v10101_v4 }
 0x422   :  { %v10121_v29 = vpop.eup %10120  ;;  %9105 = vmatmul.mubr.msk.f32.vlgmr.msra.gmra.mrb[22].mxu0 %vm1199_vm6, %v1194_v21  ;;  %9116 = vmatmul.mubr.msk.f32.vlgmr.msra.gmra.mrb[22].mxu1 %vm1199_vm6, %v1323_v22  ;;  %v7469_v22 = vld [vmem:[%s14596_s15] ss:$0 sm:$0xff] }
 0x423   :  { %v1195_v30 = vmul.f32 %v10121_v29, %v10103_v5  ;;  %v1324_v31 = vmul.f32 %v10121_v29, %v10105_v9  ;;  %9366 = vmatpush3.bf16.msra.mxu0 %v10622_v3  ;;  %v1455_v3 = vld [vmem:[%s14592_s11 + $0x10] sm:$0xff] }
 0x424   :  { %v10123_v32 = vpop.eup %10122  ;;  %v9367_v39 = vpack.c.bf16 %v1456_v38, %v1455_v3 }
 0x425   :  { %9107 = vmatprep.mubr.msk.f32.mxu0 %vm1199_vm6, %v1195_v30  ;;  %9118 = vmatprep.mubr.msk.f32.mxu1 %vm1199_vm6, %v1324_v31  ;;  %v1198_v33 = vmul.f32 %v10123_v32, %v10107_v10  ;;  %v1327_v34 = vmul.f32 %v10123_v32, %v10109_v14 }
 0x426   :  { %v10125_v35 = vpop.eup %10124  ;;  %9108 = vmatmul.mubr.msk.f32.gmra.mrb[24].mxu0 %vm1199_vm6, %v1196_v27  ;;  %9119 = vmatmul.mubr.msk.f32.gmra.mrb[24].mxu1 %vm1199_vm6, %v1325_v28 }
 0x427   :  { %v1197_v36 = vmul.f32 %v10125_v35, %v10111_v15  ;;  %v1326_v37 = vmul.f32 %v10125_v35, %v10113_v18  ;;  %9368 = vmatprep.subr.bf16.mxu0 %v9367_v39 }
 0x428   :  { %9370 = vmatpush3.bf16.msra.mxu0 %v9367_v39 }
 0x429   :  { %9110 = vmatprep.mubr.msk.f32.mxu0 %vm1199_vm6, %v1197_v36  ;;  %9121 = vmatprep.mubr.msk.f32.mxu1 %vm1199_vm6, %v1326_v37 }
 0x42a   :  { %9111 = vmatmul.mubr.msk.f32.gmra.mrb[26].mxu0 %vm1199_vm6, %v1198_v33  ;;  %9122 = vmatmul.mubr.msk.f32.gmra.mrb[26].mxu1 %vm1199_vm6, %v1327_v34 }
 0x4f5   :  { %v9106_v45 = vpop.f32.mrb[22].mxu0  ;;  %v9117_v46 = vpop.f32.mrb[22].mxu1 }
 0x4f6   :  { %v1317_v47 = vmul.f32 %v9106_v45, %v878_v41  ;;  %v1442_v48 = vmul.f32 %v9117_v46, %v893_v42  ;;  %v1287_v49 = vpop.f32.mrb[23].mxu0  ;;  %v1412_v50 = vpop.f32.mrb[23].mxu1 }
 0x4f7   :  { %v1316_v51 = vmul.f32 %v1287_v49, %v873_v43  ;;  %v1441_v52 = vmul.f32 %v1412_v50, %v888_v44 }
 0x4f8   :  { %v1448_v53 = vadd.f32 %v1442_v48, %v1317_v47 }
 0x4f9   :  { %v1447_v55 = vadd.f32 %v1441_v52, %v1316_v51  ;;  %v9109_v1 = vpop.f32.mrb[24].mxu0  ;;  %v9120_v61 = vpop.f32.mrb[24].mxu1 }
 0x4fa   :  { %v1319_v2 = vmul.f32 %v9109_v1, %v888_v44  ;;  %v1444_v57 = vmul.f32 %v9120_v61, %v873_v43  ;;  %v1297_v4 = vpop.f32.mrb[25].mxu0  ;;  %v1422_v58 = vpop.f32.mrb[25].mxu1 }
 0x4fb   :  { %v1318_v5 = vmul.f32 %v1297_v4, %v883_v54  ;;  %v1443_v8 = vmul.f32 %v1422_v58, %v898_v62  ;;  %9132 = vmatprep.mubr.msk.f32.mxu0 %vm446_vm4, %v1447_v55 }
 0x4fc   :  { %v1450_v9 = vadd.f32 %v1444_v57, %v1319_v2  ;;  %9133 = vmatmul.mubr.msk.f32.vlgmr.msra.gmra.mrb[28].mxu0 %vm446_vm4, %v1448_v53 }
 0x4fd   :  { %v1449_v10 = vadd.f32 %v1443_v8, %v1318_v5  ;;  %v9112_v11 = vpop.f32.mrb[26].mxu0  ;;  %v9123_v14 = vpop.f32.mrb[26].mxu1 }
 0x4fe   :  { %v1321_v59 = vmul.f32 %v9112_v11, %v898_v62  ;;  %v1446_v15 = vmul.f32 %v9123_v14, %v883_v54  ;;  %v1307_v60 = vpop.f32.mrb[27].mxu0  ;;  %v1432_v17 = vpop.f32.mrb[27].mxu1 }
 0x4ff   :  { %v1320_v18 = vmul.f32 %v1307_v60, %v893_v42  ;;  %v1445_v19 = vmul.f32 %v1432_v17, %v878_v41  ;;  %9135 = vmatprep.mubr.msk.f32.mxu0 %vm446_vm4, %v1449_v10  ;;  %v1705_v60 = vld [vmem:[%s14601_s20 + $0x88] sm:$0xff]  ;;  %v1691_v17 = vld [vmem:[%s14601_s20 + $0x18] sm:$0xff] }
 0x500   :  { %v1452_v20 = vadd.f32 %v1446_v15, %v1321_v59  ;;  %9136 = vmatmul.mubr.msk.f32.gmra.mrb[30].mxu0 %vm446_vm4, %v1450_v9  ;;  %v1689_v15 = vld [vmem:[%s14601_s20 + $0x8] sm:$0xff] }
 0x501   :  { %v1451_v21 = vadd.f32 %v1445_v19, %v1320_v18  ;;  %v9371_v18 = vpack.c.bf16 %v1705_v60, %v1689_v15  ;;  %v1707_v19 = vld [vmem:[%s14601_s20 + $0x98] sm:$0xff]  ;;  %v1741_v15 = vld [vmem:[%s14601_s20 + $0x1a8] sm:$0xff] }
 0x502   :  { %v1727_v60 = vld [vmem:[%s14601_s20 + $0x138] sm:$0xff] }
 0x503   :  { %9138 = vmatprep.mubr.msk.f32.mxu0 %vm446_vm4, %v1451_v21  ;;  %v1704_v21 = vld [vmem:[%s14601_s20 + $0x80] sm:$0xff]  ;;  %9372 = vmatprep.subr.bf16.mxu1 %v9371_v18 }
 0x504   :  { %9139 = vmatmul.mubr.msk.f32.gmra.mrb[32].mxu0 %vm446_vm4, %v1452_v20  ;;  %v1688_v20 = vld [vmem:[%s14601_s20] sm:$0xff] }
 0x5cf   :  { %v9134_v23 = vpop.f32.mrb[28].mxu0 }
 0x5d0   :  { %v1548_v24 = vpop.f32.mrb[29].mxu0  ;;  %v1554_v25 = vadd.f32 %v9134_v23, %v7469_v22  ;;  %v9373_v23 = vpack.c.bf16 %v1704_v21, %v1688_v20 }
 0x5d1   :  { %v1549_v26 = vadd.f32 %v7469_v22, %v1548_v24  ;;  %v1690_v24 = vld [vmem:[%s14601_s20 + $0x10] sm:$0xff] }
 0x5d2   :  { %v1578_v33 = vadd.f32 %v1554_v25, %v10506_v0  ;;  %v1706_v25 = vld [vmem:[%s14601_s20 + $0x90] sm:$0xff]  ;;  %9374 = vmatpush1.bf16.msra.mxu1 %v9373_v23 }
 0x5d3   :  { %v9137_v27 = vpop.f32.mrb[30].mxu0  ;;  %v1577_v28 = vadd.f32 %v1549_v26, %v10504_v63  ;;  %v9381_v26 = vpack.c.bf16 %v1706_v25, %v1690_v24  ;;  %v1724_v25 = vld [vmem:[%s14601_s20 + $0x120] sm:$0xff] }
 0x5d4   :  { %v1558_v29 = vpop.f32.mrb[31].mxu0  ;;  %v1564_v30 = vadd.f32 %v9137_v27, %v7469_v22  ;;  %v1588_v38 = vsel %vm446_vm4, %v1578_v33, 0.0  ;;  %v1721_v27 = vld [vmem:[%s14601_s20 + $0x108] sm:$0xff] }
 0x5d5   :  { %v1559_v31 = vadd.f32 %v7469_v22, %v1558_v29  ;;  %v1585_v32 = vsel %vm446_vm4, %v1577_v28, 0.0  ;;  %v1723_v29 = vld [vmem:[%s14601_s20 + $0x118] sm:$0xff] }
 0x5d6   :  { %1586 = vadd.xlane.f32.xlu1 %v1585_v32  ;;  %v1580_v39 = vadd.f32 %v1564_v30, %v10525_v7  ;;  %v1720_v32 = vld [vmem:[%s14601_s20 + $0x100] sm:$0xff] }
 0x5d7   :  { %v9140_v34 = vpop.f32.mrb[32].mxu0  ;;  %v1579_v35 = vadd.f32 %v1559_v31, %v10522_v6  ;;  %v1739_v31 = vld [vmem:[%s14601_s20 + $0x198] sm:$0xff] }
 0x5d8   :  { %v1568_v36 = vpop.f32.mrb[33].mxu0  ;;  %v1574_v63 = vadd.f32 %v9140_v34, %v7469_v22  ;;  %v1594_v40 = vsel %vm446_vm4, %v1580_v39, 0.0  ;;  %v9383_v34 = vpack.c.bf16 %v1739_v31, %v1723_v29  ;;  %v1726_v29 = vld [vmem:[%s14601_s20 + $0x130] sm:$0xff] }
 0x5d9   :  { %v1569_v37 = vadd.f32 %v7469_v22, %v1568_v36  ;;  %v1591_v3 = vsel %vm446_vm4, %v1579_v35, 0.0  ;;  %v9379_v22 = vpack.c.bf16 %v1707_v19, %v1691_v17  ;;  %v1722_v36 = vld [vmem:[%s14601_s20 + $0x110] sm:$0xff]  ;;  %v1743_v17 = vld [vmem:[%s14601_s20 + $0x1b8] sm:$0xff] }
 0x5da   :  { %1592 = vadd.xlane.f32.xlu0 %v1591_v3  ;;  %1589 = vadd.xlane.f32.xlu1 %v1588_v38  ;;  %v1582_v6 = vadd.f32 %v1574_v63, %v10543_v13  ;;  %v14619_v38 = vmov 0.0   ;;  %v1709_v63 = vld [vmem:[%s14601_s20 + $0xa8] sm:$0xff] }
 0x5db   :  { %v1581_v41 = vadd.f32 %v1569_v37, %v10541_v12  ;;  %9380 = vmatprep.subr.bf16.mxu0 %v9379_v22  ;;  %v1738_v37 = vld [vmem:[%s14601_s20 + $0x190] sm:$0xff]  ;;  %1918 = vmatprep.mubr.f32.mxu1 %v14619_v38 }
 0x5dc   :  { %v1600_v42 = vsel %vm446_vm4, %v1582_v6, 0.0  ;;  %9382 = vmatpush1.bf16.msra.mxu0 %v9381_v26  ;;  %v9385_v3 = vpack.c.bf16 %v1738_v37, %v1722_v36  ;;  %2019 = vmatprep.mubr.f32.mxu0 %v14619_v38  ;;  %v1740_v26 = vld [vmem:[%s14601_s20 + $0x1a0] sm:$0xff] }
 0x5dd   :  { %v1597_v0 = vsel %vm446_vm4, %v1581_v41, 0.0  ;;  %9384 = vmatprep.subr.bf16.mxu0 %v9383_v34  ;;  %v1715_v34 = vld [vmem:[%s14601_s20 + $0xd8] sm:$0xff]  ;;  %v9393_v36 = vpack.c.bf16 %v1740_v26, %v1724_v25  ;;  %v1733_v25 = vld [vmem:[%s14601_s20 + $0x168] sm:$0xff] }
 0x5de   :  { %1595 = vadd.xlane.f32.xlu1 %v1594_v40  ;;  %v1695_v40 = vld [vmem:[%s14601_s20 + $0x38] sm:$0xff]  ;;  %v1749_v26 = vld [vmem:[%s14601_s20 + $0x1e8] sm:$0xff] }
 0x5e0   :  { %9386 = vmatpush1.bf16.msra.mxu0 %v9385_v3 }
 0x5e2   :  { %1598 = vadd.xlane.f32.xlu1 %v1597_v0  ;;  %v1711_v0 = vld [vmem:[%s14601_s20 + $0xb8] sm:$0xff] }
 0x5e6   :  { %1601 = vadd.xlane.f32.xlu1 %v1600_v42 }
 0x663   :  { %v1587_v43 = vpop.xlane.xlu1 %1586 }
 0x664   :  { %v1604_v44 = vmul.f32 0.03125, %v1587_v43 }
 0x666   :  { %v10674_v45 = vsub.f32 %v1577_v28, %v1604_v44  ;;  %v1737_v28 = vld [vmem:[%s14601_s20 + $0x188] sm:$0xff] }
 0x667   :  { %v1593_v7 = vpop.xlane.xlu0 %1592  ;;  %v1590_v46 = vpop.xlane.xlu1 %1589  ;;  %v9375_v30 = vpack.c.bf16 %v1737_v28, %v1721_v27  ;;  %v9399_v28 = vpack.c.bf16 %v1743_v17, %v1727_v60 }
 0x668   :  { %v1606_v47 = vmul.f32 0.03125, %v1593_v7  ;;  %v1605_v48 = vmul.f32 0.03125, %v1590_v46  ;;  %v1616_v12 = vmul.f32 %v10674_v45, %v10674_v45 }
 0x669   :  { %9376 = vmatprep.subr.bf16.mxu1 %v9375_v30  ;;  %v1697_v30 = vld [vmem:[%s14601_s20 + $0x48] sm:$0xff] }
 0x66a   :  { %v10678_v49 = vsub.f32 %v1579_v35, %v1606_v47  ;;  %v10680_v50 = vsub.f32 %v1578_v33, %v1605_v48  ;;  %v1622_v13 = vsel %vm446_vm4, %v1616_v12, 0.0  ;;  %v1736_v33 = vld [vmem:[%s14601_s20 + $0x180] sm:$0xff] }
 0x66b   :  { %v1596_v51 = vpop.xlane.xlu1 %1595  ;;  %1623 = vadd.xlane.f32.xlu1 %v1622_v13  ;;  %v9377_v35 = vpack.c.bf16 %v1736_v33, %v1720_v32  ;;  %v1713_v32 = vld [vmem:[%s14601_s20 + $0xc8] sm:$0xff]  ;;  %v1699_v33 = vld [vmem:[%s14601_s20 + $0x58] sm:$0xff] }
 0x66c   :  { %v1607_v52 = vmul.f32 0.03125, %v1596_v51  ;;  %v1617_v53 = vmul.f32 %v10680_v50, %v10680_v50  ;;  %v1618_v55 = vmul.f32 %v10678_v49, %v10678_v49 }
 0x66d   :  { %9378 = vmatpush1.bf16.msra.mxu1 %v9377_v35 }
 0x66e   :  { %v10685_v54 = vsub.f32 %v1580_v39, %v1607_v52  ;;  %v1625_v62 = vsel %vm446_vm4, %v1617_v53, 0.0  ;;  %v1628_v57 = vsel %vm446_vm4, %v1618_v55, 0.0  ;;  %v1693_v39 = vld [vmem:[%s14601_s20 + $0x28] sm:$0xff] }
 0x66f   :  { %1626 = vadd.xlane.f32.xlu1 %v1625_v62  ;;  %v1599_v1 = vpop.xlane.xlu1 %1598  ;;  %v10769_v62 = vld [vmem:[%s14597_s16] ss:$0 sm:$0xff] }
 0x670   :  { %v1608_v61 = vmul.f32 0.03125, %v1599_v1  ;;  %v1619_v4 = vmul.f32 %v10685_v54, %v10685_v54  ;;  %v10774_v1 = vld [vmem:[%s14598_s17] ss:$0 sm:$0xff] }
 0x672   :  { %v10690_v2 = vsub.f32 %v1581_v41, %v1608_v61  ;;  %v1631_v9 = vsel %vm446_vm4, %v1619_v4, 0.0  ;;  %v9387_v41 = vpack.c.bf16 %v1709_v63, %v1693_v39  ;;  %v9403_v63 = vpack.c.bf16 %v1713_v32, %v1697_v30  ;;  %v1732_v30 = vld [vmem:[%s14601_s20 + $0x160] sm:$0xff] }
 0x673   :  { %1629 = vadd.xlane.f32.xlu1 %v1628_v57  ;;  %v1602_v58 = vpop.xlane.xlu1 %1601  ;;  %v9423_v32 = vpack.c.bf16 %v1749_v26, %v1733_v25  ;;  %v2765_v25 = vld [vmem:[%s14603_s22 + $0x38] sm:$0xff] }
 0x674   :  { %v1609_v5 = vmul.f32 0.03125, %v1602_v58  ;;  %v1620_v10 = vmul.f32 %v10690_v2, %v10690_v2  ;;  %9388 = vmatprep.subr.bf16.mxu1 %v9387_v41  ;;  %v1692_v58 = vld [vmem:[%s14601_s20 + $0x20] sm:$0xff] }
 0x676   :  { %v10695_v8 = vsub.f32 %v1582_v6, %v1609_v5  ;;  %v1634_v14 = vsel %vm446_vm4, %v1620_v10, 0.0  ;;  %v9395_v6 = vpack.c.bf16 %v1711_v0, %v1695_v40  ;;  %v1708_v5 = vld [vmem:[%s14601_s20 + $0xa0] sm:$0xff]  ;;  %v9411_v40 = vpack.c.bf16 %v1715_v34, %v1699_v33  ;;  %v1734_v34 = vld [vmem:[%s14601_s20 + $0x170] sm:$0xff] }
 0x677   :  { %1632 = vadd.xlane.f32.xlu1 %v1631_v9  ;;  %v9389_v23 = vpack.c.bf16 %v1708_v5, %v1692_v58  ;;  %v1744_v58 = vld [vmem:[%s14601_s20 + $0x1c0] sm:$0xff] }
 0x678   :  { %v1621_v11 = vmul.f32 %v10695_v8, %v10695_v8  ;;  %9396 = vmatprep.subr.bf16.mxu0 %v9395_v6 }
 0x67a   :  { %v1637_v59 = vsel %vm446_vm4, %v1621_v11, 0.0  ;;  %v1694_v11 = vld [vmem:[%s14601_s20 + $0x30] sm:$0xff] }
 0x67b   :  { %1635 = vadd.xlane.f32.xlu1 %v1634_v14  ;;  %1638 = vadd.xlane.f32.xlu0 %v1637_v59  ;;  %v1725_v14 = vld [vmem:[%s14601_s20 + $0x128] sm:$0xff] }
 0x67c   :  { %v9391_v27 = vpack.c.bf16 %v1741_v15, %v1725_v14  ;;  %v1717_v14 = vld [vmem:[%s14601_s20 + $0xe8] sm:$0xff]  ;;  %v1719_v15 = vld [vmem:[%s14601_s20 + $0xf8] sm:$0xff] }
 0x6f8   :  { %v1624_v42 = vpop.xlane.xlu1 %1623 }
 0x6f9   :  { %v1640_v43 = vmul.f32 0.03125, %v1624_v42 }
 0x6fb   :  { %v1646_v44 = vadd.f32 1e-05, %v1640_v43 }
 0x6fc   :  { %v1627_v7 = vpop.xlane.xlu1 %1626 }
 0x6fd   :  { %10126 = vrsqrt.f32 %v1646_v44  ;;  %v1641_v46 = vmul.f32 0.03125, %v1627_v7 }
 0x6ff   :  { %v1647_v47 = vadd.f32 1e-05, %v1641_v46 }
 0x700   :  { %v1630_v48 = vpop.xlane.xlu1 %1629 }
 0x701   :  { %10128 = vrsqrt.f32 %v1647_v47  ;;  %v1642_v12 = vmul.f32 0.03125, %v1630_v48 }
 0x703   :  { %v1648_v13 = vadd.f32 1e-05, %v1642_v12 }
 0x704   :  { %v1633_v51 = vpop.xlane.xlu1 %1632 }
 0x705   :  { %10130 = vrsqrt.f32 %v1648_v13  ;;  %v1643_v52 = vmul.f32 0.03125, %v1633_v51  ;;  %v1712_v13 = vld [vmem:[%s14601_s20 + $0xc0] sm:$0xff]  ;;  %v1698_v51 = vld [vmem:[%s14601_s20 + $0x50] sm:$0xff] }
 0x707   :  { %v10127_v53 = vpop.eup %10126  ;;  %v1649_v55 = vadd.f32 1e-05, %v1643_v52  ;;  %v1714_v52 = vld [vmem:[%s14601_s20 + $0xd0] sm:$0xff] }
 0x708   :  { %v1658_v61 = vmul.f32 %v10127_v53, %v10674_v45  ;;  %v1639_v57 = vpop.xlane.xlu0 %1638  ;;  %v1636_v4 = vpop.xlane.xlu1 %1635  ;;  %v1710_v45 = vld [vmem:[%s14601_s20 + $0xb0] sm:$0xff]  ;;  %v1729_v53 = vld [vmem:[%s14601_s20 + $0x148] sm:$0xff] }
 0x709   :  { %10132 = vrsqrt.f32 %v1649_v55  ;;  %v1645_v9 = vmul.f32 0.03125, %v1639_v57  ;;  %v1644_v10 = vmul.f32 0.03125, %v1636_v4  ;;  %v9397_v24 = vpack.c.bf16 %v1710_v45, %v1694_v11  ;;  %v1731_v55 = vld [vmem:[%s14601_s20 + $0x158] sm:$0xff]  ;;  %v1728_v4 = vld [vmem:[%s14601_s20 + $0x140] sm:$0xff]  ;;  %v1746_v11 = vld [vmem:[%s14601_s20 + $0x1d0] sm:$0xff] }
 0x70a   :  { %v1670_v59 = vmul.f32 %v10769_v62, %v1658_v61  ;;  %v9413_v57 = vpack.c.bf16 %v1714_v52, %v1698_v51  ;;  %v1701_v45 = vld [vmem:[%s14601_s20 + $0x68] sm:$0xff]  ;;  %v9409_v60 = vpack.c.bf16 %v1744_v58, %v1728_v4  ;;  %v2760_v52 = vld [vmem:[%s14603_s22 + $0x10] sm:$0xff]  ;;  %v2810_v58 = vld [vmem:[%s14603_s22 + $0x1a0] sm:$0xff] }
 0x70b   :  { %v10129_v18 = vpop.eup %10128  ;;  %v1651_v19 = vadd.f32 1e-05, %v1645_v9  ;;  %v1650_v20 = vadd.f32 1e-05, %v1644_v10  ;;  %v1730_v10 = vld [vmem:[%s14601_s20 + $0x150] sm:$0xff]  ;;  %v2779_v4 = vld [vmem:[%s14603_s22 + $0xa8] sm:$0xff] }
 0x70c   :  { %v10803_v21 = vadd.f32 %v10774_v1, %v1670_v59  ;;  %v1659_v22 = vmul.f32 %v10129_v18, %v10680_v50  ;;  %v1742_v50 = vld [vmem:[%s14601_s20 + $0x1b0] sm:$0xff]  ;;  %v1703_v59 = vld [vmem:[%s14601_s20 + $0x78] sm:$0xff]  ;;  %v9417_v17 = vpack.c.bf16 %v1746_v11, %v1730_v10  ;;  %v9419_v18 = vpack.c.bf16 %v1717_v14, %v1701_v45  ;;  %v2762_v11 = vld [vmem:[%s14603_s22 + $0x20] sm:$0xff] }
 0x70d   :  { %10134 = vrsqrt.f32 %v1651_v19  ;;  %v9401_v39 = vpack.c.bf16 %v1742_v50, %v1726_v29  ;;  %v9427_v19 = vpack.c.bf16 %v1719_v15, %v1703_v59  ;;  %v2763_v45 = vld [vmem:[%s14603_s22 + $0x28] sm:$0xff]  ;;  %v2794_v15 = vld [vmem:[%s14603_s22 + $0x120] sm:$0xff] }
 0x70e   :  { %v1671_v31 = vmul.f32 %v10769_v62, %v1659_v22  ;;  %10136 = vrsqrt.f32 %v1650_v20  ;;  %7478 = vmatmul.mubr.msk.f32.vlgmr.msra.gmra.mrb[28].mxu1 %vm446_vm4, %v10803_v21  ;;  %7484 = vmatmul.mubr.msk.f32.vlgmr.msra.gmra.mrb[34].mxu0 %vm446_vm4, %v10803_v21  ;;  %v1700_v20 = vld [vmem:[%s14601_s20 + $0x60] sm:$0xff] }
 0x70f   :  { %v10131_v35 = vpop.eup %10130  ;;  %1924 = vmatprep.mubr.f32.mxu1 %v14619_v38  ;;  %2025 = vmatprep.mubr.f32.mxu0 %v14619_v38  ;;  %v1716_v22 = vld [vmem:[%s14601_s20 + $0xe0] sm:$0xff] }
 0x710   :  { %v10838_v37 = vadd.f32 %v10774_v1, %v1671_v31  ;;  %v1660_v3 = vmul.f32 %v10131_v35, %v10678_v49  ;;  %9390 = vmatpush1.bf16.msra.mxu1 %v9389_v23  ;;  %9398 = vmatpush1.bf16.msra.mxu0 %v9397_v24  ;;  %v1702_v23 = vld [vmem:[%s14601_s20 + $0x70] sm:$0xff]  ;;  %v9421_v29 = vpack.c.bf16 %v1716_v22, %v1700_v20  ;;  %v1748_v31 = vld [vmem:[%s14601_s20 + $0x1e0] sm:$0xff]  ;;  %v2813_v20 = vld [vmem:[%s14603_s22 + $0x1b8] sm:$0xff] }
 0x711   :  { %9392 = vmatprep.subr.bf16.mxu1 %v9391_v27  ;;  %9400 = vmatprep.subr.bf16.mxu0 %v9399_v28  ;;  %v1718_v24 = vld [vmem:[%s14601_s20 + $0xf0] sm:$0xff]  ;;  %v1735_v27 = vld [vmem:[%s14601_s20 + $0x178] sm:$0xff]  ;;  %v9445_v22 = vpack.c.bf16 %v2763_v45, %v2762_v11 }
 0x712   :  { %v1672_v41 = vmul.f32 %v10769_v62, %v1660_v3  ;;  %7479 = vmatmul.mubr.msk.f32.gmra.mrb[30].mxu1 %vm446_vm4, %v10838_v37  ;;  %7485 = vmatmul.mubr.msk.f32.gmra.mrb[36].mxu0 %vm446_vm4, %v10838_v37  ;;  %v1751_v28 = vld [vmem:[%s14601_s20 + $0x1f8] sm:$0xff]  ;;  %v9429_v50 = vpack.c.bf16 %v1718_v24, %v1702_v23  ;;  %v1750_v35 = vld [vmem:[%s14601_s20 + $0x1f0] sm:$0xff]  ;;  %v2775_v3 = vld [vmem:[%s14603_s22 + $0x88] sm:$0xff] }
 0x713   :  { %v10133_v0 = vpop.eup %10132  ;;  %1930 = vmatprep.mubr.f32.mxu1 %v14619_v38  ;;  %2031 = vmatprep.mubr.f32.mxu0 %v14619_v38  ;;  %v9431_v33 = vpack.c.bf16 %v1751_v28, %v1735_v27  ;;  %v2764_v24 = vld [vmem:[%s14603_s22 + $0x30] sm:$0xff]  ;;  %v2789_v11 = vld [vmem:[%s14603_s22 + $0xf8] sm:$0xff] }
 0x714   :  { %v10849_v49 = vadd.f32 %v10774_v1, %v1672_v41  ;;  %v1661_v6 = vmul.f32 %v10133_v0, %v10685_v54  ;;  %9394 = vmatpush1.bf16.msra.mxu1 %v9393_v36  ;;  %9402 = vmatpush1.bf16.msra.mxu0 %v9401_v39  ;;  %v2774_v36 = vld [vmem:[%s14603_s22 + $0x80] sm:$0xff]  ;;  %v9433_v41 = vpack.c.bf16 %v1750_v35, %v1734_v34  ;;  %v2796_v28 = vld [vmem:[%s14603_s22 + $0x130] sm:$0xff] }
 0x715   :  { %9404 = vmatprep.subr.bf16.mxu1 %v9403_v63  ;;  %9412 = vmatprep.subr.bf16.mxu0 %v9411_v40  ;;  %v2806_v39 = vld [vmem:[%s14603_s22 + $0x180] sm:$0xff]  ;;  %v2807_v63 = vld [vmem:[%s14603_s22 + $0x188] sm:$0xff]  ;;  %v9425_v40 = vpack.c.bf16 %v1748_v31, %v1732_v30  ;;  %v9435_v0 = vpack.c.bf16 %v2775_v3, %v2774_v36  ;;  %v2820_v45 = vld [vmem:[%s14603_s22 + $0x1f0] sm:$0xff] }
 0x716   :  { %v1673_v42 = vmul.f32 %v10769_v62, %v1661_v6  ;;  %7480 = vmatmul.mubr.msk.f32.gmra.mrb[32].mxu1 %vm446_vm4, %v10849_v49  ;;  %7486 = vmatmul.mubr.msk.f32.gmra.mrb[38].mxu0 %vm446_vm4, %v10849_v49  ;;  %v9467_v6 = vpack.c.bf16 %v2807_v63, %v2806_v39  ;;  %v2783_v30 = vld [vmem:[%s14603_s22 + $0xc8] sm:$0xff]  ;;  %v2814_v31 = vld [vmem:[%s14603_s22 + $0x1c0] sm:$0xff] }
 0x717   :  { %v10135_v43 = vpop.eup %10134  ;;  %1936 = vmatprep.mubr.f32.mxu1 %v14619_v38  ;;  %2037 = vmatprep.mubr.f32.mxu0 %v14619_v38  ;;  %v2766_v35 = vld [vmem:[%s14603_s22 + $0x40] sm:$0xff]  ;;  %v2767_v36 = vld [vmem:[%s14603_s22 + $0x48] sm:$0xff] }
 0x718   :  { %v10137_v44 = vpop.eup %10136  ;;  %v10860_v54 = vadd.f32 %v10774_v1, %v1673_v42  ;;  %v1663_v7 = vmul.f32 %v10135_v43, %v10695_v8  ;;  %v1696_v8 = vld [vmem:[%s14601_s20 + $0x40] sm:$0xff]  ;;  %v2759_v43 = vld [vmem:[%s14603_s22 + $0x8] sm:$0xff] }
 0x719   :  { %v1662_v46 = vmul.f32 %v10137_v44, %v10690_v2  ;;  %v9405_v61 = vpack.c.bf16 %v1712_v13, %v1696_v8  ;;  %v2758_v42 = vld [vmem:[%s14603_s22] sm:$0xff]  ;;  %v2809_v8 = vld [vmem:[%s14603_s22 + $0x198] sm:$0xff] }
 0x71a   :  { %7481 = vmatmul.mubr.msk.f32.gmra.mrb[34].mxu1 %vm446_vm4, %v10860_v54  ;;  %7487 = vmatmul.mubr.msk.f32.gmra.mrb[40].mxu0 %vm446_vm4, %v10860_v54  ;;  %v1675_v48 = vmul.f32 %v10769_v62, %v1663_v7  ;;  %v2790_v44 = vld [vmem:[%s14603_s22 + $0x100] sm:$0xff]  ;;  %v2791_v7 = vld [vmem:[%s14603_s22 + $0x108] sm:$0xff]  ;;  %v9437_v13 = vpack.c.bf16 %v2759_v43, %v2758_v42  ;;  %v2817_v42 = vld [vmem:[%s14603_s22 + $0x1d8] sm:$0xff]  ;;  %v9453_v43 = vpack.c.bf16 %v2767_v36, %v2766_v35 }
 0x71b   :  { %v1674_v47 = vmul.f32 %v10769_v62, %v1662_v46  ;;  %1942 = vmatprep.mubr.f32.mxu1 %v14619_v38  ;;  %2043 = vmatprep.mubr.f32.mxu0 %v14619_v38  ;;  %v1745_v62 = vld [vmem:[%s14601_s20 + $0x1c8] sm:$0xff]  ;;  %v2776_v46 = vld [vmem:[%s14603_s22 + $0x90] sm:$0xff]  ;;  %v9469_v51 = vpack.c.bf16 %v2791_v7, %v2790_v44  ;;  %v2798_v63 = vld [vmem:[%s14603_s22 + $0x140] sm:$0xff] }
 0x71c   :  { %v10882_v2 = vadd.f32 %v10774_v1, %v1675_v48  ;;  %v9407_v5 = vpack.c.bf16 %v1745_v62, %v1729_v53  ;;  %v2808_v48 = vld [vmem:[%s14603_s22 + $0x190] sm:$0xff]  ;;  %v2761_v53 = vld [vmem:[%s14603_s22 + $0x18] sm:$0xff] }
 0x71d   :  { %v10873_v12 = vadd.f32 %v10774_v1, %v1674_v47  ;;  %v1747_v1 = vld [vmem:[%s14601_s20 + $0x1d8] sm:$0xff]  ;;  %v2768_v7 = vld [vmem:[%s14603_s22 + $0x50] sm:$0xff] }
 0x71e   :  { %v9415_v9 = vpack.c.bf16 %v1747_v1, %v1731_v55  ;;  %v2777_v47 = vld [vmem:[%s14603_s22 + $0x98] sm:$0xff]  ;;  %v9471_v55 = vpack.c.bf16 %v2809_v8, %v2808_v48  ;;  %v2792_v1 = vld [vmem:[%s14603_s22 + $0x110] sm:$0xff] }
 0x71f   :  { %7482 = vmatmul.mubr.msk.f32.gmra.mrb[36].mxu1 %vm446_vm4, %v10873_v12  ;;  %7488 = vmatmul.mubr.msk.f32.gmra.mrb[42].mxu0 %vm446_vm4, %v10873_v12  ;;  %v9439_v62 = vpack.c.bf16 %v2777_v47, %v2776_v46  ;;  %v2769_v46 = vld [vmem:[%s14603_s22 + $0x58] sm:$0xff]  ;;  %v2800_v8 = vld [vmem:[%s14603_s22 + $0x150] sm:$0xff] }
 0x720   :  { %1948 = vmatprep.mubr.f32.mxu1 %v14619_v38  ;;  %2049 = vmatprep.mubr.f32.mxu0 %v14619_v38 }
 0x723   :  { %7483 = vmatmul.mubr.msk.f32.gmra.mrb[38].mxu1 %vm446_vm4, %v10882_v2  ;;  %7489 = vmatmul.mubr.msk.f32.gmra.mrb[44].mxu0 %vm446_vm4, %v10882_v2 }
 0x724   :  { %2120 = vmatprep.mubr.f32.mxu1 %v14619_v38  ;;  %2221 = vmatprep.mubr.f32.mxu0 %v14619_v38 }
 0x727   :  { %7490 = vmatmul.mubr.msk.f32.vlgmr.msra.gmra.mrb[40].mxu1 %vm446_vm4, %v10803_v21  ;;  %7496 = vmatmul.mubr.msk.f32.vlgmr.msra.gmra.mrb[46].mxu0 %vm446_vm4, %v10803_v21 }
 0x728   :  { %2126 = vmatprep.mubr.f32.mxu1 %v14619_v38  ;;  %2227 = vmatprep.mubr.f32.mxu0 %v14619_v38 }
 0x729   :  { %9406 = vmatpush1.bf16.msra.mxu1 %v9405_v61  ;;  %9414 = vmatpush1.bf16.msra.mxu0 %v9413_v57  ;;  %v2793_v61 = vld [vmem:[%s14603_s22 + $0x118] sm:$0xff]  ;;  %v2778_v57 = vld [vmem:[%s14603_s22 + $0xa0] sm:$0xff] }
 0x72a   :  { %9408 = vmatprep.subr.bf16.mxu1 %v9407_v5  ;;  %9416 = vmatprep.subr.bf16.mxu0 %v9415_v9  ;;  %v2811_v5 = vld [vmem:[%s14603_s22 + $0x1a8] sm:$0xff]  ;;  %v9441_v9 = vpack.c.bf16 %v2761_v53, %v2760_v52  ;;  %v9473_v10 = vpack.c.bf16 %v2793_v61, %v2792_v1  ;;  %v9443_v14 = vpack.c.bf16 %v2779_v4, %v2778_v57  ;;  %v2818_v53 = vld [vmem:[%s14603_s22 + $0x1e0] sm:$0xff] }
 0x72b   :  { %7491 = vmatmul.mubr.msk.f32.gmra.mrb[42].mxu1 %vm446_vm4, %v10838_v37  ;;  %7497 = vmatmul.mubr.msk.f32.gmra.mrb[48].mxu0 %vm446_vm4, %v10838_v37  ;;  %v9475_v59 = vpack.c.bf16 %v2811_v5, %v2810_v58  ;;  %v2787_v52 = vld [vmem:[%s14603_s22 + $0xe8] sm:$0xff]  ;;  %v2770_v61 = vld [vmem:[%s14603_s22 + $0x60] sm:$0xff] }
 0x72c   :  { %2132 = vmatprep.mubr.f32.mxu1 %v14619_v38  ;;  %2233 = vmatprep.mubr.f32.mxu0 %v14619_v38  ;;  %v2771_v57 = vld [vmem:[%s14603_s22 + $0x68] sm:$0xff]  ;;  %v2802_v5 = vld [vmem:[%s14603_s22 + $0x160] sm:$0xff] }
 0x72d   :  { %9410 = vmatpush1.bf16.msra.mxu1 %v9409_v60  ;;  %9418 = vmatpush1.bf16.msra.mxu0 %v9417_v17  ;;  %v2795_v60 = vld [vmem:[%s14603_s22 + $0x128] sm:$0xff]  ;;  %v2780_v17 = vld [vmem:[%s14603_s22 + $0xb0] sm:$0xff] }
 0x72e   :  { %9420 = vmatprep.subr.bf16.mxu1 %v9419_v18  ;;  %9428 = vmatprep.subr.bf16.mxu0 %v9427_v19  ;;  %v2781_v18 = vld [vmem:[%s14603_s22 + $0xb8] sm:$0xff]  ;;  %v2812_v19 = vld [vmem:[%s14603_s22 + $0x1b0] sm:$0xff]  ;;  %v9477_v23 = vpack.c.bf16 %v2795_v60, %v2794_v15 }
 0x72f   :  { %7492 = vmatmul.mubr.msk.f32.gmra.mrb[44].mxu1 %vm446_vm4, %v10849_v49  ;;  %7498 = vmatmul.mubr.msk.f32.gmra.mrb[50].mxu0 %vm446_vm4, %v10849_v49  ;;  %v9447_v26 = vpack.c.bf16 %v2781_v18, %v2780_v17  ;;  %v9479_v27 = vpack.c.bf16 %v2813_v20, %v2812_v19  ;;  %v2772_v60 = vld [vmem:[%s14603_s22 + $0x70] sm:$0xff]  ;;  %v2773_v17 = vld [vmem:[%s14603_s22 + $0x78] sm:$0xff] }
 0x730   :  { %2138 = vmatprep.mubr.f32.mxu1 %v14619_v38  ;;  %2239 = vmatprep.mubr.f32.mxu0 %v14619_v38  ;;  %v2804_v20 = vld [vmem:[%s14603_s22 + $0x170] sm:$0xff] }
 0x733   :  { %7493 = vmatmul.mubr.msk.f32.gmra.mrb[46].mxu1 %vm446_vm4, %v10860_v54  ;;  %7499 = vmatmul.mubr.msk.f32.gmra.mrb[52].mxu0 %vm446_vm4, %v10860_v54 }
 0x734   :  { %2144 = vmatprep.mubr.f32.mxu1 %v14619_v38  ;;  %2245 = vmatprep.mubr.f32.mxu0 %v14619_v38 }
 0x737   :  { %7494 = vmatmul.mubr.msk.f32.gmra.mrb[48].mxu1 %vm446_vm4, %v10873_v12  ;;  %7500 = vmatmul.mubr.msk.f32.gmra.mrb[54].mxu0 %vm446_vm4, %v10873_v12 }
 0x738   :  { %2150 = vmatprep.mubr.f32.mxu1 %v14619_v38  ;;  %2251 = vmatprep.mubr.f32.mxu0 %v14619_v38 }
 0x73b   :  { %7495 = vmatmul.mubr.msk.f32.gmra.mrb[50].mxu1 %vm446_vm4, %v10882_v2  ;;  %7501 = vmatmul.mubr.msk.f32.gmra.mrb[56].mxu0 %vm446_vm4, %v10882_v2 }
 0x73c   :  { %2322 = vmatprep.mubr.f32.mxu1 %v14619_v38  ;;  %2423 = vmatprep.mubr.f32.mxu0 %v14619_v38 }
 0x73f   :  { %7502 = vmatmul.mubr.msk.f32.vlgmr.msra.gmra.mrb[52].mxu1 %vm446_vm4, %v10803_v21  ;;  %7508 = vmatmul.mubr.msk.f32.vlgmr.msra.gmra.mrb[58].mxu0 %vm446_vm4, %v10803_v21 }
 0x740   :  { %2328 = vmatprep.mubr.f32.mxu1 %v14619_v38  ;;  %2429 = vmatprep.mubr.f32.mxu0 %v14619_v38 }
 0x741   :  { %9422 = vmatpush1.bf16.msra.mxu1 %v9421_v29  ;;  %9430 = vmatpush1.bf16.msra.mxu0 %v9429_v50  ;;  %v2797_v29 = vld [vmem:[%s14603_s22 + $0x138] sm:$0xff]  ;;  %v2782_v50 = vld [vmem:[%s14603_s22 + $0xc0] sm:$0xff] }
 0x742   :  { %9424 = vmatprep.subr.bf16.mxu1 %v9423_v32  ;;  %9432 = vmatprep.subr.bf16.mxu0 %v9431_v33  ;;  %v2815_v32 = vld [vmem:[%s14603_s22 + $0x1c8] sm:$0xff]  ;;  %v9449_v33 = vpack.c.bf16 %v2765_v25, %v2764_v24  ;;  %v9481_v34 = vpack.c.bf16 %v2797_v29, %v2796_v28  ;;  %v9451_v3 = vpack.c.bf16 %v2783_v30, %v2782_v50  ;;  %v2870_v25 = vld [vmem:[%s14603_s22 + $0x380] sm:$0xff]  ;;  %v1756_v30 = vlaneseq }
 0x743   :  { %7503 = vmatmul.mubr.msk.f32.gmra.mrb[54].mxu1 %vm446_vm4, %v10838_v37  ;;  %7509 = vmatmul.mubr.msk.f32.gmra.mrb[60].mxu0 %vm446_vm4, %v10838_v37  ;;  %v9483_v39 = vpack.c.bf16 %v2815_v32, %v2814_v31  ;;  %v2839_v24 = vld [vmem:[%s14603_s22 + $0x288] sm:$0xff] }
 0x744   :  { %2334 = vmatprep.mubr.f32.mxu1 %v14619_v38  ;;  %2435 = vmatprep.mubr.f32.mxu0 %v14619_v38  ;;  %v11284_v31 = vshrl.u32 %v1756_v30, 7  ;;  %v11395_v30 = vld [vmem:[%s14603_s22 + $0x320] sm:$0xff] }
 0x745   :  { %9426 = vmatpush1.bf16.msra.mxu1 %v9425_v40  ;;  %9434 = vmatpush1.bf16.msra.mxu0 %v9433_v41  ;;  %v2799_v40 = vld [vmem:[%s14603_s22 + $0x148] sm:$0xff]  ;;  %v2784_v41 = vld [vmem:[%s14603_s22 + $0xd0] sm:$0xff] }
 0x746   :  { %9436 = vmatprep.subr.bf16.mxu1 %v9435_v0  ;;  %9468 = vmatprep.subr.bf16.mxu0 %v9467_v6  ;;  %v2785_v0 = vld [vmem:[%s14603_s22 + $0xd8] sm:$0xff]  ;;  %v2816_v6 = vld [vmem:[%s14603_s22 + $0x1d0] sm:$0xff]  ;;  %v9485_v44 = vpack.c.bf16 %v2799_v40, %v2798_v63  ;;  %v11287_v32 = vsub.s32 0, %v11284_v31  ;;  %v11298_v35 = vsub.s32 1, %v11284_v31  ;;  %v11301_v36 = vsub.s32 3, %v11284_v31 }
 0x747   :  { %7504 = vmatmul.mubr.msk.f32.gmra.mrb[56].mxu1 %vm446_vm4, %v10849_v49  ;;  %7510 = vmatmul.mubr.msk.f32.gmra.mrb[62].mxu0 %vm446_vm4, %v10849_v49  ;;  %v9455_v47 = vpack.c.bf16 %v2785_v0, %v2784_v41  ;;  %v9487_v48 = vpack.c.bf16 %v2817_v42, %v2816_v6  ;;  %v2822_v41 = vld [vmem:[%s14603_s22 + $0x200] sm:$0xff]  ;;  %v2823_v0 = vld [vmem:[%s14603_s22 + $0x208] sm:$0xff] }
 0x748   :  { %2340 = vmatprep.mubr.f32.mxu1 %v14619_v38  ;;  %2441 = vmatprep.mubr.f32.mxu0 %v14619_v38 }
 0x74b   :  { %7505 = vmatmul.mubr.msk.f32.gmra.mrb[58].mxu1 %vm446_vm4, %v10860_v54  ;;  %7511 = vmatmul.mubr.msk.f32.gmra.mrb[64].mxu0 %vm446_vm4, %v10860_v54 }
 0x74c   :  { %2346 = vmatprep.mubr.f32.mxu1 %v14619_v38  ;;  %2447 = vmatprep.mubr.f32.mxu0 %v14619_v38 }
 0x74f   :  { %7506 = vmatmul.mubr.msk.f32.gmra.mrb[60].mxu1 %vm446_vm4, %v10873_v12  ;;  %7512 = vmatmul.mubr.msk.f32.gmra.mrb[66].mxu0 %vm446_vm4, %v10873_v12 }
 0x750   :  { %2352 = vmatprep.mubr.f32.mxu1 %v14619_v38  ;;  %2453 = vmatprep.mubr.f32.mxu0 %v14619_v38 }
 0x753   :  { %7507 = vmatmul.mubr.msk.f32.gmra.mrb[62].mxu1 %vm446_vm4, %v10882_v2  ;;  %7513 = vmatmul.mubr.msk.f32.gmra.mrb[68].mxu0 %vm446_vm4, %v10882_v2 }
 0x754   :  { %2524 = vmatprep.mubr.f32.mxu1 %v14619_v38  ;;  %2625 = vmatprep.mubr.f32.mxu0 %v14619_v38 }
 0x757   :  { %7514 = vmatmul.mubr.msk.f32.vlgmr.msra.gmra.mrb[64].mxu1 %vm446_vm4, %v10803_v21  ;;  %7520 = vmatmul.mubr.msk.f32.vlgmr.msra.gmra.mrb[70].mxu0 %vm446_vm4, %v10803_v21 }
 0x758   :  { %2530 = vmatprep.mubr.f32.mxu1 %v14619_v38  ;;  %2631 = vmatprep.mubr.f32.mxu0 %v14619_v38 }
 0x759   :  { %9438 = vmatpush3.bf16.msra.mxu1 %v9437_v13  ;;  %9470 = vmatpush3.bf16.msra.mxu0 %v9469_v51  ;;  %v2801_v13 = vld [vmem:[%s14603_s22 + $0x158] sm:$0xff]  ;;  %v2786_v51 = vld [vmem:[%s14603_s22 + $0xe0] sm:$0xff] }
 0x75a   :  { %9440 = vmatprep.subr.bf16.mxu1 %v9439_v62  ;;  %9472 = vmatprep.subr.bf16.mxu0 %v9471_v55  ;;  %v2819_v62 = vld [vmem:[%s14603_s22 + $0x1e8] sm:$0xff]  ;;  %v9457_v55 = vpack.c.bf16 %v2769_v46, %v2768_v7  ;;  %v9489_v1 = vpack.c.bf16 %v2801_v13, %v2800_v8  ;;  %v9459_v4 = vpack.c.bf16 %v2787_v52, %v2786_v51  ;;  %v2840_v7 = vld [vmem:[%s14603_s22 + $0x290] sm:$0xff]  ;;  %v2841_v13 = vld [vmem:[%s14603_s22 + $0x298] sm:$0xff] }
 0x75b   :  { %7515 = vmatmul.mubr.msk.f32.gmra.mrb[66].mxu1 %vm446_vm4, %v10838_v37  ;;  %7521 = vmatmul.mubr.msk.f32.gmra.mrb[72].mxu0 %vm446_vm4, %v10838_v37  ;;  %v9491_v58 = vpack.c.bf16 %v2819_v62, %v2818_v53  ;;  %v2872_v51 = vld [vmem:[%s14603_s22 + $0x390] sm:$0xff]  ;;  %v2873_v52 = vld [vmem:[%s14603_s22 + $0x398] sm:$0xff] }
 0x75c   :  { %2536 = vmatprep.mubr.f32.mxu1 %v14619_v38  ;;  %2637 = vmatprep.mubr.f32.mxu0 %v14619_v38 }
 0x75d   :  { %9442 = vmatpush3.bf16.msra.mxu1 %v9441_v9  ;;  %9474 = vmatpush3.bf16.msra.mxu0 %v9473_v10  ;;  %v2803_v9 = vld [vmem:[%s14603_s22 + $0x168] sm:$0xff]  ;;  %v2788_v10 = vld [vmem:[%s14603_s22 + $0xf0] sm:$0xff] }
 0x75e   :  { %9444 = vmatprep.subr.bf16.mxu1 %v9443_v14  ;;  %9476 = vmatprep.subr.bf16.mxu0 %v9475_v59  ;;  %v2821_v14 = vld [vmem:[%s14603_s22 + $0x1f8] sm:$0xff]  ;;  %v9461_v59 = vpack.c.bf16 %v2771_v57, %v2770_v61  ;;  %v9493_v15 = vpack.c.bf16 %v2803_v9, %v2802_v5  ;;  %v9463_v18 = vpack.c.bf16 %v2789_v11, %v2788_v10 }
 0x75f   :  { %7516 = vmatmul.mubr.msk.f32.gmra.mrb[68].mxu1 %vm446_vm4, %v10849_v49  ;;  %7522 = vmatmul.mubr.msk.f32.gmra.mrb[74].mxu0 %vm446_vm4, %v10849_v49  ;;  %v9495_v19 = vpack.c.bf16 %v2821_v14, %v2820_v45  ;;  %v2825_v57 = vld [vmem:[%s14603_s22 + $0x218] sm:$0xff]  ;;  %v9503_v45 = vpack.c.bf16 %v2841_v13, %v2840_v7  ;;  %v9535_v14 = vpack.c.bf16 %v2873_v52, %v2872_v51 }
 0x760   :  { %2542 = vmatprep.mubr.f32.mxu1 %v14619_v38  ;;  %2643 = vmatprep.mubr.f32.mxu0 %v14619_v38 }
 0x761   :  { %9446 = vmatpush3.bf16.msra.mxu1 %v9445_v22  ;;  %9478 = vmatpush3.bf16.msra.mxu0 %v9477_v23  ;;  %v2805_v22 = vld [vmem:[%s14603_s22 + $0x178] sm:$0xff]  ;;  %v2838_v23 = vld [vmem:[%s14603_s22 + $0x280] sm:$0xff] }
 0x762   :  { %9448 = vmatprep.subr.bf16.mxu1 %v9447_v26  ;;  %9480 = vmatprep.subr.bf16.mxu0 %v9479_v27  ;;  %v2871_v26 = vld [vmem:[%s14603_s22 + $0x388] sm:$0xff]  ;;  %v9465_v27 = vpack.c.bf16 %v2773_v17, %v2772_v60  ;;  %v9497_v28 = vpack.c.bf16 %v2805_v22, %v2804_v20  ;;  %v9499_v29 = vpack.c.bf16 %v2839_v24, %v2838_v23  ;;  %v2874_v23 = vld [vmem:[%s14603_s22 + $0x3a0] sm:$0xff] }
 0x763   :  { %7517 = vmatmul.mubr.msk.f32.gmra.mrb[70].mxu1 %vm446_vm4, %v10860_v54  ;;  %7523 = vmatmul.mubr.msk.f32.gmra.mrb[76].mxu0 %vm446_vm4, %v10860_v54  ;;  %v9531_v50 = vpack.c.bf16 %v2871_v26, %v2870_v25  ;;  %v2875_v24 = vld [vmem:[%s14603_s22 + $0x3a8] sm:$0xff] }
 0x764   :  { %2548 = vmatprep.mubr.f32.mxu1 %v14619_v38  ;;  %2649 = vmatprep.mubr.f32.mxu0 %v14619_v38  ;;  %v9539_v7 = vpack.c.bf16 %v2875_v24, %v2874_v23  ;;  %v2861_v23 = vld [vmem:[%s14603_s22 + $0x338] sm:$0xff]  ;;  %v2846_v24 = vld [vmem:[%s14603_s22 + $0x2c0] sm:$0xff] }
 0x765   :  { %9450 = vmatpush3.bf16.msra.mxu1 %v9449_v33  ;;  %9482 = vmatpush3.bf16.msra.mxu0 %v9481_v34  ;;  %v11290_v33 = vsub.s32 2, %v11284_v31  ;;  %v11295_v34 = vld [vmem:[%s14602_s21] sm:$0xff] }
 0x766   :  { %9452 = vmatprep.subr.bf16.mxu1 %v9451_v3  ;;  %9484 = vmatprep.subr.bf16.mxu0 %v9483_v39  ;;  %v11305_v3 = vrot.slane %v11295_v34, %v11287_v32  ;;  %v11313_v63 = vrot.slane %v11295_v34, %v11298_v35  ;;  %v11317_v40 = vrot.slane %v11295_v34, %v11301_v36 }
 0x767   :  { %7518 = vmatmul.mubr.msk.f32.gmra.mrb[72].mxu1 %vm446_vm4, %v10873_v12  ;;  %7524 = vmatmul.mubr.msk.f32.gmra.mrb[78].mxu0 %vm446_vm4, %v10873_v12  ;;  %v11309_v39 = vrot.slane %v11295_v34, %v11290_v33 }
 0x768   :  { %2554 = vmatprep.mubr.f32.mxu1 %v14619_v38  ;;  %2655 = vmatprep.mubr.f32.mxu0 %v14619_v38 }
 0x769   :  { %9454 = vmatpush3.bf16.msra.mxu1 %v9453_v43  ;;  %9486 = vmatpush3.bf16.msra.mxu0 %v9485_v44  ;;  %v2854_v43 = vld [vmem:[%s14603_s22 + $0x300] sm:$0xff]  ;;  %v2855_v44 = vld [vmem:[%s14603_s22 + $0x308] sm:$0xff] }
 0x76a   :  { %9456 = vmatprep.subr.bf16.mxu1 %v9455_v47  ;;  %9488 = vmatprep.subr.bf16.mxu0 %v9487_v48  ;;  %v9533_v61 = vpack.c.bf16 %v2855_v44, %v2854_v43 }
 0x76b   :  { %7519 = vmatmul.mubr.msk.f32.gmra.mrb[74].mxu1 %vm446_vm4, %v10882_v2  ;;  %7525 = vmatmul.mubr.msk.f32.gmra.mrb[80].mxu0 %vm446_vm4, %v10882_v2 }
 0x76d   :  { %9458 = vmatpush3.bf16.msra.mxu1 %v9457_v55  ;;  %9490 = vmatpush3.bf16.msra.mxu0 %v9489_v1  ;;  %v11350_v55 = vld [vmem:[%s14603_s22 + $0x210] sm:$0xff]  ;;  %v9501_v1 = vpack.c.bf16 %v2823_v0, %v2822_v41  ;;  %v11400_v41 = vld [vmem:[%s14603_s22 + $0x328] sm:$0xff] }
 0x76e   :  { %9460 = vmatprep.subr.bf16.mxu1 %v9459_v4  ;;  %9492 = vmatprep.subr.bf16.mxu0 %v9491_v58  ;;  %v2856_v4 = vld [vmem:[%s14603_s22 + $0x310] sm:$0xff]  ;;  %v2857_v58 = vld [vmem:[%s14603_s22 + $0x318] sm:$0xff] }
 0x771   :  { %9462 = vmatpush3.bf16.msra.mxu1 %v9461_v59  ;;  %9494 = vmatpush3.bf16.msra.mxu0 %v9493_v15  ;;  %v11364_v59 = vld [vmem:[%s14603_s22 + $0x2a0] sm:$0xff]  ;;  %v11369_v15 = vld [vmem:[%s14603_s22 + $0x2a8] sm:$0xff] }
 0x772   :  { %9464 = vmatprep.subr.bf16.mxu1 %v9463_v18  ;;  %9496 = vmatprep.subr.bf16.mxu0 %v9495_v19  ;;  %v9507_v44 = vpack.c.bf16 %v11369_v15, %v11364_v59  ;;  %v2829_v59 = vld [vmem:[%s14603_s22 + $0x238] sm:$0xff]  ;;  %v2860_v15 = vld [vmem:[%s14603_s22 + $0x330] sm:$0xff] }
 0x775   :  { %9466 = vmatpush3.bf16.msra.mxu1 %v9465_v27  ;;  %9498 = vmatpush3.bf16.msra.mxu0 %v9497_v28  ;;  %v11384_v27 = vld [vmem:[%s14603_s22 + $0x220] sm:$0xff]  ;;  %v9505_v28 = vpack.c.bf16 %v2825_v57, %v11350_v55  ;;  %v2877_v55 = vld [vmem:[%s14603_s22 + $0x3b8] sm:$0xff] }
 0x776   :  { %9500 = vmatprep.subr.bf16.mxu1 %v9499_v29  ;;  %9532 = vmatprep.subr.bf16.mxu0 %v9531_v50  ;;  %v9537_v29 = vpack.c.bf16 %v2857_v58, %v2856_v4  ;;  %v11390_v50 = vld [vmem:[%s14603_s22 + $0x228] sm:$0xff]  ;;  %v9541_v4 = vpack.c.bf16 %v11400_v41, %v11395_v30  ;;  %v11431_v58 = vld [vmem:[%s14603_s22 + $0x230] sm:$0xff] }
 0x777   :  { %v9509_v57 = vpack.c.bf16 %v11390_v50, %v11384_v27  ;;  %v2847_v27 = vld [vmem:[%s14603_s22 + $0x2c8] sm:$0xff]  ;;  %v9513_v50 = vpack.c.bf16 %v2829_v59, %v11431_v58 }
 0x7e1   :  { %v1920_v6 = vpop.f32.mrb[28].mxu1  ;;  %v2021_v42 = vpop.f32.mrb[34].mxu0 }
 0x7e2   :  { %v1921_v46 = vadd.f32 %v1920_v6, %v11305_v3  ;;  %v2022_v47 = vadd.f32 %v2021_v42, %v11309_v39  ;;  %v1922_v48 = vpop.f32.mrb[29].mxu1  ;;  %v2023_v8 = vpop.f32.mrb[35].mxu0 }
 0x7e3   :  { %v1923_v53 = vadd.f32 %v1922_v48, %v11313_v63  ;;  %v2024_v62 = vadd.f32 %v2023_v8, %v11317_v40 }
 0x7e4   :  { %v2662_v60 = vmax.f32 %v1921_v46, 0.0  ;;  %v2664_v17 = vmax.f32 %v2022_v47, 0.0  ;;  %v11407_v46 = vld [vmem:[%s14603_s22 + $0x2b0] sm:$0xff]  ;;  %v11412_v47 = vld [vmem:[%s14603_s22 + $0x2b8] sm:$0xff] }
 0x7e5   :  { %v2663_v5 = vmax.f32 %v1923_v53, 0.0  ;;  %v2665_v9 = vmax.f32 %v2024_v62, 0.0  ;;  %v1926_v10 = vpop.f32.mrb[30].mxu1  ;;  %v2027_v11 = vpop.f32.mrb[36].mxu0  ;;  %v2876_v62 = vld [vmem:[%s14603_s22 + $0x3b0] sm:$0xff] }
 0x7e6   :  { %v1927_v18 = vadd.f32 %v1926_v10, %v11305_v3  ;;  %v2028_v19 = vadd.f32 %v2027_v11, %v11309_v39  ;;  %v1928_v20 = vpop.f32.mrb[31].mxu1  ;;  %v2029_v22 = vpop.f32.mrb[37].mxu0 }
 0x7e7   :  { %v1929_v25 = vadd.f32 %v1928_v20, %v11313_v63  ;;  %v2030_v26 = vadd.f32 %v2029_v22, %v11317_v40  ;;  %3085 = vmatprep.mubr.f32.mxu1 %v2663_v5  ;;  %3180 = vmatprep.mubr.f32.mxu0 %v2665_v9 }
 0x7e8   :  { %3086 = vmatmul.mubr.f32.vlgmr.msra.gmra.mrb[76].mxu1 %v2662_v60  ;;  %3181 = vmatmul.mubr.f32.vlgmr.msra.gmra.mrb[82].mxu0 %v2664_v17  ;;  %v2678_v48 = vmax.f32 %v1927_v18, 0.0  ;;  %v2680_v8 = vmax.f32 %v2028_v19, 0.0 }
 0x7e9   :  { %v2679_v0 = vmax.f32 %v1929_v25, 0.0  ;;  %v2681_v6 = vmax.f32 %v2030_v26, 0.0  ;;  %9502 = vmatpush3.bf16.msra.mxu1 %v9501_v1  ;;  %9534 = vmatpush3.bf16.msra.mxu0 %v9533_v61  ;;  %v1932_v42 = vpop.f32.mrb[32].mxu1  ;;  %v2033_v43 = vpop.f32.mrb[38].mxu0 }
 0x7ea   :  { %v1933_v13 = vadd.f32 %v1932_v42, %v11305_v3  ;;  %v2034_v51 = vadd.f32 %v2033_v43, %v11309_v39  ;;  %v1934_v52 = vpop.f32.mrb[33].mxu1  ;;  %v2035_v53 = vpop.f32.mrb[39].mxu0  ;;  %9504 = vmatprep.subr.bf16.mxu1 %v9503_v45  ;;  %9536 = vmatprep.subr.bf16.mxu0 %v9535_v14  ;;  %v9511_v45 = vpack.c.bf16 %v11412_v47, %v11407_v46  ;;  %v11469_v42 = vld [vmem:[%s14603_s22 + $0x248] sm:$0xff]  ;;  %v11474_v43 = vld [vmem:[%s14603_s22 + $0x340] sm:$0xff] }
 0x7eb   :  { %v1935_v1 = vadd.f32 %v1934_v52, %v11313_v63  ;;  %v2036_v61 = vadd.f32 %v2035_v53, %v11317_v40  ;;  %3090 = vmatprep.mubr.f32.mxu1 %v2679_v0  ;;  %3185 = vmatprep.mubr.f32.mxu0 %v2681_v6  ;;  %v9543_v14 = vpack.c.bf16 %v2877_v55, %v2876_v62  ;;  %v11464_v6 = vld [vmem:[%s14603_s22 + $0x240] sm:$0xff]  ;;  %v11485_v52 = vld [vmem:[%s14603_s22 + $0x2d0] sm:$0xff] }
 0x7ec   :  { %3091 = vmatmul.mubr.f32.gmra.mrb[78].mxu1 %v2678_v48  ;;  %3186 = vmatmul.mubr.f32.gmra.mrb[84].mxu0 %v2680_v8  ;;  %v2694_v60 = vmax.f32 %v1933_v13, 0.0  ;;  %v2696_v17 = vmax.f32 %v2034_v51, 0.0  ;;  %v9545_v0 = vpack.c.bf16 %v2861_v23, %v2860_v15  ;;  %v9515_v8 = vpack.c.bf16 %v2847_v27, %v2846_v24  ;;  %v2863_v51 = vld [vmem:[%s14603_s22 + $0x348] sm:$0xff] }
 0x7ed   :  { %v2695_v5 = vmax.f32 %v1935_v1, 0.0  ;;  %v2697_v9 = vmax.f32 %v2036_v61, 0.0  ;;  %9506 = vmatpush3.bf16.msra.mxu1 %v9505_v28  ;;  %9538 = vmatpush3.bf16.msra.mxu0 %v9537_v29  ;;  %v1938_v10 = vpop.f32.mrb[34].mxu1  ;;  %v2039_v11 = vpop.f32.mrb[40].mxu0  ;;  %v2878_v28 = vld [vmem:[%s14603_s22 + $0x3c0] sm:$0xff]  ;;  %v2879_v29 = vld [vmem:[%s14603_s22 + $0x3c8] sm:$0xff] }
 0x7ee   :  { %v1939_v18 = vadd.f32 %v1938_v10, %v11305_v3  ;;  %v2040_v19 = vadd.f32 %v2039_v11, %v11309_v39  ;;  %v1940_v20 = vpop.f32.mrb[35].mxu1  ;;  %v2041_v22 = vpop.f32.mrb[41].mxu0  ;;  %9508 = vmatprep.subr.bf16.mxu1 %v9507_v44  ;;  %9540 = vmatprep.subr.bf16.mxu0 %v9539_v7  ;;  %v11477_v44 = vsub.s32 5, %v11284_v31  ;;  %v9547_v13 = vpack.c.bf16 %v2879_v29, %v2878_v28  ;;  %v2849_v61 = vld [vmem:[%s14603_s22 + $0x2d8] sm:$0xff] }
 0x7ef   :  { %v1941_v25 = vadd.f32 %v1940_v20, %v11313_v63  ;;  %v2042_v26 = vadd.f32 %v2041_v22, %v11317_v40  ;;  %3095 = vmatprep.mubr.f32.mxu1 %v2695_v5  ;;  %3190 = vmatprep.mubr.f32.mxu0 %v2697_v9  ;;  %v11501_v9 = vsub.s32 7, %v11284_v31  ;;  %v9517_v10 = vpack.c.bf16 %v11469_v42, %v11464_v6  ;;  %v2833_v20 = vld [vmem:[%s14603_s22 + $0x258] sm:$0xff]  ;;  %v2864_v22 = vld [vmem:[%s14603_s22 + $0x350] sm:$0xff]  ;;  %v2834_v42 = vld [vmem:[%s14603_s22 + $0x260] sm:$0xff] }
 0x7f0   :  { %3096 = vmatmul.mubr.f32.gmra.mrb[80].mxu1 %v2694_v60  ;;  %3191 = vmatmul.mubr.f32.gmra.mrb[86].mxu0 %v2696_v17  ;;  %14649 = vst [vmem:[#allocation5_spill] sm:$0xff] %v11477_v44  ;;  %v2710_v7 = vmax.f32 %v1939_v18, 0.0  ;;  %v2712_v46 = vmax.f32 %v2040_v19, 0.0  ;;  %v9549_v11 = vpack.c.bf16 %v2863_v51, %v11474_v43  ;;  %v9519_v18 = vpack.c.bf16 %v2849_v61, %v11485_v52  ;;  %v2865_v29 = vld [vmem:[%s14603_s22 + $0x358] sm:$0xff]  ;;  %v2867_v61 = vld [vmem:[%s14603_s22 + $0x368] sm:$0xff] }
 0x7f1   :  { %v2711_v30 = vmax.f32 %v1941_v25, 0.0  ;;  %v2713_v41 = vmax.f32 %v2042_v26, 0.0  ;;  %9510 = vmatpush3.bf16.msra.mxu1 %v9509_v57  ;;  %9542 = vmatpush3.bf16.msra.mxu0 %v9541_v4  ;;  %v2880_v57 = vld [vmem:[%s14603_s22 + $0x3d0] sm:$0xff]  ;;  %v2881_v4 = vld [vmem:[%s14603_s22 + $0x3d8] sm:$0xff]  ;;  %14650 = vst [vmem:[#allocation6_spill] sm:$0xff] %v11501_v9  ;;  %v11549_v6 = vsub.s32 6, %v11284_v31 }
 0x7f2   :  { %v1944_v47 = vpop.f32.mrb[36].mxu1  ;;  %v2045_v48 = vpop.f32.mrb[42].mxu0  ;;  %9512 = vmatprep.subr.bf16.mxu1 %v9511_v45  ;;  %9544 = vmatprep.subr.bf16.mxu0 %v9543_v14  ;;  %v11508_v45 = vrot.slane %v11295_v34, %v11477_v44  ;;  %v11513_v14 = vld [vmem:[%s14603_s22 + $0x250] sm:$0xff]  ;;  %v9551_v19 = vpack.c.bf16 %v2881_v4, %v2880_v57 }
 0x7f3   :  { %v1945_v53 = vadd.f32 %v1944_v47, %v11305_v3  ;;  %v2046_v62 = vadd.f32 %v2045_v48, %v11309_v39  ;;  %v1946_v55 = vpop.f32.mrb[37].mxu1  ;;  %v2047_v1 = vpop.f32.mrb[43].mxu0  ;;  %3100 = vmatprep.mubr.f32.mxu1 %v2711_v30  ;;  %3195 = vmatprep.mubr.f32.mxu0 %v2713_v41  ;;  %v9521_v48 = vpack.c.bf16 %v2833_v20, %v11513_v14  ;;  %v2852_v57 = vld [vmem:[%s14603_s22 + $0x2f0] sm:$0xff] }
 0x7f4   :  { %v1947_v58 = vadd.f32 %v1946_v55, %v11313_v63  ;;  %v2048_v5 = vadd.f32 %v2047_v1, %v11317_v40  ;;  %3101 = vmatmul.mubr.f32.gmra.mrb[82].mxu1 %v2710_v7  ;;  %3196 = vmatmul.mubr.f32.gmra.mrb[88].mxu0 %v2712_v46 }
 0x7f5   :  { %9514 = vmatpush3.bf16.msra.mxu1 %v9513_v50  ;;  %9546 = vmatpush3.bf16.msra.mxu0 %v9545_v0  ;;  %v2726_v23 = vmax.f32 %v1945_v53, 0.0  ;;  %v2728_v24 = vmax.f32 %v2046_v62, 0.0  ;;  %v2850_v50 = vld [vmem:[%s14603_s22 + $0x2e0] sm:$0xff] }
 0x7f6   :  { %v2727_v59 = vmax.f32 %v1947_v58, 0.0  ;;  %v2729_v15 = vmax.f32 %v2048_v5, 0.0  ;;  %v1950_v60 = vpop.f32.mrb[38].mxu1  ;;  %v2051_v17 = vpop.f32.mrb[44].mxu0  ;;  %9516 = vmatprep.subr.bf16.mxu1 %v9515_v8  ;;  %9548 = vmatprep.subr.bf16.mxu0 %v9547_v13  ;;  %v2882_v0 = vld [vmem:[%s14603_s22 + $0x3e0] sm:$0xff]  ;;  %v9553_v8 = vpack.c.bf16 %v2865_v29, %v2864_v22  ;;  %v2853_v5 = vld [vmem:[%s14603_s22 + $0x2f8] sm:$0xff] }
 0x7f7   :  { %v1951_v25 = vadd.f32 %v1950_v60, %v11305_v3  ;;  %v2052_v26 = vadd.f32 %v2051_v17, %v11309_v39  ;;  %v1952_v27 = vpop.f32.mrb[39].mxu1  ;;  %v2053_v28 = vpop.f32.mrb[45].mxu0  ;;  %v11534_v3 = vrot.slane %v11295_v34, %v11501_v9  ;;  %v2851_v39 = vld [vmem:[%s14603_s22 + $0x2e8] sm:$0xff]  ;;  %v2866_v13 = vld [vmem:[%s14603_s22 + $0x360] sm:$0xff]  ;;  %v2837_v22 = vld [vmem:[%s14603_s22 + $0x278] sm:$0xff] }
 0x7f8   :  { %v1953_v30 = vadd.f32 %v1952_v27, %v11313_v63  ;;  %v2054_v41 = vadd.f32 %v2053_v28, %v11317_v40  ;;  %3105 = vmatprep.mubr.f32.mxu1 %v2727_v59  ;;  %3200 = vmatprep.mubr.f32.mxu0 %v2729_v15  ;;  %v2883_v63 = vld [vmem:[%s14603_s22 + $0x3e8] sm:$0xff]  ;;  %v11546_v40 = vsub.s32 4, %v11284_v31  ;;  %v9523_v55 = vpack.c.bf16 %v2851_v39, %v2850_v50  ;;  %v2836_v59 = vld [vmem:[%s14603_s22 + $0x270] sm:$0xff]  ;;  %v2869_v29 = vld [vmem:[%s14603_s22 + $0x378] sm:$0xff] }
 0x7f9   :  { %3106 = vmatmul.mubr.f32.gmra.mrb[84].mxu1 %v2726_v23  ;;  %3201 = vmatmul.mubr.f32.gmra.mrb[90].mxu0 %v2728_v24  ;;  %v2835_v31 = vld [vmem:[%s14603_s22 + $0x268] sm:$0xff]  ;;  %v2742_v51 = vmax.f32 %v1951_v25, 0.0  ;;  %v2744_v52 = vmax.f32 %v2052_v26, 0.0  ;;  %v9555_v1 = vpack.c.bf16 %v2883_v63, %v2882_v0  ;;  %v9557_v20 = vpack.c.bf16 %v2867_v61, %v2866_v13  ;;  %v2868_v23 = vld [vmem:[%s14603_s22 + $0x370] sm:$0xff]  ;;  %v2902_v50 = vld [vmem:[%s14603_s22 + $0x480] sm:$0xff] }
 0x7fa   :  { %v2743_v43 = vmax.f32 %v1953_v30, 0.0  ;;  %v2745_v7 = vmax.f32 %v2054_v41, 0.0  ;;  %9518 = vmatpush3.bf16.msra.mxu1 %v9517_v10  ;;  %9550 = vmatpush3.bf16.msra.mxu0 %v9549_v11  ;;  %v11554_v46 = vpop.f32.mrb[40].mxu1  ;;  %v11556_v47 = vpop.f32.mrb[46].mxu0  ;;  %v2884_v10 = vld [vmem:[%s14603_s22 + $0x3f0] sm:$0xff]  ;;  %v2885_v11 = vld [vmem:[%s14603_s22 + $0x3f8] sm:$0xff]  ;;  %v11584_v14 = vrot.slane %v11295_v34, %v11546_v40  ;;  %v11597_v24 = vrot.slane %v11295_v34, %v11549_v6 }
 0x7fb   :  { %v2124_v53 = vpop.f32.mrb[41].mxu1  ;;  %v2225_v62 = vpop.f32.mrb[47].mxu0  ;;  %9520 = vmatprep.subr.bf16.mxu1 %v9519_v18  ;;  %9552 = vmatprep.subr.bf16.mxu0 %v9551_v19  ;;  %v9525_v19 = vpack.c.bf16 %v2835_v31, %v2834_v42  ;;  %v9527_v27 = vpack.c.bf16 %v2853_v5, %v2852_v57  ;;  %v9559_v28 = vpack.c.bf16 %v2885_v11, %v2884_v10  ;;  %v2903_v30 = vld [vmem:[%s14603_s22 + $0x488] sm:$0xff]  ;;  %v2934_v34 = vld [vmem:[%s14603_s22 + $0x580] sm:$0xff]  ;;  %v11641_v13 = vld [vmem:[%s14603_s22 + $0x490] sm:$0xff] }
 0x7fc   :  { %v2125_v4 = vadd.f32 %v2124_v53, %v11508_v45  ;;  %v2226_v58 = vadd.f32 %v2225_v62, %v11534_v3  ;;  %3110 = vmatprep.mubr.f32.mxu1 %v2743_v43  ;;  %3205 = vmatprep.mubr.f32.mxu0 %v2745_v7  ;;  %v2935_v41 = vld [vmem:[%s14603_s22 + $0x588] sm:$0xff]  ;;  %v11617_v39 = vld [vmem:[%s14603_s22 + $0x400] sm:$0xff]  ;;  %v9529_v43 = vpack.c.bf16 %v2837_v22, %v2836_v59  ;;  %v11655_v61 = vld [vmem:[%s14603_s22 + $0x590] sm:$0xff] }
 0x7fd   :  { %3111 = vmatmul.mubr.f32.gmra.mrb[86].mxu1 %v2742_v51  ;;  %3206 = vmatmul.mubr.f32.gmra.mrb[92].mxu0 %v2744_v52  ;;  %v11622_v0 = vld [vmem:[%s14603_s22 + $0x408] sm:$0xff]  ;;  %v9561_v7 = vpack.c.bf16 %v2869_v29, %v2868_v23  ;;  %v2123_v51 = vadd.f32 %v11554_v46, %v11584_v14  ;;  %v2224_v52 = vadd.f32 %v11556_v47, %v11597_v24  ;;  %v2937_v46 = vld [vmem:[%s14603_s22 + $0x598] sm:$0xff]  ;;  %v11677_v10 = vld [vmem:[%s14603_s22 + $0x510] sm:$0xff] }
 0x7fe   :  { %v2667_v15 = vmax.f32 %v2125_v4, 0.0  ;;  %v2669_v60 = vmax.f32 %v2226_v58, 0.0  ;;  %9522 = vmatpush3.bf16.msra.mxu1 %v9521_v48  ;;  %9554 = vmatpush3.bf16.msra.mxu0 %v9553_v8  ;;  %v2128_v17 = vpop.f32.mrb[42].mxu1  ;;  %v2229_v18 = vpop.f32.mrb[48].mxu0  ;;  %v9563_v48 = vpack.c.bf16 %v2903_v30, %v2902_v50  ;;  %v11631_v8 = vld [vmem:[%s14603_s22 + $0x500] sm:$0xff]  ;;  %v11636_v31 = vld [vmem:[%s14603_s22 + $0x508] sm:$0xff]  ;;  %v9565_v4 = vpack.c.bf16 %v11622_v0, %v11617_v39 }
 0x7ff   :  { %v2130_v25 = vpop.f32.mrb[43].mxu1  ;;  %v2231_v26 = vpop.f32.mrb[49].mxu0  ;;  %9524 = vmatprep.subr.bf16.mxu1 %v9523_v55  ;;  %9556 = vmatprep.subr.bf16.mxu0 %v9555_v1  ;;  %v9595_v55 = vpack.c.bf16 %v2935_v41, %v2934_v34  ;;  %v11650_v1 = vld [vmem:[%s14603_s22 + $0x498] sm:$0xff]  ;;  %v11667_v58 = vld [vmem:[%s14603_s22 + $0x410] sm:$0xff]  ;;  %v11696_v22 = vld [vmem:[%s14603_s22 + $0x4a0] sm:$0xff] }
 0x800   :  { %3275 = vmatprep.mubr.f32.mxu1 %v2667_v15  ;;  %3370 = vmatprep.mubr.f32.mxu0 %v2669_v60  ;;  %v2131_v47 = vadd.f32 %v2130_v25, %v11508_v45  ;;  %v2232_v57 = vadd.f32 %v2231_v26, %v11534_v3  ;;  %v11672_v5 = vld [vmem:[%s14603_s22 + $0x418] sm:$0xff]  ;;  %v9597_v15 = vpack.c.bf16 %v11636_v31, %v11631_v8  ;;  %v11701_v23 = vld [vmem:[%s14603_s22 + $0x4a8] sm:$0xff]  ;;  %v2666_v25 = vmax.f32 %v2123_v51, 0.0  ;;  %v11708_v30 = vld [vmem:[%s14603_s22 + $0x5a0] sm:$0xff] }
 0x801   :  { %v9567_v60 = vpack.c.bf16 %v11650_v1, %v11641_v13  ;;  %v2668_v26 = vmax.f32 %v2224_v52, 0.0  ;;  %v11713_v34 = vld [vmem:[%s14603_s22 + $0x5a8] sm:$0xff]  ;;  %v9569_v0 = vpack.c.bf16 %v11672_v5, %v11667_v58  ;;  %v9571_v51 = vpack.c.bf16 %v11701_v23, %v11696_v22  ;;  %v11766_v5 = vld [vmem:[%s14603_s22 + $0x5b0] sm:$0xff] }
 0x802   :  { %9526 = vmatpush3.bf16.msra.mxu1 %v9525_v19  ;;  %9558 = vmatpush3.bf16.msra.mxu0 %v9557_v20  ;;  %v11624_v63 = vpop.f32.mrb[44].mxu1  ;;  %v11626_v42 = vpop.f32.mrb[50].mxu0  ;;  %v9599_v19 = vpack.c.bf16 %v2937_v46, %v11655_v61  ;;  %v11691_v20 = vld [vmem:[%s14603_s22 + $0x518] sm:$0xff]  ;;  %v2683_v41 = vmax.f32 %v2131_v47, 0.0  ;;  %v2685_v39 = vmax.f32 %v2232_v57, 0.0  ;;  %v9603_v52 = vpack.c.bf16 %v11713_v34, %v11708_v30  ;;  %v11785_v23 = vld [vmem:[%s14603_s22 + $0x430] sm:$0xff] }
 0x803   :  { %v2136_v53 = vpop.f32.mrb[45].mxu1  ;;  %v2237_v62 = vpop.f32.mrb[51].mxu0  ;;  %9528 = vmatprep.subr.bf16.mxu1 %v9527_v27  ;;  %9560 = vmatprep.subr.bf16.mxu0 %v9559_v28  ;;  %v2129_v27 = vadd.f32 %v2128_v17, %v11584_v14  ;;  %v2230_v28 = vadd.f32 %v2229_v18, %v11597_v24  ;;  %v9601_v13 = vpack.c.bf16 %v11691_v20, %v11677_v10  ;;  %v11771_v10 = vld [vmem:[%s14603_s22 + $0x5b8] sm:$0xff]  ;;  %v11815_v30 = vld [vmem:[%s14603_s22 + $0x4c0] sm:$0xff]  ;;  %v11820_v34 = vld [vmem:[%s14603_s22 + $0x4c8] sm:$0xff] }
 0x804   :  { %v2137_v17 = vadd.f32 %v2136_v53, %v11508_v45  ;;  %v2238_v18 = vadd.f32 %v2237_v62, %v11534_v3  ;;  %v11747_v53 = vld [vmem:[%s14603_s22 + $0x528] sm:$0xff]  ;;  %v11752_v62 = vld [vmem:[%s14603_s22 + $0x4b0] sm:$0xff]  ;;  %v2135_v46 = vadd.f32 %v11624_v63, %v11584_v14  ;;  %v2236_v47 = vadd.f32 %v11626_v42, %v11597_v24 }
 0x805   :  { %v2682_v1 = vmax.f32 %v2129_v27, 0.0  ;;  %v2684_v61 = vmax.f32 %v2230_v28, 0.0 }
 0x806   :  { %9530 = vmatpush3.bf16.msra.mxu1 %v9529_v43  ;;  %9562 = vmatpush3.bf16.msra.mxu0 %v9561_v7  ;;  %v11679_v11 = vpop.f32.mrb[46].mxu1  ;;  %v11681_v59 = vpop.f32.mrb[52].mxu0  ;;  %v11722_v43 = vld [vmem:[%s14603_s22 + $0x420] sm:$0xff]  ;;  %v11727_v7 = vld [vmem:[%s14603_s22 + $0x428] sm:$0xff]  ;;  %v2699_v20 = vmax.f32 %v2137_v17, 0.0  ;;  %v2701_v22 = vmax.f32 %v2238_v18, 0.0 }
 0x807   :  { %v2142_v29 = vpop.f32.mrb[47].mxu1  ;;  %v2243_v50 = vpop.f32.mrb[53].mxu0  ;;  %9564 = vmatprep.subr.bf16.mxu1 %v9563_v48  ;;  %9596 = vmatprep.subr.bf16.mxu0 %v9595_v55  ;;  %v11732_v48 = vld [vmem:[%s14603_s22 + $0x520] sm:$0xff]  ;;  %v11757_v55 = vld [vmem:[%s14603_s22 + $0x4b8] sm:$0xff]  ;;  %v2141_v17 = vadd.f32 %v11679_v11, %v11584_v14  ;;  %v2242_v18 = vadd.f32 %v11681_v59, %v11597_v24 }
 0x808   :  { %v2143_v63 = vadd.f32 %v2142_v29, %v11508_v45  ;;  %v2244_v42 = vadd.f32 %v2243_v50, %v11534_v3  ;;  %v9605_v27 = vpack.c.bf16 %v11747_v53, %v11732_v48  ;;  %v9575_v28 = vpack.c.bf16 %v11757_v55, %v11752_v62  ;;  %v11810_v50 = vld [vmem:[%s14603_s22 + $0x538] sm:$0xff]  ;;  %v11829_v48 = vld [vmem:[%s14603_s22 + $0x5c0] sm:$0xff]  ;;  %v11834_v53 = vld [vmem:[%s14603_s22 + $0x5c8] sm:$0xff] }
 0x809   :  { %3276 = vmatmul.mubr.f32.vlgmr.msra.gmra.mrb[88].mxu1 %v2666_v25  ;;  %3371 = vmatmul.mubr.f32.vlgmr.msra.gmra.mrb[94].mxu0 %v2668_v26  ;;  %v9607_v29 = vpack.c.bf16 %v11771_v10, %v11766_v5  ;;  %v9611_v5 = vpack.c.bf16 %v11834_v53, %v11829_v48  ;;  %v2927_v10 = vld [vmem:[%s14603_s22 + $0x548] sm:$0xff] }
 0x80a   :  { %3280 = vmatprep.mubr.f32.mxu1 %v2683_v41  ;;  %3375 = vmatprep.mubr.f32.mxu0 %v2685_v39  ;;  %v11734_v8 = vpop.f32.mrb[48].mxu1  ;;  %v11736_v31 = vpop.f32.mrb[54].mxu0  ;;  %v2698_v41 = vmax.f32 %v2135_v46, 0.0  ;;  %v2700_v39 = vmax.f32 %v2236_v47, 0.0  ;;  %v2715_v62 = vmax.f32 %v2143_v63, 0.0  ;;  %v2717_v55 = vmax.f32 %v2244_v42, 0.0 }
 0x80b   :  { %9566 = vmatpush3.bf16.msra.mxu1 %v9565_v4  ;;  %9598 = vmatpush3.bf16.msra.mxu0 %v9597_v15  ;;  %v2148_v57 = vpop.f32.mrb[49].mxu1  ;;  %v2249_v58 = vpop.f32.mrb[55].mxu0  ;;  %v11778_v4 = vld [vmem:[%s14602_s21 + $0x8] sm:$0xff]  ;;  %v9573_v15 = vpack.c.bf16 %v11727_v7, %v11722_v43  ;;  %v2714_v63 = vmax.f32 %v2141_v17, 0.0  ;;  %v2716_v42 = vmax.f32 %v2242_v18, 0.0 }
 0x80c   :  { %9568 = vmatprep.subr.bf16.mxu1 %v9567_v60  ;;  %9600 = vmatprep.subr.bf16.mxu0 %v9599_v19  ;;  %v11790_v60 = vld [vmem:[%s14603_s22 + $0x438] sm:$0xff]  ;;  %v11795_v19 = vld [vmem:[%s14603_s22 + $0x530] sm:$0xff]  ;;  %v2149_v11 = vadd.f32 %v2148_v57, %v11508_v45  ;;  %v2250_v59 = vadd.f32 %v2249_v58, %v11534_v3  ;;  %v9579_v58 = vpack.c.bf16 %v11820_v34, %v11815_v30 }
 0x80d   :  { %3281 = vmatmul.mubr.f32.gmra.mrb[90].mxu1 %v2682_v1  ;;  %3376 = vmatmul.mubr.f32.gmra.mrb[96].mxu0 %v2684_v61  ;;  %v9577_v1 = vpack.c.bf16 %v11790_v60, %v11785_v23  ;;  %v11851_v61 = vld [vmem:[%s14603_s22 + $0x440] sm:$0xff]  ;;  %v9609_v57 = vpack.c.bf16 %v11810_v50, %v11795_v19  ;;  %v2147_v23 = vadd.f32 %v11734_v8, %v11584_v14  ;;  %v2944_v30 = vld [vmem:[%s14603_s22 + $0x5d0] sm:$0xff]  ;;  %v2945_v34 = vld [vmem:[%s14603_s22 + $0x5d8] sm:$0xff] }
 0x80e   :  { %3285 = vmatprep.mubr.f32.mxu1 %v2699_v20  ;;  %3380 = vmatprep.mubr.f32.mxu0 %v2701_v22  ;;  %v11797_v25 = vpop.f32.mrb[50].mxu1  ;;  %v11799_v26 = vpop.f32.mrb[56].mxu0  ;;  %v11879_v20 = vld [vmem:[%s14603_s22 + $0x4d0] sm:$0xff]  ;;  %v11884_v22 = vld [vmem:[%s14603_s22 + $0x4d8] sm:$0xff]  ;;  %v2248_v60 = vadd.f32 %v11736_v31, %v11597_v24 }
 0x80f   :  { %9570 = vmatpush3.bf16.msra.mxu1 %v9569_v0  ;;  %9602 = vmatpush3.bf16.msra.mxu0 %v9601_v13  ;;  %v2154_v43 = vpop.f32.mrb[51].mxu1  ;;  %v2255_v7 = vpop.f32.mrb[57].mxu0  ;;  %v11840_v0 = vrot.slane %v11778_v4, %v11298_v35  ;;  %v11844_v13 = vrot.slane %v11778_v4, %v11301_v36 }
 0x810   :  { %9572 = vmatprep.subr.bf16.mxu1 %v9571_v51  ;;  %9604 = vmatprep.subr.bf16.mxu0 %v9603_v52  ;;  %v11856_v51 = vld [vmem:[%s14603_s22 + $0x448] sm:$0xff]  ;;  %v11861_v52 = vld [vmem:[%s14603_s22 + $0x540] sm:$0xff]  ;;  %v2155_v17 = vadd.f32 %v2154_v43, %v11508_v45  ;;  %v2256_v8 = vadd.f32 %v2255_v7, %v11534_v3  ;;  %v9583_v45 = vpack.c.bf16 %v11884_v22, %v11879_v20  ;;  %v2730_v3 = vmax.f32 %v2147_v23, 0.0 }
 0x811   :  { %3286 = vmatmul.mubr.f32.gmra.mrb[92].mxu1 %v2698_v41  ;;  %3381 = vmatmul.mubr.f32.gmra.mrb[98].mxu0 %v2700_v39  ;;  %v2731_v41 = vmax.f32 %v2149_v11, 0.0  ;;  %v2733_v39 = vmax.f32 %v2250_v59, 0.0  ;;  %v9581_v31 = vpack.c.bf16 %v11856_v51, %v11851_v61  ;;  %v9613_v18 = vpack.c.bf16 %v2927_v10, %v11861_v52  ;;  %v2915_v61 = vld [vmem:[%s14603_s22 + $0x4e8] sm:$0xff]  ;;  %v2946_v51 = vld [vmem:[%s14603_s22 + $0x5e0] sm:$0xff] }
 0x812   :  { %3290 = vmatprep.mubr.f32.mxu1 %v2715_v62  ;;  %3385 = vmatprep.mubr.f32.mxu0 %v2717_v55  ;;  %v11863_v46 = vpop.f32.mrb[52].mxu1  ;;  %v11865_v47 = vpop.f32.mrb[58].mxu0  ;;  %v9615_v43 = vpack.c.bf16 %v2945_v34, %v2944_v30  ;;  %v2254_v7 = vadd.f32 %v11799_v26, %v11597_v24  ;;  %v2896_v62 = vld [vmem:[%s14603_s22 + $0x450] sm:$0xff]  ;;  %v2897_v55 = vld [vmem:[%s14603_s22 + $0x458] sm:$0xff]  ;;  %v2747_v11 = vmax.f32 %v2155_v17, 0.0  ;;  %v2749_v59 = vmax.f32 %v2256_v8, 0.0 }
 0x813   :  { %9574 = vmatpush3.bf16.msra.mxu1 %v9573_v15  ;;  %9606 = vmatpush3.bf16.msra.mxu0 %v9605_v27  ;;  %v2326_v19 = vpop.f32.mrb[53].mxu1  ;;  %v2427_v50 = vpop.f32.mrb[59].mxu0  ;;  %v2929_v26 = vld [vmem:[%s14603_s22 + $0x558] sm:$0xff]  ;;  %v2947_v52 = vld [vmem:[%s14603_s22 + $0x5e8] sm:$0xff]  ;;  %v2898_v23 = vld [vmem:[%s14603_s22 + $0x460] sm:$0xff] }
 0x814   :  { %9576 = vmatprep.subr.bf16.mxu1 %v9575_v28  ;;  %9608 = vmatprep.subr.bf16.mxu0 %v9607_v29  ;;  %v2732_v28 = vmax.f32 %v2248_v60, 0.0  ;;  %v2153_v29 = vadd.f32 %v11797_v25, %v11584_v14  ;;  %v2327_v14 = vadd.f32 %v2326_v19, %v11840_v0  ;;  %v2428_v24 = vadd.f32 %v2427_v50, %v11844_v13  ;;  %v2928_v25 = vld [vmem:[%s14603_s22 + $0x550] sm:$0xff]  ;;  %v2899_v60 = vld [vmem:[%s14603_s22 + $0x468] sm:$0xff]  ;;  %v2917_v8 = vld [vmem:[%s14603_s22 + $0x4f8] sm:$0xff] }
 0x815   :  { %3291 = vmatmul.mubr.f32.gmra.mrb[94].mxu1 %v2714_v63  ;;  %3386 = vmatmul.mubr.f32.gmra.mrb[100].mxu0 %v2716_v42  ;;  %v2748_v10 = vmax.f32 %v2254_v7, 0.0  ;;  %v9585_v63 = vpack.c.bf16 %v2897_v55, %v2896_v62  ;;  %v9617_v42 = vpack.c.bf16 %v2929_v26, %v2928_v25  ;;  %v9619_v34 = vpack.c.bf16 %v2947_v52, %v2946_v51  ;;  %v2916_v17 = vld [vmem:[%s14603_s22 + $0x4f0] sm:$0xff]  ;;  %v2933_v26 = vld [vmem:[%s14603_s22 + $0x578] sm:$0xff]  ;;  %v2998_v51 = vld [vmem:[%s14603_s22 + $0x780] sm:$0xff] }
 0x816   :  { %3295 = vmatprep.mubr.f32.mxu1 %v2731_v41  ;;  %3390 = vmatprep.mubr.f32.mxu0 %v2733_v39  ;;  %v11900_v15 = vpop.f32.mrb[54].mxu1  ;;  %v11902_v27 = vpop.f32.mrb[60].mxu0  ;;  %v2671_v19 = vmax.f32 %v2327_v14, 0.0  ;;  %v2673_v50 = vmax.f32 %v2428_v24, 0.0  ;;  %v2930_v41 = vld [vmem:[%s14603_s22 + $0x560] sm:$0xff]  ;;  %v2931_v39 = vld [vmem:[%s14603_s22 + $0x568] sm:$0xff]  ;;  %v9589_v7 = vpack.c.bf16 %v2899_v60, %v2898_v23  ;;  %v11996_v14 = vrot.slane %v11778_v4, %v11290_v33 }
 0x817   :  { %9578 = vmatpush3.bf16.msra.mxu1 %v9577_v1  ;;  %9610 = vmatpush3.bf16.msra.mxu0 %v9609_v57  ;;  %v11911_v48 = vpop.f32.mrb[55].mxu1  ;;  %v11913_v53 = vpop.f32.mrb[61].mxu0  ;;  %v2914_v1 = vld [vmem:[%s14603_s22 + $0x4e0] sm:$0xff]  ;;  %v9621_v62 = vpack.c.bf16 %v2931_v39, %v2930_v41  ;;  %v2900_v55 = vld [vmem:[%s14603_s22 + $0x470] sm:$0xff]  ;;  %v9591_v24 = vpack.c.bf16 %v2917_v8, %v2916_v17  ;;  %v2999_v52 = vld [vmem:[%s14603_s22 + $0x788] sm:$0xff] }
 0x818   :  { %9580 = vmatprep.subr.bf16.mxu1 %v9579_v58  ;;  %9612 = vmatprep.subr.bf16.mxu0 %v9611_v5  ;;  %v2746_v5 = vmax.f32 %v2153_v29, 0.0  ;;  %v9587_v30 = vpack.c.bf16 %v2915_v61, %v2914_v1  ;;  %v2966_v1 = vld [vmem:[%s14603_s22 + $0x680] sm:$0xff]  ;;  %v2967_v61 = vld [vmem:[%s14603_s22 + $0x688] sm:$0xff]  ;;  %v12042_v39 = vld [vmem:[%s14603_s22 + $0x690] sm:$0xff]  ;;  %v2426_v8 = vadd.f32 %v11865_v47, %v11996_v14  ;;  %v2333_v47 = vadd.f32 %v11911_v48, %v11840_v0 }
 0x819   :  { %3296 = vmatmul.mubr.f32.gmra.mrb[96].mxu1 %v2730_v3  ;;  %3391 = vmatmul.mubr.f32.gmra.mrb[102].mxu0 %v2732_v28  ;;  %v11979_v3 = vrot.slane %v11778_v4, %v11287_v32  ;;  %v2983_v41 = vld [vmem:[%s14603_s22 + $0x708] sm:$0xff] }
 0x81a   :  { %3300 = vmatprep.mubr.f32.mxu1 %v2747_v11  ;;  %3395 = vmatprep.mubr.f32.mxu0 %v2749_v59  ;;  %v11941_v57 = vpop.f32.mrb[56].mxu1  ;;  %v11943_v58 = vpop.f32.mrb[62].mxu0  ;;  %v2901_v11 = vld [vmem:[%s14603_s22 + $0x478] sm:$0xff]  ;;  %v2932_v59 = vld [vmem:[%s14603_s22 + $0x570] sm:$0xff] }
 0x81b   :  { %9582 = vmatpush3.bf16.msra.mxu1 %v9581_v31  ;;  %9614 = vmatpush3.bf16.msra.mxu0 %v9613_v18  ;;  %v11945_v20 = vpop.f32.mrb[57].mxu1  ;;  %v11947_v22 = vpop.f32.mrb[63].mxu0  ;;  %v2948_v31 = vld [vmem:[%s14603_s22 + $0x5f0] sm:$0xff]  ;;  %v2949_v18 = vld [vmem:[%s14603_s22 + $0x5f8] sm:$0xff]  ;;  %v2325_v17 = vadd.f32 %v11863_v46, %v11979_v3 }
 0x81c   :  { %9584 = vmatprep.subr.bf16.mxu1 %v9583_v45  ;;  %9616 = vmatprep.subr.bf16.mxu0 %v9615_v43  ;;  %v9623_v25 = vpack.c.bf16 %v2949_v18, %v2948_v31  ;;  %v9659_v31 = vpack.c.bf16 %v2999_v52, %v2998_v51  ;;  %v12051_v18 = vld [vmem:[%s14603_s22 + $0x698] sm:$0xff]  ;;  %v12092_v51 = vld [vmem:[%s14603_s22 + $0x710] sm:$0xff] }
 0x81d   :  { %3301 = vmatmul.mubr.f32.gmra.mrb[98].mxu1 %v2746_v5  ;;  %3396 = vmatmul.mubr.f32.gmra.mrb[104].mxu0 %v2748_v10  ;;  %v3001_v46 = vld [vmem:[%s14603_s22 + $0x798] sm:$0xff] }
 0x81e   :  { %3465 = vmatprep.mubr.f32.mxu1 %v2671_v19  ;;  %3560 = vmatprep.mubr.f32.mxu0 %v2673_v50  ;;  %v11973_v45 = vpop.f32.mrb[58].mxu1  ;;  %v11975_v43 = vpop.f32.mrb[64].mxu0  ;;  %v9593_v19 = vpack.c.bf16 %v2901_v11, %v2900_v55  ;;  %v9625_v50 = vpack.c.bf16 %v2933_v26, %v2932_v59  ;;  %v12097_v52 = vld [vmem:[%s14603_s22 + $0x718] sm:$0xff] }
 0x81f   :  { %9586 = vmatpush3.bf16.msra.mxu1 %v9585_v63  ;;  %9618 = vmatpush3.bf16.msra.mxu0 %v9617_v42  ;;  %v11981_v28 = vpop.f32.mrb[59].mxu1  ;;  %v11983_v29 = vpop.f32.mrb[65].mxu0  ;;  %v12020_v63 = vld [vmem:[%s14603_s22 + $0x600] sm:$0xff]  ;;  %v12025_v42 = vld [vmem:[%s14603_s22 + $0x608] sm:$0xff] }
 0x820   :  { %9588 = vmatprep.subr.bf16.mxu1 %v9587_v30  ;;  %9620 = vmatprep.subr.bf16.mxu0 %v9619_v34  ;;  %v9627_v30 = vpack.c.bf16 %v2967_v61, %v2966_v1  ;;  %v12034_v34 = vld [vmem:[%s14603_s22 + $0x700] sm:$0xff]  ;;  %v9629_v59 = vpack.c.bf16 %v12025_v42, %v12020_v63  ;;  %v9631_v1 = vpack.c.bf16 %v12051_v18, %v12042_v39  ;;  %v2670_v42 = vmax.f32 %v2325_v17, 0.0  ;;  %v12121_v17 = vld [vmem:[%s14603_s22 + $0x7a8] sm:$0xff] }
 0x821   :  { %v9661_v26 = vpack.c.bf16 %v2983_v41, %v12034_v34  ;;  %v12102_v63 = vld [vmem:[%s14603_s22 + $0x6a0] sm:$0xff]  ;;  %v2432_v34 = vadd.f32 %v11902_v27, %v11996_v14  ;;  %v12111_v41 = vld [vmem:[%s14603_s22 + $0x6a8] sm:$0xff]  ;;  %v2339_v27 = vadd.f32 %v11945_v20, %v11840_v0 }
 0x822   :  { %v12013_v5 = vpop.f32.mrb[60].mxu1  ;;  %v12015_v10 = vpop.f32.mrb[66].mxu0  ;;  %v12116_v39 = vld [vmem:[%s14603_s22 + $0x7a0] sm:$0xff]  ;;  %v12141_v20 = vld [vmem:[%s14603_s22 + $0x628] sm:$0xff] }
 0x823   :  { %9590 = vmatpush3.bf16.msra.mxu1 %v9589_v7  ;;  %9622 = vmatpush3.bf16.msra.mxu0 %v9621_v62  ;;  %v12027_v23 = vpop.f32.mrb[61].mxu1  ;;  %v12029_v60 = vpop.f32.mrb[67].mxu0  ;;  %v12056_v7 = vld [vmem:[%s14603_s22 + $0x790] sm:$0xff]  ;;  %v2434_v62 = vadd.f32 %v11913_v53, %v11844_v13 }
 0x824   :  { %9592 = vmatprep.subr.bf16.mxu1 %v9591_v24  ;;  %9624 = vmatprep.subr.bf16.mxu0 %v9623_v25  ;;  %v12074_v24 = vld [vmem:[%s14603_s22 + $0x610] sm:$0xff]  ;;  %v12079_v25 = vld [vmem:[%s14603_s22 + $0x618] sm:$0xff]  ;;  %v9663_v61 = vpack.c.bf16 %v3001_v46, %v12056_v7  ;;  %v12136_v46 = vld [vmem:[%s14603_s22 + $0x620] sm:$0xff] }
 0x825   :  { %v9633_v7 = vpack.c.bf16 %v12079_v25, %v12074_v24  ;;  %v9635_v24 = vpack.c.bf16 %v12111_v41, %v12102_v63  ;;  %v9667_v25 = vpack.c.bf16 %v12121_v17, %v12116_v39  ;;  %v2688_v63 = vmax.f32 %v2432_v34, 0.0  ;;  %v12175_v17 = vld [vmem:[%s14603_s22 + $0x6b8] sm:$0xff] }
 0x826   :  { %v12065_v55 = vpop.f32.mrb[62].mxu1  ;;  %v12067_v11 = vpop.f32.mrb[68].mxu0  ;;  %v2337_v41 = vadd.f32 %v11941_v57, %v11979_v3  ;;  %v2438_v39 = vadd.f32 %v11943_v58, %v11996_v14  ;;  %v2703_v57 = vmax.f32 %v2339_v27, 0.0  ;;  %v2345_v58 = vadd.f32 %v11981_v28, %v11840_v0  ;;  %v12200_v27 = vld [vmem:[%s14603_s22 + $0x630] sm:$0xff]  ;;  %v12205_v28 = vld [vmem:[%s14603_s22 + $0x638] sm:$0xff] }
 0x827   :  { %9594 = vmatpush3.bf16.msra.mxu1 %v9593_v19  ;;  %9626 = vmatpush3.bf16.msra.mxu0 %v9625_v50  ;;  %v12081_v48 = vpop.f32.mrb[63].mxu1  ;;  %v12083_v53 = vpop.f32.mrb[69].mxu0  ;;  %v2672_v19 = vmax.f32 %v2426_v8, 0.0  ;;  %v2331_v50 = vadd.f32 %v11900_v15, %v11979_v3  ;;  %v2687_v15 = vmax.f32 %v2333_v47, 0.0  ;;  %v2689_v8 = vmax.f32 %v2434_v62, 0.0 }
 0x828   :  { %9628 = vmatprep.subr.bf16.mxu1 %v9627_v30  ;;  %9660 = vmatprep.subr.bf16.mxu0 %v9659_v31  ;;  %v2440_v30 = vadd.f32 %v11947_v22, %v11844_v13  ;;  %v9665_v62 = vpack.c.bf16 %v12097_v52, %v12092_v51  ;;  %v12166_v51 = vld [vmem:[%s14603_s22 + $0x6b0] sm:$0xff]  ;;  %v9637_v38 = vpack.c.bf16 %v12141_v20, %v12136_v46 }
 0x829   :  { %v2686_v52 = vmax.f32 %v2331_v50, 0.0  ;;  %v12185_v50 = vld [vmem:[%s14603_s22 + $0x7b8] sm:$0xff]  ;;  %v12220_v20 = vld [vmem:[%s14603_s22 + $0x730] sm:$0xff] }
 0x82a   :  { %3466 = vmatmul.mubr.f32.vlgmr.msra.gmra.mrb[100].mxu1 %v2670_v42  ;;  %3561 = vmatmul.mubr.f32.vlgmr.msra.gmra.mrb[106].mxu0 %v2672_v19  ;;  %v12127_v31 = vpop.f32.mrb[64].mxu1  ;;  %v12129_v18 = vpop.f32.mrb[70].mxu0  ;;  %v12156_v42 = vld [vmem:[%s14603_s22 + $0x720] sm:$0xff]  ;;  %v12161_v19 = vld [vmem:[%s14603_s22 + $0x728] sm:$0xff]  ;;  %v2705_v34 = vmax.f32 %v2440_v30, 0.0  ;;  %v9639_v30 = vpack.c.bf16 %v12175_v17, %v12166_v51  ;;  %v2704_v51 = vmax.f32 %v2438_v39, 0.0  ;;  %v2444_v17 = vadd.f32 %v11975_v43, %v11996_v14 }
 0x82b   :  { %3470 = vmatprep.mubr.f32.mxu1 %v2687_v15  ;;  %3565 = vmatprep.mubr.f32.mxu0 %v2689_v8  ;;  %v12143_v22 = vpop.f32.mrb[65].mxu1  ;;  %v12145_v47 = vpop.f32.mrb[71].mxu0  ;;  %v12180_v15 = vld [vmem:[%s14603_s22 + $0x7b0] sm:$0xff]  ;;  %v2351_v43 = vadd.f32 %v12027_v23, %v11840_v0  ;;  %v9641_v23 = vpack.c.bf16 %v12205_v28, %v12200_v27 }
 0x82c   :  { %9630 = vmatpush3.bf16.msra.mxu1 %v9629_v59  ;;  %9662 = vmatpush3.bf16.msra.mxu0 %v9661_v26  ;;  %v2446_v59 = vadd.f32 %v11983_v29, %v11844_v13  ;;  %v9671_v46 = vpack.c.bf16 %v12185_v50, %v12180_v15  ;;  %v12239_v15 = vld [vmem:[%s14603_s22 + $0x6c8] sm:$0xff]  ;;  %v12244_v50 = vld [vmem:[%s14603_s22 + $0x7c0] sm:$0xff] }
 0x82d   :  { %9632 = vmatprep.subr.bf16.mxu1 %v9631_v1  ;;  %9664 = vmatprep.subr.bf16.mxu0 %v9663_v61  ;;  %v9669_v61 = vpack.c.bf16 %v12161_v19, %v12156_v42  ;;  %v12230_v42 = vld [vmem:[%s14603_s22 + $0x6c0] sm:$0xff]  ;;  %v2702_v19 = vmax.f32 %v2337_v41, 0.0  ;;  %v12249_v41 = vld [vmem:[%s14603_s22 + $0x7c8] sm:$0xff] }
 0x82e   :  { %3471 = vmatmul.mubr.f32.gmra.mrb[102].mxu1 %v2686_v52  ;;  %3566 = vmatmul.mubr.f32.gmra.mrb[108].mxu0 %v2688_v63  ;;  %v12191_v26 = vpop.f32.mrb[66].mxu1  ;;  %v12193_v8 = vpop.f32.mrb[72].mxu0  ;;  %v12225_v52 = vld [vmem:[%s14603_s22 + $0x738] sm:$0xff]  ;;  %v2343_v63 = vadd.f32 %v11973_v45, %v11979_v3  ;;  %v2719_v45 = vmax.f32 %v2345_v58, 0.0  ;;  %v2721_v39 = vmax.f32 %v2446_v59, 0.0  ;;  %v9643_v27 = vpack.c.bf16 %v12239_v15, %v12230_v42 }
 0x82f   :  { %3475 = vmatprep.mubr.f32.mxu1 %v2703_v57  ;;  %3570 = vmatprep.mubr.f32.mxu0 %v2705_v34  ;;  %v12207_v29 = vpop.f32.mrb[67].mxu1  ;;  %v12209_v1 = vpop.f32.mrb[73].mxu0  ;;  %v12261_v57 = vrot.slane %v11778_v4, %v11501_v9  ;;  %v9675_v28 = vpack.c.bf16 %v12249_v41, %v12244_v50  ;;  %v2349_v42 = vadd.f32 %v12013_v5, %v11979_v3  ;;  %v2977_v50 = vld [vmem:[%s14603_s22 + $0x6d8] sm:$0xff]  ;;  %v3008_v41 = vld [vmem:[%s14603_s22 + $0x7d0] sm:$0xff] }
 0x830   :  { %9634 = vmatpush3.bf16.msra.mxu1 %v9633_v7  ;;  %9666 = vmatpush3.bf16.msra.mxu0 %v9665_v62  ;;  %v2452_v7 = vadd.f32 %v12029_v60, %v11844_v13  ;;  %v12257_v62 = vrot.slane %v11778_v4, %v11477_v44  ;;  %v12272_v60 = vld [vmem:[%s14603_s22 + $0x640] sm:$0xff]  ;;  %v2450_v15 = vadd.f32 %v12015_v10, %v11996_v14 }
 0x831   :  { %9636 = vmatprep.subr.bf16.mxu1 %v9635_v24  ;;  %9668 = vmatprep.subr.bf16.mxu0 %v9667_v25  ;;  %v12277_v24 = vld [vmem:[%s14603_s22 + $0x648] sm:$0xff]  ;;  %v2357_v5 = vadd.f32 %v12081_v48, %v11840_v0 }
 0x832   :  { %3476 = vmatmul.mubr.f32.gmra.mrb[104].mxu1 %v2702_v19  ;;  %3571 = vmatmul.mubr.f32.gmra.mrb[110].mxu0 %v2704_v51  ;;  %v12263_v34 = vpop.f32.mrb[68].mxu1  ;;  %v12265_v58 = vpop.f32.mrb[74].mxu0  ;;  %v9673_v19 = vpack.c.bf16 %v12225_v52, %v12220_v20  ;;  %v2990_v51 = vld [vmem:[%s14603_s22 + $0x740] sm:$0xff]  ;;  %v2718_v20 = vmax.f32 %v2343_v63, 0.0  ;;  %v2720_v52 = vmax.f32 %v2444_v17, 0.0  ;;  %v3009_v63 = vld [vmem:[%s14603_s22 + $0x7d8] sm:$0xff]  ;;  %v9645_v44 = vpack.c.bf16 %v12277_v24, %v12272_v60 }
 0x833   :  { %3480 = vmatprep.mubr.f32.mxu1 %v2719_v45  ;;  %3575 = vmatprep.mubr.f32.mxu0 %v2721_v39  ;;  %v12279_v25 = vpop.f32.mrb[69].mxu1  ;;  %v12281_v59 = vpop.f32.mrb[75].mxu0  ;;  %v2991_v45 = vld [vmem:[%s14603_s22 + $0x748] sm:$0xff]  ;;  %v12298_v39 = vld [vmem:[%s14603_s22 + $0x6d0] sm:$0xff]  ;;  %v2735_v17 = vmax.f32 %v2351_v43, 0.0  ;;  %v2737_v9 = vmax.f32 %v2452_v7, 0.0  ;;  %v9679_v48 = vpack.c.bf16 %v3009_v63, %v3008_v41 }
 0x834   :  { %9638 = vmatpush3.bf16.msra.mxu1 %v9637_v38  ;;  %9670 = vmatpush3.bf16.msra.mxu0 %v9669_v61  ;;  %v2458_v38 = vadd.f32 %v12083_v53, %v11844_v13  ;;  %v9677_v0 = vpack.c.bf16 %v2991_v45, %v2990_v51  ;;  %v9647_v13 = vpack.c.bf16 %v2977_v50, %v12298_v39  ;;  %v2734_v53 = vmax.f32 %v2349_v42, 0.0  ;;  %v2961_v60 = vld [vmem:[%s14603_s22 + $0x658] sm:$0xff]  ;;  %v2962_v41 = vld [vmem:[%s14603_s22 + $0x660] sm:$0xff]  ;;  %v2963_v63 = vld [vmem:[%s14603_s22 + $0x668] sm:$0xff] }
 0x835   :  { %9640 = vmatprep.subr.bf16.mxu1 %v9639_v30  ;;  %9672 = vmatprep.subr.bf16.mxu0 %v9671_v46  ;;  %v2736_v30 = vmax.f32 %v2450_v15, 0.0  ;;  %v2355_v46 = vadd.f32 %v12065_v55, %v11979_v3  ;;  %v2751_v24 = vmax.f32 %v2357_v5, 0.0  ;;  %v2529_v45 = vadd.f32 %v12143_v22, %v12257_v62  ;;  %v2993_v55 = vld [vmem:[%s14603_s22 + $0x758] sm:$0xff] }
 0x836   :  { %3481 = vmatmul.mubr.f32.gmra.mrb[106].mxu1 %v2718_v20  ;;  %3576 = vmatmul.mubr.f32.gmra.mrb[112].mxu0 %v2720_v52  ;;  %v12317_v10 = vpop.f32.mrb[70].mxu1  ;;  %v12319_v61 = vpop.f32.mrb[76].mxu0  ;;  %v2456_v20 = vadd.f32 %v12067_v11, %v11996_v14  ;;  %v2753_v51 = vmax.f32 %v2458_v38, 0.0  ;;  %v2630_v3 = vadd.f32 %v12145_v47, %v12261_v57  ;;  %v2992_v14 = vld [vmem:[%s14603_s22 + $0x750] sm:$0xff]  ;;  %v2978_v11 = vld [vmem:[%s14603_s22 + $0x6e0] sm:$0xff]  ;;  %v2979_v47 = vld [vmem:[%s14603_s22 + $0x6e8] sm:$0xff] }
 0x837   :  { %3485 = vmatprep.mubr.f32.mxu1 %v2735_v17  ;;  %3580 = vmatprep.mubr.f32.mxu0 %v2737_v9  ;;  %v12323_v43 = vpop.f32.mrb[71].mxu1  ;;  %v12325_v7 = vpop.f32.mrb[77].mxu0  ;;  %v2960_v9 = vld [vmem:[%s14603_s22 + $0x650] sm:$0xff]  ;;  %v2750_v52 = vmax.f32 %v2355_v46, 0.0  ;;  %v9681_v50 = vpack.c.bf16 %v2993_v55, %v2992_v14  ;;  %v2675_v17 = vmax.f32 %v2529_v45, 0.0  ;;  %v9651_v38 = vpack.c.bf16 %v2979_v47, %v2978_v11 }
 0x838   :  { %9642 = vmatpush3.bf16.msra.mxu1 %v9641_v23  ;;  %9674 = vmatpush3.bf16.msra.mxu0 %v9673_v19  ;;  %v3010_v19 = vld [vmem:[%s14603_s22 + $0x7e0] sm:$0xff]  ;;  %v2752_v42 = vmax.f32 %v2456_v20, 0.0  ;;  %v9649_v15 = vpack.c.bf16 %v2961_v60, %v2960_v9  ;;  %v2677_v5 = vmax.f32 %v2630_v3, 0.0  ;;  %v3012_v20 = vld [vmem:[%s14603_s22 + $0x7f0] sm:$0xff]  ;;  %v3013_v9 = vld [vmem:[%s14603_s22 + $0x7f8] sm:$0xff]  ;;  %v9653_v45 = vpack.c.bf16 %v2963_v63, %v2962_v41 }
 0x839   :  { %9644 = vmatprep.subr.bf16.mxu1 %v9643_v27  ;;  %9676 = vmatprep.subr.bf16.mxu0 %v9675_v28  ;;  %v3011_v27 = vld [vmem:[%s14603_s22 + $0x7e8] sm:$0xff]  ;;  %v2964_v14 = vld [vmem:[%s14603_s22 + $0x670] sm:$0xff]  ;;  %v12409_v55 = vrot.slane %v11778_v4, %v11549_v6  ;;  %v9687_v47 = vpack.c.bf16 %v3013_v9, %v3012_v20  ;;  %v2535_v41 = vadd.f32 %v12207_v29, %v12257_v62 }
 0x83a   :  { %3486 = vmatmul.mubr.f32.gmra.mrb[108].mxu1 %v2734_v53  ;;  %3581 = vmatmul.mubr.f32.gmra.mrb[114].mxu0 %v2736_v30  ;;  %v12351_v22 = vpop.f32.mrb[72].mxu1  ;;  %v12353_v23 = vpop.f32.mrb[78].mxu0  ;;  %v9683_v53 = vpack.c.bf16 %v3011_v27, %v3010_v19  ;;  %v2980_v30 = vld [vmem:[%s14603_s22 + $0x6f0] sm:$0xff]  ;;  %v2965_v19 = vld [vmem:[%s14603_s22 + $0x678] sm:$0xff]  ;;  %v2636_v63 = vadd.f32 %v12209_v1, %v12261_v57  ;;  %v2642_v29 = vadd.f32 %v12281_v59, %v12261_v57 }
 0x83b   :  { %3490 = vmatprep.mubr.f32.mxu1 %v2751_v24  ;;  %3585 = vmatprep.mubr.f32.mxu0 %v2753_v51  ;;  %v12364_v28 = vpop.f32.mrb[73].mxu1  ;;  %v12366_v39 = vpop.f32.mrb[79].mxu0  ;;  %v12402_v51 = vrot.slane %v11778_v4, %v11546_v40  ;;  %v2996_v27 = vld [vmem:[%s14603_s22 + $0x770] sm:$0xff]  ;;  %v9657_v4 = vpack.c.bf16 %v2965_v19, %v2964_v14  ;;  %v2648_v59 = vadd.f32 %v12325_v7, %v12261_v57 }
 0x83c   :  { %9646 = vmatpush3.bf16.msra.mxu1 %v9645_v44  ;;  %9678 = vmatpush3.bf16.msra.mxu0 %v9677_v0  ;;  %v2994_v44 = vld [vmem:[%s14603_s22 + $0x760] sm:$0xff]  ;;  %v2995_v0 = vld [vmem:[%s14603_s22 + $0x768] sm:$0xff]  ;;  %v2654_v7 = vadd.f32 %v12366_v39, %v12261_v57 }
 0x83d   :  { %9648 = vmatprep.subr.bf16.mxu1 %v9647_v13  ;;  %9680 = vmatprep.subr.bf16.mxu0 %v9679_v48  ;;  %v2981_v48 = vld [vmem:[%s14603_s22 + $0x6f8] sm:$0xff]  ;;  %v9685_v3 = vpack.c.bf16 %v2995_v0, %v2994_v44  ;;  %v2541_v44 = vadd.f32 %v12279_v25, %v12257_v62  ;;  %v2547_v25 = vadd.f32 %v12323_v43, %v12257_v62 }
 0x83e   :  { %3491 = vmatmul.mubr.f32.gmra.mrb[110].mxu1 %v2750_v52  ;;  %3586 = vmatmul.mubr.f32.gmra.mrb[116].mxu0 %v2752_v42  ;;  %v12383_v46 = vpop.f32.mrb[74].mxu1  ;;  %v12385_v13 = vpop.f32.mrb[80].mxu0  ;;  %v9655_v11 = vpack.c.bf16 %v2981_v48, %v2980_v30  ;;  %v2997_v52 = vld [vmem:[%s14603_s22 + $0x778] sm:$0xff]  ;;  %v2709_v48 = vmax.f32 %v2642_v29, 0.0  ;;  %v2553_v43 = vadd.f32 %v12364_v28, %v12257_v62  ;;  %v2741_v19 = vmax.f32 %v2654_v7, 0.0 }
 0x83f   :  { %3655 = vmatprep.mubr.f32.mxu1 %v2675_v17  ;;  %3750 = vmatprep.mubr.f32.mxu0 %v2677_v5  ;;  %v12396_v60 = vpop.f32.mrb[75].mxu1  ;;  %v12398_v24 = vpop.f32.mrb[81].mxu0  ;;  %v9689_v42 = vpack.c.bf16 %v2997_v52, %v2996_v27  ;;  %v2707_v30 = vmax.f32 %v2541_v44, 0.0 }
 0x840   :  { %9650 = vmatpush3.bf16.msra.mxu1 %v9649_v15  ;;  %9682 = vmatpush3.bf16.msra.mxu0 %v9681_v50  ;;  %v2527_v15 = vadd.f32 %v12127_v31, %v12402_v51  ;;  %v2628_v50 = vadd.f32 %v12129_v18, %v12409_v55  ;;  %v2634_v31 = vadd.f32 %v12193_v8, %v12409_v55  ;;  %v2693_v18 = vmax.f32 %v2636_v63, 0.0 }
 0x841   :  { %9652 = vmatprep.subr.bf16.mxu1 %v9651_v38  ;;  %9684 = vmatprep.subr.bf16.mxu0 %v9683_v53  ;;  %v2533_v38 = vadd.f32 %v12191_v26, %v12402_v51  ;;  %v2691_v53 = vmax.f32 %v2535_v41, 0.0  ;;  %v2539_v26 = vadd.f32 %v12263_v34, %v12402_v51  ;;  %v2640_v8 = vadd.f32 %v12265_v58, %v12409_v55 }
 0x842   :  { %v2674_v17 = vmax.f32 %v2527_v15, 0.0  ;;  %v2676_v5 = vmax.f32 %v2628_v50, 0.0  ;;  %v2692_v0 = vmax.f32 %v2634_v31, 0.0  ;;  %v2545_v34 = vadd.f32 %v12317_v10, %v12402_v51  ;;  %v7526_v15 = vld [vmem:[%s14604_s23] ss:$0 sm:$0xff] }
 0x843   :  { %v2690_v1 = vmax.f32 %v2533_v38, 0.0  ;;  %v2706_v20 = vmax.f32 %v2539_v26, 0.0  ;;  %v2708_v9 = vmax.f32 %v2640_v8, 0.0  ;;  %v2646_v58 = vadd.f32 %v12319_v61, %v12409_v55 }
 0x844   :  { %9654 = vmatpush3.bf16.msra.mxu1 %v9653_v45  ;;  %9686 = vmatpush3.bf16.msra.mxu0 %v9685_v3  ;;  %v2723_v45 = vmax.f32 %v2547_v25, 0.0  ;;  %v2725_v3 = vmax.f32 %v2648_v59, 0.0  ;;  %v2722_v14 = vmax.f32 %v2545_v34, 0.0  ;;  %v2551_v10 = vadd.f32 %v12351_v22, %v12402_v51 }
 0x845   :  { %9656 = vmatprep.subr.bf16.mxu1 %v9655_v11  ;;  %9688 = vmatprep.subr.bf16.mxu0 %v9687_v47  ;;  %v2724_v11 = vmax.f32 %v2646_v58, 0.0  ;;  %v2652_v61 = vadd.f32 %v12353_v23, %v12409_v55  ;;  %v2739_v47 = vmax.f32 %v2553_v43, 0.0  ;;  %v2559_v28 = vadd.f32 %v12396_v60, %v12257_v62 }
 0x846   :  { %v2660_v39 = vadd.f32 %v12398_v24, %v12261_v57  ;;  %v2738_v27 = vmax.f32 %v2551_v10, 0.0  ;;  %v2557_v22 = vadd.f32 %v12383_v46, %v12402_v51  ;;  %v2658_v23 = vadd.f32 %v12385_v13, %v12409_v55 }
 0x847   :  { %v2740_v52 = vmax.f32 %v2652_v61, 0.0 }
 0x848   :  { %9658 = vmatpush3.bf16.msra.mxu1 %v9657_v4  ;;  %9690 = vmatpush3.bf16.msra.mxu0 %v9689_v42  ;;  %v2755_v4 = vmax.f32 %v2559_v28, 0.0  ;;  %v2757_v42 = vmax.f32 %v2660_v39, 0.0  ;;  %v2754_v62 = vmax.f32 %v2557_v22, 0.0  ;;  %v2756_v57 = vmax.f32 %v2658_v23, 0.0 }
 0x84b   :  { %3656 = vmatmul.mubr.f32.vlgmr.msra.gmra.mrb[112].mxu1 %v2674_v17  ;;  %3751 = vmatmul.mubr.f32.vlgmr.msra.gmra.mrb[118].mxu0 %v2676_v5 }
 0x84c   :  { %3660 = vmatprep.mubr.f32.mxu1 %v2691_v53  ;;  %3755 = vmatprep.mubr.f32.mxu0 %v2693_v18 }
 0x84f   :  { %3661 = vmatmul.mubr.f32.gmra.mrb[114].mxu1 %v2690_v1  ;;  %3756 = vmatmul.mubr.f32.gmra.mrb[120].mxu0 %v2692_v0 }
 0x850   :  { %3665 = vmatprep.mubr.f32.mxu1 %v2707_v30  ;;  %3760 = vmatprep.mubr.f32.mxu0 %v2709_v48 }
 0x853   :  { %3666 = vmatmul.mubr.f32.gmra.mrb[116].mxu1 %v2706_v20  ;;  %3761 = vmatmul.mubr.f32.gmra.mrb[122].mxu0 %v2708_v9 }
 0x854   :  { %3670 = vmatprep.mubr.f32.mxu1 %v2723_v45  ;;  %3765 = vmatprep.mubr.f32.mxu0 %v2725_v3 }
 0x857   :  { %3671 = vmatmul.mubr.f32.gmra.mrb[118].mxu1 %v2722_v14  ;;  %3766 = vmatmul.mubr.f32.gmra.mrb[124].mxu0 %v2724_v11 }
 0x858   :  { %3675 = vmatprep.mubr.f32.mxu1 %v2739_v47  ;;  %3770 = vmatprep.mubr.f32.mxu0 %v2741_v19 }
 0x85b   :  { %3676 = vmatmul.mubr.f32.gmra.mrb[120].mxu1 %v2738_v27  ;;  %3771 = vmatmul.mubr.f32.gmra.mrb[126].mxu0 %v2740_v52 }
 0x85c   :  { %3680 = vmatprep.mubr.f32.mxu1 %v2755_v4  ;;  %3775 = vmatprep.mubr.f32.mxu0 %v2757_v42 }
 0x85f   :  { %3681 = vmatmul.mubr.f32.gmra.mrb[122].mxu1 %v2754_v62  ;;  %3776 = vmatmul.mubr.f32.gmra.mrb[128].mxu0 %v2756_v57 }
 0x8bb   :  { %v8118_v60 = vpop.f32.mrb[76].mxu1  ;;  %v8168_v24 = vpop.f32.mrb[82].mxu0 }
 0x8bc   :  { %v8119_v46 = vpop.f32.mrb[77].mxu1  ;;  %v8169_v51 = vpop.f32.mrb[83].mxu0 }
 0x8bd   :  { %v8120_v50 = vadd.f32 %v8119_v46, %v8118_v60  ;;  %v8170_v13 = vadd.f32 %v8169_v51, %v8168_v24 }
 0x8bf   :  { %v3088_v55 = vadd.f32 %v8120_v50, %v7526_v15  ;;  %v8121_v41 = vpop.f32.mrb[78].mxu1  ;;  %v8171_v63 = vpop.f32.mrb[84].mxu0 }
 0x8c0   :  { %v8122_v17 = vpop.f32.mrb[79].mxu1  ;;  %v8172_v5 = vpop.f32.mrb[85].mxu0 }
 0x8c1   :  { %v3183_v38 = vadd.f32 %v8170_v13, %v3088_v55  ;;  %v8123_v31 = vadd.f32 %v8122_v17, %v8121_v41  ;;  %v8173_v53 = vadd.f32 %v8172_v5, %v8171_v63 }
 0x8c3   :  { %v3093_v18 = vadd.f32 %v8123_v31, %v7526_v15  ;;  %v8124_v44 = vpop.f32.mrb[80].mxu1  ;;  %v8174_v29 = vpop.f32.mrb[86].mxu0 }
 0x8c4   :  { %v8125_v1 = vpop.f32.mrb[81].mxu1  ;;  %v8175_v0 = vpop.f32.mrb[87].mxu0 }
 0x8c5   :  { %v3188_v26 = vadd.f32 %v8173_v53, %v3093_v18  ;;  %v8126_v8 = vadd.f32 %v8125_v1, %v8124_v44  ;;  %v8176_v30 = vadd.f32 %v8175_v0, %v8174_v29 }
 0x8c7   :  { %v3098_v48 = vadd.f32 %v8126_v8, %v7526_v15  ;;  %v8127_v25 = vpop.f32.mrb[82].mxu1  ;;  %v8177_v59 = vpop.f32.mrb[88].mxu0 }
 0x8c8   :  { %v8128_v20 = vpop.f32.mrb[83].mxu1  ;;  %v8178_v9 = vpop.f32.mrb[89].mxu0 }
 0x8c9   :  { %v3193_v34 = vadd.f32 %v8176_v30, %v3098_v48  ;;  %v8129_v58 = vadd.f32 %v8128_v20, %v8127_v25  ;;  %v8179_v45 = vadd.f32 %v8178_v9, %v8177_v59 }
 0x8cb   :  { %v3103_v3 = vadd.f32 %v8129_v58, %v7526_v15 }
 0x8cc   :  { %v8130_v43 = vpop.f32.mrb[84].mxu1  ;;  %v8180_v7 = vpop.f32.mrb[90].mxu0 }
 0x8cd   :  { %v3198_v14 = vadd.f32 %v8179_v45, %v3103_v3  ;;  %v8131_v11 = vpop.f32.mrb[85].mxu1  ;;  %v8181_v10 = vpop.f32.mrb[91].mxu0 }
 0x8ce   :  { %v8132_v61 = vadd.f32 %v8131_v11, %v8130_v43  ;;  %v8182_v47 = vadd.f32 %v8181_v10, %v8180_v7 }
 0x8d0   :  { %v3108_v19 = vadd.f32 %v8132_v61, %v7526_v15  ;;  %v8133_v28 = vpop.f32.mrb[86].mxu1  ;;  %v8183_v39 = vpop.f32.mrb[92].mxu0 }
 0x8d1   :  { %v8134_v27 = vpop.f32.mrb[87].mxu1  ;;  %v8184_v52 = vpop.f32.mrb[93].mxu0 }
 0x8d2   :  { %v3203_v22 = vadd.f32 %v8182_v47, %v3108_v19  ;;  %v8135_v23 = vadd.f32 %v8134_v27, %v8133_v28  ;;  %v8185_v4 = vadd.f32 %v8184_v52, %v8183_v39 }
 0x8d4   :  { %v3113_v42 = vadd.f32 %v8135_v23, %v7526_v15 }
 0x8d6   :  { %v3208_v62 = vadd.f32 %v8185_v4, %v3113_v42 }
 0x8dc   :  { %v8218_v57 = vpop.f32.mrb[88].mxu1  ;;  %v8268_v60 = vpop.f32.mrb[94].mxu0 }
 0x8dd   :  { %v8219_v24 = vpop.f32.mrb[89].mxu1  ;;  %v8269_v46 = vpop.f32.mrb[95].mxu0 }
 0x8de   :  { %v8220_v51 = vadd.f32 %v8219_v24, %v8218_v57  ;;  %v8270_v50 = vadd.f32 %v8269_v46, %v8268_v60 }
 0x8e0   :  { %v3278_v13 = vadd.f32 %v8220_v51, %v3183_v38  ;;  %v8221_v55 = vpop.f32.mrb[90].mxu1  ;;  %v8271_v41 = vpop.f32.mrb[96].mxu0 }
 0x8e1   :  { %v8222_v63 = vpop.f32.mrb[91].mxu1  ;;  %v8272_v17 = vpop.f32.mrb[97].mxu0 }
 0x8e2   :  { %v3373_v5 = vadd.f32 %v8270_v50, %v3278_v13  ;;  %v8223_v31 = vadd.f32 %v8222_v63, %v8221_v55  ;;  %v8273_v53 = vadd.f32 %v8272_v17, %v8271_v41 }
 0x8e4   :  { %v3283_v18 = vadd.f32 %v8223_v31, %v3188_v26  ;;  %v8224_v44 = vpop.f32.mrb[92].mxu1  ;;  %v8274_v29 = vpop.f32.mrb[98].mxu0 }
 0x8e5   :  { %v8225_v1 = vpop.f32.mrb[93].mxu1  ;;  %v8275_v15 = vpop.f32.mrb[99].mxu0 }
 0x8e6   :  { %v3378_v0 = vadd.f32 %v8273_v53, %v3283_v18  ;;  %v8226_v8 = vadd.f32 %v8225_v1, %v8224_v44  ;;  %v8276_v30 = vadd.f32 %v8275_v15, %v8274_v29 }
 0x8e8   :  { %v3288_v48 = vadd.f32 %v8226_v8, %v3193_v34  ;;  %v8227_v25 = vpop.f32.mrb[94].mxu1  ;;  %v8277_v59 = vpop.f32.mrb[100].mxu0 }
 0x8e9   :  { %v8228_v20 = vpop.f32.mrb[95].mxu1  ;;  %v8278_v38 = vpop.f32.mrb[101].mxu0 }
 0x8ea   :  { %v3383_v9 = vadd.f32 %v8276_v30, %v3288_v48  ;;  %v8229_v58 = vadd.f32 %v8228_v20, %v8227_v25  ;;  %v8279_v45 = vadd.f32 %v8278_v38, %v8277_v59 }
 0x8ec   :  { %v3293_v3 = vadd.f32 %v8229_v58, %v3198_v14  ;;  %v8230_v43 = vpop.f32.mrb[96].mxu1  ;;  %v8280_v7 = vpop.f32.mrb[102].mxu0 }
 0x8ed   :  { %v8231_v11 = vpop.f32.mrb[97].mxu1  ;;  %v8281_v26 = vpop.f32.mrb[103].mxu0 }
 0x8ee   :  { %v3388_v10 = vadd.f32 %v8279_v45, %v3293_v3  ;;  %v8232_v61 = vadd.f32 %v8231_v11, %v8230_v43  ;;  %v8282_v47 = vadd.f32 %v8281_v26, %v8280_v7 }
 0x8f0   :  { %v3298_v19 = vadd.f32 %v8232_v61, %v3203_v22  ;;  %v8233_v28 = vpop.f32.mrb[98].mxu1  ;;  %v8283_v39 = vpop.f32.mrb[104].mxu0 }
 0x8f1   :  { %v8234_v27 = vpop.f32.mrb[99].mxu1  ;;  %v8284_v34 = vpop.f32.mrb[105].mxu0 }
 0x8f2   :  { %v3393_v52 = vadd.f32 %v8282_v47, %v3298_v19  ;;  %v8235_v23 = vadd.f32 %v8234_v27, %v8233_v28  ;;  %v8285_v4 = vadd.f32 %v8284_v34, %v8283_v39 }
 0x8f4   :  { %v3303_v42 = vadd.f32 %v8235_v23, %v3208_v62 }
 0x8f6   :  { %v3398_v57 = vadd.f32 %v8285_v4, %v3303_v42 }
 0x8fd   :  { %v8318_v60 = vpop.f32.mrb[100].mxu1  ;;  %v8368_v24 = vpop.f32.mrb[106].mxu0 }
 0x8fe   :  { %v8319_v14 = vpop.f32.mrb[101].mxu1  ;;  %v8369_v46 = vpop.f32.mrb[107].mxu0 }
 0x8ff   :  { %v8320_v51 = vadd.f32 %v8319_v14, %v8318_v60  ;;  %v8370_v50 = vadd.f32 %v8369_v46, %v8368_v24 }
 0x901   :  { %v3468_v13 = vadd.f32 %v8320_v51, %v3373_v5  ;;  %v8321_v55 = vpop.f32.mrb[102].mxu1  ;;  %v8371_v41 = vpop.f32.mrb[108].mxu0 }
 0x902   :  { %v8322_v63 = vpop.f32.mrb[103].mxu1  ;;  %v8372_v22 = vpop.f32.mrb[109].mxu0 }
 0x903   :  { %v3563_v17 = vadd.f32 %v8370_v50, %v3468_v13  ;;  %v8323_v31 = vadd.f32 %v8322_v63, %v8321_v55  ;;  %v8373_v53 = vadd.f32 %v8372_v22, %v8371_v41 }
 0x905   :  { %v3473_v18 = vadd.f32 %v8323_v31, %v3378_v0  ;;  %v8324_v44 = vpop.f32.mrb[104].mxu1  ;;  %v8374_v29 = vpop.f32.mrb[110].mxu0 }
 0x906   :  { %v8325_v1 = vpop.f32.mrb[105].mxu1  ;;  %v8375_v62 = vpop.f32.mrb[111].mxu0 }
 0x907   :  { %v3568_v15 = vadd.f32 %v8373_v53, %v3473_v18  ;;  %v8326_v8 = vadd.f32 %v8325_v1, %v8324_v44  ;;  %v8376_v30 = vadd.f32 %v8375_v62, %v8374_v29 }
 0x909   :  { %v3478_v48 = vadd.f32 %v8326_v8, %v3383_v9  ;;  %v8327_v25 = vpop.f32.mrb[106].mxu1  ;;  %v8377_v59 = vpop.f32.mrb[112].mxu0 }
 0x90a   :  { %v8328_v20 = vpop.f32.mrb[107].mxu1  ;;  %v8378_v5 = vpop.f32.mrb[113].mxu0 }
 0x90b   :  { %v3573_v38 = vadd.f32 %v8376_v30, %v3478_v48  ;;  %v8329_v58 = vadd.f32 %v8328_v20, %v8327_v25  ;;  %v8379_v45 = vadd.f32 %v8378_v5, %v8377_v59 }
 0x90d   :  { %v3483_v3 = vadd.f32 %v8329_v58, %v3388_v10  ;;  %v8330_v43 = vpop.f32.mrb[108].mxu1  ;;  %v8380_v7 = vpop.f32.mrb[114].mxu0 }
 0x90e   :  { %v8331_v11 = vpop.f32.mrb[109].mxu1  ;;  %v8381_v0 = vpop.f32.mrb[115].mxu0 }
 0x90f   :  { %v3578_v26 = vadd.f32 %v8379_v45, %v3483_v3  ;;  %v8332_v61 = vadd.f32 %v8331_v11, %v8330_v43  ;;  %v8382_v47 = vadd.f32 %v8381_v0, %v8380_v7 }
 0x911   :  { %v3488_v19 = vadd.f32 %v8332_v61, %v3393_v52  ;;  %v8333_v28 = vpop.f32.mrb[110].mxu1  ;;  %v8383_v39 = vpop.f32.mrb[116].mxu0 }
 0x912   :  { %v8334_v27 = vpop.f32.mrb[111].mxu1  ;;  %v8384_v9 = vpop.f32.mrb[117].mxu0 }
 0x913   :  { %v3583_v34 = vadd.f32 %v8382_v47, %v3488_v19  ;;  %v8335_v23 = vadd.f32 %v8334_v27, %v8333_v28  ;;  %v8385_v4 = vadd.f32 %v8384_v9, %v8383_v39 }
 0x915   :  { %v3493_v42 = vadd.f32 %v8335_v23, %v3398_v57 }
 0x917   :  { %v3588_v60 = vadd.f32 %v8385_v4, %v3493_v42 }
 0x91e   :  { %v8418_v24 = vpop.f32.mrb[112].mxu1  ;;  %v8468_v14 = vpop.f32.mrb[118].mxu0 }
 0x91f   :  { %v8419_v10 = vpop.f32.mrb[113].mxu1  ;;  %v8469_v46 = vpop.f32.mrb[119].mxu0 }
 0x920   :  { %v8420_v51 = vadd.f32 %v8419_v10, %v8418_v24  ;;  %v8470_v50 = vadd.f32 %v8469_v46, %v8468_v14 }
 0x922   :  { %v3658_v13 = vadd.f32 %v8420_v51, %v3563_v17  ;;  %v8421_v55 = vpop.f32.mrb[114].mxu1  ;;  %v8471_v41 = vpop.f32.mrb[120].mxu0 }
 0x923   :  { %v8422_v63 = vpop.f32.mrb[115].mxu1  ;;  %v8472_v52 = vpop.f32.mrb[121].mxu0 }
 0x924   :  { %v3753_v22 = vadd.f32 %v8470_v50, %v3658_v13  ;;  %v8423_v31 = vadd.f32 %v8422_v63, %v8421_v55  ;;  %v8473_v53 = vadd.f32 %v8472_v52, %v8471_v41 }
 0x926   :  { %v3663_v18 = vadd.f32 %v8423_v31, %v3568_v15  ;;  %v8424_v44 = vpop.f32.mrb[116].mxu1  ;;  %v8474_v29 = vpop.f32.mrb[122].mxu0  ;;  %v3781_v57 = vadd.f32 %v3753_v22, %v10803_v21 }
 0x927   :  { %v8425_v1 = vpop.f32.mrb[117].mxu1  ;;  %v8475_v62 = vpop.f32.mrb[123].mxu0 }
 0x928   :  { %v3758_v8 = vadd.f32 %v8473_v53, %v3663_v18  ;;  %v8426_v30 = vadd.f32 %v8425_v1, %v8424_v44  ;;  %v8476_v48 = vadd.f32 %v8475_v62, %v8474_v29  ;;  %v3789_v25 = vsel %vm446_vm4, %v3781_v57, 0.0 }
 0x929   :  { %3790 = vadd.xlane.f32.xlu1 %v3789_v25 }
 0x92a   :  { %v3668_v17 = vadd.f32 %v8426_v30, %v3573_v38  ;;  %v8427_v59 = vpop.f32.mrb[118].mxu1  ;;  %v8477_v20 = vpop.f32.mrb[124].mxu0  ;;  %v3782_v5 = vadd.f32 %v3758_v8, %v10838_v37 }
 0x92b   :  { %v8428_v58 = vpop.f32.mrb[119].mxu1  ;;  %v8478_v45 = vpop.f32.mrb[125].mxu0 }
 0x92c   :  { %v3763_v15 = vadd.f32 %v8476_v48, %v3668_v17  ;;  %v8429_v3 = vadd.f32 %v8428_v58, %v8427_v59  ;;  %v8479_v43 = vadd.f32 %v8478_v45, %v8477_v20  ;;  %v3792_v21 = vsel %vm446_vm4, %v3782_v5, 0.0 }
 0x92d   :  { %3793 = vadd.xlane.f32.xlu0 %v3792_v21 }
 0x92e   :  { %v3673_v7 = vadd.f32 %v8429_v3, %v3578_v26  ;;  %v8430_v11 = vpop.f32.mrb[120].mxu1  ;;  %v8480_v0 = vpop.f32.mrb[126].mxu0  ;;  %v3783_v61 = vadd.f32 %v3763_v15, %v10849_v49 }
 0x92f   :  { %v8431_v47 = vpop.f32.mrb[121].mxu1  ;;  %v8481_v19 = vpop.f32.mrb[127].mxu0 }
 0x930   :  { %v3768_v38 = vadd.f32 %v8479_v43, %v3673_v7  ;;  %v8432_v28 = vadd.f32 %v8431_v47, %v8430_v11  ;;  %v8482_v39 = vadd.f32 %v8481_v19, %v8480_v0  ;;  %v3795_v37 = vsel %vm446_vm4, %v3783_v61, 0.0  ;;  %v7541_v7 = vld [vmem:[%s14644_s27 + $0x20] sm:$0xff]  ;;  %v7542_v11 = vld [vmem:[%s14644_s27 + $0x28] sm:$0xff] }
 0x931   :  { %3796 = vadd.xlane.f32.xlu1 %v3795_v37  ;;  %v7529_v0 = vld [vmem:[%s14643_s2 + $0x20] sm:$0xff]  ;;  %v7530_v47 = vld [vmem:[%s14643_s2 + $0x28] sm:$0xff] }
 0x932   :  { %v3678_v27 = vadd.f32 %v8432_v28, %v3583_v34  ;;  %v8433_v9 = vpop.f32.mrb[122].mxu1  ;;  %v8483_v23 = vpop.f32.mrb[128].mxu0  ;;  %v3784_v4 = vadd.f32 %v3768_v38, %v10860_v54  ;;  %v9691_v19 = vpack.c.bf16 %v7530_v47, %v7529_v0  ;;  %v7531_v38 = vld [vmem:[%s14643_s2 + $0x30] sm:$0xff]  ;;  %v7532_v28 = vld [vmem:[%s14643_s2 + $0x38] sm:$0xff] }
 0x933   :  { %v8434_v42 = vpop.f32.mrb[123].mxu1  ;;  %v8484_v24 = vpop.f32.mrb[129].mxu0  ;;  %v9695_v37 = vpack.c.bf16 %v7532_v28, %v7531_v38 }
 0x934   :  { %v3773_v26 = vadd.f32 %v8482_v39, %v3678_v27  ;;  %v8435_v14 = vadd.f32 %v8434_v42, %v8433_v9  ;;  %v8485_v10 = vadd.f32 %v8484_v24, %v8483_v23  ;;  %v3798_v49 = vsel %vm446_vm4, %v3784_v4, 0.0  ;;  %9692 = vmatprep.subr.bf16.mxu1 %v9691_v19  ;;  %v7543_v39 = vld [vmem:[%s14644_s27 + $0x30] sm:$0xff]  ;;  %v7544_v27 = vld [vmem:[%s14644_s27 + $0x38] sm:$0xff]  ;;  %v7553_v23 = vld [vmem:[%s14645_s10 + $0x20] sm:$0xff]  ;;  %s10240_s27 = smov [#allocation2]  }
 0x935   :  { %3799 = vadd.xlane.f32.xlu0 %v3798_v49  ;;  %9694 = vmatpush3.bf16.msra.mxu1 %v9691_v19  ;;  %v9703_v9 = vpack.c.bf16 %v7544_v27, %v7543_v39  ;;  %s7394_s29 = sshll.u32 %s10240_s27, 4  ;;  %s7395_s29 = int_to_ptr.vmem [resolvable:$true] %s7394_s29 }
 0x936   :  { %v3683_v46 = vadd.f32 %v8435_v14, %v3588_v60  ;;  %v3785_v51 = vadd.f32 %v3773_v26, %v10873_v12  ;;  %9696 = vmatprep.subr.bf16.mxu1 %v9695_v37  ;;  %p10216_p1 = scmp.lt.s32.totalorder %s7395_s29, %s7395_s29 }
 0x938   :  { %v3778_v50 = vadd.f32 %v8485_v10, %v3683_v46  ;;  %v3801_v13 = vsel %vm446_vm4, %v3785_v51, 0.0 }
 0x939   :  { %3802 = vadd.xlane.f32.xlu1 %v3801_v13  ;;  %9698 = vmatpush3.bf16.msra.mxu1 %v9695_v37 }
 0x93a   :  { %v3786_v34 = vadd.f32 %v3778_v50, %v10882_v2 }
 0x93c   :  { %v3804_v55 = vsel %vm446_vm4, %v3786_v34, 0.0 }
 0x93d   :  { %3805 = vadd.xlane.f32.xlu0 %v3804_v55 }
 0x9b6   :  { %v3791_v54 = vpop.xlane.xlu1 %3790 }
 0x9b7   :  { %v3807_v41 = vmul.f32 0.03125, %v3791_v54 }
 0x9b9   :  { %v12479_v63 = vsub.f32 %v3781_v57, %v3807_v41  ;;  %v7527_v41 = vld [vmem:[%s14599_s18] ss:$0 sm:$0xff] }
 0x9ba   :  { %v3794_v52 = vpop.xlane.xlu0 %3793 }
 0x9bb   :  { %v3808_v22 = vmul.f32 0.03125, %v3794_v52  ;;  %v3819_v60 = vmul.f32 %v12479_v63, %v12479_v63 }
 0x9bd   :  { %v12483_v31 = vsub.f32 %v3782_v5, %v3808_v22  ;;  %v3825_v12 = vsel %vm446_vm4, %v3819_v60, 0.0 }
 0x9be   :  { %v3797_v53 = vpop.xlane.xlu1 %3796  ;;  %3826 = vadd.xlane.f32.xlu1 %v3825_v12  ;;  %v7528_v12 = vld [vmem:[%s14600_s19] ss:$0 sm:$0xff] }
 0x9bf   :  { %v3809_v18 = vmul.f32 0.03125, %v3797_v53  ;;  %v3820_v2 = vmul.f32 %v12483_v31, %v12483_v31 }
 0x9c1   :  { %v12488_v44 = vsub.f32 %v3783_v61, %v3809_v18  ;;  %v3828_v29 = vsel %vm446_vm4, %v3820_v2, 0.0  ;;  %v9699_v61 = vpack.c.bf16 %v7542_v11, %v7541_v7 }
 0x9c2   :  { %v3800_v57 = vpop.xlane.xlu0 %3799  ;;  %3829 = vadd.xlane.f32.xlu0 %v3828_v29 }
 0x9c3   :  { %v3810_v1 = vmul.f32 0.03125, %v3800_v57  ;;  %v3821_v62 = vmul.f32 %v12488_v44, %v12488_v44  ;;  %9700 = vmatprep.subr.bf16.mxu0 %v9699_v61 }
 0x9c4   :  { %9702 = vmatpush3.bf16.msra.mxu0 %v9699_v61 }
 0x9c5   :  { %v12493_v8 = vsub.f32 %v3784_v4, %v3810_v1  ;;  %v3831_v30 = vsel %vm446_vm4, %v3821_v62, 0.0  ;;  %9704 = vmatprep.subr.bf16.mxu0 %v9703_v9  ;;  %v7554_v4 = vld [vmem:[%s14645_s10 + $0x28] sm:$0xff] }
 0x9c6   :  { %3832 = vadd.xlane.f32.xlu1 %v3831_v30  ;;  %v3803_v48 = vpop.xlane.xlu1 %3802  ;;  %v9707_v42 = vpack.c.bf16 %v7554_v4, %v7553_v23 }
 0x9c7   :  { %v3811_v25 = vmul.f32 0.03125, %v3803_v48  ;;  %v3822_v17 = vmul.f32 %v12493_v8, %v12493_v8  ;;  %v7556_v48 = vld [vmem:[%s14645_s10 + $0x38] sm:$0xff] }
 0x9c8   :  { %9706 = vmatpush3.bf16.msra.mxu0 %v9703_v9  ;;  %9708 = vmatprep.subr.bf16.mxu1 %v9707_v42 }
 0x9c9   :  { %v12498_v59 = vsub.f32 %v3785_v51, %v3811_v25  ;;  %v3834_v20 = vsel %vm446_vm4, %v3822_v17, 0.0  ;;  %9716 = vmatprep.subr.bf16.mxu0 %v10489_v56 }
 0x9ca   :  { %3835 = vadd.xlane.f32.xlu0 %v3834_v20  ;;  %v3806_v5 = vpop.xlane.xlu0 %3805 }
 0x9cb   :  { %v3812_v58 = vmul.f32 0.03125, %v3806_v5  ;;  %v3823_v45 = vmul.f32 %v12498_v59, %v12498_v59 }
 0x9cd   :  { %v12503_v15 = vsub.f32 %v3786_v34, %v3812_v58  ;;  %v3837_v3 = vsel %vm446_vm4, %v3823_v45, 0.0 }
 0x9ce   :  { %3838 = vadd.xlane.f32.xlu1 %v3837_v3 }
 0x9cf   :  { %v3824_v43 = vmul.f32 %v12503_v15, %v12503_v15 }
 0x9d1   :  { %v3840_v21 = vsel %vm446_vm4, %v3824_v43, 0.0 }
 0x9d2   :  { %3841 = vadd.xlane.f32.xlu0 %v3840_v21 }
 0xa4b   :  { %v3827_v24 = vpop.xlane.xlu1 %3826 }
 0xa4c   :  { %v3843_v26 = vmul.f32 0.03125, %v3827_v24 }
 0xa4e   :  { %v3849_v14 = vadd.f32 1e-05, %v3843_v26 }
 0xa4f   :  { %v3830_v10 = vpop.xlane.xlu0 %3829 }
 0xa50   :  { %10138 = vrsqrt.f32 %v3849_v14  ;;  %v3844_v49 = vmul.f32 0.03125, %v3830_v10 }
 0xa52   :  { %v3850_v46 = vadd.f32 1e-05, %v3844_v49 }
 0xa53   :  { %v3833_v51 = vpop.xlane.xlu1 %3832 }
 0xa54   :  { %10140 = vrsqrt.f32 %v3850_v46  ;;  %v3845_v50 = vmul.f32 0.03125, %v3833_v51 }
 0xa56   :  { %v3851_v13 = vadd.f32 1e-05, %v3845_v50 }
 0xa57   :  { %v3836_v34 = vpop.xlane.xlu0 %3835 }
 0xa58   :  { %10142 = vrsqrt.f32 %v3851_v13  ;;  %v3846_v55 = vmul.f32 0.03125, %v3836_v34 }
 0xa5a   :  { %v10139_v54 = vpop.eup %10138  ;;  %v3852_v52 = vadd.f32 1e-05, %v3846_v55 }
 0xa5b   :  { %v3839_v22 = vpop.xlane.xlu1 %3838  ;;  %v3861_v60 = vmul.f32 %v10139_v54, %v12479_v63  ;;  %v7555_v63 = vld [vmem:[%s14645_s10 + $0x30] sm:$0xff] }
 0xa5c   :  { %10144 = vrsqrt.f32 %v3852_v52  ;;  %v3847_v53 = vmul.f32 0.03125, %v3839_v22  ;;  %v9711_v58 = vpack.c.bf16 %v7556_v48, %v7555_v63 }
 0xa5d   :  { %v3873_v18 = vmul.f32 %v7527_v41, %v3861_v60 }
 0xa5e   :  { %v10141_v2 = vpop.eup %10140  ;;  %v3853_v29 = vadd.f32 1e-05, %v3847_v53 }
 0xa5f   :  { %v3862_v57 = vmul.f32 %v10141_v2, %v12483_v31  ;;  %v3842_v1 = vpop.xlane.xlu0 %3841  ;;  %v12548_v62 = vadd.f32 %v7528_v12, %v3873_v18 }
 0xa60   :  { %10146 = vrsqrt.f32 %v3853_v29  ;;  %v3848_v30 = vmul.f32 0.03125, %v3842_v1 }
 0xa61   :  { %v3874_v25 = vmul.f32 %v7527_v41, %v3862_v57  ;;  %9149 = vmatprep.mubr.msk.f32.mxu1 %vm446_vm4, %v12548_v62  ;;  %9166 = vmatprep.mubr.msk.f32.mxu0 %vm446_vm4, %v12548_v62 }
 0xa62   :  { %v10143_v31 = vpop.eup %10142  ;;  %v3854_v17 = vadd.f32 1e-05, %v3848_v30 }
 0xa63   :  { %v12560_v20 = vadd.f32 %v7528_v12, %v3874_v25  ;;  %v3863_v5 = vmul.f32 %v10143_v31, %v12488_v44 }
 0xa64   :  { %10148 = vrsqrt.f32 %v3854_v17 }
 0xa65   :  { %9150 = vmatmul.mubr.msk.f32.vlgmr.msra.gmra.mrb[124].mxu1 %vm446_vm4, %v12560_v20  ;;  %9167 = vmatmul.mubr.msk.f32.vlgmr.msra.gmra.mrb[130].mxu0 %vm446_vm4, %v12560_v20  ;;  %v3875_v45 = vmul.f32 %v7527_v41, %v3863_v5 }
 0xa66   :  { %v10145_v3 = vpop.eup %10144  ;;  %9710 = vmatpush3.bf16.msra.mxu1 %v9707_v42  ;;  %9718 = vmatpush3.bf16.msra.mxu0 %v10489_v56 }
 0xa67   :  { %v12568_v43 = vadd.f32 %v7528_v12, %v3875_v45  ;;  %v3864_v21 = vmul.f32 %v10145_v3, %v12493_v8  ;;  %9712 = vmatprep.subr.bf16.mxu1 %v9711_v58  ;;  %9720 = vmatprep.subr.bf16.mxu0 %v10573_v16  ;;  %v12584_v8 = vld [vmem:[%s14648_s6] sm:$0xf] }
 0xa69   :  { %9152 = vmatprep.mubr.msk.f32.mxu1 %vm446_vm4, %v12568_v43  ;;  %9169 = vmatprep.mubr.msk.f32.mxu0 %vm446_vm4, %v12568_v43  ;;  %v3876_v44 = vmul.f32 %v7527_v41, %v3864_v21 }
 0xa6a   :  { %v10147_v7 = vpop.eup %10146  ;;  %9714 = vmatpush3.bf16.msra.mxu1 %v9711_v58  ;;  %9722 = vmatpush3.bf16.msra.mxu0 %v10573_v16 }
 0xa6b   :  { %v12577_v11 = vadd.f32 %v7528_v12, %v3876_v44  ;;  %v3865_v0 = vmul.f32 %v10147_v7, %v12498_v59  ;;  %9724 = vmatprep.subr.bf16.mxu1 %v10489_v56  ;;  %9226 = vmatprep.subr.msk.mxu0 %vm97_vm0, %v12584_v8  ;;  %v7591_v44 = vld [vmem:[%s14592_s11 + $0x20] sm:$0xff]  ;;  %v7592_v7 = vld [vmem:[%s14592_s11 + $0x28] sm:$0xff] }
 0xa6d   :  { %9153 = vmatmul.mubr.msk.f32.gmra.mrb[126].mxu1 %vm446_vm4, %v12577_v11  ;;  %9170 = vmatmul.mubr.msk.f32.gmra.mrb[132].mxu0 %vm446_vm4, %v12577_v11  ;;  %v3877_v61 = vmul.f32 %v7527_v41, %v3865_v0  ;;  %v12662_v0 = vpack.c.bf16 %v7592_v7, %v7591_v44 }
 0xa6e   :  { %v10149_v47 = vpop.eup %10148 }
 0xa6f   :  { %v12592_v19 = vadd.f32 %v7528_v12, %v3877_v61  ;;  %v3866_v59 = vmul.f32 %v10149_v47, %v12503_v15  ;;  %v7546_v15 = vld [vmem:[%s14594_s13 + $0x1] ss:$0 sm:$0xff] }
 0xa71   :  { %9155 = vmatprep.mubr.msk.f32.mxu1 %vm446_vm4, %v12592_v19  ;;  %9172 = vmatprep.mubr.msk.f32.mxu0 %vm446_vm4, %v12592_v19  ;;  %v3878_v38 = vmul.f32 %v7527_v41, %v3866_v59 }
 0xa73   :  { %v12599_v28 = vadd.f32 %v7528_v12, %v3878_v38 }
 0xa75   :  { %9156 = vmatmul.mubr.msk.f32.gmra.mrb[128].mxu1 %vm446_vm4, %v12599_v28  ;;  %9173 = vmatmul.mubr.msk.f32.gmra.mrb[134].mxu0 %vm446_vm4, %v12599_v28 }
 0xa76   :  { %9183 = vmatprep.mubr.msk.f32.mxu1 %vm446_vm4, %v12548_v62 }
 0xa79   :  { %9184 = vmatmul.mubr.msk.f32.vlgmr.msra.gmra.mrb[130].mxu1 %vm446_vm4, %v12560_v20 }
 0xa7a   :  { %9186 = vmatprep.mubr.msk.f32.mxu1 %vm446_vm4, %v12568_v43  ;;  %9726 = vmatpush3.bf16.msra.mxu1 %v10489_v56  ;;  %v7534_v56 = vld [vmem:[%s14593_s12 + $0x1] ss:$0 sm:$0xff] }
 0xa7b   :  { %9728 = vmatprep.subr.bf16.mxu1 %v10573_v16 }
 0xa7d   :  { %9187 = vmatmul.mubr.msk.f32.gmra.mrb[132].mxu1 %vm446_vm4, %v12577_v11 }
 0xa7e   :  { %9189 = vmatprep.mubr.msk.f32.mxu1 %vm446_vm4, %v12592_v19  ;;  %9730 = vmatpush3.bf16.msra.mxu1 %v10573_v16 }
 0xa7f   :  { %9237 = vmatprep.subr.msk.mxu1 %vm97_vm0, %v12584_v8 }
 0xa81   :  { %9190 = vmatmul.mubr.msk.f32.gmra.mrb[134].mxu1 %vm446_vm4, %v12599_v28 }
 0xb38   :  { %v9151_v39 = vpop.f32.mrb[124].mxu1  ;;  %v9168_v37 = vpop.f32.mrb[130].mxu0 }
 0xb39   :  { %v3994_v27 = vadd.f32 %v9151_v39, %v7534_v56  ;;  %v4102_v9 = vadd.f32 %v9168_v37, %v7546_v15  ;;  %v3988_v23 = vpop.f32.mrb[125].mxu1  ;;  %v4096_v16 = vpop.f32.mrb[131].mxu0 }
 0xb3a   :  { %v3989_v4 = vadd.f32 %v7534_v56, %v3988_v23  ;;  %v4097_v42 = vadd.f32 %v7546_v15, %v4096_v16 }
 0xb3b   :  { %v4234_v24 = vmul.f32 %v4102_v9, %v3994_v27 }
 0xb3c   :  { %v4233_v26 = vmul.f32 %v4097_v42, %v3989_v4 }
 0xb3e   :  { %9200 = vmatprep.mubr.msk.f32.mxu0 %vm446_vm4, %v4233_v26 }
 0xb3f   :  { %9201 = vmatmul.mubr.msk.f32.vlgmr.msra.gmra.mrb[136].mxu0 %vm446_vm4, %v4234_v24 }
 0xb40   :  { %v9154_v14 = vpop.f32.mrb[126].mxu1  ;;  %v9171_v10 = vpop.f32.mrb[132].mxu0  ;;  %9227 = vmatpush3.msk.msra.mxu0 %vm97_vm0, %v12584_v8 }
 0xb41   :  { %v4004_v49 = vadd.f32 %v9154_v14, %v7534_v56  ;;  %v4112_v46 = vadd.f32 %v9171_v10, %v7546_v15  ;;  %v3998_v51 = vpop.f32.mrb[127].mxu1  ;;  %v4106_v50 = vpop.f32.mrb[133].mxu0  ;;  %9732 = vmatprep.subr.bf16.mxu0 %v12662_v0 }
 0xb42   :  { %v3999_v13 = vadd.f32 %v7534_v56, %v3998_v51  ;;  %v4107_v34 = vadd.f32 %v7546_v15, %v4106_v50 }
 0xb43   :  { %v4355_v55 = vmul.f32 %v4097_v42, %v4004_v49  ;;  %v4236_v54 = vmul.f32 %v4112_v46, %v4004_v49  ;;  %v4352_v41 = vmul.f32 %v4112_v46, %v3989_v4 }
 0xb44   :  { %v4235_v52 = vmul.f32 %v4107_v34, %v3999_v13 }
 0xb45   :  { %9217 = vmatprep.mubr.msk.f32.mxu1 %vm446_vm4, %v4352_v41 }
 0xb46   :  { %9203 = vmatprep.mubr.msk.f32.mxu0 %vm446_vm4, %v4235_v52 }
 0xb47   :  { %9204 = vmatmul.mubr.msk.f32.gmra.mrb[138].mxu0 %vm446_vm4, %v4236_v54 }
 0xb48   :  { %v9157_v22 = vpop.f32.mrb[128].mxu1  ;;  %v9174_v60 = vpop.f32.mrb[134].mxu0 }
 0xb49   :  { %v4014_v12 = vadd.f32 %v9157_v22, %v7534_v56  ;;  %v4122_v53 = vadd.f32 %v9174_v60, %v7546_v15  ;;  %v4008_v18 = vpop.f32.mrb[129].mxu1  ;;  %v4116_v2 = vpop.f32.mrb[135].mxu0 }
 0xb4a   :  { %v4009_v29 = vadd.f32 %v7534_v56, %v4008_v18  ;;  %v4117_v57 = vadd.f32 %v7546_v15, %v4116_v2 }
 0xb4b   :  { %v4357_v1 = vmul.f32 %v4107_v34, %v4014_v12  ;;  %v4238_v30 = vmul.f32 %v4122_v53, %v4014_v12  ;;  %v4354_v63 = vmul.f32 %v4122_v53, %v3999_v13 }
 0xb4c   :  { %v4356_v48 = vmul.f32 %v4102_v9, %v4009_v29  ;;  %v4237_v25 = vmul.f32 %v4117_v57, %v4009_v29  ;;  %v4353_v31 = vmul.f32 %v4117_v57, %v3994_v27  ;;  %v12635_v17 = vpop.f32.mrb[130].mxu1 }
 0xb4d   :  { %v12637_v5 = vpop.f32.mrb[131].mxu1 }
 0xb4e   :  { %9206 = vmatprep.mubr.msk.f32.mxu0 %vm446_vm4, %v4237_v25  ;;  %9218 = vmatmul.mubr.msk.f32.vlgmr.msra.gmra.mrb[136].mxu1 %vm446_vm4, %v4353_v31 }
 0xb4f   :  { %9207 = vmatmul.mubr.msk.f32.gmra.mrb[140].mxu0 %vm446_vm4, %v4238_v30  ;;  %9220 = vmatprep.mubr.msk.f32.mxu1 %vm446_vm4, %v4354_v63 }
 0xb50   :  { %v12643_v58 = vpop.f32.mrb[132].mxu1  ;;  %9238 = vmatpush3.msk.msra.mxu1 %vm97_vm0, %v12584_v8 }
 0xb51   :  { %v12647_v45 = vpop.f32.mrb[133].mxu1 }
 0xb52   :  { %9221 = vmatmul.mubr.msk.f32.gmra.mrb[138].mxu1 %vm446_vm4, %v4355_v55 }
 0xb53   :  { %9223 = vmatprep.mubr.msk.f32.mxu1 %vm446_vm4, %v4356_v48 }
 0xb54   :  { %v12651_v3 = vpop.f32.mrb[134].mxu1 }
 0xb55   :  { %v12653_v21 = vpop.f32.mrb[135].mxu1 }
 0xb56   :  { %9224 = vmatmul.mubr.msk.f32.gmra.mrb[140].mxu1 %vm446_vm4, %v4357_v1 }
 0xc12   :  { %v9202_v8 = vpop.f32.mrb[136].mxu0 }
 0xc13   :  { %v4323_v61 = vpop.f32.mrb[137].mxu0 }
 0xc1a   :  { %v9205_v47 = vpop.f32.mrb[138].mxu0 }
 0xc1b   :  { %v4333_v59 = vpop.f32.mrb[139].mxu0 }
 0xc21   :  { %v9219_v38 = vpop.f32.mrb[136].mxu1 }
 0xc22   :  { %v4472_v56 = vmax.f32 %v9202_v8, %v9219_v38  ;;  %v9208_v15 = vpop.f32.mrb[140].mxu0  ;;  %v4442_v39 = vpop.f32.mrb[137].mxu1 }
 0xc23   :  { %v4471_v37 = vmax.f32 %v4323_v61, %v4442_v39  ;;  %v4343_v27 = vpop.f32.mrb[141].mxu0 }
 0xc24   :  { %v4478_v9 = vsub.f32 %v9202_v8, %v4472_v56  ;;  %v4496_v23 = vsub.f32 %v9219_v38, %v4472_v56 }
 0xc25   :  { %v4477_v16 = vsub.f32 %v4323_v61, %v4471_v37  ;;  %v4495_v4 = vsub.f32 %v4442_v39, %v4471_v37  ;;  %v9222_v42 = vpop.f32.mrb[138].mxu1 }
 0xc26   :  { %v4485_v24 = vmul.f32 1.442695, %v4478_v9  ;;  %v4503_v26 = vmul.f32 1.442695, %v4496_v23  ;;  %v4474_v14 = vmax.f32 %v9205_v47, %v9222_v42  ;;  %v4452_v10 = vpop.f32.mrb[139].mxu1 }
 0xc27   :  { %v4483_v49 = vmul.f32 1.442695, %v4477_v16  ;;  %v4501_v46 = vmul.f32 1.442695, %v4495_v4  ;;  %v4473_v51 = vmax.f32 %v4333_v59, %v4452_v10 }
 0xc28   :  { %10150 = vpow2.f32 %v4485_v24  ;;  %v4480_v50 = vsub.f32 %v9205_v47, %v4474_v14  ;;  %v4498_v13 = vsub.f32 %v9222_v42, %v4474_v14 }
 0xc29   :  { %10152 = vpow2.f32 %v4503_v26  ;;  %v4479_v34 = vsub.f32 %v4333_v59, %v4473_v51  ;;  %v4497_v55 = vsub.f32 %v4452_v10, %v4473_v51  ;;  %v9225_v54 = vpop.f32.mrb[140].mxu1 }
 0xc2a   :  { %10154 = vpow2.f32 %v4483_v49  ;;  %v4489_v41 = vmul.f32 1.442695, %v4480_v50  ;;  %v4507_v52 = vmul.f32 1.442695, %v4498_v13  ;;  %v4476_v22 = vmax.f32 %v9208_v15, %v9225_v54  ;;  %v4462_v60 = vpop.f32.mrb[141].mxu1 }
 0xc2b   :  { %10156 = vpow2.f32 %v4501_v46  ;;  %v4487_v12 = vmul.f32 1.442695, %v4479_v34  ;;  %v4505_v53 = vmul.f32 1.442695, %v4497_v55  ;;  %v4475_v18 = vmax.f32 %v4343_v27, %v4462_v60 }
 0xc2c   :  { %10158 = vpow2.f32 %v4489_v41  ;;  %v4482_v2 = vsub.f32 %v9208_v15, %v4476_v22  ;;  %v4500_v29 = vsub.f32 %v9225_v54, %v4476_v22 }
 0xc2d   :  { %10160 = vpow2.f32 %v4507_v52  ;;  %v4481_v57 = vsub.f32 %v4343_v27, %v4475_v18  ;;  %v4499_v1 = vsub.f32 %v4462_v60, %v4475_v18  ;;  %v7593_v18 = vld [vmem:[%s14592_s11 + $0x30] sm:$0xff] }
 0xc2e   :  { %10162 = vpow2.f32 %v4487_v12  ;;  %v4493_v30 = vmul.f32 1.442695, %v4482_v2  ;;  %v4511_v63 = vmul.f32 1.442695, %v4500_v29  ;;  %v7594_v2 = vld [vmem:[%s14592_s11 + $0x38] sm:$0xff] }
 0xc2f   :  { %10164 = vpow2.f32 %v4505_v53  ;;  %v4491_v48 = vmul.f32 1.442695, %v4481_v57  ;;  %v4509_v25 = vmul.f32 1.442695, %v4499_v1  ;;  %v9735_v29 = vpack.c.bf16 %v7594_v2, %v7593_v18  ;;  %v7558_v57 = vld [vmem:[%s14595_s14 + $0x1] ss:$0 sm:$0xff] }
 0xc30   :  { %10166 = vpow2.f32 %v4493_v30  ;;  %v4210_v1 = vadd.f32 %v12635_v17, %v7558_v57  ;;  %v4225_v30 = vadd.f32 %v7558_v57, %v12653_v21 }
 0xc31   :  { %10168 = vpow2.f32 %v4511_v63  ;;  %v4205_v63 = vadd.f32 %v7558_v57, %v12637_v5 }
 0xc32   :  { %v10151_v31 = vpop.eup %10150  ;;  %10170 = vpow2.f32 %v4491_v48  ;;  %v4220_v48 = vadd.f32 %v12643_v58, %v7558_v57 }
 0xc33   :  { %v10153_v44 = vpop.eup %10152  ;;  %10172 = vpow2.f32 %v4509_v25 }
 0xc34   :  { %v10155_v7 = vpop.eup %10154  ;;  %v4514_v8 = vadd.f32 %v10153_v44, %v10151_v31 }
 0xc35   :  { %v10157_v61 = vpop.eup %10156 }
 0xc36   :  { %v10159_v47 = vpop.eup %10158  ;;  %10174 = vrcp.f32 %v4514_v8  ;;  %v4513_v59 = vadd.f32 %v10157_v61, %v10155_v7 }
 0xc37   :  { %v10161_v38 = vpop.eup %10160 }
 0xc38   :  { %v10163_v56 = vpop.eup %10162  ;;  %10176 = vrcp.f32 %v4513_v59  ;;  %v4516_v15 = vadd.f32 %v10161_v38, %v10159_v47 }
 0xc39   :  { %v10165_v39 = vpop.eup %10164 }
 0xc3a   :  { %v10167_v37 = vpop.eup %10166  ;;  %10178 = vrcp.f32 %v4516_v15  ;;  %v4515_v27 = vadd.f32 %v10165_v39, %v10163_v56  ;;  %v4230_v15 = vadd.f32 %v12651_v3, %v7558_v57 }
 0xc3b   :  { %v10169_v9 = vpop.eup %10168 }
 0xc3c   :  { %v10171_v23 = vpop.eup %10170  ;;  %10180 = vrcp.f32 %v4515_v27  ;;  %v4518_v16 = vadd.f32 %v10169_v9, %v10167_v37 }
 0xc3d   :  { %v10173_v4 = vpop.eup %10172 }
 0xc3e   :  { %10182 = vrcp.f32 %v4518_v16  ;;  %v4517_v42 = vadd.f32 %v10173_v4, %v10171_v23 }
 0xc40   :  { %v10175_v24 = vpop.eup %10174  ;;  %10184 = vrcp.f32 %v4517_v42 }
 0xc41   :  { %v4526_v26 = vmul.f32 %v10175_v24, %v10151_v31  ;;  %v4651_v14 = vmul.f32 %v10175_v24, %v10153_v44 }
 0xc42   :  { %v10177_v10 = vpop.eup %10176 }
 0xc43   :  { %v4525_v49 = vmul.f32 %v10177_v10, %v10155_v7  ;;  %v4650_v46 = vmul.f32 %v10177_v10, %v10157_v61 }
 0xc44   :  { %v10179_v51 = vpop.eup %10178 }
 0xc45   :  { %9228 = vmatprep.mubr.msk.f32.mxu0 %vm1199_vm6, %v4525_v49  ;;  %9239 = vmatprep.mubr.msk.f32.mxu1 %vm1199_vm6, %v4650_v46  ;;  %v4528_v50 = vmul.f32 %v10179_v51, %v10159_v47  ;;  %v4653_v13 = vmul.f32 %v10179_v51, %v10161_v38 }
 0xc46   :  { %v10181_v34 = vpop.eup %10180  ;;  %9229 = vmatmul.mubr.msk.f32.vlgmr.msra.gmra.mrb[142].mxu0 %vm1199_vm6, %v4526_v26  ;;  %9240 = vmatmul.mubr.msk.f32.vlgmr.msra.gmra.mrb[142].mxu1 %vm1199_vm6, %v4651_v14 }
 0xc47   :  { %v4527_v55 = vmul.f32 %v10181_v34, %v10163_v56  ;;  %v4652_v54 = vmul.f32 %v10181_v34, %v10165_v39  ;;  %9734 = vmatpush3.bf16.msra.mxu0 %v12662_v0  ;;  %v14651_v0 = vmov 0.0   ;;  %v4215_v56 = vadd.f32 %v7558_v57, %v12647_v45 }
 0xc48   :  { %v10183_v41 = vpop.eup %10182  ;;  %9736 = vmatprep.subr.bf16.mxu0 %v9735_v29 }
 0xc49   :  { %9231 = vmatprep.mubr.msk.f32.mxu0 %vm1199_vm6, %v4527_v55  ;;  %9242 = vmatprep.mubr.msk.f32.mxu1 %vm1199_vm6, %v4652_v54  ;;  %v4530_v52 = vmul.f32 %v10183_v41, %v10167_v37  ;;  %v4655_v22 = vmul.f32 %v10183_v41, %v10169_v9 }
 0xc4a   :  { %v10185_v60 = vpop.eup %10184  ;;  %9232 = vmatmul.mubr.msk.f32.gmra.mrb[144].mxu0 %vm1199_vm6, %v4528_v50  ;;  %9243 = vmatmul.mubr.msk.f32.gmra.mrb[144].mxu1 %vm1199_vm6, %v4653_v13  ;;  %v7596_v50 = vld [vmem:[%s14596_s15 + $0x1] ss:$0 sm:$0xff] }
 0xc4b   :  { %v4529_v12 = vmul.f32 %v10185_v60, %v10171_v23  ;;  %v4654_v53 = vmul.f32 %v10185_v60, %v10173_v4  ;;  %9738 = vmatpush3.bf16.msra.mxu0 %v9735_v29 }
 0xc4d   :  { %9234 = vmatprep.mubr.msk.f32.mxu0 %vm1199_vm6, %v4529_v12  ;;  %9245 = vmatprep.mubr.msk.f32.mxu1 %vm1199_vm6, %v4654_v53 }
 0xc4e   :  { %9235 = vmatmul.mubr.msk.f32.gmra.mrb[146].mxu0 %vm1199_vm6, %v4530_v52  ;;  %9246 = vmatmul.mubr.msk.f32.gmra.mrb[146].mxu1 %vm1199_vm6, %v4655_v22 }
 0xc4f   :  { %5251 = vmatprep.mubr.f32.mxu1 %v14651_v0 }
 0xd19   :  { %v9230_v25 = vpop.f32.mrb[142].mxu0  ;;  %v9241_v31 = vpop.f32.mrb[142].mxu1 }
 0xd1a   :  { %v4645_v44 = vmul.f32 %v9230_v25, %v4210_v1  ;;  %v4770_v7 = vmul.f32 %v9241_v31, %v4225_v30  ;;  %v4615_v8 = vpop.f32.mrb[143].mxu0  ;;  %v4740_v61 = vpop.f32.mrb[143].mxu1 }
 0xd1b   :  { %v4644_v47 = vmul.f32 %v4615_v8, %v4205_v63  ;;  %v4769_v59 = vmul.f32 %v4740_v61, %v4220_v48 }
 0xd1c   :  { %v4776_v38 = vadd.f32 %v4770_v7, %v4645_v44 }
 0xd1d   :  { %v4775_v17 = vadd.f32 %v4769_v59, %v4644_v47  ;;  %v9233_v39 = vpop.f32.mrb[144].mxu0  ;;  %v9244_v21 = vpop.f32.mrb[144].mxu1 }
 0xd1e   :  { %v4647_v37 = vmul.f32 %v9233_v39, %v4220_v48  ;;  %v4772_v5 = vmul.f32 %v9244_v21, %v4205_v63  ;;  %v4625_v27 = vpop.f32.mrb[145].mxu0  ;;  %v4750_v58 = vpop.f32.mrb[145].mxu1 }
 0xd1f   :  { %v4646_v9 = vmul.f32 %v4625_v27, %v4215_v56  ;;  %v4771_v23 = vmul.f32 %v4750_v58, %v4230_v15  ;;  %9256 = vmatprep.mubr.msk.f32.mxu0 %vm446_vm4, %v4775_v17 }
 0xd20   :  { %v4778_v16 = vadd.f32 %v4772_v5, %v4647_v37  ;;  %9257 = vmatmul.mubr.msk.f32.vlgmr.msra.gmra.mrb[148].mxu0 %vm446_vm4, %v4776_v38 }
 0xd21   :  { %v4777_v4 = vadd.f32 %v4771_v23, %v4646_v9  ;;  %v9236_v42 = vpop.f32.mrb[146].mxu0  ;;  %v9247_v24 = vpop.f32.mrb[146].mxu1 }
 0xd22   :  { %v4649_v45 = vmul.f32 %v9236_v42, %v4230_v15  ;;  %v4774_v26 = vmul.f32 %v9247_v24, %v4215_v56  ;;  %v4635_v3 = vpop.f32.mrb[147].mxu0  ;;  %v4760_v14 = vpop.f32.mrb[147].mxu1 }
 0xd23   :  { %v4648_v10 = vmul.f32 %v4635_v3, %v4225_v30  ;;  %v4773_v49 = vmul.f32 %v4760_v14, %v4210_v1  ;;  %9259 = vmatprep.mubr.msk.f32.mxu0 %vm446_vm4, %v4777_v4 }
 0xd24   :  { %v4780_v46 = vadd.f32 %v4774_v26, %v4649_v45  ;;  %9260 = vmatmul.mubr.msk.f32.gmra.mrb[150].mxu0 %vm446_vm4, %v4778_v16 }
 0xd25   :  { %v4779_v51 = vadd.f32 %v4773_v49, %v4648_v10 }
 0xd27   :  { %9262 = vmatprep.mubr.msk.f32.mxu0 %vm446_vm4, %v4779_v51  ;;  %v7624_v51 = vld [vmem:[%s14601_s20 + $0x288] sm:$0xff] }
 0xd28   :  { %9263 = vmatmul.mubr.msk.f32.gmra.mrb[152].mxu0 %vm446_vm4, %v4780_v46  ;;  %v7608_v46 = vld [vmem:[%s14601_s20 + $0x208] sm:$0xff] }
 0xd29   :  { %5352 = vmatprep.mubr.f32.mxu0 %v14651_v0 }
 0xdf3   :  { %v9258_v13 = vpop.f32.mrb[148].mxu0 }
 0xdf4   :  { %v4884_v34 = vadd.f32 %v9258_v13, %v7596_v50  ;;  %v4878_v55 = vpop.f32.mrb[149].mxu0  ;;  %v9739_v13 = vpack.c.bf16 %v7624_v51, %v7608_v46  ;;  %v12814_v46 = vld [vmem:[%s14598_s17 + $0x1] ss:$0 sm:$0xff] }
 0xdf5   :  { %v4879_v54 = vadd.f32 %v7596_v50, %v4878_v55  ;;  %v7607_v55 = vld [vmem:[%s14601_s20 + $0x200] sm:$0xff] }
 0xdf6   :  { %v4908_v41 = vadd.f32 %v4884_v34, %v12560_v20  ;;  %v7626_v34 = vld [vmem:[%s14601_s20 + $0x298] sm:$0xff]  ;;  %9740 = vmatprep.subr.bf16.mxu1 %v9739_v13  ;;  %v7611_v13 = vld [vmem:[%s14601_s20 + $0x220] sm:$0xff] }
 0xdf7   :  { %v9261_v52 = vpop.f32.mrb[150].mxu0  ;;  %v4907_v22 = vadd.f32 %v4879_v54, %v12548_v62  ;;  %v7623_v54 = vld [vmem:[%s14601_s20 + $0x280] sm:$0xff] }
 0xdf8   :  { %v4894_v60 = vadd.f32 %v9261_v52, %v7596_v50  ;;  %v4888_v12 = vpop.f32.mrb[151].mxu0  ;;  %v4920_v53 = vsel %vm446_vm4, %v4908_v41, 0.0  ;;  %v9741_v52 = vpack.c.bf16 %v7623_v54, %v7607_v55  ;;  %v7613_v55 = vld [vmem:[%s14601_s20 + $0x230] sm:$0xff] }
 0xdf9   :  { %v4889_v18 = vadd.f32 %v7596_v50, %v4888_v12  ;;  %4921 = vadd.xlane.f32.xlu0 %v4920_v53  ;;  %v4917_v2 = vsel %vm446_vm4, %v4907_v22, 0.0  ;;  %v7640_v53 = vld [vmem:[%s14601_s20 + $0x308] sm:$0xff]  ;;  %v7629_v54 = vld [vmem:[%s14601_s20 + $0x2b0] sm:$0xff] }
 0xdfa   :  { %4918 = vadd.xlane.f32.xlu1 %v4917_v2  ;;  %v4910_v29 = vadd.f32 %v4894_v60, %v12577_v11  ;;  %v7625_v60 = vld [vmem:[%s14601_s20 + $0x290] sm:$0xff]  ;;  %9742 = vmatpush1.bf16.msra.mxu1 %v9741_v52  ;;  %v7642_v2 = vld [vmem:[%s14601_s20 + $0x318] sm:$0xff] }
 0xdfb   :  { %v9264_v57 = vpop.f32.mrb[152].mxu0  ;;  %v4909_v1 = vadd.f32 %v4889_v18, %v12568_v43  ;;  %v7656_v18 = vld [vmem:[%s14601_s20 + $0x388] sm:$0xff]  ;;  %v7646_v52 = vld [vmem:[%s14601_s20 + $0x338] sm:$0xff] }
 0xdfc   :  { %v4904_v30 = vadd.f32 %v9264_v57, %v7596_v50  ;;  %v4898_v63 = vpop.f32.mrb[153].mxu0  ;;  %v4926_v20 = vsel %vm446_vm4, %v4910_v29, 0.0  ;;  %v7658_v57 = vld [vmem:[%s14601_s20 + $0x398] sm:$0xff] }
 0xdfd   :  { %v4899_v48 = vadd.f32 %v7596_v50, %v4898_v63  ;;  %4927 = vadd.xlane.f32.xlu0 %v4926_v20  ;;  %v4923_v62 = vsel %vm446_vm4, %v4909_v1, 0.0  ;;  %v7610_v50 = vld [vmem:[%s14601_s20 + $0x218] sm:$0xff]  ;;  %v9751_v63 = vpack.c.bf16 %v7658_v57, %v7642_v2  ;;  %v9765_v57 = vpack.c.bf16 %v7629_v54, %v7613_v55  ;;  %v7665_v55 = vld [vmem:[%s14601_s20 + $0x3d0] sm:$0xff]  ;;  %v7620_v54 = vld [vmem:[%s14601_s20 + $0x268] sm:$0xff] }
 0xdfe   :  { %4924 = vadd.xlane.f32.xlu1 %v4923_v62  ;;  %v4912_v25 = vadd.f32 %v4904_v30, %v12599_v28  ;;  %v7655_v30 = vld [vmem:[%s14601_s20 + $0x380] sm:$0xff]  ;;  %v7657_v62 = vld [vmem:[%s14601_s20 + $0x390] sm:$0xff] }
 0xdff   :  { %v4911_v31 = vadd.f32 %v4899_v48, %v12592_v19  ;;  %v7641_v48 = vld [vmem:[%s14601_s20 + $0x310] sm:$0xff] }
 0xe00   :  { %v4932_v44 = vsel %vm446_vm4, %v4912_v25, 0.0 }
 0xe01   :  { %4933 = vadd.xlane.f32.xlu0 %v4932_v44  ;;  %v4929_v11 = vsel %vm446_vm4, %v4911_v31, 0.0  ;;  %v7628_v44 = vld [vmem:[%s14601_s20 + $0x2a8] sm:$0xff] }
 0xe02   :  { %4930 = vadd.xlane.f32.xlu1 %v4929_v11 }
 0xe86   :  { %v4922_v43 = vpop.xlane.xlu0 %4921 }
 0xe87   :  { %v4936_v7 = vmul.f32 0.03125, %v4922_v43  ;;  %v4919_v8 = vpop.xlane.xlu1 %4918  ;;  %v7614_v43 = vld [vmem:[%s14601_s20 + $0x238] sm:$0xff] }
 0xe88   :  { %v4935_v61 = vmul.f32 0.03125, %v4919_v8 }
 0xe89   :  { %v12716_v47 = vsub.f32 %v4908_v41, %v4936_v7  ;;  %v9747_v41 = vpack.c.bf16 %v7626_v34, %v7610_v50  ;;  %v7630_v7 = vld [vmem:[%s14601_s20 + $0x2b8] sm:$0xff]  ;;  %v7627_v34 = vld [vmem:[%s14601_s20 + $0x2a0] sm:$0xff] }
 0xe8a   :  { %v12718_v59 = vsub.f32 %v4907_v22, %v4935_v61  ;;  %v4928_v38 = vpop.xlane.xlu0 %4927  ;;  %v7609_v22 = vld [vmem:[%s14601_s20 + $0x210] sm:$0xff]  ;;  %v9763_v8 = vpack.c.bf16 %v7630_v7, %v7614_v43 }
 0xe8b   :  { %v4938_v56 = vmul.f32 0.03125, %v4928_v38  ;;  %v4925_v15 = vpop.xlane.xlu1 %4924  ;;  %v4948_v19 = vmul.f32 %v12716_v47, %v12716_v47  ;;  %v9749_v12 = vpack.c.bf16 %v7625_v60, %v7609_v22  ;;  %9748 = vmatprep.subr.bf16.mxu0 %v9747_v41  ;;  %v7660_v41 = vld [vmem:[%s14601_s20 + $0x3a8] sm:$0xff]  ;;  %v7662_v22 = vld [vmem:[%s14601_s20 + $0x3b8] sm:$0xff] }
 0xe8c   :  { %v4937_v28 = vmul.f32 0.03125, %v4925_v15  ;;  %v4947_v17 = vmul.f32 %v12718_v59, %v12718_v59 }
 0xe8d   :  { %v12724_v39 = vsub.f32 %v4910_v29, %v4938_v56  ;;  %v4956_v21 = vsel %vm446_vm4, %v4948_v19, 0.0  ;;  %9750 = vmatpush1.bf16.msra.mxu0 %v9749_v12  ;;  %v9743_v29 = vpack.c.bf16 %v7656_v18, %v7640_v53  ;;  %v9757_v12 = vpack.c.bf16 %v7627_v34, %v7611_v13  ;;  %v7643_v53 = vld [vmem:[%s14601_s20 + $0x320] sm:$0xff]  ;;  %v7649_v34 = vld [vmem:[%s14601_s20 + $0x350] sm:$0xff] }
 0xe8e   :  { %v12727_v37 = vsub.f32 %v4909_v1, %v4937_v28  ;;  %4957 = vadd.xlane.f32.xlu0 %v4956_v21  ;;  %v4934_v5 = vpop.xlane.xlu0 %4933  ;;  %v4953_v27 = vsel %vm446_vm4, %v4947_v17, 0.0  ;;  %v7639_v1 = vld [vmem:[%s14601_s20 + $0x300] sm:$0xff]  ;;  %9752 = vmatprep.subr.bf16.mxu0 %v9751_v63  ;;  %v7661_v63 = vld [vmem:[%s14601_s20 + $0x3b0] sm:$0xff] }
 0xe8f   :  { %v4940_v58 = vmul.f32 0.03125, %v4934_v5  ;;  %4954 = vadd.xlane.f32.xlu1 %v4953_v27  ;;  %v4931_v9 = vpop.xlane.xlu1 %4930  ;;  %v4950_v23 = vmul.f32 %v12724_v39, %v12724_v39  ;;  %v9745_v20 = vpack.c.bf16 %v7655_v30, %v7639_v1  ;;  %9744 = vmatprep.subr.bf16.mxu1 %v9743_v29  ;;  %v7659_v1 = vld [vmem:[%s14601_s20 + $0x3a0] sm:$0xff]  ;;  %v7645_v30 = vld [vmem:[%s14601_s20 + $0x330] sm:$0xff] }
 0xe90   :  { %v4939_v16 = vmul.f32 0.03125, %v4931_v9  ;;  %v4949_v4 = vmul.f32 %v12727_v37, %v12727_v37  ;;  %v9769_v43 = vpack.c.bf16 %v7661_v63, %v7645_v30  ;;  %v7668_v30 = vld [vmem:[%s14601_s20 + $0x3e8] sm:$0xff]  ;;  %v7654_v63 = vld [vmem:[%s14601_s20 + $0x378] sm:$0xff] }
 0xe91   :  { %v12734_v42 = vsub.f32 %v4912_v25, %v4940_v58  ;;  %v4962_v24 = vsel %vm446_vm4, %v4950_v23, 0.0  ;;  %v9753_v25 = vpack.c.bf16 %v7657_v62, %v7641_v48  ;;  %9746 = vmatpush1.bf16.msra.mxu1 %v9745_v20  ;;  %v9767_v62 = vpack.c.bf16 %v7662_v22, %v7646_v52 }
 0xe92   :  { %v12737_v45 = vsub.f32 %v4911_v31, %v4939_v16  ;;  %4963 = vadd.xlane.f32.xlu0 %v4962_v24  ;;  %v4959_v26 = vsel %vm446_vm4, %v4949_v4, 0.0  ;;  %v7612_v31 = vld [vmem:[%s14601_s20 + $0x228] sm:$0xff]  ;;  %v9785_v22 = vpack.c.bf16 %v7665_v55, %v7649_v34  ;;  %v7773_v55 = vld [vmem:[%s14603_s22 + $0x9a0] sm:$0xff] }
 0xe93   :  { %4960 = vadd.xlane.f32.xlu1 %v4959_v26  ;;  %v4952_v3 = vmul.f32 %v12734_v42, %v12734_v42  ;;  %9754 = vmatpush1.bf16.msra.mxu0 %v9753_v25  ;;  %v9755_v11 = vpack.c.bf16 %v7628_v44, %v7612_v31  ;;  %v7632_v25 = vld [vmem:[%s14601_s20 + $0x2c8] sm:$0xff]  ;;  %v7618_v31 = vld [vmem:[%s14601_s20 + $0x258] sm:$0xff] }
 0xe94   :  { %v4951_v14 = vmul.f32 %v12737_v45, %v12737_v45  ;;  %9764 = vmatprep.subr.bf16.mxu0 %v9763_v8  ;;  %v7634_v44 = vld [vmem:[%s14601_s20 + $0x2d8] sm:$0xff]  ;;  %v7742_v34 = vld [vmem:[%s14603_s22 + $0x8a8] sm:$0xff] }
 0xe95   :  { %v4968_v10 = vsel %vm446_vm4, %v4952_v3, 0.0  ;;  %9756 = vmatprep.subr.bf16.mxu1 %v9755_v11  ;;  %v9761_v11 = vpack.c.bf16 %v7659_v1, %v7643_v53  ;;  %v7619_v53 = vld [vmem:[%s14601_s20 + $0x260] sm:$0xff]  ;;  %v7652_v1 = vld [vmem:[%s14601_s20 + $0x368] sm:$0xff] }
 0xe96   :  { %4969 = vadd.xlane.f32.xlu0 %v4968_v10  ;;  %v4965_v49 = vsel %vm446_vm4, %v4951_v14, 0.0  ;;  %v12809_v10 = vld [vmem:[%s14597_s16 + $0x1] ss:$0 sm:$0xff] }
 0xe97   :  { %4966 = vadd.xlane.f32.xlu1 %v4965_v49 }
 0xf1b   :  { %v4958_v61 = vpop.xlane.xlu0 %4957 }
 0xf1c   :  { %v4972_v38 = vmul.f32 0.03125, %v4958_v61  ;;  %v4955_v56 = vpop.xlane.xlu1 %4954 }
 0xf1d   :  { %v4971_v15 = vmul.f32 0.03125, %v4955_v56 }
 0xf1e   :  { %v4978_v19 = vadd.f32 1e-05, %v4972_v38 }
 0xf1f   :  { %v4977_v28 = vadd.f32 1e-05, %v4971_v15  ;;  %v4964_v17 = vpop.xlane.xlu0 %4963  ;;  %v9779_v15 = vpack.c.bf16 %v7634_v44, %v7618_v31  ;;  %v9791_v31 = vpack.c.bf16 %v7668_v30, %v7652_v1  ;;  %v7776_v1 = vld [vmem:[%s14603_s22 + $0x9b8] sm:$0xff] }
 0xf20   :  { %10186 = vrsqrt.f32 %v4978_v19  ;;  %v4974_v21 = vmul.f32 0.03125, %v4964_v17  ;;  %v4961_v5 = vpop.xlane.xlu1 %4960 }
 0xf21   :  { %10188 = vrsqrt.f32 %v4977_v28  ;;  %v4973_v27 = vmul.f32 0.03125, %v4961_v5 }
 0xf22   :  { %v4980_v58 = vadd.f32 1e-05, %v4974_v21 }
 0xf23   :  { %v4979_v9 = vadd.f32 1e-05, %v4973_v27  ;;  %v4970_v23 = vpop.xlane.xlu0 %4969 }
 0xf24   :  { %v4967_v16 = vpop.xlane.xlu1 %4966  ;;  %v4976_v24 = vmul.f32 0.03125, %v4970_v23  ;;  %v7631_v23 = vld [vmem:[%s14601_s20 + $0x2c0] sm:$0xff] }
 0xf25   :  { %10190 = vrsqrt.f32 %v4979_v9  ;;  %v4975_v4 = vmul.f32 0.03125, %v4967_v16  ;;  %v7615_v9 = vld [vmem:[%s14601_s20 + $0x240] sm:$0xff]  ;;  %v7617_v16 = vld [vmem:[%s14601_s20 + $0x250] sm:$0xff] }
 0xf26   :  { %10192 = vrsqrt.f32 %v4980_v58  ;;  %v4982_v49 = vadd.f32 1e-05, %v4976_v24  ;;  %v7648_v24 = vld [vmem:[%s14601_s20 + $0x348] sm:$0xff] }
 0xf27   :  { %v4981_v26 = vadd.f32 1e-05, %v4975_v4  ;;  %v7633_v4 = vld [vmem:[%s14601_s20 + $0x2d0] sm:$0xff] }
 0xf29   :  { %10194 = vrsqrt.f32 %v4981_v26  ;;  %v7664_v26 = vld [vmem:[%s14601_s20 + $0x3c8] sm:$0xff] }
 0xf2a   :  { %v10187_v3 = vpop.eup %10186  ;;  %10196 = vrsqrt.f32 %v4982_v49  ;;  %v9781_v49 = vpack.c.bf16 %v7633_v4, %v7617_v16  ;;  %v7740_v16 = vld [vmem:[%s14603_s22 + $0x898] sm:$0xff]  ;;  %v7771_v4 = vld [vmem:[%s14603_s22 + $0x990] sm:$0xff] }
 0xf2b   :  { %v10189_v14 = vpop.eup %10188  ;;  %v4990_v51 = vmul.f32 %v10187_v3, %v12716_v47  ;;  %v7644_v47 = vld [vmem:[%s14601_s20 + $0x328] sm:$0xff]  ;;  %v7650_v3 = vld [vmem:[%s14601_s20 + $0x358] sm:$0xff] }
 0xf2c   :  { %v4989_v50 = vmul.f32 %v10189_v14, %v12718_v59  ;;  %v9759_v48 = vpack.c.bf16 %v7660_v41, %v7644_v47  ;;  %v7666_v14 = vld [vmem:[%s14601_s20 + $0x3d8] sm:$0xff]  ;;  %v7636_v47 = vld [vmem:[%s14601_s20 + $0x2e8] sm:$0xff] }
 0xf2d   :  { %v5002_v18 = vmul.f32 %v12809_v10, %v4990_v51  ;;  %v7663_v51 = vld [vmem:[%s14601_s20 + $0x3c0] sm:$0xff]  ;;  %v9783_v13 = vpack.c.bf16 %v7666_v14, %v7650_v3  ;;  %v7638_v41 = vld [vmem:[%s14601_s20 + $0x2f8] sm:$0xff]  ;;  %v7723_v14 = vld [vmem:[%s14603_s22 + $0x810] sm:$0xff] }
 0xf2e   :  { %v5001_v59 = vmul.f32 %v12809_v10, %v4989_v50  ;;  %v9775_v50 = vpack.c.bf16 %v7664_v26, %v7648_v24  ;;  %v7772_v24 = vld [vmem:[%s14603_s22 + $0x998] sm:$0xff] }
 0xf2f   :  { %v10191_v60 = vpop.eup %10190  ;;  %v12879_v7 = vadd.f32 %v12814_v46, %v5002_v18  ;;  %v7635_v18 = vld [vmem:[%s14601_s20 + $0x2e0] sm:$0xff] }
 0xf30   :  { %v12848_v2 = vadd.f32 %v12814_v46, %v5001_v59  ;;  %v4991_v29 = vmul.f32 %v10191_v60, %v12727_v37  ;;  %v10193_v20 = vpop.eup %10192  ;;  %v7616_v37 = vld [vmem:[%s14601_s20 + $0x248] sm:$0xff]  ;;  %v7622_v59 = vld [vmem:[%s14601_s20 + $0x278] sm:$0xff]  ;;  %v9787_v60 = vpack.c.bf16 %v7636_v47, %v7620_v54 }
 0xf31   :  { %v4992_v8 = vmul.f32 %v10193_v20, %v12724_v39  ;;  %v9771_v56 = vpack.c.bf16 %v7632_v25, %v7616_v37  ;;  %v7670_v20 = vld [vmem:[%s14601_s20 + $0x3f8] sm:$0xff]  ;;  %v7651_v37 = vld [vmem:[%s14601_s20 + $0x360] sm:$0xff]  ;;  %v7774_v54 = vld [vmem:[%s14603_s22 + $0x9a8] sm:$0xff] }
 0xf32   :  { %7673 = vmatmul.mubr.msk.f32.vlgmr.msra.gmra.mrb[148].mxu1 %vm446_vm4, %v12848_v2  ;;  %7679 = vmatmul.mubr.msk.f32.vlgmr.msra.gmra.mrb[154].mxu0 %vm446_vm4, %v12848_v2  ;;  %v5003_v61 = vmul.f32 %v12809_v10, %v4991_v29  ;;  %v7621_v29 = vld [vmem:[%s14601_s20 + $0x270] sm:$0xff]  ;;  %v7667_v25 = vld [vmem:[%s14601_s20 + $0x3e0] sm:$0xff]  ;;  %v9799_v44 = vpack.c.bf16 %v7670_v20, %v7654_v63 }
 0xf33   :  { %5257 = vmatprep.mubr.f32.mxu1 %v14651_v0  ;;  %5358 = vmatprep.mubr.f32.mxu0 %v14651_v0  ;;  %v10195_v38 = vpop.eup %10194  ;;  %v5004_v39 = vmul.f32 %v12809_v10, %v4992_v8  ;;  %v7737_v8 = vld [vmem:[%s14603_s22 + $0x880] sm:$0xff]  ;;  %v7727_v20 = vld [vmem:[%s14603_s22 + $0x830] sm:$0xff] }
 0xf34   :  { %9758 = vmatpush1.bf16.msra.mxu1 %v9757_v12  ;;  %9766 = vmatpush1.bf16.msra.mxu0 %v9765_v57  ;;  %v12891_v19 = vadd.f32 %v12814_v46, %v5003_v61  ;;  %v4993_v28 = vmul.f32 %v10195_v38, %v12737_v45  ;;  %v10197_v17 = vpop.eup %10196  ;;  %v9795_v12 = vpack.c.bf16 %v7638_v41, %v7622_v59  ;;  %v7637_v57 = vld [vmem:[%s14601_s20 + $0x2f0] sm:$0xff]  ;;  %v7738_v61 = vld [vmem:[%s14603_s22 + $0x888] sm:$0xff]  ;;  %v7769_v38 = vld [vmem:[%s14603_s22 + $0x980] sm:$0xff] }
 0xf35   :  { %9760 = vmatprep.subr.bf16.mxu1 %v9759_v48  ;;  %9768 = vmatprep.subr.bf16.mxu0 %v9767_v62  ;;  %v12901_v21 = vadd.f32 %v12814_v46, %v5004_v39  ;;  %v4994_v45 = vmul.f32 %v10197_v17, %v12734_v42  ;;  %v9789_v48 = vpack.c.bf16 %v7635_v18, %v7619_v53  ;;  %v7725_v41 = vld [vmem:[%s14603_s22 + $0x820] sm:$0xff]  ;;  %v7758_v53 = vld [vmem:[%s14603_s22 + $0x928] sm:$0xff]  ;;  %v7743_v18 = vld [vmem:[%s14603_s22 + $0x8b0] sm:$0xff] }
 0xf36   :  { %7674 = vmatmul.mubr.msk.f32.gmra.mrb[150].mxu1 %vm446_vm4, %v12879_v7  ;;  %7680 = vmatmul.mubr.msk.f32.gmra.mrb[156].mxu0 %vm446_vm4, %v12879_v7  ;;  %v5005_v5 = vmul.f32 %v12809_v10, %v4993_v28  ;;  %v9797_v62 = vpack.c.bf16 %v7637_v57, %v7621_v29  ;;  %v9803_v28 = vpack.c.bf16 %v7738_v61, %v7737_v8  ;;  %v7744_v29 = vld [vmem:[%s14603_s22 + $0x8b8] sm:$0xff]  ;;  %v7775_v57 = vld [vmem:[%s14603_s22 + $0x9b0] sm:$0xff]  ;;  %v7778_v8 = vld [vmem:[%s14603_s22 + $0x9c8] sm:$0xff] }
 0xf37   :  { %5263 = vmatprep.mubr.f32.mxu1 %v14651_v0  ;;  %5364 = vmatprep.mubr.f32.mxu0 %v14651_v0  ;;  %v5006_v27 = vmul.f32 %v12809_v10, %v4994_v45  ;;  %v9773_v10 = vpack.c.bf16 %v7631_v23, %v7615_v9  ;;  %v7721_v45 = vld [vmem:[%s14603_s22 + $0x800] sm:$0xff]  ;;  %v7754_v9 = vld [vmem:[%s14603_s22 + $0x908] sm:$0xff]  ;;  %v7739_v23 = vld [vmem:[%s14603_s22 + $0x890] sm:$0xff] }
 0xf38   :  { %9762 = vmatpush1.bf16.msra.mxu1 %v9761_v11  ;;  %9770 = vmatpush1.bf16.msra.mxu0 %v9769_v43  ;;  %v12913_v58 = vadd.f32 %v12814_v46, %v5005_v5  ;;  %v7653_v11 = vld [vmem:[%s14601_s20 + $0x370] sm:$0xff]  ;;  %v7722_v5 = vld [vmem:[%s14603_s22 + $0x808] sm:$0xff] }
 0xf39   :  { %9772 = vmatprep.subr.bf16.mxu1 %v9771_v56  ;;  %9780 = vmatprep.subr.bf16.mxu0 %v9779_v15  ;;  %v12922_v42 = vadd.f32 %v12814_v46, %v5006_v27  ;;  %v7647_v46 = vld [vmem:[%s14601_s20 + $0x340] sm:$0xff]  ;;  %v7669_v43 = vld [vmem:[%s14601_s20 + $0x3f0] sm:$0xff]  ;;  %v7770_v56 = vld [vmem:[%s14603_s22 + $0x988] sm:$0xff]  ;;  %v9793_v15 = vpack.c.bf16 %v7667_v25, %v7651_v37  ;;  %v9805_v26 = vpack.c.bf16 %v7722_v5, %v7721_v45 }
 0xf3a   :  { %7675 = vmatmul.mubr.msk.f32.gmra.mrb[152].mxu1 %vm446_vm4, %v12891_v19  ;;  %7681 = vmatmul.mubr.msk.f32.gmra.mrb[158].mxu0 %vm446_vm4, %v12891_v19  ;;  %v9777_v52 = vpack.c.bf16 %v7663_v51, %v7647_v46  ;;  %v9801_v39 = vpack.c.bf16 %v7669_v43, %v7653_v11  ;;  %v9835_v17 = vpack.c.bf16 %v7770_v56, %v7769_v38  ;;  %v7753_v27 = vld [vmem:[%s14603_s22 + $0x900] sm:$0xff]  ;;  %v7755_v51 = vld [vmem:[%s14603_s22 + $0x910] sm:$0xff]  ;;  %v7746_v11 = vld [vmem:[%s14603_s22 + $0x8c8] sm:$0xff] }
 0xf3b   :  { %5269 = vmatprep.mubr.f32.mxu1 %v14651_v0  ;;  %5370 = vmatprep.mubr.f32.mxu0 %v14651_v0  ;;  %v9837_v3 = vpack.c.bf16 %v7754_v9, %v7753_v27  ;;  %v9839_v46 = vpack.c.bf16 %v7772_v24, %v7771_v4  ;;  %v9847_v37 = vpack.c.bf16 %v7776_v1, %v7775_v57  ;;  %v7759_v25 = vld [vmem:[%s14603_s22 + $0x930] sm:$0xff]  ;;  %v7777_v43 = vld [vmem:[%s14603_s22 + $0x9c0] sm:$0xff]  ;;  %v7762_v45 = vld [vmem:[%s14603_s22 + $0x948] sm:$0xff] }
 0xf3c   :  { %v7729_v56 = vld [vmem:[%s14603_s22 + $0x840] sm:$0xff]  ;;  %v7747_v5 = vld [vmem:[%s14603_s22 + $0x8d0] sm:$0xff]  ;;  %v7748_v27 = vld [vmem:[%s14603_s22 + $0x8d8] sm:$0xff] }
 0xf3d   :  { %v7779_v9 = vld [vmem:[%s14603_s22 + $0x9d0] sm:$0xff] }
 0xf3e   :  { %7676 = vmatmul.mubr.msk.f32.gmra.mrb[154].mxu1 %vm446_vm4, %v12901_v21  ;;  %7682 = vmatmul.mubr.msk.f32.gmra.mrb[160].mxu0 %vm446_vm4, %v12901_v21  ;;  %v7731_v24 = vld [vmem:[%s14603_s22 + $0x850] sm:$0xff] }
 0xf3f   :  { %5275 = vmatprep.mubr.f32.mxu1 %v14651_v0  ;;  %5376 = vmatprep.mubr.f32.mxu0 %v14651_v0  ;;  %v7735_v1 = vld [vmem:[%s14603_s22 + $0x870] sm:$0xff] }
 0xf42   :  { %7677 = vmatmul.mubr.msk.f32.gmra.mrb[156].mxu1 %vm446_vm4, %v12913_v58  ;;  %7683 = vmatmul.mubr.msk.f32.gmra.mrb[162].mxu0 %vm446_vm4, %v12913_v58 }
 0xf43   :  { %5281 = vmatprep.mubr.f32.mxu1 %v14651_v0  ;;  %5382 = vmatprep.mubr.f32.mxu0 %v14651_v0 }
 0xf46   :  { %7678 = vmatmul.mubr.msk.f32.gmra.mrb[158].mxu1 %vm446_vm4, %v12922_v42  ;;  %7684 = vmatmul.mubr.msk.f32.gmra.mrb[164].mxu0 %vm446_vm4, %v12922_v42 }
 0xf47   :  { %5453 = vmatprep.mubr.f32.mxu1 %v14651_v0  ;;  %5554 = vmatprep.mubr.f32.mxu0 %v14651_v0 }
 0xf4a   :  { %7685 = vmatmul.mubr.msk.f32.vlgmr.msra.gmra.mrb[160].mxu1 %vm446_vm4, %v12848_v2  ;;  %7691 = vmatmul.mubr.msk.f32.vlgmr.msra.gmra.mrb[166].mxu0 %vm446_vm4, %v12848_v2 }
 0xf4b   :  { %5459 = vmatprep.mubr.f32.mxu1 %v14651_v0  ;;  %5560 = vmatprep.mubr.f32.mxu0 %v14651_v0 }
 0xf4c   :  { %9774 = vmatpush1.bf16.msra.mxu1 %v9773_v10  ;;  %9782 = vmatpush1.bf16.msra.mxu0 %v9781_v49  ;;  %v7724_v10 = vld [vmem:[%s14603_s22 + $0x818] sm:$0xff]  ;;  %v9807_v49 = vpack.c.bf16 %v7740_v16, %v7739_v23 }
 0xf4d   :  { %9776 = vmatprep.subr.bf16.mxu1 %v9775_v50  ;;  %9784 = vmatprep.subr.bf16.mxu0 %v9783_v13  ;;  %v7756_v50 = vld [vmem:[%s14603_s22 + $0x918] sm:$0xff]  ;;  %v7741_v13 = vld [vmem:[%s14603_s22 + $0x8a0] sm:$0xff]  ;;  %v9809_v47 = vpack.c.bf16 %v7724_v10, %v7723_v14  ;;  %v7763_v10 = vld [vmem:[%s14603_s22 + $0x950] sm:$0xff] }
 0xf4e   :  { %7686 = vmatmul.mubr.msk.f32.gmra.mrb[162].mxu1 %vm446_vm4, %v12879_v7  ;;  %7692 = vmatmul.mubr.msk.f32.gmra.mrb[168].mxu0 %vm446_vm4, %v12879_v7  ;;  %v9841_v59 = vpack.c.bf16 %v7756_v50, %v7755_v51  ;;  %v7780_v23 = vld [vmem:[%s14603_s22 + $0x9d8] sm:$0xff]  ;;  %v7750_v51 = vld [vmem:[%s14603_s22 + $0x8e8] sm:$0xff]  ;;  %v7781_v50 = vld [vmem:[%s14603_s22 + $0x9e0] sm:$0xff] }
 0xf4f   :  { %5465 = vmatprep.mubr.f32.mxu1 %v14651_v0  ;;  %5566 = vmatprep.mubr.f32.mxu0 %v14651_v0  ;;  %v9855_v14 = vpack.c.bf16 %v7780_v23, %v7779_v9  ;;  %v7817_v9 = vld [vmem:[%s14603_s22 + $0xb00] sm:$0xff]  ;;  %v7818_v23 = vld [vmem:[%s14603_s22 + $0xb08] sm:$0xff] }
 0xf50   :  { %9778 = vmatpush1.bf16.msra.mxu1 %v9777_v52  ;;  %9786 = vmatpush1.bf16.msra.mxu0 %v9785_v22  ;;  %v7726_v52 = vld [vmem:[%s14603_s22 + $0x828] sm:$0xff]  ;;  %v9811_v22 = vpack.c.bf16 %v7742_v34, %v7741_v13 }
 0xf51   :  { %9788 = vmatprep.subr.bf16.mxu1 %v9787_v60  ;;  %9796 = vmatprep.subr.bf16.mxu0 %v9795_v12  ;;  %v9843_v60 = vpack.c.bf16 %v7774_v54, %v7773_v55  ;;  %v7757_v12 = vld [vmem:[%s14603_s22 + $0x920] sm:$0xff]  ;;  %v9813_v30 = vpack.c.bf16 %v7726_v52, %v7725_v41  ;;  %v7782_v13 = vld [vmem:[%s14603_s22 + $0x9e8] sm:$0xff] }
 0xf52   :  { %7687 = vmatmul.mubr.msk.f32.gmra.mrb[164].mxu1 %vm446_vm4, %v12891_v19  ;;  %7693 = vmatmul.mubr.msk.f32.gmra.mrb[170].mxu0 %vm446_vm4, %v12891_v19  ;;  %v9845_v63 = vpack.c.bf16 %v7758_v53, %v7757_v12  ;;  %v7733_v54 = vld [vmem:[%s14603_s22 + $0x860] sm:$0xff]  ;;  %v9859_v41 = vpack.c.bf16 %v7782_v13, %v7781_v50  ;;  %v7752_v12 = vld [vmem:[%s14603_s22 + $0x8f8] sm:$0xff]  ;;  %v7783_v53 = vld [vmem:[%s14603_s22 + $0x9f0] sm:$0xff] }
 0xf53   :  { %5471 = vmatprep.mubr.f32.mxu1 %v14651_v0  ;;  %5572 = vmatprep.mubr.f32.mxu0 %v14651_v0  ;;  %v7765_v52 = vld [vmem:[%s14603_s22 + $0x960] sm:$0xff]  ;;  %v13376_v50 = vld [vmem:[%s14603_s22 + $0xa10] sm:$0xff] }
 0xf56   :  { %7688 = vmatmul.mubr.msk.f32.gmra.mrb[166].mxu1 %vm446_vm4, %v12901_v21  ;;  %7694 = vmatmul.mubr.msk.f32.gmra.mrb[172].mxu0 %vm446_vm4, %v12901_v21 }
 0xf57   :  { %5477 = vmatprep.mubr.f32.mxu1 %v14651_v0  ;;  %5578 = vmatprep.mubr.f32.mxu0 %v14651_v0 }
 0xf5a   :  { %7689 = vmatmul.mubr.msk.f32.gmra.mrb[168].mxu1 %vm446_vm4, %v12913_v58  ;;  %7695 = vmatmul.mubr.msk.f32.gmra.mrb[174].mxu0 %vm446_vm4, %v12913_v58 }
 0xf5b   :  { %5483 = vmatprep.mubr.f32.mxu1 %v14651_v0  ;;  %5584 = vmatprep.mubr.f32.mxu0 %v14651_v0 }
 0xf5e   :  { %7690 = vmatmul.mubr.msk.f32.gmra.mrb[170].mxu1 %vm446_vm4, %v12922_v42  ;;  %7696 = vmatmul.mubr.msk.f32.gmra.mrb[176].mxu0 %vm446_vm4, %v12922_v42 }
 0xf5f   :  { %5655 = vmatprep.mubr.f32.mxu1 %v14651_v0  ;;  %5756 = vmatprep.mubr.f32.mxu0 %v14651_v0 }
 0xf62   :  { %7697 = vmatmul.mubr.msk.f32.vlgmr.msra.gmra.mrb[172].mxu1 %vm446_vm4, %v12848_v2  ;;  %7703 = vmatmul.mubr.msk.f32.vlgmr.msra.gmra.mrb[178].mxu0 %vm446_vm4, %v12848_v2 }
 0xf63   :  { %5661 = vmatprep.mubr.f32.mxu1 %v14651_v0  ;;  %5762 = vmatprep.mubr.f32.mxu0 %v14651_v0 }
 0xf64   :  { %9790 = vmatpush1.bf16.msra.mxu1 %v9789_v48  ;;  %9798 = vmatpush1.bf16.msra.mxu0 %v9797_v62  ;;  %v7728_v48 = vld [vmem:[%s14603_s22 + $0x838] sm:$0xff]  ;;  %v9815_v62 = vpack.c.bf16 %v7744_v29, %v7743_v18 }
 0xf65   :  { %9792 = vmatprep.subr.bf16.mxu1 %v9791_v31  ;;  %9800 = vmatprep.subr.bf16.mxu0 %v9799_v44  ;;  %v7760_v31 = vld [vmem:[%s14603_s22 + $0x938] sm:$0xff]  ;;  %v7745_v44 = vld [vmem:[%s14603_s22 + $0x8c0] sm:$0xff]  ;;  %v9817_v61 = vpack.c.bf16 %v7728_v48, %v7727_v20  ;;  %v7767_v48 = vld [vmem:[%s14603_s22 + $0x970] sm:$0xff] }
 0xf66   :  { %7698 = vmatmul.mubr.msk.f32.gmra.mrb[174].mxu1 %vm446_vm4, %v12879_v7  ;;  %7704 = vmatmul.mubr.msk.f32.gmra.mrb[180].mxu0 %vm446_vm4, %v12879_v7  ;;  %v9849_v38 = vpack.c.bf16 %v7760_v31, %v7759_v25  ;;  %v7784_v18 = vld [vmem:[%s14603_s22 + $0x9f8] sm:$0xff]  ;;  %v7802_v25 = vld [vmem:[%s14603_s22 + $0xa88] sm:$0xff]  ;;  %v7833_v31 = vld [vmem:[%s14603_s22 + $0xb80] sm:$0xff] }
 0xf67   :  { %5667 = vmatprep.mubr.f32.mxu1 %v14651_v0  ;;  %5768 = vmatprep.mubr.f32.mxu0 %v14651_v0  ;;  %v9863_v20 = vpack.c.bf16 %v7784_v18, %v7783_v53  ;;  %v13396_v53 = vld [vmem:[%s14603_s22 + $0xaa0] sm:$0xff]  ;;  %v13401_v18 = vld [vmem:[%s14603_s22 + $0xaa8] sm:$0xff] }
 0xf68   :  { %9794 = vmatpush1.bf16.msra.mxu1 %v9793_v15  ;;  %9802 = vmatpush1.bf16.msra.mxu0 %v9801_v39  ;;  %v7730_v15 = vld [vmem:[%s14603_s22 + $0x848] sm:$0xff]  ;;  %v9819_v39 = vpack.c.bf16 %v7746_v11, %v7745_v44 }
 0xf69   :  { %9804 = vmatprep.subr.bf16.mxu1 %v9803_v28  ;;  %9836 = vmatprep.subr.bf16.mxu0 %v9835_v17  ;;  %v9851_v28 = vpack.c.bf16 %v7778_v8, %v7777_v43  ;;  %v7761_v17 = vld [vmem:[%s14603_s22 + $0x940] sm:$0xff]  ;;  %v9821_v16 = vpack.c.bf16 %v7730_v15, %v7729_v56  ;;  %v7834_v44 = vld [vmem:[%s14603_s22 + $0xb88] sm:$0xff] }
 0xf6a   :  { %7699 = vmatmul.mubr.msk.f32.gmra.mrb[176].mxu1 %vm446_vm4, %v12891_v19  ;;  %7705 = vmatmul.mubr.msk.f32.gmra.mrb[182].mxu0 %vm446_vm4, %v12891_v19  ;;  %v9853_v4 = vpack.c.bf16 %v7762_v45, %v7761_v17  ;;  %v7785_v17 = vld [vmem:[%s14603_s22 + $0xa00] sm:$0xff]  ;;  %v7786_v45 = vld [vmem:[%s14603_s22 + $0xa08] sm:$0xff] }
 0xf6b   :  { %5673 = vmatprep.mubr.f32.mxu1 %v14651_v0  ;;  %5774 = vmatprep.mubr.f32.mxu0 %v14651_v0  ;;  %v9869_v13 = vpack.c.bf16 %v7786_v45, %v7785_v17 }
 0xf6e   :  { %7700 = vmatmul.mubr.msk.f32.gmra.mrb[178].mxu1 %vm446_vm4, %v12901_v21  ;;  %7706 = vmatmul.mubr.msk.f32.gmra.mrb[184].mxu0 %vm446_vm4, %v12901_v21 }
 0xf6f   :  { %5679 = vmatprep.mubr.f32.mxu1 %v14651_v0  ;;  %5780 = vmatprep.mubr.f32.mxu0 %v14651_v0 }
 0xf72   :  { %7701 = vmatmul.mubr.msk.f32.gmra.mrb[180].mxu1 %vm446_vm4, %v12913_v58  ;;  %7707 = vmatmul.mubr.msk.f32.gmra.mrb[186].mxu0 %vm446_vm4, %v12913_v58 }
 0xf73   :  { %5685 = vmatprep.mubr.f32.mxu1 %v14651_v0  ;;  %5786 = vmatprep.mubr.f32.mxu0 %v14651_v0 }
 0xf76   :  { %7702 = vmatmul.mubr.msk.f32.gmra.mrb[182].mxu1 %vm446_vm4, %v12922_v42  ;;  %7708 = vmatmul.mubr.msk.f32.gmra.mrb[188].mxu0 %vm446_vm4, %v12922_v42 }
 0xf77   :  { %5857 = vmatprep.mubr.f32.mxu1 %v14651_v0  ;;  %5958 = vmatprep.mubr.f32.mxu0 %v14651_v0 }
 0xf7a   :  { %7709 = vmatmul.mubr.msk.f32.vlgmr.msra.gmra.mrb[184].mxu1 %vm446_vm4, %v12848_v2  ;;  %7715 = vmatmul.mubr.msk.f32.vlgmr.msra.gmra.mrb[190].mxu0 %vm446_vm4, %v12848_v2 }
 0xf7b   :  { %5863 = vmatprep.mubr.f32.mxu1 %v14651_v0  ;;  %5964 = vmatprep.mubr.f32.mxu0 %v14651_v0 }
 0xf7c   :  { %9806 = vmatpush3.bf16.msra.mxu1 %v9805_v26  ;;  %9838 = vmatpush3.bf16.msra.mxu0 %v9837_v3  ;;  %v7732_v26 = vld [vmem:[%s14603_s22 + $0x858] sm:$0xff]  ;;  %v9823_v3 = vpack.c.bf16 %v7748_v27, %v7747_v5 }
 0xf7d   :  { %9808 = vmatprep.subr.bf16.mxu1 %v9807_v49  ;;  %9840 = vmatprep.subr.bf16.mxu0 %v9839_v46  ;;  %v7764_v49 = vld [vmem:[%s14603_s22 + $0x958] sm:$0xff]  ;;  %v7749_v46 = vld [vmem:[%s14603_s22 + $0x8e0] sm:$0xff]  ;;  %v9825_v34 = vpack.c.bf16 %v7732_v26, %v7731_v24 }
 0xf7e   :  { %7710 = vmatmul.mubr.msk.f32.gmra.mrb[186].mxu1 %vm446_vm4, %v12879_v7  ;;  %7716 = vmatmul.mubr.msk.f32.gmra.mrb[192].mxu0 %vm446_vm4, %v12879_v7  ;;  %v9857_v55 = vpack.c.bf16 %v7764_v49, %v7763_v10  ;;  %v7835_v10 = vld [vmem:[%s14603_s22 + $0xb90] sm:$0xff]  ;;  %v7836_v49 = vld [vmem:[%s14603_s22 + $0xb98] sm:$0xff] }
 0xf7f   :  { %5869 = vmatprep.mubr.f32.mxu1 %v14651_v0  ;;  %5970 = vmatprep.mubr.f32.mxu0 %v14651_v0 }
 0xf80   :  { %9810 = vmatpush3.bf16.msra.mxu1 %v9809_v47  ;;  %9842 = vmatpush3.bf16.msra.mxu0 %v9841_v59  ;;  %v7734_v47 = vld [vmem:[%s14603_s22 + $0x868] sm:$0xff]  ;;  %v9827_v59 = vpack.c.bf16 %v7750_v51, %v7749_v46 }
 0xf81   :  { %9812 = vmatprep.subr.bf16.mxu1 %v9811_v22  ;;  %9844 = vmatprep.subr.bf16.mxu0 %v9843_v60  ;;  %v7766_v22 = vld [vmem:[%s14603_s22 + $0x968] sm:$0xff]  ;;  %v7751_v60 = vld [vmem:[%s14603_s22 + $0x8f0] sm:$0xff]  ;;  %v9829_v29 = vpack.c.bf16 %v7734_v47, %v7733_v54  ;;  %v13391_v47 = vld [vmem:[%s14603_s22 + $0xb18] sm:$0xff] }
 0xf82   :  { %7711 = vmatmul.mubr.msk.f32.gmra.mrb[188].mxu1 %vm446_vm4, %v12891_v19  ;;  %7717 = vmatmul.mubr.msk.f32.gmra.mrb[194].mxu0 %vm446_vm4, %v12891_v19  ;;  %v9861_v57 = vpack.c.bf16 %v7766_v22, %v7765_v52  ;;  %v13386_v54 = vld [vmem:[%s14603_s22 + $0xb10] sm:$0xff] }
 0xf83   :  { %5875 = vmatprep.mubr.f32.mxu1 %v14651_v0  ;;  %5976 = vmatprep.mubr.f32.mxu0 %v14651_v0 }
 0xf84   :  { %9814 = vmatpush3.bf16.msra.mxu1 %v9813_v30  ;;  %9846 = vmatpush3.bf16.msra.mxu0 %v9845_v63  ;;  %v7736_v30 = vld [vmem:[%s14603_s22 + $0x878] sm:$0xff]  ;;  %v9831_v63 = vpack.c.bf16 %v7752_v12, %v7751_v60  ;;  %v9903_v12 = vpack.c.bf16 %v7836_v49, %v7835_v10 }
 0xf85   :  { %9816 = vmatprep.subr.bf16.mxu1 %v9815_v62  ;;  %9848 = vmatprep.subr.bf16.mxu0 %v9847_v37  ;;  %v7768_v62 = vld [vmem:[%s14603_s22 + $0x978] sm:$0xff]  ;;  %v7801_v37 = vld [vmem:[%s14603_s22 + $0xa80] sm:$0xff]  ;;  %v9833_v11 = vpack.c.bf16 %v7736_v30, %v7735_v1 }
 0xf86   :  { %7712 = vmatmul.mubr.msk.f32.gmra.mrb[190].mxu1 %vm446_vm4, %v12901_v21  ;;  %7718 = vmatmul.mubr.msk.f32.gmra.mrb[196].mxu0 %vm446_vm4, %v12901_v21  ;;  %v9865_v43 = vpack.c.bf16 %v7768_v62, %v7767_v48  ;;  %v9867_v8 = vpack.c.bf16 %v7802_v25, %v7801_v37  ;;  %v13408_v48 = vld [vmem:[%s14603_s22 + $0xba0] sm:$0xff]  ;;  %v7838_v62 = vld [vmem:[%s14603_s22 + $0xba8] sm:$0xff] }
 0xf87   :  { %5881 = vmatprep.mubr.f32.mxu1 %v14651_v0  ;;  %5982 = vmatprep.mubr.f32.mxu0 %v14651_v0 }
 0xf88   :  { %9818 = vmatpush3.bf16.msra.mxu1 %v9817_v61  ;;  %9850 = vmatpush3.bf16.msra.mxu0 %v9849_v38  ;;  %v9899_v61 = vpack.c.bf16 %v7834_v44, %v7833_v31  ;;  %v13327_v38 = vld [vmem:[%s14602_s21 + $0x10] sm:$0xff]  ;;  %v13418_v31 = vld [vmem:[%s14603_s22 + $0xa20] sm:$0xff] }
 0xf89   :  { %9820 = vmatprep.subr.bf16.mxu1 %v9819_v39  ;;  %9852 = vmatprep.subr.bf16.mxu0 %v9851_v28  ;;  %v13331_v56 = vrot.slane %v13327_v38, %v11287_v32  ;;  %v13335_v15 = vrot.slane %v13327_v38, %v11290_v33  ;;  %v13339_v39 = vrot.slane %v13327_v38, %v11298_v35 }
 0xf8a   :  { %7713 = vmatmul.mubr.msk.f32.gmra.mrb[192].mxu1 %vm446_vm4, %v12913_v58  ;;  %7719 = vmatmul.mubr.msk.f32.gmra.mrb[198].mxu0 %vm446_vm4, %v12913_v58  ;;  %v13343_v28 = vrot.slane %v13327_v38, %v11301_v36 }
 0xf8b   :  { %5887 = vmatprep.mubr.f32.mxu1 %v14651_v0  ;;  %5988 = vmatprep.mubr.f32.mxu0 %v14651_v0 }
 0xf8c   :  { %9822 = vmatpush3.bf16.msra.mxu1 %v9821_v16  ;;  %9854 = vmatpush3.bf16.msra.mxu0 %v9853_v4  ;;  %v7803_v16 = vld [vmem:[%s14603_s22 + $0xa90] sm:$0xff] }
 0xf8d   :  { %9824 = vmatprep.subr.bf16.mxu1 %v9823_v3  ;;  %9856 = vmatprep.subr.bf16.mxu0 %v9855_v14  ;;  %v7804_v14 = vld [vmem:[%s14603_s22 + $0xa98] sm:$0xff] }
 0xf8e   :  { %7714 = vmatmul.mubr.msk.f32.gmra.mrb[194].mxu1 %vm446_vm4, %v12922_v42  ;;  %7720 = vmatmul.mubr.msk.f32.gmra.mrb[200].mxu0 %vm446_vm4, %v12922_v42  ;;  %v9871_v60 = vpack.c.bf16 %v7804_v14, %v7803_v16  ;;  %v13445_v16 = vld [vmem:[%s14603_s22 + $0xab0] sm:$0xff] }
 0xf90   :  { %9826 = vmatpush3.bf16.msra.mxu1 %v9825_v34  ;;  %9858 = vmatpush3.bf16.msra.mxu0 %v9857_v55  ;;  %v9901_v34 = vpack.c.bf16 %v7818_v23, %v7817_v9  ;;  %v13381_v55 = vld [vmem:[%s14603_s22 + $0xa18] sm:$0xff]  ;;  %v9875_v9 = vpack.c.bf16 %v13401_v18, %v13396_v53  ;;  %v9907_v23 = vpack.c.bf16 %v7838_v62, %v13408_v48 }
 0xf91   :  { %9828 = vmatprep.subr.bf16.mxu1 %v9827_v59  ;;  %9860 = vmatprep.subr.bf16.mxu0 %v9859_v41  ;;  %v9873_v44 = vpack.c.bf16 %v13381_v55, %v13376_v50 }
 0xf94   :  { %9830 = vmatpush3.bf16.msra.mxu1 %v9829_v29  ;;  %9862 = vmatpush3.bf16.msra.mxu0 %v9861_v57 }
 0xf95   :  { %9832 = vmatprep.subr.bf16.mxu1 %v9831_v63  ;;  %9864 = vmatprep.subr.bf16.mxu0 %v9863_v20 }
 0xf98   :  { %9834 = vmatpush3.bf16.msra.mxu1 %v9833_v11  ;;  %9866 = vmatpush3.bf16.msra.mxu0 %v9865_v43  ;;  %v9905_v11 = vpack.c.bf16 %v13391_v47, %v13386_v54  ;;  %v13427_v43 = vld [vmem:[%s14603_s22 + $0xa28] sm:$0xff]  ;;  %v13476_v47 = vld [vmem:[%s14603_s22 + $0xa38] sm:$0xff] }
 0xf99   :  { %9868 = vmatprep.subr.bf16.mxu1 %v9867_v8  ;;  %9900 = vmatprep.subr.bf16.mxu0 %v9899_v61  ;;  %v13432_v8 = vld [vmem:[%s14603_s22 + $0xb20] sm:$0xff]  ;;  %v13437_v61 = vld [vmem:[%s14603_s22 + $0xb28] sm:$0xff]  ;;  %v9877_v55 = vpack.c.bf16 %v13427_v43, %v13418_v31 }
 0xf9a   :  { %v9909_v54 = vpack.c.bf16 %v13437_v61, %v13432_v8  ;;  %v13523_v61 = vld [vmem:[%s14603_s22 + $0xa48] sm:$0xff] }
0x1005   :  { %v5253_v5 = vpop.f32.mrb[148].mxu1  ;;  %v5354_v27 = vpop.f32.mrb[154].mxu0 }
0x1006   :  { %v5254_v4 = vadd.f32 %v5253_v5, %v13331_v56  ;;  %v5355_v24 = vadd.f32 %v5354_v27, %v13335_v15  ;;  %v5255_v26 = vpop.f32.mrb[149].mxu1  ;;  %v5356_v3 = vpop.f32.mrb[155].mxu0 }
0x1007   :  { %v5256_v46 = vadd.f32 %v5255_v26, %v13339_v39  ;;  %v5357_v51 = vadd.f32 %v5356_v3, %v13343_v28 }
0x1008   :  { %v5995_v29 = vmax.f32 %v5254_v4, 0.0  ;;  %v5997_v57 = vmax.f32 %v5355_v24, 0.0  ;;  %v13450_v4 = vld [vmem:[%s14603_s22 + $0xab8] sm:$0xff] }
0x1009   :  { %v5996_v59 = vmax.f32 %v5256_v46, 0.0  ;;  %v5998_v41 = vmax.f32 %v5357_v51, 0.0  ;;  %v5259_v52 = vpop.f32.mrb[150].mxu1  ;;  %v5360_v22 = vpop.f32.mrb[156].mxu0  ;;  %v13457_v46 = vld [vmem:[%s14603_s22 + $0xbb0] sm:$0xff]  ;;  %v7840_v51 = vld [vmem:[%s14603_s22 + $0xbb8] sm:$0xff]  ;;  %v9879_v53 = vpack.c.bf16 %v13450_v4, %v13445_v16 }
0x100a   :  { %v5260_v1 = vadd.f32 %v5259_v52, %v13331_v56  ;;  %v5361_v30 = vadd.f32 %v5360_v22, %v13335_v15  ;;  %v5261_v63 = vpop.f32.mrb[151].mxu1  ;;  %v5362_v20 = vpop.f32.mrb[157].mxu0  ;;  %v9911_v18 = vpack.c.bf16 %v7840_v51, %v13457_v46 }
0x100b   :  { %v5262_v37 = vadd.f32 %v5261_v63, %v13339_v39  ;;  %v5363_v25 = vadd.f32 %v5362_v20, %v13343_v28  ;;  %6420 = vmatprep.mubr.f32.mxu1 %v5996_v59  ;;  %6515 = vmatprep.mubr.f32.mxu0 %v5998_v41  ;;  %v13481_v59 = vld [vmem:[%s14603_s22 + $0xb30] sm:$0xff]  ;;  %v13486_v41 = vld [vmem:[%s14603_s22 + $0xb38] sm:$0xff] }
0x100c   :  { %6421 = vmatmul.mubr.f32.vlgmr.msra.gmra.mrb[196].mxu1 %v5995_v29  ;;  %6516 = vmatmul.mubr.f32.vlgmr.msra.gmra.mrb[202].mxu0 %v5997_v57  ;;  %v6011_v24 = vmax.f32 %v5260_v1, 0.0  ;;  %v6013_v26 = vmax.f32 %v5361_v30, 0.0  ;;  %v13494_v29 = vld [vmem:[%s14603_s22 + $0xac0] sm:$0xff]  ;;  %v13499_v57 = vld [vmem:[%s14603_s22 + $0xac8] sm:$0xff]  ;;  %v9913_v8 = vpack.c.bf16 %v13486_v41, %v13481_v59 }
0x100d   :  { %v6012_v17 = vmax.f32 %v5262_v37, 0.0  ;;  %v6014_v45 = vmax.f32 %v5363_v25, 0.0  ;;  %9870 = vmatpush3.bf16.msra.mxu1 %v9869_v13  ;;  %9902 = vmatpush3.bf16.msra.mxu0 %v9901_v34  ;;  %v5265_v5 = vpop.f32.mrb[152].mxu1  ;;  %v5366_v27 = vpop.f32.mrb[158].mxu0  ;;  %v13467_v34 = vld [vmem:[%s14603_s22 + $0xa30] sm:$0xff]  ;;  %v7841_v37 = vld [vmem:[%s14603_s22 + $0xbc0] sm:$0xff]  ;;  %v9883_v16 = vpack.c.bf16 %v13499_v57, %v13494_v29 }
0x100e   :  { %v5266_v3 = vadd.f32 %v5265_v5, %v13331_v56  ;;  %v5367_v14 = vadd.f32 %v5366_v27, %v13335_v15  ;;  %v5267_v10 = vpop.f32.mrb[153].mxu1  ;;  %v5368_v49 = vpop.f32.mrb[159].mxu0  ;;  %9872 = vmatprep.subr.bf16.mxu1 %v9871_v60  ;;  %9904 = vmatprep.subr.bf16.mxu0 %v9903_v12  ;;  %v7842_v25 = vld [vmem:[%s14603_s22 + $0xbc8] sm:$0xff]  ;;  %v9881_v43 = vpack.c.bf16 %v13476_v47, %v13467_v34  ;;  %v7796_v57 = vld [vmem:[%s14603_s22 + $0xa58] sm:$0xff] }
0x100f   :  { %v5268_v50 = vadd.f32 %v5267_v10, %v13339_v39  ;;  %v5369_v13 = vadd.f32 %v5368_v49, %v13343_v28  ;;  %6425 = vmatprep.mubr.f32.mxu1 %v6012_v17  ;;  %6520 = vmatprep.mubr.f32.mxu0 %v6014_v45  ;;  %v13528_v17 = vld [vmem:[%s14603_s22 + $0xb40] sm:$0xff]  ;;  %v13533_v45 = vld [vmem:[%s14603_s22 + $0xb48] sm:$0xff]  ;;  %v9915_v4 = vpack.c.bf16 %v7842_v25, %v7841_v37  ;;  %v7828_v25 = vld [vmem:[%s14603_s22 + $0xb58] sm:$0xff] }
0x1010   :  { %6426 = vmatmul.mubr.f32.gmra.mrb[198].mxu1 %v6011_v24  ;;  %6521 = vmatmul.mubr.f32.gmra.mrb[204].mxu0 %v6013_v26  ;;  %v6027_v1 = vmax.f32 %v5266_v3, 0.0  ;;  %v6029_v30 = vmax.f32 %v5367_v14, 0.0  ;;  %v13540_v24 = vld [vmem:[%s14603_s22 + $0xad0] sm:$0xff]  ;;  %v13545_v26 = vld [vmem:[%s14603_s22 + $0xad8] sm:$0xff]  ;;  %v9917_v47 = vpack.c.bf16 %v13533_v45, %v13528_v17  ;;  %v14652_v59 = vld [vmem:[#allocation5_spill] sm:$0xff] }
0x1011   :  { %v6028_v52 = vmax.f32 %v5268_v50, 0.0  ;;  %v6030_v22 = vmax.f32 %v5369_v13, 0.0  ;;  %9874 = vmatpush3.bf16.msra.mxu1 %v9873_v44  ;;  %9906 = vmatpush3.bf16.msra.mxu0 %v9905_v11  ;;  %v5271_v60 = vpop.f32.mrb[154].mxu1  ;;  %v5372_v12 = vpop.f32.mrb[160].mxu0  ;;  %v13514_v11 = vld [vmem:[%s14603_s22 + $0xa40] sm:$0xff]  ;;  %v7843_v50 = vld [vmem:[%s14603_s22 + $0xbd0] sm:$0xff]  ;;  %v13563_v41 = vrot.slane %v13327_v38, %v14652_v59 }
0x1012   :  { %v5272_v63 = vadd.f32 %v5271_v60, %v13331_v56  ;;  %v5373_v20 = vadd.f32 %v5372_v12, %v13335_v15  ;;  %v5273_v48 = vpop.f32.mrb[155].mxu1  ;;  %v5374_v62 = vpop.f32.mrb[161].mxu0  ;;  %9876 = vmatprep.subr.bf16.mxu1 %v9875_v9  ;;  %9908 = vmatprep.subr.bf16.mxu0 %v9907_v23  ;;  %v7844_v13 = vld [vmem:[%s14603_s22 + $0xbd8] sm:$0xff] }
0x1013   :  { %v5274_v31 = vadd.f32 %v5273_v48, %v13339_v39  ;;  %v5375_v44 = vadd.f32 %v5374_v62, %v13343_v28  ;;  %6430 = vmatprep.mubr.f32.mxu1 %v6028_v52  ;;  %6525 = vmatprep.mubr.f32.mxu0 %v6030_v22  ;;  %v13568_v52 = vld [vmem:[%s14603_s22 + $0xa50] sm:$0xff]  ;;  %v9919_v29 = vpack.c.bf16 %v7844_v13, %v7843_v50  ;;  %v7816_v13 = vld [vmem:[%s14603_s22 + $0xaf8] sm:$0xff] }
0x1014   :  { %6431 = vmatmul.mubr.f32.gmra.mrb[200].mxu1 %v6027_v1  ;;  %6526 = vmatmul.mubr.f32.gmra.mrb[206].mxu0 %v6029_v30  ;;  %v6043_v3 = vmax.f32 %v5272_v63, 0.0  ;;  %v6045_v14 = vmax.f32 %v5373_v20, 0.0  ;;  %v7827_v1 = vld [vmem:[%s14603_s22 + $0xb50] sm:$0xff] }
0x1015   :  { %v6044_v5 = vmax.f32 %v5274_v31, 0.0  ;;  %v6046_v27 = vmax.f32 %v5375_v44, 0.0  ;;  %9878 = vmatpush3.bf16.msra.mxu1 %v9877_v55  ;;  %9910 = vmatpush3.bf16.msra.mxu0 %v9909_v54  ;;  %v5277_v9 = vpop.f32.mrb[156].mxu1  ;;  %v5378_v23 = vpop.f32.mrb[162].mxu0  ;;  %v9885_v54 = vpack.c.bf16 %v13523_v61, %v13514_v11  ;;  %v7813_v31 = vld [vmem:[%s14603_s22 + $0xae0] sm:$0xff] }
0x1016   :  { %v5278_v10 = vadd.f32 %v5277_v9, %v13331_v56  ;;  %v5379_v49 = vadd.f32 %v5378_v23, %v13335_v15  ;;  %v5279_v46 = vpop.f32.mrb[157].mxu1  ;;  %v5380_v51 = vpop.f32.mrb[163].mxu0  ;;  %9880 = vmatprep.subr.bf16.mxu1 %v9879_v53  ;;  %9912 = vmatprep.subr.bf16.mxu0 %v9911_v18  ;;  %v9887_v18 = vpack.c.bf16 %v13545_v26, %v13540_v24  ;;  %v7798_v23 = vld [vmem:[%s14603_s22 + $0xa68] sm:$0xff] }
0x1017   :  { %v5280_v34 = vadd.f32 %v5279_v46, %v13339_v39  ;;  %v5381_v55 = vadd.f32 %v5380_v51, %v13343_v28  ;;  %6435 = vmatprep.mubr.f32.mxu1 %v6044_v5  ;;  %6530 = vmatprep.mubr.f32.mxu0 %v6046_v27  ;;  %v9889_v27 = vpack.c.bf16 %v7796_v57, %v13568_v52  ;;  %v7815_v46 = vld [vmem:[%s14603_s22 + $0xaf0] sm:$0xff] }
0x1018   :  { %6436 = vmatmul.mubr.f32.gmra.mrb[202].mxu1 %v6043_v3  ;;  %6531 = vmatmul.mubr.f32.gmra.mrb[208].mxu0 %v6045_v14  ;;  %v6059_v30 = vmax.f32 %v5278_v10, 0.0  ;;  %v6061_v63 = vmax.f32 %v5379_v49, 0.0  ;;  %v9921_v9 = vpack.c.bf16 %v7828_v25, %v7827_v1  ;;  %v7830_v49 = vld [vmem:[%s14603_s22 + $0xb68] sm:$0xff]  ;;  %v7831_v57 = vld [vmem:[%s14603_s22 + $0xb70] sm:$0xff]  ;;  %v13647_v1 = vrot.slane %v13327_v38, %v11549_v6 }
0x1019   :  { %v6060_v22 = vmax.f32 %v5280_v34, 0.0  ;;  %v6062_v60 = vmax.f32 %v5381_v55, 0.0  ;;  %9882 = vmatpush3.bf16.msra.mxu1 %v9881_v43  ;;  %9914 = vmatpush3.bf16.msra.mxu0 %v9913_v8  ;;  %v5283_v12 = vpop.f32.mrb[158].mxu1  ;;  %v5384_v53 = vpop.f32.mrb[164].mxu0  ;;  %v7814_v43 = vld [vmem:[%s14603_s22 + $0xae8] sm:$0xff]  ;;  %v7845_v8 = vld [vmem:[%s14603_s22 + $0xbe0] sm:$0xff] }
0x101a   :  { %v5284_v20 = vadd.f32 %v5283_v12, %v13331_v56  ;;  %v5385_v48 = vadd.f32 %v5384_v53, %v13335_v15  ;;  %v5285_v62 = vpop.f32.mrb[159].mxu1  ;;  %v5386_v37 = vpop.f32.mrb[165].mxu0  ;;  %9884 = vmatprep.subr.bf16.mxu1 %v9883_v16  ;;  %9916 = vmatprep.subr.bf16.mxu0 %v9915_v4  ;;  %v14653_v56 = vld [vmem:[#allocation6_spill] sm:$0xff]  ;;  %v7829_v16 = vld [vmem:[%s14603_s22 + $0xb60] sm:$0xff]  ;;  %v9891_v14 = vpack.c.bf16 %v7814_v43, %v7813_v31  ;;  %v7848_v55 = vld [vmem:[%s14603_s22 + $0xbf8] sm:$0xff] }
0x101b   :  { %v5286_v44 = vadd.f32 %v5285_v62, %v13339_v39  ;;  %v5387_v11 = vadd.f32 %v5386_v37, %v13343_v28  ;;  %6440 = vmatprep.mubr.f32.mxu1 %v6060_v22  ;;  %6535 = vmatprep.mubr.f32.mxu0 %v6062_v60  ;;  %v13590_v15 = vrot.slane %v13327_v38, %v14653_v56  ;;  %v7846_v39 = vld [vmem:[%s14603_s22 + $0xbe8] sm:$0xff]  ;;  %v7797_v28 = vld [vmem:[%s14603_s22 + $0xa60] sm:$0xff]  ;;  %v7847_v34 = vld [vmem:[%s14603_s22 + $0xbf0] sm:$0xff] }
0x101c   :  { %6441 = vmatmul.mubr.f32.gmra.mrb[204].mxu1 %v6059_v30  ;;  %6536 = vmatmul.mubr.f32.gmra.mrb[210].mxu0 %v6061_v63  ;;  %v6075_v4 = vmax.f32 %v5284_v20, 0.0  ;;  %v6077_v24 = vmax.f32 %v5385_v48, 0.0  ;;  %v9923_v10 = vpack.c.bf16 %v7846_v39, %v7845_v8  ;;  %v9893_v53 = vpack.c.bf16 %v7798_v23, %v7797_v28  ;;  %v7832_v62 = vld [vmem:[%s14603_s22 + $0xb78] sm:$0xff]  ;;  %v7865_v37 = vld [vmem:[%s14603_s22 + $0xc80] sm:$0xff]  ;;  %v7866_v25 = vld [vmem:[%s14603_s22 + $0xc88] sm:$0xff] }
0x101d   :  { %v6076_v61 = vmax.f32 %v5286_v44, 0.0  ;;  %v6078_v17 = vmax.f32 %v5387_v11, 0.0  ;;  %9886 = vmatpush3.bf16.msra.mxu1 %v9885_v54  ;;  %9918 = vmatpush3.bf16.msra.mxu0 %v9917_v47  ;;  %v13604_v45 = vpop.f32.mrb[160].mxu1  ;;  %v13606_v5 = vpop.f32.mrb[166].mxu0  ;;  %v13634_v54 = vrot.slane %v13327_v38, %v11546_v40  ;;  %v7799_v47 = vld [vmem:[%s14603_s22 + $0xa70] sm:$0xff]  ;;  %v9895_v20 = vpack.c.bf16 %v7816_v13, %v7815_v46  ;;  %v7897_v38 = vld [vmem:[%s14603_s22 + $0xd80] sm:$0xff] }
0x101e   :  { %v5457_v26 = vpop.f32.mrb[161].mxu1  ;;  %v5558_v3 = vpop.f32.mrb[167].mxu0  ;;  %9888 = vmatprep.subr.bf16.mxu1 %v9887_v18  ;;  %9920 = vmatprep.subr.bf16.mxu0 %v9919_v29  ;;  %v9925_v18 = vpack.c.bf16 %v7830_v49, %v7829_v16  ;;  %v7800_v29 = vld [vmem:[%s14603_s22 + $0xa78] sm:$0xff]  ;;  %v9927_v48 = vpack.c.bf16 %v7848_v55, %v7847_v34  ;;  %v7898_v31 = vld [vmem:[%s14603_s22 + $0xd88] sm:$0xff]  ;;  %v13667_v44 = vld [vmem:[%s14603_s22 + $0xc00] sm:$0xff]  ;;  %v9929_v28 = vpack.c.bf16 %v7832_v62, %v7831_v57 }
0x101f   :  { %v5458_v51 = vadd.f32 %v5457_v26, %v13563_v41  ;;  %v5559_v50 = vadd.f32 %v5558_v3, %v13590_v15  ;;  %6445 = vmatprep.mubr.f32.mxu1 %v6076_v61  ;;  %6540 = vmatprep.mubr.f32.mxu0 %v6078_v17  ;;  %v13672_v11 = vld [vmem:[%s14603_s22 + $0xc08] sm:$0xff]  ;;  %v9897_v39 = vpack.c.bf16 %v7800_v29, %v7799_v47  ;;  %v13681_v17 = vld [vmem:[%s14603_s22 + $0xd00] sm:$0xff]  ;;  %v13700_v3 = vld [vmem:[%s14603_s22 + $0xc98] sm:$0xff] }
0x1020   :  { %6446 = vmatmul.mubr.f32.gmra.mrb[206].mxu1 %v6075_v4  ;;  %6541 = vmatmul.mubr.f32.gmra.mrb[212].mxu0 %v6077_v24  ;;  %v9931_v61 = vpack.c.bf16 %v7866_v25, %v7865_v37  ;;  %v5456_v23 = vadd.f32 %v13604_v45, %v13634_v54  ;;  %v5557_v16 = vadd.f32 %v13606_v5, %v13647_v1  ;;  %v7900_v45 = vld [vmem:[%s14603_s22 + $0xd98] sm:$0xff]  ;;  %v13717_v46 = vld [vmem:[%s14603_s22 + $0xc10] sm:$0xff]  ;;  %v13758_v62 = vld [vmem:[%s14603_s22 + $0xda0] sm:$0xff] }
0x1021   :  { %v6000_v52 = vmax.f32 %v5458_v51, 0.0  ;;  %v6002_v22 = vmax.f32 %v5559_v50, 0.0  ;;  %9890 = vmatpush3.bf16.msra.mxu1 %v9889_v27  ;;  %9922 = vmatpush3.bf16.msra.mxu0 %v9921_v9  ;;  %v5461_v60 = vpop.f32.mrb[162].mxu1  ;;  %v5562_v12 = vpop.f32.mrb[168].mxu0  ;;  %v13686_v27 = vld [vmem:[%s14603_s22 + $0xd08] sm:$0xff]  ;;  %v13691_v9 = vld [vmem:[%s14603_s22 + $0xc90] sm:$0xff]  ;;  %v9963_v26 = vpack.c.bf16 %v7898_v31, %v7897_v38  ;;  %v9933_v49 = vpack.c.bf16 %v13672_v11, %v13667_v44 }
0x1022   :  { %v5463_v30 = vpop.f32.mrb[163].mxu1  ;;  %v5564_v63 = vpop.f32.mrb[169].mxu0  ;;  %9892 = vmatprep.subr.bf16.mxu1 %v9891_v14  ;;  %9924 = vmatprep.subr.bf16.mxu0 %v9923_v10  ;;  %v13705_v14 = vld [vmem:[%s14603_s22 + $0xd90] sm:$0xff]  ;;  %v13722_v51 = vld [vmem:[%s14603_s22 + $0xc18] sm:$0xff]  ;;  %v9965_v55 = vpack.c.bf16 %v13686_v27, %v13681_v17  ;;  %v9935_v47 = vpack.c.bf16 %v13700_v3, %v13691_v9  ;;  %v5999_v29 = vmax.f32 %v5456_v23, 0.0  ;;  %v6001_v57 = vmax.f32 %v5557_v16, 0.0 }
0x1023   :  { %6610 = vmatprep.mubr.f32.mxu1 %v6000_v52  ;;  %6705 = vmatprep.mubr.f32.mxu0 %v6002_v22  ;;  %v5464_v5 = vadd.f32 %v5463_v30, %v13563_v41  ;;  %v5565_v10 = vadd.f32 %v5564_v63, %v13590_v15  ;;  %v13727_v50 = vld [vmem:[%s14603_s22 + $0xd10] sm:$0xff]  ;;  %v9967_v52 = vpack.c.bf16 %v7900_v45, %v13705_v14  ;;  %v13741_v22 = vld [vmem:[%s14603_s22 + $0xd18] sm:$0xff]  ;;  %v13763_v37 = vld [vmem:[%s14603_s22 + $0xda8] sm:$0xff] }
0x1024   :  { %v5462_v30 = vadd.f32 %v5461_v60, %v13634_v54  ;;  %v5563_v63 = vadd.f32 %v5562_v12, %v13647_v1  ;;  %v9937_v31 = vpack.c.bf16 %v13722_v51, %v13717_v46  ;;  %v13772_v44 = vld [vmem:[%s14603_s22 + $0xc20] sm:$0xff]  ;;  %v13777_v11 = vld [vmem:[%s14603_s22 + $0xc28] sm:$0xff]  ;;  %v9969_v17 = vpack.c.bf16 %v13741_v22, %v13727_v50  ;;  %v13802_v16 = vld [vmem:[%s14603_s22 + $0xcb0] sm:$0xff] }
0x1025   :  { %9894 = vmatpush3.bf16.msra.mxu1 %v9893_v53  ;;  %9926 = vmatpush3.bf16.msra.mxu0 %v9925_v18  ;;  %v13674_v43 = vpop.f32.mrb[164].mxu1  ;;  %v13676_v8 = vpop.f32.mrb[170].mxu0  ;;  %v13746_v53 = vld [vmem:[%s14603_s22 + $0xca0] sm:$0xff]  ;;  %v13751_v18 = vld [vmem:[%s14603_s22 + $0xca8] sm:$0xff]  ;;  %v6016_v25 = vmax.f32 %v5464_v5, 0.0  ;;  %v6018_v38 = vmax.f32 %v5565_v10, 0.0  ;;  %v9971_v9 = vpack.c.bf16 %v13763_v37, %v13758_v62 }
0x1026   :  { %v5469_v4 = vpop.f32.mrb[165].mxu1  ;;  %v5570_v24 = vpop.f32.mrb[171].mxu0  ;;  %9896 = vmatprep.subr.bf16.mxu1 %v9895_v20  ;;  %9928 = vmatprep.subr.bf16.mxu0 %v9927_v48  ;;  %v9939_v27 = vpack.c.bf16 %v13751_v18, %v13746_v53  ;;  %v13797_v23 = vld [vmem:[%s14603_s22 + $0xd28] sm:$0xff]  ;;  %v5468_v3 = vadd.f32 %v13674_v43, %v13634_v54  ;;  %v5569_v14 = vadd.f32 %v13676_v8, %v13647_v1  ;;  %v13816_v10 = vld [vmem:[%s14603_s22 + $0xdb0] sm:$0xff]  ;;  %v13821_v46 = vld [vmem:[%s14603_s22 + $0xdb8] sm:$0xff] }
0x1027   :  { %v5470_v60 = vadd.f32 %v5469_v4, %v13563_v41  ;;  %v5571_v12 = vadd.f32 %v5570_v24, %v13590_v15  ;;  %v13807_v4 = vld [vmem:[%s14603_s22 + $0xcb8] sm:$0xff]  ;;  %v6015_v24 = vmax.f32 %v5462_v30, 0.0  ;;  %v13835_v22 = vld [vmem:[%s14603_s22 + $0xc30] sm:$0xff]  ;;  %v9975_v30 = vpack.c.bf16 %v13821_v46, %v13816_v10 }
0x1028   :  { %v6031_v62 = vmax.f32 %v5468_v3, 0.0  ;;  %v6033_v37 = vmax.f32 %v5569_v14, 0.0  ;;  %v7890_v14 = vld [vmem:[%s14603_s22 + $0xd48] sm:$0xff] }
0x1029   :  { %9898 = vmatpush3.bf16.msra.mxu1 %v9897_v39  ;;  %9930 = vmatpush3.bf16.msra.mxu0 %v9929_v28  ;;  %v13729_v13 = vpop.f32.mrb[166].mxu1  ;;  %v13731_v34 = vpop.f32.mrb[172].mxu0  ;;  %v13782_v39 = vld [vmem:[%s14603_s22 + $0xd20] sm:$0xff]  ;;  %v6032_v51 = vmax.f32 %v5470_v60, 0.0  ;;  %v6034_v50 = vmax.f32 %v5571_v12, 0.0 }
0x102a   :  { %v5475_v20 = vpop.f32.mrb[167].mxu1  ;;  %v5576_v48 = vpop.f32.mrb[173].mxu0  ;;  %9932 = vmatprep.subr.bf16.mxu1 %v9931_v61  ;;  %9964 = vmatprep.subr.bf16.mxu0 %v9963_v26  ;;  %v6017_v26 = vmax.f32 %v5563_v63, 0.0  ;;  %v13860_v63 = vld [vmem:[%s14603_s22 + $0xd38] sm:$0xff] }
0x102b   :  { %v5476_v43 = vadd.f32 %v5475_v20, %v13563_v41  ;;  %v5577_v8 = vadd.f32 %v5576_v48, %v13590_v15  ;;  %v13865_v20 = vld [vmem:[%s14603_s22 + $0xcc0] sm:$0xff]  ;;  %v13870_v48 = vld [vmem:[%s14603_s22 + $0xcc8] sm:$0xff] }
0x102c   :  { %6611 = vmatmul.mubr.f32.vlgmr.msra.gmra.mrb[208].mxu1 %v5999_v29  ;;  %6706 = vmatmul.mubr.f32.vlgmr.msra.gmra.mrb[214].mxu0 %v6001_v57  ;;  %v9973_v29 = vpack.c.bf16 %v13797_v23, %v13782_v39  ;;  %v9943_v57 = vpack.c.bf16 %v13807_v4, %v13802_v16  ;;  %v13901_v4 = vld [vmem:[%s14603_s22 + $0xc40] sm:$0xff] }
0x102d   :  { %6615 = vmatprep.mubr.f32.mxu1 %v6016_v25  ;;  %6710 = vmatprep.mubr.f32.mxu0 %v6018_v38  ;;  %v13784_v28 = vpop.f32.mrb[168].mxu1  ;;  %v13786_v61 = vpop.f32.mrb[174].mxu0  ;;  %v5474_v25 = vadd.f32 %v13729_v13, %v13634_v54  ;;  %v5575_v38 = vadd.f32 %v13731_v34, %v13647_v1  ;;  %v6048_v39 = vmax.f32 %v5476_v43, 0.0  ;;  %v6050_v23 = vmax.f32 %v5577_v8, 0.0 }
0x102e   :  { %9934 = vmatpush3.bf16.msra.mxu1 %v9933_v49  ;;  %9966 = vmatpush3.bf16.msra.mxu0 %v9965_v55  ;;  %v5481_v45 = vpop.f32.mrb[169].mxu1  ;;  %v5582_v5 = vpop.f32.mrb[175].mxu0  ;;  %v13828_v49 = vld [vmem:[%s14602_s21 + $0x18] sm:$0xff]  ;;  %v9941_v55 = vpack.c.bf16 %v13777_v11, %v13772_v44  ;;  %v13879_v44 = vld [vmem:[%s14603_s22 + $0xdc0] sm:$0xff]  ;;  %v13884_v11 = vld [vmem:[%s14603_s22 + $0xdc8] sm:$0xff] }
0x102f   :  { %9936 = vmatprep.subr.bf16.mxu1 %v9935_v47  ;;  %9968 = vmatprep.subr.bf16.mxu0 %v9967_v52  ;;  %v13840_v47 = vld [vmem:[%s14603_s22 + $0xc38] sm:$0xff]  ;;  %v13845_v52 = vld [vmem:[%s14603_s22 + $0xd30] sm:$0xff]  ;;  %v5482_v13 = vadd.f32 %v5481_v45, %v13563_v41  ;;  %v5583_v34 = vadd.f32 %v5582_v5, %v13590_v15  ;;  %v9979_v3 = vpack.c.bf16 %v13884_v11, %v13879_v44  ;;  %v6047_v10 = vmax.f32 %v5474_v25, 0.0 }
0x1030   :  { %6616 = vmatmul.mubr.f32.gmra.mrb[210].mxu1 %v6015_v24  ;;  %6711 = vmatmul.mubr.f32.gmra.mrb[216].mxu0 %v6017_v26  ;;  %v9945_v16 = vpack.c.bf16 %v13840_v47, %v13835_v22  ;;  %v9977_v24 = vpack.c.bf16 %v13860_v63, %v13845_v52  ;;  %v9947_v26 = vpack.c.bf16 %v13870_v48, %v13865_v20  ;;  %v13929_v45 = vld [vmem:[%s14603_s22 + $0xcd0] sm:$0xff]  ;;  %v13934_v5 = vld [vmem:[%s14603_s22 + $0xcd8] sm:$0xff]  ;;  %v6049_v46 = vmax.f32 %v5575_v38, 0.0 }
0x1031   :  { %6620 = vmatprep.mubr.f32.mxu1 %v6032_v51  ;;  %6715 = vmatprep.mubr.f32.mxu0 %v6034_v50  ;;  %v13847_v53 = vpop.f32.mrb[170].mxu1  ;;  %v13849_v18 = vpop.f32.mrb[176].mxu0  ;;  %v5480_v51 = vadd.f32 %v13784_v28, %v13634_v54  ;;  %v5581_v50 = vadd.f32 %v13786_v61, %v13647_v1  ;;  %v7907_v22 = vld [vmem:[%s14603_s22 + $0xdd0] sm:$0xff]  ;;  %v7908_v47 = vld [vmem:[%s14603_s22 + $0xdd8] sm:$0xff]  ;;  %v6064_v52 = vmax.f32 %v5482_v13, 0.0  ;;  %v6066_v63 = vmax.f32 %v5583_v34, 0.0 }
0x1032   :  { %9938 = vmatpush3.bf16.msra.mxu1 %v9937_v31  ;;  %9970 = vmatpush3.bf16.msra.mxu0 %v9969_v17  ;;  %v5487_v60 = vpop.f32.mrb[171].mxu1  ;;  %v5588_v12 = vpop.f32.mrb[177].mxu0  ;;  %v13890_v31 = vrot.slane %v13828_v49, %v11298_v35  ;;  %v13894_v17 = vrot.slane %v13828_v49, %v11301_v36  ;;  %v13911_v35 = vld [vmem:[%s14603_s22 + $0xd40] sm:$0xff]  ;;  %v7910_v34 = vld [vmem:[%s14603_s22 + $0xde8] sm:$0xff] }
0x1033   :  { %9940 = vmatprep.subr.bf16.mxu1 %v9939_v27  ;;  %9972 = vmatprep.subr.bf16.mxu0 %v9971_v9  ;;  %v13906_v27 = vld [vmem:[%s14603_s22 + $0xc48] sm:$0xff]  ;;  %v5488_v20 = vadd.f32 %v5487_v60, %v13563_v41  ;;  %v5589_v28 = vadd.f32 %v5588_v12, %v13590_v15  ;;  %v9981_v48 = vpack.c.bf16 %v7890_v14, %v13911_v35  ;;  %v6063_v15 = vmax.f32 %v5480_v51, 0.0  ;;  %v7859_v60 = vld [vmem:[%s14603_s22 + $0xc50] sm:$0xff]  ;;  %v7860_v12 = vld [vmem:[%s14603_s22 + $0xc58] sm:$0xff] }
0x1034   :  { %6621 = vmatmul.mubr.f32.gmra.mrb[212].mxu1 %v6031_v62  ;;  %6716 = vmatmul.mubr.f32.gmra.mrb[218].mxu0 %v6033_v37  ;;  %v9949_v61 = vpack.c.bf16 %v13906_v27, %v13901_v4  ;;  %v9951_v41 = vpack.c.bf16 %v13934_v5, %v13929_v45  ;;  %v9983_v62 = vpack.c.bf16 %v7908_v47, %v7907_v22  ;;  %v7909_v13 = vld [vmem:[%s14603_s22 + $0xde0] sm:$0xff]  ;;  %v7862_v5 = vld [vmem:[%s14603_s22 + $0xc68] sm:$0xff]  ;;  %v7879_v22 = vld [vmem:[%s14603_s22 + $0xcf0] sm:$0xff] }
0x1035   :  { %6625 = vmatprep.mubr.f32.mxu1 %v6048_v39  ;;  %6720 = vmatprep.mubr.f32.mxu0 %v6050_v23  ;;  %v13913_v36 = vpop.f32.mrb[172].mxu1  ;;  %v13915_v9 = vpop.f32.mrb[178].mxu0  ;;  %v5587_v37 = vadd.f32 %v13849_v18, %v13647_v1  ;;  %v6080_v44 = vmax.f32 %v5488_v20, 0.0  ;;  %v6082_v11 = vmax.f32 %v5589_v28, 0.0  ;;  %v7892_v18 = vld [vmem:[%s14603_s22 + $0xd58] sm:$0xff]  ;;  %v7877_v39 = vld [vmem:[%s14603_s22 + $0xce0] sm:$0xff] }
0x1036   :  { %9942 = vmatpush3.bf16.msra.mxu1 %v9941_v55  ;;  %9974 = vmatpush3.bf16.msra.mxu0 %v9973_v29  ;;  %v5659_v43 = vpop.f32.mrb[173].mxu1  ;;  %v5760_v8 = vpop.f32.mrb[179].mxu0  ;;  %v7878_v23 = vld [vmem:[%s14603_s22 + $0xce8] sm:$0xff]  ;;  %v7861_v45 = vld [vmem:[%s14603_s22 + $0xc60] sm:$0xff]  ;;  %v7880_v47 = vld [vmem:[%s14603_s22 + $0xcf8] sm:$0xff] }
0x1037   :  { %9944 = vmatprep.subr.bf16.mxu1 %v9943_v57  ;;  %9976 = vmatprep.subr.bf16.mxu0 %v9975_v30  ;;  %v6065_v57 = vmax.f32 %v5581_v50, 0.0  ;;  %v5486_v30 = vadd.f32 %v13847_v53, %v13634_v54  ;;  %v5660_v54 = vadd.f32 %v5659_v43, %v13890_v31  ;;  %v5761_v1 = vadd.f32 %v5760_v8, %v13894_v17  ;;  %v7891_v53 = vld [vmem:[%s14603_s22 + $0xd50] sm:$0xff]  ;;  %v7893_v43 = vld [vmem:[%s14603_s22 + $0xd60] sm:$0xff]  ;;  %v7894_v8 = vld [vmem:[%s14603_s22 + $0xd68] sm:$0xff] }
0x1038   :  { %6626 = vmatmul.mubr.f32.gmra.mrb[214].mxu1 %v6047_v10  ;;  %6721 = vmatmul.mubr.f32.gmra.mrb[220].mxu0 %v6049_v46  ;;  %v6081_v35 = vmax.f32 %v5587_v37, 0.0  ;;  %v9985_v14 = vpack.c.bf16 %v7892_v18, %v7891_v53  ;;  %v9955_v51 = vpack.c.bf16 %v7878_v23, %v7877_v39  ;;  %v9987_v50 = vpack.c.bf16 %v7910_v34, %v7909_v13  ;;  %v14070_v39 = vld [vmem:[%s14603_s22 + $0xe00] sm:$0xff]  ;;  %v14075_v23 = vld [vmem:[%s14603_s22 + $0xe08] sm:$0xff] }
0x1039   :  { %6630 = vmatprep.mubr.f32.mxu1 %v6064_v52  ;;  %6725 = vmatprep.mubr.f32.mxu0 %v6066_v63  ;;  %v13950_v55 = vpop.f32.mrb[174].mxu1  ;;  %v13952_v29 = vpop.f32.mrb[180].mxu0  ;;  %v6079_v27 = vmax.f32 %v5486_v30, 0.0  ;;  %v6004_v10 = vmax.f32 %v5660_v54, 0.0  ;;  %v6006_v46 = vmax.f32 %v5761_v1, 0.0  ;;  %v7911_v52 = vld [vmem:[%s14603_s22 + $0xdf0] sm:$0xff]  ;;  %v14046_v37 = vrot.slane %v13828_v49, %v11290_v33 }
0x103a   :  { %9946 = vmatpush3.bf16.msra.mxu1 %v9945_v16  ;;  %9978 = vmatpush3.bf16.msra.mxu0 %v9977_v24  ;;  %v13961_v25 = vpop.f32.mrb[175].mxu1  ;;  %v13963_v38 = vpop.f32.mrb[181].mxu0  ;;  %v7912_v63 = vld [vmem:[%s14603_s22 + $0xdf8] sm:$0xff]  ;;  %v7930_v54 = vld [vmem:[%s14603_s22 + $0xe88] sm:$0xff]  ;;  %v7961_v33 = vld [vmem:[%s14603_s22 + $0xf80] sm:$0xff] }
0x103b   :  { %9948 = vmatprep.subr.bf16.mxu1 %v9947_v26  ;;  %9980 = vmatprep.subr.bf16.mxu0 %v9979_v3  ;;  %v9953_v3 = vpack.c.bf16 %v7860_v12, %v7859_v60  ;;  %v7864_v30 = vld [vmem:[%s14603_s22 + $0xc78] sm:$0xff]  ;;  %v9959_v60 = vpack.c.bf16 %v7880_v47, %v7879_v22  ;;  %v9991_v12 = vpack.c.bf16 %v7912_v63, %v7911_v52  ;;  %v7962_v1 = vld [vmem:[%s14603_s22 + $0xf88] sm:$0xff]  ;;  %v14124_v63 = vld [vmem:[%s14603_s22 + $0xe10] sm:$0xff] }
0x103c   :  { %6631 = vmatmul.mubr.f32.gmra.mrb[216].mxu1 %v6063_v15  ;;  %6726 = vmatmul.mubr.f32.gmra.mrb[222].mxu0 %v6065_v57  ;;  %v9989_v15 = vpack.c.bf16 %v7894_v8, %v7893_v43  ;;  %v7863_v57 = vld [vmem:[%s14603_s22 + $0xc70] sm:$0xff]  ;;  %v5767_v8 = vadd.f32 %v13963_v38, %v13894_v17  ;;  %v9997_v52 = vpack.c.bf16 %v14075_v23, %v14070_v39  ;;  %v14166_v39 = vld [vmem:[%s14603_s22 + $0xfa0] sm:$0xff]  ;;  %v14171_v23 = vld [vmem:[%s14603_s22 + $0xfa8] sm:$0xff] }
0x103d   :  { %6635 = vmatprep.mubr.f32.mxu1 %v6080_v44  ;;  %6730 = vmatprep.mubr.f32.mxu0 %v6082_v11  ;;  %v13991_v16 = vpop.f32.mrb[176].mxu1  ;;  %v13993_v4 = vpop.f32.mrb[182].mxu0  ;;  %v7896_v44 = vld [vmem:[%s14603_s22 + $0xd78] sm:$0xff]  ;;  %v7929_v11 = vld [vmem:[%s14603_s22 + $0xe80] sm:$0xff]  ;;  %v14106_v43 = vld [vmem:[%s14603_s22 + $0xf90] sm:$0xff] }
0x103e   :  { %9950 = vmatpush3.bf16.msra.mxu1 %v9949_v61  ;;  %9982 = vmatpush3.bf16.msra.mxu0 %v9981_v48  ;;  %v13995_v24 = vpop.f32.mrb[177].mxu1  ;;  %v13997_v26 = vpop.f32.mrb[183].mxu0  ;;  %v14029_v61 = vrot.slane %v13828_v49, %v11287_v32  ;;  %v7895_v32 = vld [vmem:[%s14603_s22 + $0xd70] sm:$0xff] }
0x103f   :  { %9952 = vmatprep.subr.bf16.mxu1 %v9951_v41  ;;  %9984 = vmatprep.subr.bf16.mxu0 %v9983_v62  ;;  %v9957_v62 = vpack.c.bf16 %v7862_v5, %v7861_v45  ;;  %v7946_v45 = vld [vmem:[%s14603_s22 + $0xf08] sm:$0xff]  ;;  %v14092_v5 = vld [vmem:[%s14603_s22 + $0xe90] sm:$0xff] }
0x1040   :  { %6636 = vmatmul.mubr.f32.gmra.mrb[218].mxu1 %v6079_v27  ;;  %6731 = vmatmul.mubr.f32.gmra.mrb[224].mxu0 %v6081_v35  ;;  %v9961_v27 = vpack.c.bf16 %v7864_v30, %v7863_v57  ;;  %v9993_v35 = vpack.c.bf16 %v7896_v44, %v7895_v32  ;;  %v14142_v32 = vld [vmem:[%s14603_s22 + $0xf10] sm:$0xff] }
0x1041   :  { %6800 = vmatprep.mubr.f32.mxu1 %v6004_v10  ;;  %6895 = vmatprep.mubr.f32.mxu0 %v6006_v46  ;;  %v14023_v20 = vpop.f32.mrb[178].mxu1  ;;  %v14025_v28 = vpop.f32.mrb[184].mxu0  ;;  %v5658_v10 = vadd.f32 %v13913_v36, %v14029_v61  ;;  %v5759_v46 = vadd.f32 %v13915_v9, %v14046_v37  ;;  %v7964_v36 = vld [vmem:[%s14603_s22 + $0xf98] sm:$0xff]  ;;  %v5666_v9 = vadd.f32 %v13961_v25, %v13890_v31 }
0x1042   :  { %9954 = vmatpush3.bf16.msra.mxu1 %v9953_v3  ;;  %9986 = vmatpush3.bf16.msra.mxu0 %v9985_v14  ;;  %v14031_v48 = vpop.f32.mrb[179].mxu1  ;;  %v14033_v41 = vpop.f32.mrb[185].mxu0  ;;  %v9995_v3 = vpack.c.bf16 %v7930_v54, %v7929_v11  ;;  %v14084_v14 = vld [vmem:[%s14603_s22 + $0xf00] sm:$0xff]  ;;  %v10031_v30 = vpack.c.bf16 %v7964_v36, %v14106_v43  ;;  %v5664_v54 = vadd.f32 %v13950_v55, %v14029_v61  ;;  %v14211_v36 = vld [vmem:[%s14603_s22 + $0xf28] sm:$0xff] }
0x1043   :  { %9956 = vmatprep.subr.bf16.mxu1 %v9955_v51  ;;  %9988 = vmatprep.subr.bf16.mxu0 %v9987_v50  ;;  %v10027_v51 = vpack.c.bf16 %v7962_v1, %v7961_v33  ;;  %v14101_v50 = vld [vmem:[%s14603_s22 + $0xe98] sm:$0xff]  ;;  %v6003_v44 = vmax.f32 %v5658_v10, 0.0  ;;  %v6005_v11 = vmax.f32 %v5759_v46, 0.0  ;;  %v5765_v33 = vadd.f32 %v13952_v29, %v14046_v37  ;;  %v14161_v1 = vld [vmem:[%s14603_s22 + $0xea8] sm:$0xff]  ;;  %v14206_v43 = vld [vmem:[%s14603_s22 + $0xf20] sm:$0xff] }
0x1044   :  { %v9999_v57 = vpack.c.bf16 %v14101_v50, %v14092_v5  ;;  %v6020_v55 = vmax.f32 %v5666_v9, 0.0  ;;  %v5672_v29 = vadd.f32 %v13995_v24, %v13890_v31  ;;  %v14186_v5 = vld [vmem:[%s14603_s22 + $0xe20] sm:$0xff]  ;;  %v14191_v24 = vld [vmem:[%s14603_s22 + $0xe28] sm:$0xff]  ;;  %v10035_v50 = vpack.c.bf16 %v14171_v23, %v14166_v39  ;;  %v14216_v9 = vld [vmem:[%s14603_s22 + $0xeb0] sm:$0xff] }
0x1045   :  { %v14063_v53 = vpop.f32.mrb[180].mxu1  ;;  %v14065_v18 = vpop.f32.mrb[186].mxu0 }
0x1046   :  { %9958 = vmatpush3.bf16.msra.mxu1 %v9957_v62  ;;  %9990 = vmatpush3.bf16.msra.mxu0 %v9989_v15  ;;  %v14077_v13 = vpop.f32.mrb[181].mxu1  ;;  %v14079_v34 = vpop.f32.mrb[187].mxu0  ;;  %v14129_v62 = vld [vmem:[%s14603_s22 + $0xe18] sm:$0xff]  ;;  %v10029_v15 = vpack.c.bf16 %v7946_v45, %v14084_v14 }
0x1047   :  { %9960 = vmatprep.subr.bf16.mxu1 %v9959_v60  ;;  %9992 = vmatprep.subr.bf16.mxu0 %v9991_v12  ;;  %v14147_v60 = vld [vmem:[%s14603_s22 + $0xf18] sm:$0xff]  ;;  %v14152_v12 = vld [vmem:[%s14603_s22 + $0xea0] sm:$0xff]  ;;  %v10001_v45 = vpack.c.bf16 %v14129_v62, %v14124_v63  ;;  %v6021_v63 = vmax.f32 %v5765_v33, 0.0  ;;  %v5670_v62 = vadd.f32 %v13991_v16, %v14029_v61  ;;  %v6036_v16 = vmax.f32 %v5672_v29, 0.0 }
0x1048   :  { %v10033_v46 = vpack.c.bf16 %v14147_v60, %v14142_v32  ;;  %v5771_v32 = vadd.f32 %v13993_v4, %v14046_v37  ;;  %v14225_v60 = vld [vmem:[%s14603_s22 + $0xeb8] sm:$0xff]  ;;  %v5678_v4 = vadd.f32 %v14031_v48, %v13890_v31  ;;  %v10005_v33 = vpack.c.bf16 %v14191_v24, %v14186_v5  ;;  %v14280_v29 = vld [vmem:[%s14603_s22 + $0xec0] sm:$0xff] }
0x1049   :  { %v14115_v22 = vpop.f32.mrb[182].mxu1  ;;  %v14117_v47 = vpop.f32.mrb[188].mxu0  ;;  %v14255_v48 = vld [vmem:[%s14603_s22 + $0xe38] sm:$0xff]  ;;  %v10007_v39 = vpack.c.bf16 %v14225_v60, %v14216_v9  ;;  %v5676_v24 = vadd.f32 %v14023_v20, %v14029_v61  ;;  %v14294_v9 = vld [vmem:[%s14603_s22 + $0xfc0] sm:$0xff] }
0x104a   :  { %9962 = vmatpush3.bf16.msra.mxu1 %v9961_v27  ;;  %9994 = vmatpush3.bf16.msra.mxu0 %v9993_v35  ;;  %v14131_v25 = vpop.f32.mrb[183].mxu1  ;;  %v14133_v38 = vpop.f32.mrb[189].mxu0  ;;  %v6022_v27 = vmax.f32 %v5767_v8, 0.0  ;;  %v5773_v35 = vadd.f32 %v13997_v26, %v13894_v17  ;;  %v6019_v8 = vmax.f32 %v5664_v54, 0.0  ;;  %v6037_v5 = vmax.f32 %v5771_v32, 0.0 }
0x104b   :  { %9996 = vmatprep.subr.bf16.mxu1 %v9995_v3  ;;  %10028 = vmatprep.subr.bf16.mxu0 %v10027_v51  ;;  %v10003_v51 = vpack.c.bf16 %v14161_v1, %v14152_v12  ;;  %v14230_v12 = vld [vmem:[%s14603_s22 + $0xfb0] sm:$0xff]  ;;  %v6052_v20 = vmax.f32 %v5678_v4, 0.0 }
0x104c   :  { %v14250_v1 = vld [vmem:[%s14603_s22 + $0xe30] sm:$0xff] }
0x104d   :  { %6801 = vmatmul.mubr.f32.vlgmr.msra.gmra.mrb[220].mxu1 %v6003_v44  ;;  %6896 = vmatmul.mubr.f32.vlgmr.msra.gmra.mrb[226].mxu0 %v6005_v11  ;;  %v14177_v3 = vpop.f32.mrb[184].mxu1  ;;  %v14179_v14 = vpop.f32.mrb[190].mxu0  ;;  %v14235_v44 = vld [vmem:[%s14603_s22 + $0xfb8] sm:$0xff]  ;;  %v6038_v11 = vmax.f32 %v5773_v35, 0.0  ;;  %v6035_v35 = vmax.f32 %v5670_v62, 0.0  ;;  %v14311_v62 = vrot.slane %v13828_v49, %v14653_v56  ;;  %v14348_v4 = vld [vmem:[%s14603_s22 + $0xed0] sm:$0xff] }
0x104e   :  { %6805 = vmatprep.mubr.f32.mxu1 %v6020_v55  ;;  %6900 = vmatprep.mubr.f32.mxu0 %v6022_v27  ;;  %v14193_v26 = vpop.f32.mrb[185].mxu1  ;;  %v14195_v10 = vpop.f32.mrb[191].mxu0  ;;  %v10039_v23 = vpack.c.bf16 %v14235_v44, %v14230_v12  ;;  %v14270_v55 = vld [vmem:[%s14603_s22 + $0xf30] sm:$0xff]  ;;  %v14275_v27 = vld [vmem:[%s14603_s22 + $0xf38] sm:$0xff] }
0x104f   :  { %9998 = vmatpush3.bf16.msra.mxu1 %v9997_v52  ;;  %10030 = vmatpush3.bf16.msra.mxu0 %v10029_v15  ;;  %v5779_v52 = vadd.f32 %v14033_v41, %v13894_v17 }
0x1050   :  { %10000 = vmatprep.subr.bf16.mxu1 %v9999_v57  ;;  %10032 = vmatprep.subr.bf16.mxu0 %v10031_v30  ;;  %v10037_v30 = vpack.c.bf16 %v14211_v36, %v14206_v43  ;;  %v5777_v43 = vadd.f32 %v14025_v28, %v14046_v37  ;;  %v14289_v36 = vld [vmem:[%s14603_s22 + $0xec8] sm:$0xff]  ;;  %v5684_v28 = vadd.f32 %v14077_v13, %v13890_v31 }
0x1051   :  { %6806 = vmatmul.mubr.f32.gmra.mrb[222].mxu1 %v6019_v8  ;;  %6901 = vmatmul.mubr.f32.gmra.mrb[228].mxu0 %v6021_v63  ;;  %v14241_v15 = vpop.f32.mrb[186].mxu1  ;;  %v14243_v54 = vpop.f32.mrb[192].mxu0  ;;  %v14299_v8 = vld [vmem:[%s14603_s22 + $0xfc8] sm:$0xff]  ;;  %v6054_v63 = vmax.f32 %v5779_v52, 0.0  ;;  %v10009_v13 = vpack.c.bf16 %v14255_v48, %v14250_v1  ;;  %v10011_v12 = vpack.c.bf16 %v14289_v36, %v14280_v29  ;;  %v6051_v52 = vmax.f32 %v5676_v24, 0.0  ;;  %v7971_v29 = vld [vmem:[%s14603_s22 + $0xfd0] sm:$0xff] }
0x1052   :  { %6810 = vmatprep.mubr.f32.mxu1 %v6036_v16  ;;  %6905 = vmatprep.mubr.f32.mxu0 %v6038_v11  ;;  %v14257_v41 = vpop.f32.mrb[187].mxu1  ;;  %v14259_v57 = vpop.f32.mrb[193].mxu0  ;;  %v10043_v44 = vpack.c.bf16 %v14299_v8, %v14294_v9  ;;  %v7953_v16 = vld [vmem:[%s14603_s22 + $0xf40] sm:$0xff]  ;;  %v7954_v11 = vld [vmem:[%s14603_s22 + $0xf48] sm:$0xff]  ;;  %v6053_v1 = vmax.f32 %v5777_v43, 0.0  ;;  %v5682_v48 = vadd.f32 %v14063_v53, %v14029_v61  ;;  %v5690_v53 = vadd.f32 %v14131_v25, %v13890_v31 }
0x1053   :  { %10002 = vmatpush3.bf16.msra.mxu1 %v10001_v45  ;;  %10034 = vmatpush3.bf16.msra.mxu0 %v10033_v46  ;;  %v5785_v45 = vadd.f32 %v14079_v34, %v13894_v17  ;;  %v14307_v46 = vrot.slane %v13828_v49, %v14652_v59  ;;  %v14322_v34 = vld [vmem:[%s14603_s22 + $0xe40] sm:$0xff]  ;;  %v14327_v59 = vld [vmem:[%s14603_s22 + $0xe48] sm:$0xff]  ;;  %v10045_v31 = vpack.c.bf16 %v7954_v11, %v7953_v16 }
0x1054   :  { %10004 = vmatprep.subr.bf16.mxu1 %v10003_v51  ;;  %10036 = vmatprep.subr.bf16.mxu0 %v10035_v50  ;;  %v10041_v50 = vpack.c.bf16 %v14275_v27, %v14270_v55  ;;  %v5783_v55 = vadd.f32 %v14065_v18, %v14046_v37  ;;  %v7940_v27 = vld [vmem:[%s14603_s22 + $0xed8] sm:$0xff]  ;;  %v5791_v18 = vadd.f32 %v14133_v38, %v13894_v17  ;;  %v6067_v38 = vmax.f32 %v5682_v48, 0.0  ;;  %v7926_v48 = vld [vmem:[%s14603_s22 + $0xe68] sm:$0xff] }
0x1055   :  { %6811 = vmatmul.mubr.f32.gmra.mrb[224].mxu1 %v6035_v35  ;;  %6906 = vmatmul.mubr.f32.gmra.mrb[230].mxu0 %v6037_v5  ;;  %v14313_v32 = vpop.f32.mrb[188].mxu1  ;;  %v14315_v60 = vpop.f32.mrb[194].mxu0  ;;  %v7972_v35 = vld [vmem:[%s14603_s22 + $0xfd8] sm:$0xff]  ;;  %v6068_v5 = vmax.f32 %v5684_v28, 0.0  ;;  %v6070_v24 = vmax.f32 %v5785_v45, 0.0  ;;  %v10013_v43 = vpack.c.bf16 %v14327_v59, %v14322_v34  ;;  %v10015_v17 = vpack.c.bf16 %v7940_v27, %v14348_v4  ;;  %v7973_v59 = vld [vmem:[%s14603_s22 + $0xfe0] sm:$0xff] }
0x1056   :  { %6815 = vmatprep.mubr.f32.mxu1 %v6052_v20  ;;  %6910 = vmatprep.mubr.f32.mxu0 %v6054_v63  ;;  %v14329_v56 = vpop.f32.mrb[189].mxu1  ;;  %v14331_v51 = vpop.f32.mrb[195].mxu0  ;;  %v10047_v25 = vpack.c.bf16 %v7972_v35, %v7971_v29  ;;  %v5789_v8 = vadd.f32 %v14117_v47, %v14046_v37  ;;  %v7923_v20 = vld [vmem:[%s14603_s22 + $0xe50] sm:$0xff]  ;;  %v7924_v63 = vld [vmem:[%s14603_s22 + $0xe58] sm:$0xff]  ;;  %v6084_v28 = vmax.f32 %v5690_v53, 0.0  ;;  %v6086_v45 = vmax.f32 %v5791_v18, 0.0 }
0x1057   :  { %10006 = vmatpush3.bf16.msra.mxu1 %v10005_v33  ;;  %10038 = vmatpush3.bf16.msra.mxu0 %v10037_v30  ;;  %v5862_v34 = vadd.f32 %v14193_v26, %v14307_v46  ;;  %v7955_v37 = vld [vmem:[%s14603_s22 + $0xf50] sm:$0xff]  ;;  %v7941_v47 = vld [vmem:[%s14603_s22 + $0xee0] sm:$0xff]  ;;  %v10017_v4 = vpack.c.bf16 %v7924_v63, %v7923_v20 }
0x1058   :  { %10008 = vmatprep.subr.bf16.mxu1 %v10007_v39  ;;  %10040 = vmatprep.subr.bf16.mxu0 %v10039_v23  ;;  %v6069_v39 = vmax.f32 %v5783_v55, 0.0  ;;  %v5688_v23 = vadd.f32 %v14115_v22, %v14029_v61  ;;  %v5963_v61 = vadd.f32 %v14195_v10, %v14311_v62  ;;  %v7956_v22 = vld [vmem:[%s14603_s22 + $0xf58] sm:$0xff]  ;;  %v7942_v10 = vld [vmem:[%s14603_s22 + $0xee8] sm:$0xff]  ;;  %v6085_v11 = vmax.f32 %v5789_v8, 0.0  ;;  %v7943_v53 = vld [vmem:[%s14603_s22 + $0xef0] sm:$0xff] }
0x1059   :  { %6816 = vmatmul.mubr.f32.gmra.mrb[226].mxu1 %v6051_v52  ;;  %6911 = vmatmul.mubr.f32.gmra.mrb[232].mxu0 %v6053_v1  ;;  %v14367_v33 = vpop.f32.mrb[190].mxu1  ;;  %v14369_v30 = vpop.f32.mrb[196].mxu0  ;;  %v10049_v52 = vpack.c.bf16 %v7956_v22, %v7955_v37  ;;  %v7925_v1 = vld [vmem:[%s14603_s22 + $0xe60] sm:$0xff]  ;;  %v6008_v55 = vmax.f32 %v5862_v34, 0.0  ;;  %v10019_v29 = vpack.c.bf16 %v7942_v10, %v7941_v47  ;;  %v7927_v63 = vld [vmem:[%s14603_s22 + $0xe70] sm:$0xff]  ;;  %v7960_v37 = vld [vmem:[%s14603_s22 + $0xf78] sm:$0xff]  ;;  %v5868_v10 = vadd.f32 %v14257_v41, %v14307_v46 }
0x105a   :  { %6820 = vmatprep.mubr.f32.mxu1 %v6068_v5  ;;  %6915 = vmatprep.mubr.f32.mxu0 %v6070_v24  ;;  %v14373_v36 = vpop.f32.mrb[191].mxu1  ;;  %v14375_v9 = vpop.f32.mrb[197].mxu0  ;;  %v6083_v16 = vmax.f32 %v5688_v23, 0.0  ;;  %v6010_v27 = vmax.f32 %v5963_v61, 0.0  ;;  %v7957_v5 = vld [vmem:[%s14603_s22 + $0xf60] sm:$0xff]  ;;  %v7958_v24 = vld [vmem:[%s14603_s22 + $0xf68] sm:$0xff]  ;;  %v14452_v23 = vrot.slane %v13828_v49, %v11546_v40  ;;  %v10021_v8 = vpack.c.bf16 %v7926_v48, %v7925_v1 }
0x105b   :  { %10010 = vmatpush3.bf16.msra.mxu1 %v10009_v13  ;;  %10042 = vmatpush3.bf16.msra.mxu0 %v10041_v50  ;;  %v7974_v50 = vld [vmem:[%s14603_s22 + $0xfe8] sm:$0xff]  ;;  %v10053_v20 = vpack.c.bf16 %v7958_v24, %v7957_v5  ;;  %v7928_v40 = vld [vmem:[%s14603_s22 + $0xe78] sm:$0xff]  ;;  %v7959_v61 = vld [vmem:[%s14603_s22 + $0xf70] sm:$0xff]  ;;  %v5975_v41 = vadd.f32 %v14331_v51, %v14311_v62  ;;  %v5981_v51 = vadd.f32 %v14375_v9, %v14311_v62 }
0x105c   :  { %10012 = vmatprep.subr.bf16.mxu1 %v10011_v12  ;;  %10044 = vmatprep.subr.bf16.mxu0 %v10043_v44  ;;  %v10051_v35 = vpack.c.bf16 %v7974_v50, %v7973_v59  ;;  %v5860_v22 = vadd.f32 %v14177_v3, %v14452_v23  ;;  %v5969_v59 = vadd.f32 %v14259_v57, %v14311_v62 }
0x105d   :  { %6821 = vmatmul.mubr.f32.gmra.mrb[228].mxu1 %v6067_v38  ;;  %6916 = vmatmul.mubr.f32.gmra.mrb[234].mxu0 %v6069_v39  ;;  %v14401_v26 = vpop.f32.mrb[192].mxu1  ;;  %v14403_v13 = vpop.f32.mrb[198].mxu0  ;;  %v6058_v5 = vmax.f32 %v5981_v51, 0.0 }
0x105e   :  { %6825 = vmatprep.mubr.f32.mxu1 %v6084_v28  ;;  %6920 = vmatprep.mubr.f32.mxu0 %v6086_v45  ;;  %v14414_v12 = vpop.f32.mrb[193].mxu1  ;;  %v14416_v44 = vpop.f32.mrb[199].mxu0  ;;  %v14459_v28 = vrot.slane %v13828_v49, %v11549_v6  ;;  %v10025_v6 = vpack.c.bf16 %v7928_v40, %v7927_v63  ;;  %v10057_v49 = vpack.c.bf16 %v7960_v37, %v7959_v61  ;;  %v6007_v50 = vmax.f32 %v5860_v22, 0.0 }
0x105f   :  { %10014 = vmatpush3.bf16.msra.mxu1 %v10013_v43  ;;  %10046 = vmatpush3.bf16.msra.mxu0 %v10045_v31  ;;  %v7944_v31 = vld [vmem:[%s14603_s22 + $0xef8] sm:$0xff]  ;;  %v5987_v9 = vadd.f32 %v14416_v44, %v14311_v62 }
0x1060   :  { %10016 = vmatprep.subr.bf16.mxu1 %v10015_v17  ;;  %10048 = vmatprep.subr.bf16.mxu0 %v10047_v25  ;;  %v7975_v17 = vld [vmem:[%s14603_s22 + $0xff0] sm:$0xff]  ;;  %v7976_v25 = vld [vmem:[%s14603_s22 + $0xff8] sm:$0xff]  ;;  %v10023_v45 = vpack.c.bf16 %v7944_v31, %v7943_v53  ;;  %v5961_v47 = vadd.f32 %v14179_v14, %v14459_v28  ;;  %v5967_v3 = vadd.f32 %v14243_v54, %v14459_v28  ;;  %v6026_v14 = vmax.f32 %v5969_v59, 0.0 }
0x1061   :  { %6826 = vmatmul.mubr.f32.gmra.mrb[230].mxu1 %v6083_v16  ;;  %6921 = vmatmul.mubr.f32.gmra.mrb[236].mxu0 %v6085_v11  ;;  %v14433_v18 = vpop.f32.mrb[194].mxu1  ;;  %v14435_v43 = vpop.f32.mrb[200].mxu0  ;;  %v10055_v34 = vpack.c.bf16 %v7976_v25, %v7975_v17  ;;  %v5866_v11 = vadd.f32 %v14241_v15, %v14452_v23  ;;  %v5872_v15 = vadd.f32 %v14313_v32, %v14452_v23  ;;  %v6074_v17 = vmax.f32 %v5987_v9, 0.0 }
0x1062   :  { %6990 = vmatprep.mubr.f32.mxu1 %v6008_v55  ;;  %7085 = vmatprep.mubr.f32.mxu0 %v6010_v27  ;;  %v14446_v38 = vpop.f32.mrb[195].mxu1  ;;  %v14448_v39 = vpop.f32.mrb[201].mxu0  ;;  %v6009_v16 = vmax.f32 %v5961_v47, 0.0  ;;  %v6025_v1 = vmax.f32 %v5967_v3, 0.0  ;;  %v5973_v54 = vadd.f32 %v14315_v60, %v14459_v28  ;;  %v6042_v55 = vmax.f32 %v5975_v41, 0.0 }
0x1063   :  { %10018 = vmatpush3.bf16.msra.mxu1 %v10017_v4  ;;  %10050 = vmatpush3.bf16.msra.mxu0 %v10049_v52  ;;  %v6024_v4 = vmax.f32 %v5868_v10, 0.0  ;;  %v5874_v52 = vadd.f32 %v14329_v56, %v14307_v46  ;;  %v6023_v57 = vmax.f32 %v5866_v11, 0.0  ;;  %v5880_v56 = vadd.f32 %v14373_v36, %v14307_v46 }
0x1064   :  { %10020 = vmatprep.subr.bf16.mxu1 %v10019_v29  ;;  %10052 = vmatprep.subr.bf16.mxu0 %v10051_v35  ;;  %v6039_v27 = vmax.f32 %v5872_v15, 0.0  ;;  %v6041_v29 = vmax.f32 %v5973_v54, 0.0  ;;  %v5878_v32 = vadd.f32 %v14367_v33, %v14452_v23  ;;  %v5979_v60 = vadd.f32 %v14369_v30, %v14459_v28 }
0x1065   :  { %v6040_v48 = vmax.f32 %v5874_v52, 0.0  ;;  %v6056_v35 = vmax.f32 %v5880_v56, 0.0  ;;  %v5886_v36 = vadd.f32 %v14414_v12, %v14307_v46  ;;  %v5884_v33 = vadd.f32 %v14401_v26, %v14452_v23 }
0x1066   :  { %v6055_v24 = vmax.f32 %v5878_v32, 0.0  ;;  %v6057_v53 = vmax.f32 %v5979_v60, 0.0  ;;  %v5985_v30 = vadd.f32 %v14403_v13, %v14459_v28  ;;  %v5892_v12 = vadd.f32 %v14446_v38, %v14307_v46 }
0x1067   :  { %10022 = vmatpush3.bf16.msra.mxu1 %v10021_v8  ;;  %10054 = vmatpush3.bf16.msra.mxu0 %v10053_v20  ;;  %v6072_v31 = vmax.f32 %v5886_v36, 0.0  ;;  %v5993_v44 = vadd.f32 %v14448_v39, %v14311_v62  ;;  %v6071_v25 = vmax.f32 %v5884_v33, 0.0  ;;  %v5890_v26 = vadd.f32 %v14433_v18, %v14452_v23 }
0x1068   :  { %10024 = vmatprep.subr.bf16.mxu1 %v10023_v45  ;;  %10056 = vmatprep.subr.bf16.mxu0 %v10055_v34  ;;  %v6073_v8 = vmax.f32 %v5985_v30, 0.0  ;;  %v5991_v13 = vadd.f32 %v14435_v43, %v14459_v28  ;;  %v6088_v20 = vmax.f32 %v5892_v12, 0.0  ;;  %v7978_v45 = vld [vmem:[%s14604_s23 + $0x1] ss:$0 sm:$0xff] }
0x1069   :  { %v6090_v63 = vmax.f32 %v5993_v44, 0.0  ;;  %v6087_v46 = vmax.f32 %v5890_v26, 0.0 }
0x106a   :  { %v6089_v62 = vmax.f32 %v5991_v13, 0.0 }
0x106b   :  { %10026 = vmatpush3.bf16.msra.mxu1 %v10025_v6  ;;  %10058 = vmatpush3.bf16.msra.mxu0 %v10057_v49 }
0x106e   :  { %6991 = vmatmul.mubr.f32.vlgmr.msra.gmra.mrb[232].mxu1 %v6007_v50  ;;  %7086 = vmatmul.mubr.f32.vlgmr.msra.gmra.mrb[238].mxu0 %v6009_v16 }
0x106f   :  { %6995 = vmatprep.mubr.f32.mxu1 %v6024_v4  ;;  %7090 = vmatprep.mubr.f32.mxu0 %v6026_v14 }
0x1072   :  { %6996 = vmatmul.mubr.f32.gmra.mrb[234].mxu1 %v6023_v57  ;;  %7091 = vmatmul.mubr.f32.gmra.mrb[240].mxu0 %v6025_v1 }
0x1073   :  { %7000 = vmatprep.mubr.f32.mxu1 %v6040_v48  ;;  %7095 = vmatprep.mubr.f32.mxu0 %v6042_v55 }
0x1076   :  { %7001 = vmatmul.mubr.f32.gmra.mrb[236].mxu1 %v6039_v27  ;;  %7096 = vmatmul.mubr.f32.gmra.mrb[242].mxu0 %v6041_v29 }
0x1077   :  { %7005 = vmatprep.mubr.f32.mxu1 %v6056_v35  ;;  %7100 = vmatprep.mubr.f32.mxu0 %v6058_v5 }
0x107a   :  { %7006 = vmatmul.mubr.f32.gmra.mrb[238].mxu1 %v6055_v24  ;;  %7101 = vmatmul.mubr.f32.gmra.mrb[244].mxu0 %v6057_v53 }
0x107b   :  { %7010 = vmatprep.mubr.f32.mxu1 %v6072_v31  ;;  %7105 = vmatprep.mubr.f32.mxu0 %v6074_v17 }
0x107e   :  { %7011 = vmatmul.mubr.f32.gmra.mrb[240].mxu1 %v6071_v25  ;;  %7106 = vmatmul.mubr.f32.gmra.mrb[246].mxu0 %v6073_v8 }
0x107f   :  { %7015 = vmatprep.mubr.f32.mxu1 %v6088_v20  ;;  %7110 = vmatprep.mubr.f32.mxu0 %v6090_v63 }
0x1082   :  { %7016 = vmatmul.mubr.f32.gmra.mrb[242].mxu1 %v6087_v46  ;;  %7111 = vmatmul.mubr.f32.gmra.mrb[248].mxu0 %v6089_v62 }
0x1083   :  { %9277 = vmatprep.mubr.msk.f32.mxu1 %vm10239_vm7, %v14651_v0 }
0x10df   :  { %v8592_v38 = vpop.f32.mrb[196].mxu1  ;;  %v8642_v39 = vpop.f32.mrb[202].mxu0 }
0x10e0   :  { %v8593_v18 = vpop.f32.mrb[197].mxu1  ;;  %v8643_v23 = vpop.f32.mrb[203].mxu0 }
0x10e1   :  { %v8594_v34 = vadd.f32 %v8593_v18, %v8592_v38  ;;  %v8644_v43 = vadd.f32 %v8643_v23, %v8642_v39 }
0x10e3   :  { %v6423_v28 = vadd.f32 %v8594_v34, %v7978_v45  ;;  %v8595_v40 = vpop.f32.mrb[198].mxu1  ;;  %v8645_v61 = vpop.f32.mrb[204].mxu0 }
0x10e4   :  { %v8596_v37 = vpop.f32.mrb[199].mxu1  ;;  %v8646_v6 = vpop.f32.mrb[205].mxu0 }
0x10e5   :  { %v6518_v49 = vadd.f32 %v8644_v43, %v6423_v28  ;;  %v8597_v22 = vadd.f32 %v8596_v37, %v8595_v40  ;;  %v8647_v47 = vadd.f32 %v8646_v6, %v8645_v61 }
0x10e7   :  { %v6428_v10 = vadd.f32 %v8597_v22, %v7978_v45  ;;  %v8598_v59 = vpop.f32.mrb[200].mxu1  ;;  %v8648_v50 = vpop.f32.mrb[206].mxu0 }
0x10e8   :  { %v8599_v16 = vpop.f32.mrb[201].mxu1  ;;  %v8649_v11 = vpop.f32.mrb[207].mxu0 }
0x10e9   :  { %v6523_v3 = vadd.f32 %v8647_v47, %v6428_v10  ;;  %v8600_v4 = vadd.f32 %v8599_v16, %v8598_v59  ;;  %v8650_v14 = vadd.f32 %v8649_v11, %v8648_v50 }
0x10eb   :  { %v6433_v52 = vadd.f32 %v8600_v4, %v7978_v45  ;;  %v8601_v41 = vpop.f32.mrb[202].mxu1  ;;  %v8651_v57 = vpop.f32.mrb[208].mxu0 }
0x10ec   :  { %v8602_v1 = vpop.f32.mrb[203].mxu1  ;;  %v8652_v15 = vpop.f32.mrb[209].mxu0 }
0x10ed   :  { %v6528_v54 = vadd.f32 %v8650_v14, %v6433_v52  ;;  %v8603_v48 = vadd.f32 %v8602_v1, %v8601_v41  ;;  %v8653_v55 = vadd.f32 %v8652_v15, %v8651_v57 }
0x10ef   :  { %v6438_v56 = vadd.f32 %v8603_v48, %v7978_v45  ;;  %v8604_v51 = vpop.f32.mrb[204].mxu1  ;;  %v8654_v27 = vpop.f32.mrb[210].mxu0 }
0x10f0   :  { %v8605_v29 = vpop.f32.mrb[205].mxu1  ;;  %v8655_v32 = vpop.f32.mrb[211].mxu0 }
0x10f1   :  { %v6533_v60 = vadd.f32 %v8653_v55, %v6438_v56  ;;  %v8606_v35 = vadd.f32 %v8605_v29, %v8604_v51  ;;  %v8656_v5 = vadd.f32 %v8655_v32, %v8654_v27 }
0x10f3   :  { %v6443_v36 = vadd.f32 %v8606_v35, %v7978_v45  ;;  %v8607_v9 = vpop.f32.mrb[206].mxu1  ;;  %v8657_v24 = vpop.f32.mrb[212].mxu0 }
0x10f4   :  { %v8608_v53 = vpop.f32.mrb[207].mxu1  ;;  %v8658_v33 = vpop.f32.mrb[213].mxu0 }
0x10f5   :  { %v6538_v30 = vadd.f32 %v8656_v5, %v6443_v36  ;;  %v8609_v31 = vadd.f32 %v8608_v53, %v8607_v9  ;;  %v8659_v17 = vadd.f32 %v8658_v33, %v8657_v24 }
0x10f7   :  { %v6448_v12 = vadd.f32 %v8609_v31, %v7978_v45 }
0x10f9   :  { %v6543_v44 = vadd.f32 %v8659_v17, %v6448_v12 }
0x10ff   :  { %v8692_v25 = vpop.f32.mrb[208].mxu1  ;;  %v8742_v8 = vpop.f32.mrb[214].mxu0 }
0x1100   :  { %v8693_v26 = vpop.f32.mrb[209].mxu1  ;;  %v8743_v13 = vpop.f32.mrb[215].mxu0 }
0x1101   :  { %v8694_v20 = vadd.f32 %v8693_v26, %v8692_v25  ;;  %v8744_v63 = vadd.f32 %v8743_v13, %v8742_v8 }
0x1103   :  { %v6613_v46 = vadd.f32 %v8694_v20, %v6518_v49  ;;  %v8695_v62 = vpop.f32.mrb[210].mxu1  ;;  %v8745_v38 = vpop.f32.mrb[216].mxu0 }
0x1104   :  { %v8696_v39 = vpop.f32.mrb[211].mxu1  ;;  %v8746_v18 = vpop.f32.mrb[217].mxu0 }
0x1105   :  { %v6708_v23 = vadd.f32 %v8744_v63, %v6613_v46  ;;  %v8697_v34 = vadd.f32 %v8696_v39, %v8695_v62  ;;  %v8747_v43 = vadd.f32 %v8746_v18, %v8745_v38 }
0x1107   :  { %v6618_v28 = vadd.f32 %v8697_v34, %v6523_v3  ;;  %v8698_v40 = vpop.f32.mrb[212].mxu1  ;;  %v8748_v61 = vpop.f32.mrb[218].mxu0 }
0x1108   :  { %v8699_v37 = vpop.f32.mrb[213].mxu1  ;;  %v8749_v45 = vpop.f32.mrb[219].mxu0 }
0x1109   :  { %v6713_v6 = vadd.f32 %v8747_v43, %v6618_v28  ;;  %v8700_v22 = vadd.f32 %v8699_v37, %v8698_v40  ;;  %v8750_v47 = vadd.f32 %v8749_v45, %v8748_v61 }
0x110b   :  { %v6623_v10 = vadd.f32 %v8700_v22, %v6528_v54  ;;  %v8701_v59 = vpop.f32.mrb[214].mxu1  ;;  %v8751_v50 = vpop.f32.mrb[220].mxu0 }
0x110c   :  { %v8702_v16 = vpop.f32.mrb[215].mxu1  ;;  %v8752_v49 = vpop.f32.mrb[221].mxu0 }
0x110d   :  { %v6718_v11 = vadd.f32 %v8750_v47, %v6623_v10  ;;  %v8703_v4 = vadd.f32 %v8702_v16, %v8701_v59  ;;  %v8753_v14 = vadd.f32 %v8752_v49, %v8751_v50 }
0x110f   :  { %v6628_v52 = vadd.f32 %v8703_v4, %v6533_v60  ;;  %v8704_v41 = vpop.f32.mrb[216].mxu1  ;;  %v8754_v57 = vpop.f32.mrb[222].mxu0 }
0x1110   :  { %v8705_v1 = vpop.f32.mrb[217].mxu1  ;;  %v8755_v3 = vpop.f32.mrb[223].mxu0 }
0x1111   :  { %v6723_v15 = vadd.f32 %v8753_v14, %v6628_v52  ;;  %v8706_v48 = vadd.f32 %v8705_v1, %v8704_v41  ;;  %v8756_v55 = vadd.f32 %v8755_v3, %v8754_v57 }
0x1113   :  { %v6633_v56 = vadd.f32 %v8706_v48, %v6538_v30  ;;  %v8707_v51 = vpop.f32.mrb[218].mxu1  ;;  %v8757_v27 = vpop.f32.mrb[224].mxu0 }
0x1114   :  { %v8708_v29 = vpop.f32.mrb[219].mxu1  ;;  %v8758_v54 = vpop.f32.mrb[225].mxu0 }
0x1115   :  { %v6728_v32 = vadd.f32 %v8756_v55, %v6633_v56  ;;  %v8709_v35 = vadd.f32 %v8708_v29, %v8707_v51  ;;  %v8759_v5 = vadd.f32 %v8758_v54, %v8757_v27 }
0x1117   :  { %v6638_v36 = vadd.f32 %v8709_v35, %v6543_v44 }
0x1119   :  { %v6733_v9 = vadd.f32 %v8759_v5, %v6638_v36 }
0x1120   :  { %v8792_v24 = vpop.f32.mrb[220].mxu1  ;;  %v8842_v53 = vpop.f32.mrb[226].mxu0 }
0x1121   :  { %v8793_v60 = vpop.f32.mrb[221].mxu1  ;;  %v8843_v33 = vpop.f32.mrb[227].mxu0 }
0x1122   :  { %v8794_v31 = vadd.f32 %v8793_v60, %v8792_v24  ;;  %v8844_v17 = vadd.f32 %v8843_v33, %v8842_v53 }
0x1124   :  { %v6803_v12 = vadd.f32 %v8794_v31, %v6708_v23  ;;  %v8795_v25 = vpop.f32.mrb[222].mxu1  ;;  %v8845_v8 = vpop.f32.mrb[228].mxu0 }
0x1125   :  { %v8796_v26 = vpop.f32.mrb[223].mxu1  ;;  %v8846_v30 = vpop.f32.mrb[229].mxu0 }
0x1126   :  { %v6898_v13 = vadd.f32 %v8844_v17, %v6803_v12  ;;  %v8797_v20 = vadd.f32 %v8796_v26, %v8795_v25  ;;  %v8847_v63 = vadd.f32 %v8846_v30, %v8845_v8 }
0x1128   :  { %v6808_v46 = vadd.f32 %v8797_v20, %v6713_v6  ;;  %v8798_v62 = vpop.f32.mrb[224].mxu1  ;;  %v8848_v38 = vpop.f32.mrb[230].mxu0 }
0x1129   :  { %v8799_v39 = vpop.f32.mrb[225].mxu1  ;;  %v8849_v44 = vpop.f32.mrb[231].mxu0 }
0x112a   :  { %v6903_v18 = vadd.f32 %v8847_v63, %v6808_v46  ;;  %v8800_v34 = vadd.f32 %v8799_v39, %v8798_v62  ;;  %v8850_v43 = vadd.f32 %v8849_v44, %v8848_v38 }
0x112c   :  { %v6813_v28 = vadd.f32 %v8800_v34, %v6718_v11  ;;  %v8801_v40 = vpop.f32.mrb[226].mxu1  ;;  %v8851_v61 = vpop.f32.mrb[232].mxu0 }
0x112d   :  { %v8802_v37 = vpop.f32.mrb[227].mxu1  ;;  %v8852_v23 = vpop.f32.mrb[233].mxu0 }
0x112e   :  { %v6908_v45 = vadd.f32 %v8850_v43, %v6813_v28  ;;  %v8803_v22 = vadd.f32 %v8802_v37, %v8801_v40  ;;  %v8853_v47 = vadd.f32 %v8852_v23, %v8851_v61 }
0x1130   :  { %v6818_v10 = vadd.f32 %v8803_v22, %v6723_v15  ;;  %v8804_v59 = vpop.f32.mrb[228].mxu1  ;;  %v8854_v50 = vpop.f32.mrb[234].mxu0 }
0x1131   :  { %v8805_v16 = vpop.f32.mrb[229].mxu1  ;;  %v8855_v6 = vpop.f32.mrb[235].mxu0 }
0x1132   :  { %v6913_v49 = vadd.f32 %v8853_v47, %v6818_v10  ;;  %v8806_v4 = vadd.f32 %v8805_v16, %v8804_v59  ;;  %v8856_v14 = vadd.f32 %v8855_v6, %v8854_v50 }
0x1134   :  { %v6823_v52 = vadd.f32 %v8806_v4, %v6728_v32  ;;  %v8807_v41 = vpop.f32.mrb[230].mxu1  ;;  %v8857_v57 = vpop.f32.mrb[236].mxu0 }
0x1135   :  { %v8808_v1 = vpop.f32.mrb[231].mxu1  ;;  %v8858_v11 = vpop.f32.mrb[237].mxu0 }
0x1136   :  { %v6918_v3 = vadd.f32 %v8856_v14, %v6823_v52  ;;  %v8809_v48 = vadd.f32 %v8808_v1, %v8807_v41  ;;  %v8859_v55 = vadd.f32 %v8858_v11, %v8857_v57 }
0x1138   :  { %v6828_v56 = vadd.f32 %v8809_v48, %v6733_v9 }
0x113a   :  { %v6923_v51 = vadd.f32 %v8859_v55, %v6828_v56 }
0x1141   :  { %v8892_v27 = vpop.f32.mrb[232].mxu1  ;;  %v8942_v29 = vpop.f32.mrb[238].mxu0 }
0x1142   :  { %v8893_v15 = vpop.f32.mrb[233].mxu1  ;;  %v8943_v54 = vpop.f32.mrb[239].mxu0 }
0x1143   :  { %v8894_v35 = vadd.f32 %v8893_v15, %v8892_v27  ;;  %v8944_v5 = vadd.f32 %v8943_v54, %v8942_v29 }
0x1145   :  { %v6993_v36 = vadd.f32 %v8894_v35, %v6898_v13  ;;  %v8895_v24 = vpop.f32.mrb[234].mxu1  ;;  %v8945_v53 = vpop.f32.mrb[240].mxu0 }
0x1146   :  { %v8896_v60 = vpop.f32.mrb[235].mxu1  ;;  %v8946_v32 = vpop.f32.mrb[241].mxu0 }
0x1147   :  { %v7088_v33 = vadd.f32 %v8944_v5, %v6993_v36  ;;  %v8897_v31 = vadd.f32 %v8896_v60, %v8895_v24  ;;  %v8947_v17 = vadd.f32 %v8946_v32, %v8945_v53 }
0x1149   :  { %v6998_v12 = vadd.f32 %v8897_v31, %v6903_v18  ;;  %v8898_v25 = vpop.f32.mrb[236].mxu1  ;;  %v8948_v8 = vpop.f32.mrb[242].mxu0  ;;  %v7116_v9 = vadd.f32 %v7088_v33, %v12848_v2 }
0x114a   :  { %v8899_v26 = vpop.f32.mrb[237].mxu1  ;;  %v8949_v30 = vpop.f32.mrb[243].mxu0 }
0x114b   :  { %v7093_v20 = vadd.f32 %v8947_v17, %v6998_v12  ;;  %v8900_v63 = vadd.f32 %v8899_v26, %v8898_v25  ;;  %v8950_v46 = vadd.f32 %v8949_v30, %v8948_v8  ;;  %v7126_v62 = vsel %vm446_vm4, %v7116_v9, 0.0 }
0x114c   :  { %7127 = vadd.xlane.f32.xlu1 %v7126_v62 }
0x114d   :  { %v7003_v13 = vadd.f32 %v8900_v63, %v6908_v45  ;;  %v8901_v38 = vpop.f32.mrb[238].mxu1  ;;  %v8951_v39 = vpop.f32.mrb[244].mxu0  ;;  %v7117_v44 = vadd.f32 %v7093_v20, %v12879_v7 }
0x114e   :  { %v8902_v34 = vpop.f32.mrb[239].mxu1  ;;  %v8952_v43 = vpop.f32.mrb[245].mxu0 }
0x114f   :  { %v7098_v18 = vadd.f32 %v8950_v46, %v7003_v13  ;;  %v8903_v28 = vadd.f32 %v8902_v34, %v8901_v38  ;;  %v8953_v40 = vadd.f32 %v8952_v43, %v8951_v39  ;;  %v7129_v2 = vsel %vm446_vm4, %v7117_v44, 0.0 }
0x1150   :  { %7130 = vadd.xlane.f32.xlu0 %v7129_v2 }
0x1151   :  { %v7008_v61 = vadd.f32 %v8903_v28, %v6913_v49  ;;  %v8904_v37 = vpop.f32.mrb[240].mxu1  ;;  %v8954_v23 = vpop.f32.mrb[246].mxu0  ;;  %v7118_v22 = vadd.f32 %v7098_v18, %v12891_v19 }
0x1152   :  { %v8905_v47 = vpop.f32.mrb[241].mxu1  ;;  %v8955_v10 = vpop.f32.mrb[247].mxu0 }
0x1153   :  { %v7103_v45 = vadd.f32 %v8953_v40, %v7008_v61  ;;  %v8906_v59 = vadd.f32 %v8905_v47, %v8904_v37  ;;  %v8956_v50 = vadd.f32 %v8955_v10, %v8954_v23  ;;  %v7132_v7 = vsel %vm446_vm4, %v7118_v22, 0.0 }
0x1154   :  { %7133 = vadd.xlane.f32.xlu1 %v7132_v7 }
0x1155   :  { %v7013_v16 = vadd.f32 %v8906_v59, %v6918_v3  ;;  %v8907_v6 = vpop.f32.mrb[242].mxu1  ;;  %v8957_v4 = vpop.f32.mrb[248].mxu0  ;;  %v7119_v14 = vadd.f32 %v7103_v45, %v12901_v21 }
0x1156   :  { %v8908_v52 = vpop.f32.mrb[243].mxu1  ;;  %v8958_v41 = vpop.f32.mrb[249].mxu0 }
0x1157   :  { %v7108_v49 = vadd.f32 %v8956_v50, %v7013_v16  ;;  %v8909_v57 = vadd.f32 %v8908_v52, %v8907_v6  ;;  %v8959_v1 = vadd.f32 %v8958_v41, %v8957_v4  ;;  %v7135_v19 = vsel %vm446_vm4, %v7119_v14, 0.0  ;;  %v7981_v16 = vld [vmem:[%s14599_s18 + $0x1] ss:$0 sm:$0xff] }
0x1158   :  { %7136 = vadd.xlane.f32.xlu0 %v7135_v19 }
0x1159   :  { %v7018_v11 = vadd.f32 %v8909_v57, %v6923_v51  ;;  %v7120_v48 = vadd.f32 %v7108_v49, %v12913_v58  ;;  %v7982_v57 = vld [vmem:[%s14600_s19 + $0x1] ss:$0 sm:$0xff] }
0x115b   :  { %v7113_v55 = vadd.f32 %v8959_v1, %v7018_v11  ;;  %v7138_v56 = vsel %vm446_vm4, %v7120_v48, 0.0 }
0x115c   :  { %7139 = vadd.xlane.f32.xlu1 %v7138_v56 }
0x115d   :  { %v7121_v3 = vadd.f32 %v7113_v55, %v12922_v42 }
0x115f   :  { %v7141_v27 = vsel %vm446_vm4, %v7121_v3, 0.0 }
0x1160   :  { %7142 = vadd.xlane.f32.xlu0 %v7141_v27 }
0x11d9   :  { %v7128_v21 = vpop.xlane.xlu1 %7127 }
0x11da   :  { %v7144_v29 = vmul.f32 0.03125, %v7128_v21 }
0x11dc   :  { %v7150_v15 = vsub.f32 %v7116_v9, %v7144_v29 }
0x11dd   :  { %v7131_v54 = vpop.xlane.xlu0 %7130 }
0x11de   :  { %v7145_v35 = vmul.f32 0.03125, %v7131_v54  ;;  %v7156_v5 = vmul.f32 %v7150_v15, %v7150_v15 }
0x11e0   :  { %v7151_v36 = vsub.f32 %v7117_v44, %v7145_v35  ;;  %v7162_v51 = vsel %vm446_vm4, %v7156_v5, 0.0  ;;  %v10238_v44 = vmov 0.0|0.0  }
0x11e1   :  { %v7134_v24 = vpop.xlane.xlu1 %7133  ;;  %7163 = vadd.xlane.f32.xlu1 %v7162_v51  ;;  %10059 = vmatprep.subr.bf16.mxu1 %v10238_v44 }
0x11e2   :  { %v7146_v58 = vmul.f32 0.03125, %v7134_v24  ;;  %v7157_v53 = vmul.f32 %v7151_v36, %v7151_v36 }
0x11e4   :  { %v7152_v60 = vsub.f32 %v7118_v22, %v7146_v58  ;;  %v7165_v32 = vsel %vm446_vm4, %v7157_v53, 0.0 }
0x11e5   :  { %v7137_v42 = vpop.xlane.xlu0 %7136  ;;  %7166 = vadd.xlane.f32.xlu0 %v7165_v32 }
0x11e6   :  { %v7147_v33 = vmul.f32 0.03125, %v7137_v42  ;;  %v7158_v31 = vmul.f32 %v7152_v60, %v7152_v60 }
0x11e8   :  { %v7153_v17 = vsub.f32 %v7119_v14, %v7147_v33  ;;  %v7168_v12 = vsel %vm446_vm4, %v7158_v31, 0.0  ;;  %v7303_v33 = vld [vmem:[%s14605_s24] sm:$0xff]  ;;  %v7304_v31 = vld [vmem:[%s14605_s24 + $0x8] sm:$0xff] }
0x11e9   :  { %7169 = vadd.xlane.f32.xlu1 %v7168_v12  ;;  %v7140_v25 = vpop.xlane.xlu1 %7139  ;;  %v7228_v12 = vld [vmem:[%s14654_s4] sm:$0x3] }
0x11ea   :  { %v7148_v8 = vmul.f32 0.03125, %v7140_v25  ;;  %v7159_v9 = vmul.f32 %v7153_v17, %v7153_v17  ;;  %v10069_v25 = vpack.c.bf16 %v7304_v31, %v7303_v33 }
0x11ec   :  { %v7154_v26 = vsub.f32 %v7120_v48, %v7148_v8  ;;  %v7171_v30 = vsel %vm446_vm4, %v7159_v9, 0.0  ;;  %v7305_v8 = vld [vmem:[%s14605_s24 + $0x10] sm:$0xff]  ;;  %v7306_v9 = vld [vmem:[%s14605_s24 + $0x18] sm:$0xff]  ;;  %s10211_s24 = scalar_lea.vmem %s7395_s29, 32 }
0x11ed   :  { %7172 = vadd.xlane.f32.xlu0 %v7171_v30  ;;  %v7143_v20 = vpop.xlane.xlu0 %7142  ;;  %p10212_p0 = scmp.ne.s32.totalorder %s7395_s29, %s10211_s24  ;;  %p10217_p2 = scmp.lt.s32.totalorder %s10211_s24, %s10211_s24 }
0x11ee   :  { %v7149_v63 = vmul.f32 0.03125, %v7143_v20  ;;  %v7160_v46 = vmul.f32 %v7154_v26, %v7154_v26 }
0x11ef   :  { %p10218_p3 = por %p10217_p2, %p10216_p1 }
0x11f0   :  { %v7155_v62 = vsub.f32 %v7121_v3, %v7149_v63  ;;  %v7174_v13 = vsel %vm446_vm4, %v7160_v46, 0.0  ;;  %v7984_v63 = vld [vmem:[%s14606_s25] ss:$0 sm:$0xff] }
0x11f1   :  { %7175 = vadd.xlane.f32.xlu1 %v7174_v13  ;;  %p10219_p4 = pnand %p10218_p3, %p10212_p0 }
0x11f2   :  { %v7161_v38 = vmul.f32 %v7155_v62, %v7155_v62 }
0x11f4   :  { %v7177_v39 = vsel %vm446_vm4, %v7161_v38, 0.0 }
0x11f5   :  { %7178 = vadd.xlane.f32.xlu0 %v7177_v39 }
0x126e   :  { %v7164_v34 = vpop.xlane.xlu1 %7163 }
0x126f   :  { %v7180_v43 = vmul.f32 0.03125, %v7164_v34 }
0x1271   :  { %v7186_v18 = vadd.f32 1e-05, %v7180_v43 }
0x1272   :  { %v7167_v28 = vpop.xlane.xlu0 %7166 }
0x1273   :  { %10198 = vrsqrt.f32 %v7186_v18  ;;  %v7181_v40 = vmul.f32 0.03125, %v7167_v28 }
0x1275   :  { %v7187_v2 = vadd.f32 1e-05, %v7181_v40 }
0x1276   :  { %v7170_v61 = vpop.xlane.xlu1 %7169 }
0x1277   :  { %10200 = vrsqrt.f32 %v7187_v2  ;;  %v7182_v37 = vmul.f32 0.03125, %v7170_v61 }
0x1279   :  { %v7188_v23 = vadd.f32 1e-05, %v7182_v37 }
0x127a   :  { %v7173_v22 = vpop.xlane.xlu0 %7172 }
0x127b   :  { %10202 = vrsqrt.f32 %v7188_v23  ;;  %v7183_v47 = vmul.f32 0.03125, %v7173_v22 }
0x127d   :  { %v10199_v10 = vpop.eup %10198  ;;  %v7189_v45 = vadd.f32 1e-05, %v7183_v47 }
0x127e   :  { %v7198_v59 = vmul.f32 %v10199_v10, %v7150_v15  ;;  %v7176_v50 = vpop.xlane.xlu1 %7175 }
0x127f   :  { %10204 = vrsqrt.f32 %v7189_v45  ;;  %v7184_v7 = vmul.f32 0.03125, %v7176_v50 }
0x1280   :  { %v7210_v41 = vmul.f32 %v7981_v16, %v7198_v59 }
0x1281   :  { %v10201_v6 = vpop.eup %10200  ;;  %v7190_v4 = vadd.f32 1e-05, %v7184_v7 }
0x1282   :  { %v7199_v14 = vmul.f32 %v10201_v6, %v7151_v36  ;;  %v7179_v52 = vpop.xlane.xlu0 %7178  ;;  %v7222_v55 = vadd.f32 %v7982_v57, %v7210_v41 }
0x1283   :  { %10206 = vrsqrt.f32 %v7190_v4  ;;  %v7185_v49 = vmul.f32 0.03125, %v7179_v52 }
0x1284   :  { %v7211_v1 = vmul.f32 %v7981_v16, %v7199_v14 }
0x1285   :  { %v10203_v19 = vpop.eup %10202  ;;  %v7191_v11 = vadd.f32 1e-05, %v7185_v49 }
0x1286   :  { %v7200_v48 = vmul.f32 %v10203_v19, %v7152_v60  ;;  %v7223_v56 = vadd.f32 %v7982_v57, %v7211_v1 }
0x1287   :  { %10208 = vrsqrt.f32 %v7191_v11 }
0x1288   :  { %v10060_v3 = vpack.c.bf16 %v7223_v56, %v7222_v55  ;;  %v7212_v29 = vmul.f32 %v7981_v16, %v7200_v48 }
0x1289   :  { %v10205_v27 = vpop.eup %10204 }
0x128a   :  { %v7201_v21 = vmul.f32 %v10205_v27, %v7153_v17  ;;  %10061 = vmatpush3.bf16.msra.mxu1 %v10060_v3  ;;  %v7224_v5 = vadd.f32 %v7982_v57, %v7212_v29 }
0x128b   :  { %10062 = vmatprep.subr.bf16.mxu1 %v10238_v44 }
0x128c   :  { %v7213_v15 = vmul.f32 %v7981_v16, %v7201_v21 }
0x128d   :  { %v10207_v54 = vpop.eup %10206 }
0x128e   :  { %v7202_v35 = vmul.f32 %v10207_v54, %v7154_v26  ;;  %v7225_v36 = vadd.f32 %v7982_v57, %v7213_v15  ;;  %v10072_v26 = vpack.c.bf16 %v7306_v9, %v7305_v8 }
0x1290   :  { %v10063_v51 = vpack.c.bf16 %v7225_v36, %v7224_v5  ;;  %v7214_v53 = vmul.f32 %v7981_v16, %v7202_v35 }
0x1291   :  { %v10209_v24 = vpop.eup %10208 }
0x1292   :  { %v7203_v58 = vmul.f32 %v10209_v24, %v7155_v62  ;;  %10064 = vmatpush3.bf16.msra.mxu1 %v10063_v51  ;;  %v7226_v32 = vadd.f32 %v7982_v57, %v7214_v53 }
0x1293   :  { %10065 = vmatprep.subr.bf16.mxu1 %v10238_v44 }
0x1294   :  { %v7215_v60 = vmul.f32 %v7981_v16, %v7203_v58 }
0x1296   :  { %v7227_v42 = vadd.f32 %v7982_v57, %v7215_v60 }
0x1298   :  { %v10066_v17 = vpack.c.bf16 %v7227_v42, %v7226_v32 }
0x129a   :  { %10067 = vmatpush3.bf16.msra.mxu1 %v10066_v17 }
0x129b   :  { %10068 = vmatprep.subr.bf16.mxu1 %v10238_v44 }
0x129d   :  { %9278 = vmatmul.mubr.msk.f32.vlgmr.msra.gmra.mrb[244].mxu1 %vm7229_vm8, %v7228_v12 }
0x129e   :  { %10070 = vmatpush3.bf16.msra.mxu1 %v10069_v25  ;;  %9288 = vmatprep.mubr.msk.f32.mxu1 %vm10239_vm7, %v14651_v0 }
0x129f   :  { %10071 = vmatprep.subr.bf16.mxu1 %v10238_v44 }
0x12a2   :  { %10073 = vmatpush3.bf16.msra.mxu1 %v10072_v26 }
0x1370   :  { %v7299_v30 = vpop.f32.mrb[244].mxu1 }
0x1371   :  { %v9279_v20 = vpop.f32.mrb[245].mxu1  ;;  %9289 = vmatmul.mubr.msk.f32.vlgmr.msra.gmra.mrb[246].mxu1 %vm446_vm4, %v7299_v30 }
0x1444   :  { %v7383_v46 = vpop.f32.mrb[246].mxu1 }
0x1445   :  { %v7384_v62 = vadd.f32 %v7984_v63, %v7383_v46  ;;  %v9290_v13 = vpop.f32.mrb[247].mxu1 }
0x1447   :  { %7387 = vst [vmem:[#allocation2] sm:$0x3] %v7384_v62 }
0x1448   :  { %10222 = shalt.err (!%p10219_p4)
}
0x1449   :  { %s14655_s1 = sld [smem:[#allocation18_spill]] }
0x144f   :  { %s10223_s30 = scalar_lea.hbm %s14655_s1, 32 }
0x1450   :  { %p10224_p5 = scmp.ne.s32.totalorder %s14655_s1, %s10223_s30  ;;  %p10227_p6 = scmp.lt.u32.totalorder %s10223_s30, %s14655_s1 }
0x1452   :  { %p10229_p7 = pnand %p10227_p6, %p10224_p5 }
0x1454   :  { %10232 = shalt.err (!%p10229_p7)
}
0x1455   :  { %7397 = dma.vmem_to_hbm [thread:$0]  %s7395_s29, 32, %s14655_s1, [#allocation3]  }
0x1456   :  { %10233 = dma.done.wait [#allocation3], 32  }
0x1457   :  { %10234 = vsyncadd [#allocation3], 4294967264 }
0x1458   :  { %7401 = vsyncpa [#allocation3], 1 }

</bundles_post_ra>
